<compile_context>
chip_gen: v5e
topology: v5e:2x2
jax: 0.10.0
libtpu: 0.0.40
codegen_flags: <defaults>
</compile_context>

<pallas_src>
import jax
import jax.numpy as jnp
import numpy as np
from jax import lax
from jax.experimental import pallas as pl
from jax.experimental.pallas import tpu as pltpu

NB_LABEL = 34
NOF = 4            # opt.nof (scaled down from 16)
IN_HW = 32         # input spatial size (scaled down from 512)
BATCH = 2

C1, C2, C3 = NOF, NOF * 2, NOF * 4         # 4, 8, 16 real channels
CPAD = 128                                 # lane-dense channel padding
CIN1_PAD = 8                               # padded input channels for conv1
H1, H2, H3 = IN_HW, IN_HW // 2, IN_HW // 4  # 32, 16, 8 (per-layer input spatial size)
HO3 = IN_HW // 8                            # 4 (final feature-map size)
FC1_IN_PAD = HO3 * HO3 * CPAD               # 2048
FC1_OUT_PAD = 256                           # 240 -> 256
FC2_OUT_PAD = 128                           # 120 -> 128
FC3_OUT_PAD = 128                           # 34  -> 128 (sliced in wrapper)


def _vmem_spec():
    return pl.BlockSpec(memory_space=pltpu.MemorySpace.VMEM)


# ----------------------------- in-kernel helpers --------------------------- #

def _conv_relu_pool(in_ref, w_ref, b_ref, out_ref, *, out_pad):
    """Fused 3x3/s1/p1 conv + bias + ReLU + 2x2 maxpool, all data in VMEM.

    in_ref : (N, H+2, W+2, Cin)  spatially zero-padded NHWC activations.
    w_ref  : (9, Cin, 128)       per-tap weight matrices (taps = dy*3+dx).
    b_ref  : (1, 128)            bias (zero beyond the real Cout).
    out_ref: pooled output; rows/cols written at offset `out_pad` (1 when the
             output is the next layer's padded input, 0 for the last layer).
    """
    n, hp2, wp2, cin = in_ref.shape
    h_in, w_in = hp2 - 2, wp2 - 2
    h_out, w_out = h_in // 2, w_in // 2
    chunk = 2                               # pooled output rows per loop step
    rows = n * 2 * chunk * w_in             # conv-output rows handled per step

    def step(i, carry):
        oh0 = chunk * i                     # first pooled output row of this step
        acc = jnp.zeros((rows, CPAD), jnp.float32)
        for dy in range(3):
            for dx in range(3):
                slab = in_ref[:, pl.ds(2 * oh0 + dy, 2 * chunk), pl.ds(dx, w_in), :]
                acc = acc + jnp.dot(slab.reshape(rows, cin),
                                    w_ref[dy * 3 + dx],
                                    preferred_element_type=jnp.float32)
        y = jnp.maximum(acc + b_ref[...], 0.0)
        # rows are ordered (n, conv_row_offset, w); split conv rows into H-pairs.
        y = y.reshape(n, chunk, 2, w_in, CPAD)
        y = jnp.maximum(y[:, :, 0, :, :], y[:, :, 1, :, :])      # pool over H
        cols = [jnp.maximum(y[:, :, 2 * k:2 * k + 1, :],
                            y[:, :, 2 * k + 1:2 * k + 2, :])      # pool over W
                for k in range(w_out)]
        pooled = jnp.concatenate(cols, axis=2)                    # (n, chunk, w_out, 128)
        out_ref[:, pl.ds(out_pad + oh0, chunk), pl.ds(out_pad, w_out), :] = pooled
        return carry

    lax.fori_loop(0, h_out // chunk, step, 0)


def net_kernel(x_ref, w1_ref, b1_ref, w2_ref, b2_ref, w3_ref, b3_ref,
               fw1_ref, fb1_ref, fw2_ref, fb2_ref, fw3_ref, fb3_ref,
               out_ref, m1_ref, m2_ref, m3_ref):
    # Zero the padded scratch maps: their 1-pixel border is the conv zero padding.
    m1_ref[...] = jnp.zeros_like(m1_ref)
    m2_ref[...] = jnp.zeros_like(m2_ref)

    _conv_relu_pool(x_ref, w1_ref, b1_ref, m1_ref, out_pad=1)    # 32x32 -> 16x16
    _conv_relu_pool(m1_ref, w2_ref, b2_ref, m2_ref, out_pad=1)   # 16x16 -> 8x8
    _conv_relu_pool(m2_ref, w3_ref, b3_ref, m3_ref, out_pad=0)   # 8x8   -> 4x4

    # ---- fused MLP: fc1 + ReLU -> fc2 + ReLU -> fc3 (all dims lane padded) ----
    p = m3_ref[...]                                              # (N, 4, 4, 128)
    n = p.shape[0]
    rows = []
    for b in range(n):
        pieces = [p[b:b + 1, i:i + 1, j:j + 1, :]
                  for i in range(HO3) for j in range(HO3)]
        rows.append(jnp.concatenate(pieces, axis=3).reshape(1, FC1_IN_PAD))
    xfc = jnp.concatenate(rows, axis=0)                          # (N, 2048)

    h = jnp.dot(xfc, fw1_ref[...], preferred_element_type=jnp.float32) + fb1_ref[...]
    h = jnp.maximum(h, 0.0)
    h = jnp.dot(h, fw2_ref[...], preferred_element_type=jnp.float32) + fb2_ref[...]
    h = jnp.maximum(h, 0.0)
    out_ref[...] = (jnp.dot(h, fw3_ref[...], preferred_element_type=jnp.float32)
                    + fb3_ref[...])


# ------------------------------ JAX wrapper -------------------------------- #

def pallas_forward(x_pad, pp):
    n = x_pad.shape[0]
    return pl.pallas_call(
        net_kernel,
        out_shape=jax.ShapeDtypeStruct((n, FC3_OUT_PAD), jnp.float32),
        in_specs=[_vmem_spec()] * 13,
        out_specs=_vmem_spec(),
        scratch_shapes=[
            pltpu.VMEM((n, H2 + 2, H2 + 2, CPAD), jnp.float32),  # padded pool1 out
            pltpu.VMEM((n, H3 + 2, H3 + 2, CPAD), jnp.float32),  # padded pool2 out
            pltpu.VMEM((n, HO3, HO3, CPAD), jnp.float32),        # pool3 out
        ],
        compiler_params=pltpu.CompilerParams(vmem_limit_bytes=32 * 1024 * 1024),
    )(x_pad, pp["w1"], pp["b1"], pp["w2"], pp["b2"], pp["w3"], pp["b3"],
      pp["fw1"], pp["fb1"], pp["fw2"], pp["fb2"], pp["fw3"], pp["fb3"])


def prep_input(x_nchw):
    """NCHW -> NHWC, 1-pixel spatial zero-pad, channel pad 1 -> CIN1_PAD."""
    x = jnp.transpose(x_nchw, (0, 2, 3, 1))
    return jnp.pad(x, ((0, 0), (1, 1), (1, 1), (0, CIN1_PAD - x.shape[3])))


@jax.jit
def net_forward(x_nchw, packed):
    logits_pad = pallas_forward(prep_input(x_nchw), packed)
    return logits_pad[:, :NB_LABEL]


# --------------------- parameter packing (host-side, one-time) ------------- #

def pack_params(p):
    def conv_pack(w, b, cin_pad):
        cin, cout = w.shape[2], w.shape[3]
        wp = jnp.zeros((9, cin_pad, CPAD), jnp.float32)
        wp = wp.at[:, :cin, :cout].set(w.reshape(9, cin, cout))
        bp = jnp.zeros((1, CPAD), jnp.float32).at[:, :cout].set(b.reshape(1, cout))
        return wp, bp

    w1, b1 = conv_pack(p["cw1"], p["cb1"], CIN1_PAD)
    w2, b2 = conv_pack(p["cw2"], p["cb2"], CPAD)
    w3, b3 = conv_pack(p["cw3"], p["cb3"], CPAD)

    # fc1: fold the NCHW flatten permutation into the weight and pad.
    # kernel xfc column (i*4+j)*128 + c  must hit  fw1[c*16 + i*4 + j, :].
    s = HO3 * HO3                                    # 16 spatial positions
    fw1 = p["fw1"]                                   # (256, 240), row = c*16 + s
    fw1e = jnp.zeros((s, CPAD, FC1_OUT_PAD), jnp.float32)
    fw1e = fw1e.at[:, :C3, :240].set(
        jnp.transpose(fw1.reshape(C3, s, 240), (1, 0, 2)))
    fw1e = fw1e.reshape(s * CPAD, FC1_OUT_PAD)       # (2048, 256)
    fb1 = jnp.zeros((1, FC1_OUT_PAD), jnp.float32).at[:, :240].set(p["fb1"])
    fw2 = jnp.zeros((FC1_OUT_PAD, FC2_OUT_PAD), jnp.float32).at[:240, :120].set(p["fw2"])
    fb2 = jnp.zeros((1, FC2_OUT_PAD), jnp.float32).at[:, :120].set(p["fb2"])
    fw3 = jnp.zeros((FC2_OUT_PAD, FC3_OUT_PAD), jnp.float32).at[:120, :NB_LABEL].set(p["fw3"])
    fb3 = jnp.zeros((1, FC3_OUT_PAD), jnp.float32).at[:, :NB_LABEL].set(p["fb3"])

    return dict(w1=w1, b1=b1, w2=w2, b2=b2, w3=w3, b3=b3,
                fw1=fw1e, fb1=fb1, fw2=fw2, fb2=fb2, fw3=fw3, fb3=fb3)


# -------------------------- parameters & reference ------------------------- #

def init_params(key):
    ks = jax.random.split(key, 12)
    fc_in = C3 * (IN_HW // 8) * (IN_HW // 8)

    def nrm(k, shape, scale):
        return (scale * jax.random.normal(k, shape)).astype(jnp.float32)

    return {
        "cw1": nrm(ks[0], (3, 3, 1, C1), 0.3),
        "cb1": nrm(ks[1], (1, C1), 0.1),
        "cw2": nrm(ks[2], (3, 3, C1, C2), 0.15),
        "cb2": nrm(ks[3], (1, C2), 0.1),
        "cw3": nrm(ks[4], (3, 3, C2, C3), 0.1),
        "cb3": nrm(ks[5], (1, C3), 0.1),
        "fw1": nrm(ks[6], (fc_in, 240), 0.05),
        "fb1": nrm(ks[7], (1, 240), 0.05),
        "fw2": nrm(ks[8], (240, 120), 0.05),
        "fb2": nrm(ks[9], (1, 120), 0.05),
        "fw3": nrm(ks[10], (120, NB_LABEL), 0.05),
        "fb3": nrm(ks[11], (1, NB_LABEL), 0.05),
    }


def reference_forward(x_nchw, params):
    """Pure-JAX (XLA) reference mirroring the PyTorch forward."""
    x = jnp.transpose(x_nchw, (0, 2, 3, 1))

    def conv_block(x, w_hwio, b):
        y = jax.lax.conv_general_dilated(
            x, w_hwio, window_strides=(1, 1), padding="SAME",
            dimension_numbers=("NHWC", "HWIO", "NHWC"))
        y = jnp.maximum(y + b.reshape(1, 1, 1, -1), 0.0)
        return jax.lax.reduce_window(y, -jnp.inf, jax.lax.max,
                                     (1, 2, 2, 1), (1, 2, 2, 1), "VALID")

    x = conv_block(x, params["cw1"], params["cb1"])
    x = conv_block(x, params["cw2"], params["cb2"])
    x = conv_block(x, params["cw3"], params["cb3"])
    x = jnp.transpose(x, (0, 3, 1, 2)).reshape(x.shape[0], -1)
    x = jnp.maximum(x @ params["fw1"] + params["fb1"], 0.0)
    x = jnp.maximum(x @ params["fw2"] + params["fb2"], 0.0)
    return x @ params["fw3"] + params["fb3"]


if __name__ == "__main__":
    key = jax.random.PRNGKey(0)
    k_x, k_p = jax.random.split(key)
    x = jax.random.normal(k_x, (BATCH, 1, IN_HW, IN_HW), dtype=jnp.float32)
    params = init_params(k_p)
    packed = pack_params(params)

    out = jax.block_until_ready(net_forward(x, packed))
    assert out.shape == (BATCH, NB_LABEL), out.shape

    ref = jax.block_until_ready(reference_forward(x, params))
    np.testing.assert_allclose(np.asarray(out), np.asarray(ref),
                               rtol=2e-4, atol=2e-4)

    print("KERNEL_OK")
</pallas_src>

<mosaic_0001>
module attributes {stable_mosaic.version = 11 : i64} {
  func.func @net_kernel(%arg0: memref<2x34x34x8xf32, #tpu.memory_space<vmem>>, %arg1: memref<9x8x128xf32, #tpu.memory_space<vmem>>, %arg2: memref<1x128xf32, #tpu.memory_space<vmem>>, %arg3: memref<9x128x128xf32, #tpu.memory_space<vmem>>, %arg4: memref<1x128xf32, #tpu.memory_space<vmem>>, %arg5: memref<9x128x128xf32, #tpu.memory_space<vmem>>, %arg6: memref<1x128xf32, #tpu.memory_space<vmem>>, %arg7: memref<2048x256xf32, #tpu.memory_space<vmem>>, %arg8: memref<1x256xf32, #tpu.memory_space<vmem>>, %arg9: memref<256x128xf32, #tpu.memory_space<vmem>>, %arg10: memref<1x128xf32, #tpu.memory_space<vmem>>, %arg11: memref<128x128xf32, #tpu.memory_space<vmem>>, %arg12: memref<1x128xf32, #tpu.memory_space<vmem>>, %arg13: memref<2x128xf32, #tpu.memory_space<vmem>>, %arg14: memref<2x18x18x128xf32, #tpu.memory_space<vmem>>, %arg15: memref<2x10x10x128xf32, #tpu.memory_space<vmem>>, %arg16: memref<2x4x4x128xf32, #tpu.memory_space<vmem>>) attributes {dimension_semantics = [], scalar_prefetch = 0 : i64, scratch_operands = 3 : i64, tpu.core_type = #tpu.core_type<tc>} {
    %cst = arith.constant 0.000000e+00 : f32
    %0 = vector.broadcast %cst : f32 to vector<2x18x18x128xf32>
    %c0 = arith.constant 0 : index
    %c0_0 = arith.constant 0 : index
    %c0_1 = arith.constant 0 : index
    %c0_2 = arith.constant 0 : index
    %1 = vector.load %arg14[%c0, %c0_0, %c0_1, %c0_2] : memref<2x18x18x128xf32, #tpu.memory_space<vmem>>, vector<2x18x18x128xf32>
    tpu.vector_store %arg14[%c0, %c0_0, %c0_1, %c0_2], %0 {strides = array<i32>} : memref<2x18x18x128xf32, #tpu.memory_space<vmem>>, vector<2x18x18x128xf32>,
    %cst_3 = arith.constant 0.000000e+00 : f32
    %2 = vector.broadcast %cst_3 : f32 to vector<2x10x10x128xf32>
    %c0_4 = arith.constant 0 : index
    %c0_5 = arith.constant 0 : index
    %c0_6 = arith.constant 0 : index
    %c0_7 = arith.constant 0 : index
    %3 = vector.load %arg15[%c0_4, %c0_5, %c0_6, %c0_7] : memref<2x10x10x128xf32, #tpu.memory_space<vmem>>, vector<2x10x10x128xf32>
    tpu.vector_store %arg15[%c0_4, %c0_5, %c0_6, %c0_7], %2 {strides = array<i32>} : memref<2x10x10x128xf32, #tpu.memory_space<vmem>>, vector<2x10x10x128xf32>,
    %c0_i32 = arith.constant 0 : i32
    %c8_i32 = arith.constant 8 : i32
    %4 = arith.addi %c0_i32, %c8_i32 : i32
    %c1_i32 = arith.constant 1 : i32
    scf.for %arg17 = %c0_i32 to %4 step %c1_i32  : i32 {
      %c2_i32_38 = arith.constant 2 : i32
      %65 = arith.muli %c2_i32_38, %arg17 : i32
      %cst_39 = arith.constant 0.000000e+00 : f32
      %66 = vector.broadcast %cst_39 : f32 to vector<256x128xf32>
      %c2_i32_40 = arith.constant 2 : i32
      %67 = arith.muli %c2_i32_40, %65 : i32
      %c0_i32_41 = arith.constant 0 : i32
      %68 = arith.addi %67, %c0_i32_41 : i32
      %c0_42 = arith.constant 0 : index
      %69 = arith.index_cast %68 : i32 to index
      %c0_43 = arith.constant 0 : index
      %c0_44 = arith.constant 0 : index
      %70 = vector.load %arg0[%c0_42, %69, %c0_43, %c0_44] : memref<2x34x34x8xf32, #tpu.memory_space<vmem>>, vector<2x4x32x8xf32>
      %71 = vector.shape_cast %70 : vector<2x4x32x8xf32> to vector<256x8xf32>
      %c0_45 = arith.constant 0 : index
      %c0_46 = arith.constant 0 : index
      %c0_47 = arith.constant 0 : index
      %72 = vector.load %arg1[%c0_45, %c0_46, %c0_47] : memref<9x8x128xf32, #tpu.memory_space<vmem>>, vector<1x8x128xf32>
      %73 = vector.shape_cast %72 : vector<1x8x128xf32> to vector<8x128xf32>
      %cst_48 = arith.constant dense<0.000000e+00> : vector<256x128xf32>
      %74 = tpu.matmul %71, %73, %cst_48 {dimension_numbers = #tpu.dot_dimension_numbers<[1], [0], [0], [1], [0, 0, 1, 1], [], []>} : vector<256x8xf32>, vector<8x128xf32>, vector<256x128xf32> -> vector<256x128xf32>
      %75 = arith.addf %66, %74 : vector<256x128xf32>
      %c2_i32_49 = arith.constant 2 : i32
      %76 = arith.muli %c2_i32_49, %65 : i32
      %c0_i32_50 = arith.constant 0 : i32
      %77 = arith.addi %76, %c0_i32_50 : i32
      %c0_51 = arith.constant 0 : index
      %78 = arith.index_cast %77 : i32 to index
      %c1 = arith.constant 1 : index
      %c0_52 = arith.constant 0 : index
      %79 = vector.load %arg0[%c0_51, %78, %c1, %c0_52] : memref<2x34x34x8xf32, #tpu.memory_space<vmem>>, vector<2x4x32x8xf32>
      %80 = vector.shape_cast %79 : vector<2x4x32x8xf32> to vector<256x8xf32>
      %c1_53 = arith.constant 1 : index
      %c0_54 = arith.constant 0 : index
      %c0_55 = arith.constant 0 : index
      %81 = vector.load %arg1[%c1_53, %c0_54, %c0_55] : memref<9x8x128xf32, #tpu.memory_space<vmem>>, vector<1x8x128xf32>
      %82 = vector.shape_cast %81 : vector<1x8x128xf32> to vector<8x128xf32>
      %cst_56 = arith.constant dense<0.000000e+00> : vector<256x128xf32>
      %83 = tpu.matmul %80, %82, %cst_56 {dimension_numbers = #tpu.dot_dimension_numbers<[1], [0], [0], [1], [0, 0, 1, 1], [], []>} : vector<256x8xf32>, vector<8x128xf32>, vector<256x128xf32> -> vector<256x128xf32>
      %84 = arith.addf %75, %83 : vector<256x128xf32>
      %c2_i32_57 = arith.constant 2 : i32
      %85 = arith.muli %c2_i32_57, %65 : i32
      %c0_i32_58 = arith.constant 0 : i32
      %86 = arith.addi %85, %c0_i32_58 : i32
      %c0_59 = arith.constant 0 : index
      %87 = arith.index_cast %86 : i32 to index
      %c2 = arith.constant 2 : index
      %c0_60 = arith.constant 0 : index
      %88 = vector.load %arg0[%c0_59, %87, %c2, %c0_60] : memref<2x34x34x8xf32, #tpu.memory_space<vmem>>, vector<2x4x32x8xf32>
      %89 = vector.shape_cast %88 : vector<2x4x32x8xf32> to vector<256x8xf32>
      %c2_61 = arith.constant 2 : index
      %c0_62 = arith.constant 0 : index
      %c0_63 = arith.constant 0 : index
      %90 = vector.load %arg1[%c2_61, %c0_62, %c0_63] : memref<9x8x128xf32, #tpu.memory_space<vmem>>, vector<1x8x128xf32>
      %91 = vector.shape_cast %90 : vector<1x8x128xf32> to vector<8x128xf32>
      %cst_64 = arith.constant dense<0.000000e+00> : vector<256x128xf32>
      %92 = tpu.matmul %89, %91, %cst_64 {dimension_numbers = #tpu.dot_dimension_numbers<[1], [0], [0], [1], [0, 0, 1, 1], [], []>} : vector<256x8xf32>, vector<8x128xf32>, vector<256x128xf32> -> vector<256x128xf32>
      %93 = arith.addf %84, %92 : vector<256x128xf32>
      %c2_i32_65 = arith.constant 2 : i32
      %94 = arith.muli %c2_i32_65, %65 : i32
      %c1_i32_66 = arith.constant 1 : i32
      %95 = arith.addi %94, %c1_i32_66 : i32
      %c0_67 = arith.constant 0 : index
      %96 = arith.index_cast %95 : i32 to index
      %c0_68 = arith.constant 0 : index
      %c0_69 = arith.constant 0 : index
      %97 = vector.load %arg0[%c0_67, %96, %c0_68, %c0_69] : memref<2x34x34x8xf32, #tpu.memory_space<vmem>>, vector<2x4x32x8xf32>
      %98 = vector.shape_cast %97 : vector<2x4x32x8xf32> to vector<256x8xf32>
      %c3 = arith.constant 3 : index
      %c0_70 = arith.constant 0 : index
      %c0_71 = arith.constant 0 : index
      %99 = vector.load %arg1[%c3, %c0_70, %c0_71] : memref<9x8x128xf32, #tpu.memory_space<vmem>>, vector<1x8x128xf32>
      %100 = vector.shape_cast %99 : vector<1x8x128xf32> to vector<8x128xf32>
      %cst_72 = arith.constant dense<0.000000e+00> : vector<256x128xf32>
      %101 = tpu.matmul %98, %100, %cst_72 {dimension_numbers = #tpu.dot_dimension_numbers<[1], [0], [0], [1], [0, 0, 1, 1], [], []>} : vector<256x8xf32>, vector<8x128xf32>, vector<256x128xf32> -> vector<256x128xf32>
      %102 = arith.addf %93, %101 : vector<256x128xf32>
      %c2_i32_73 = arith.constant 2 : i32
      %103 = arith.muli %c2_i32_73, %65 : i32
      %c1_i32_74 = arith.constant 1 : i32
      %104 = arith.addi %103, %c1_i32_74 : i32
      %c0_75 = arith.constant 0 : index
      %105 = arith.index_cast %104 : i32 to index
      %c1_76 = arith.constant 1 : index
      %c0_77 = arith.constant 0 : index
      %106 = vector.load %arg0[%c0_75, %105, %c1_76, %c0_77] : memref<2x34x34x8xf32, #tpu.memory_space<vmem>>, vector<2x4x32x8xf32>
      %107 = vector.shape_cast %106 : vector<2x4x32x8xf32> to vector<256x8xf32>
      %c4 = arith.constant 4 : index
      %c0_78 = arith.constant 0 : index
      %c0_79 = arith.constant 0 : index
      %108 = vector.load %arg1[%c4, %c0_78, %c0_79] : memref<9x8x128xf32, #tpu.memory_space<vmem>>, vector<1x8x128xf32>
      %109 = vector.shape_cast %108 : vector<1x8x128xf32> to vector<8x128xf32>
      %cst_80 = arith.constant dense<0.000000e+00> : vector<256x128xf32>
      %110 = tpu.matmul %107, %109, %cst_80 {dimension_numbers = #tpu.dot_dimension_numbers<[1], [0], [0], [1], [0, 0, 1, 1], [], []>} : vector<256x8xf32>, vector<8x128xf32>, vector<256x128xf32> -> vector<256x128xf32>
      %111 = arith.addf %102, %110 : vector<256x128xf32>
      %c2_i32_81 = arith.constant 2 : i32
      %112 = arith.muli %c2_i32_81, %65 : i32
      %c1_i32_82 = arith.constant 1 : i32
      %113 = arith.addi %112, %c1_i32_82 : i32
      %c0_83 = arith.constant 0 : index
      %114 = arith.index_cast %113 : i32 to index
      %c2_84 = arith.constant 2 : index
      %c0_85 = arith.constant 0 : index
      %115 = vector.load %arg0[%c0_83, %114, %c2_84, %c0_85] : memref<2x34x34x8xf32, #tpu.memory_space<vmem>>, vector<2x4x32x8xf32>
      %116 = vector.shape_cast %115 : vector<2x4x32x8xf32> to vector<256x8xf32>
      %c5 = arith.constant 5 : index
      %c0_86 = arith.constant 0 : index
      %c0_87 = arith.constant 0 : index
      %117 = vector.load %arg1[%c5, %c0_86, %c0_87] : memref<9x8x128xf32, #tpu.memory_space<vmem>>, vector<1x8x128xf32>
      %118 = vector.shape_cast %117 : vector<1x8x128xf32> to vector<8x128xf32>
      %cst_88 = arith.constant dense<0.000000e+00> : vector<256x128xf32>
      %119 = tpu.matmul %116, %118, %cst_88 {dimension_numbers = #tpu.dot_dimension_numbers<[1], [0], [0], [1], [0, 0, 1, 1], [], []>} : vector<256x8xf32>, vector<8x128xf32>, vector<256x128xf32> -> vector<256x128xf32>
      %120 = arith.addf %111, %119 : vector<256x128xf32>
      %c2_i32_89 = arith.constant 2 : i32
      %121 = arith.muli %c2_i32_89, %65 : i32
      %c2_i32_90 = arith.constant 2 : i32
      %122 = arith.addi %121, %c2_i32_90 : i32
      %c0_91 = arith.constant 0 : index
      %123 = arith.index_cast %122 : i32 to index
      %c0_92 = arith.constant 0 : index
      %c0_93 = arith.constant 0 : index
      %124 = vector.load %arg0[%c0_91, %123, %c0_92, %c0_93] : memref<2x34x34x8xf32, #tpu.memory_space<vmem>>, vector<2x4x32x8xf32>
      %125 = vector.shape_cast %124 : vector<2x4x32x8xf32> to vector<256x8xf32>
      %c6 = arith.constant 6 : index
      %c0_94 = arith.constant 0 : index
      %c0_95 = arith.constant 0 : index
      %126 = vector.load %arg1[%c6, %c0_94, %c0_95] : memref<9x8x128xf32, #tpu.memory_space<vmem>>, vector<1x8x128xf32>
      %127 = vector.shape_cast %126 : vector<1x8x128xf32> to vector<8x128xf32>
      %cst_96 = arith.constant dense<0.000000e+00> : vector<256x128xf32>
      %128 = tpu.matmul %125, %127, %cst_96 {dimension_numbers = #tpu.dot_dimension_numbers<[1], [0], [0], [1], [0, 0, 1, 1], [], []>} : vector<256x8xf32>, vector<8x128xf32>, vector<256x128xf32> -> vector<256x128xf32>
      %129 = arith.addf %120, %128 : vector<256x128xf32>
      %c2_i32_97 = arith.constant 2 : i32
      %130 = arith.muli %c2_i32_97, %65 : i32
      %c2_i32_98 = arith.constant 2 : i32
      %131 = arith.addi %130, %c2_i32_98 : i32
      %c0_99 = arith.constant 0 : index
      %132 = arith.index_cast %131 : i32 to index
      %c1_100 = arith.constant 1 : index
      %c0_101 = arith.constant 0 : index
      %133 = vector.load %arg0[%c0_99, %132, %c1_100, %c0_101] : memref<2x34x34x8xf32, #tpu.memory_space<vmem>>, vector<2x4x32x8xf32>
      %134 = vector.shape_cast %133 : vector<2x4x32x8xf32> to vector<256x8xf32>
      %c7 = arith.constant 7 : index
      %c0_102 = arith.constant 0 : index
      %c0_103 = arith.constant 0 : index
      %135 = vector.load %arg1[%c7, %c0_102, %c0_103] : memref<9x8x128xf32, #tpu.memory_space<vmem>>, vector<1x8x128xf32>
      %136 = vector.shape_cast %135 : vector<1x8x128xf32> to vector<8x128xf32>
      %cst_104 = arith.constant dense<0.000000e+00> : vector<256x128xf32>
      %137 = tpu.matmul %134, %136, %cst_104 {dimension_numbers = #tpu.dot_dimension_numbers<[1], [0], [0], [1], [0, 0, 1, 1], [], []>} : vector<256x8xf32>, vector<8x128xf32>, vector<256x128xf32> -> vector<256x128xf32>
      %138 = arith.addf %129, %137 : vector<256x128xf32>
      %c2_i32_105 = arith.constant 2 : i32
      %139 = arith.muli %c2_i32_105, %65 : i32
      %c2_i32_106 = arith.constant 2 : i32
      %140 = arith.addi %139, %c2_i32_106 : i32
      %c0_107 = arith.constant 0 : index
      %141 = arith.index_cast %140 : i32 to index
      %c2_108 = arith.constant 2 : index
      %c0_109 = arith.constant 0 : index
      %142 = vector.load %arg0[%c0_107, %141, %c2_108, %c0_109] : memref<2x34x34x8xf32, #tpu.memory_space<vmem>>, vector<2x4x32x8xf32>
      %143 = vector.shape_cast %142 : vector<2x4x32x8xf32> to vector<256x8xf32>
      %c8 = arith.constant 8 : index
      %c0_110 = arith.constant 0 : index
      %c0_111 = arith.constant 0 : index
      %144 = vector.load %arg1[%c8, %c0_110, %c0_111] : memref<9x8x128xf32, #tpu.memory_space<vmem>>, vector<1x8x128xf32>
      %145 = vector.shape_cast %144 : vector<1x8x128xf32> to vector<8x128xf32>
      %cst_112 = arith.constant dense<0.000000e+00> : vector<256x128xf32>
      %146 = tpu.matmul %143, %145, %cst_112 {dimension_numbers = #tpu.dot_dimension_numbers<[1], [0], [0], [1], [0, 0, 1, 1], [], []>} : vector<256x8xf32>, vector<8x128xf32>, vector<256x128xf32> -> vector<256x128xf32>
      %147 = arith.addf %138, %146 : vector<256x128xf32>
      %c0_113 = arith.constant 0 : index
      %c0_114 = arith.constant 0 : index
      %148 = vector.load %arg2[%c0_113, %c0_114] : memref<1x128xf32, #tpu.memory_space<vmem>>, vector<1x128xf32>
      %149 = vector.broadcast %148 : vector<1x128xf32> to vector<256x128xf32>
      %150 = arith.addf %147, %149 : vector<256x128xf32>
      %cst_115 = arith.constant 0.000000e+00 : f32
      %151 = vector.broadcast %cst_115 : f32 to vector<256x128xf32>
      %152 = arith.maximumf %150, %151 : vector<256x128xf32>
      %153 = vector.shape_cast %152 : vector<256x128xf32> to vector<2x2x2x32x128xf32>
      %154 = vector.extract_strided_slice %153 {offsets = [0, 0, 0, 0, 0], sizes = [2, 2, 1, 32, 128], strides = [1, 1, 1, 1, 1]} : vector<2x2x2x32x128xf32> to vector<2x2x1x32x128xf32>
      %155 = vector.shape_cast %154 : vector<2x2x1x32x128xf32> to vector<2x2x32x128xf32>
      %156 = vector.extract_strided_slice %153 {offsets = [0, 0, 1, 0, 0], sizes = [2, 2, 1, 32, 128], strides = [1, 1, 1, 1, 1]} : vector<2x2x2x32x128xf32> to vector<2x2x1x32x128xf32>
      %157 = vector.shape_cast %156 : vector<2x2x1x32x128xf32> to vector<2x2x32x128xf32>
      %158 = arith.maximumf %155, %157 : vector<2x2x32x128xf32>
      %159 = vector.extract_strided_slice %158 {offsets = [0, 0, 0, 0], sizes = [2, 2, 1, 128], strides = [1, 1, 1, 1]} : vector<2x2x32x128xf32> to vector<2x2x1x128xf32>
      %160 = vector.extract_strided_slice %158 {offsets = [0, 0, 1, 0], sizes = [2, 2, 1, 128], strides = [1, 1, 1, 1]} : vector<2x2x32x128xf32> to vector<2x2x1x128xf32>
      %161 = arith.maximumf %159, %160 : vector<2x2x1x128xf32>
      %162 = vector.extract_strided_slice %158 {offsets = [0, 0, 2, 0], sizes = [2, 2, 1, 128], strides = [1, 1, 1, 1]} : vector<2x2x32x128xf32> to vector<2x2x1x128xf32>
      %163 = vector.extract_strided_slice %158 {offsets = [0, 0, 3, 0], sizes = [2, 2, 1, 128], strides = [1, 1, 1, 1]} : vector<2x2x32x128xf32> to vector<2x2x1x128xf32>
      %164 = arith.maximumf %162, %163 : vector<2x2x1x128xf32>
      %165 = vector.extract_strided_slice %158 {offsets = [0, 0, 4, 0], sizes = [2, 2, 1, 128], strides = [1, 1, 1, 1]} : vector<2x2x32x128xf32> to vector<2x2x1x128xf32>
      %166 = vector.extract_strided_slice %158 {offsets = [0, 0, 5, 0], sizes = [2, 2, 1, 128], strides = [1, 1, 1, 1]} : vector<2x2x32x128xf32> to vector<2x2x1x128xf32>
      %167 = arith.maximumf %165, %166 : vector<2x2x1x128xf32>
      %168 = vector.extract_strided_slice %158 {offsets = [0, 0, 6, 0], sizes = [2, 2, 1, 128], strides = [1, 1, 1, 1]} : vector<2x2x32x128xf32> to vector<2x2x1x128xf32>
      %169 = vector.extract_strided_slice %158 {offsets = [0, 0, 7, 0], sizes = [2, 2, 1, 128], strides = [1, 1, 1, 1]} : vector<2x2x32x128xf32> to vector<2x2x1x128xf32>
      %170 = arith.maximumf %168, %169 : vector<2x2x1x128xf32>
      %171 = vector.extract_strided_slice %158 {offsets = [0, 0, 8, 0], sizes = [2, 2, 1, 128], strides = [1, 1, 1, 1]} : vector<2x2x32x128xf32> to vector<2x2x1x128xf32>
      %172 = vector.extract_strided_slice %158 {offsets = [0, 0, 9, 0], sizes = [2, 2, 1, 128], strides = [1, 1, 1, 1]} : vector<2x2x32x128xf32> to vector<2x2x1x128xf32>
      %173 = arith.maximumf %171, %172 : vector<2x2x1x128xf32>
      %174 = vector.extract_strided_slice %158 {offsets = [0, 0, 10, 0], sizes = [2, 2, 1, 128], strides = [1, 1, 1, 1]} : vector<2x2x32x128xf32> to vector<2x2x1x128xf32>
      %175 = vector.extract_strided_slice %158 {offsets = [0, 0, 11, 0], sizes = [2, 2, 1, 128], strides = [1, 1, 1, 1]} : vector<2x2x32x128xf32> to vector<2x2x1x128xf32>
      %176 = arith.maximumf %174, %175 : vector<2x2x1x128xf32>
      %177 = vector.extract_strided_slice %158 {offsets = [0, 0, 12, 0], sizes = [2, 2, 1, 128], strides = [1, 1, 1, 1]} : vector<2x2x32x128xf32> to vector<2x2x1x128xf32>
      %178 = vector.extract_strided_slice %158 {offsets = [0, 0, 13, 0], sizes = [2, 2, 1, 128], strides = [1, 1, 1, 1]} : vector<2x2x32x128xf32> to vector<2x2x1x128xf32>
      %179 = arith.maximumf %177, %178 : vector<2x2x1x128xf32>
      %180 = vector.extract_strided_slice %158 {offsets = [0, 0, 14, 0], sizes = [2, 2, 1, 128], strides = [1, 1, 1, 1]} : vector<2x2x32x128xf32> to vector<2x2x1x128xf32>
      %181 = vector.extract_strided_slice %158 {offsets = [0, 0, 15, 0], sizes = [2, 2, 1, 128], strides = [1, 1, 1, 1]} : vector<2x2x32x128xf32> to vector<2x2x1x128xf32>
      %182 = arith.maximumf %180, %181 : vector<2x2x1x128xf32>
      %183 = vector.extract_strided_slice %158 {offsets = [0, 0, 16, 0], sizes = [2, 2, 1, 128], strides = [1, 1, 1, 1]} : vector<2x2x32x128xf32> to vector<2x2x1x128xf32>
      %184 = vector.extract_strided_slice %158 {offsets = [0, 0, 17, 0], sizes = [2, 2, 1, 128], strides = [1, 1, 1, 1]} : vector<2x2x32x128xf32> to vector<2x2x1x128xf32>
      %185 = arith.maximumf %183, %184 : vector<2x2x1x128xf32>
      %186 = vector.extract_strided_slice %158 {offsets = [0, 0, 18, 0], sizes = [2, 2, 1, 128], strides = [1, 1, 1, 1]} : vector<2x2x32x128xf32> to vector<2x2x1x128xf32>
      %187 = vector.extract_strided_slice %158 {offsets = [0, 0, 19, 0], sizes = [2, 2, 1, 128], strides = [1, 1, 1, 1]} : vector<2x2x32x128xf32> to vector<2x2x1x128xf32>
      %188 = arith.maximumf %186, %187 : vector<2x2x1x128xf32>
      %189 = vector.extract_strided_slice %158 {offsets = [0, 0, 20, 0], sizes = [2, 2, 1, 128], strides = [1, 1, 1, 1]} : vector<2x2x32x128xf32> to vector<2x2x1x128xf32>
      %190 = vector.extract_strided_slice %158 {offsets = [0, 0, 21, 0], sizes = [2, 2, 1, 128], strides = [1, 1, 1, 1]} : vector<2x2x32x128xf32> to vector<2x2x1x128xf32>
      %191 = arith.maximumf %189, %190 : vector<2x2x1x128xf32>
      %192 = vector.extract_strided_slice %158 {offsets = [0, 0, 22, 0], sizes = [2, 2, 1, 128], strides = [1, 1, 1, 1]} : vector<2x2x32x128xf32> to vector<2x2x1x128xf32>
      %193 = vector.extract_strided_slice %158 {offsets = [0, 0, 23, 0], sizes = [2, 2, 1, 128], strides = [1, 1, 1, 1]} : vector<2x2x32x128xf32> to vector<2x2x1x128xf32>
      %194 = arith.maximumf %192, %193 : vector<2x2x1x128xf32>
      %195 = vector.extract_strided_slice %158 {offsets = [0, 0, 24, 0], sizes = [2, 2, 1, 128], strides = [1, 1, 1, 1]} : vector<2x2x32x128xf32> to vector<2x2x1x128xf32>
      %196 = vector.extract_strided_slice %158 {offsets = [0, 0, 25, 0], sizes = [2, 2, 1, 128], strides = [1, 1, 1, 1]} : vector<2x2x32x128xf32> to vector<2x2x1x128xf32>
      %197 = arith.maximumf %195, %196 : vector<2x2x1x128xf32>
      %198 = vector.extract_strided_slice %158 {offsets = [0, 0, 26, 0], sizes = [2, 2, 1, 128], strides = [1, 1, 1, 1]} : vector<2x2x32x128xf32> to vector<2x2x1x128xf32>
      %199 = vector.extract_strided_slice %158 {offsets = [0, 0, 27, 0], sizes = [2, 2, 1, 128], strides = [1, 1, 1, 1]} : vector<2x2x32x128xf32> to vector<2x2x1x128xf32>
      %200 = arith.maximumf %198, %199 : vector<2x2x1x128xf32>
      %201 = vector.extract_strided_slice %158 {offsets = [0, 0, 28, 0], sizes = [2, 2, 1, 128], strides = [1, 1, 1, 1]} : vector<2x2x32x128xf32> to vector<2x2x1x128xf32>
      %202 = vector.extract_strided_slice %158 {offsets = [0, 0, 29, 0], sizes = [2, 2, 1, 128], strides = [1, 1, 1, 1]} : vector<2x2x32x128xf32> to vector<2x2x1x128xf32>
      %203 = arith.maximumf %201, %202 : vector<2x2x1x128xf32>
      %204 = vector.extract_strided_slice %158 {offsets = [0, 0, 30, 0], sizes = [2, 2, 1, 128], strides = [1, 1, 1, 1]} : vector<2x2x32x128xf32> to vector<2x2x1x128xf32>
      %205 = vector.extract_strided_slice %158 {offsets = [0, 0, 31, 0], sizes = [2, 2, 1, 128], strides = [1, 1, 1, 1]} : vector<2x2x32x128xf32> to vector<2x2x1x128xf32>
      %206 = arith.maximumf %204, %205 : vector<2x2x1x128xf32>
      %207 = tpu.concatenate %161, %164, %167, %170, %173, %176, %179, %182, %185, %188, %191, %194, %197, %200, %203, %206 in 2 : vector<2x2x1x128xf32>, vector<2x2x1x128xf32>, vector<2x2x1x128xf32>, vector<2x2x1x128xf32>, vector<2x2x1x128xf32>, vector<2x2x1x128xf32>, vector<2x2x1x128xf32>, vector<2x2x1x128xf32>, vector<2x2x1x128xf32>, vector<2x2x1x128xf32>, vector<2x2x1x128xf32>, vector<2x2x1x128xf32>, vector<2x2x1x128xf32>, vector<2x2x1x128xf32>, vector<2x2x1x128xf32>, vector<2x2x1x128xf32> -> vector<2x2x16x128xf32>
      %c1_i32_116 = arith.constant 1 : i32
      %208 = arith.addi %c1_i32_116, %65 : i32
      %c0_117 = arith.constant 0 : index
      %209 = arith.index_cast %208 : i32 to index
      %c1_118 = arith.constant 1 : index
      %c0_119 = arith.constant 0 : index
      %210 = vector.load %arg14[%c0_117, %209, %c1_118, %c0_119] : memref<2x18x18x128xf32, #tpu.memory_space<vmem>>, vector<2x2x16x128xf32>
      tpu.vector_store %arg14[%c0_117, %209, %c1_118, %c0_119], %207 {strides = array<i32>} : memref<2x18x18x128xf32, #tpu.memory_space<vmem>>, vector<2x2x16x128xf32>,
    }
    %c8_i32_8 = arith.constant 8 : i32
    %c0_i32_9 = arith.constant 0 : i32
    %c4_i32 = arith.constant 4 : i32
    %5 = arith.addi %c0_i32_9, %c4_i32 : i32
    %c1_i32_10 = arith.constant 1 : i32
    scf.for %arg17 = %c0_i32_9 to %5 step %c1_i32_10  : i32 {
      %c2_i32_38 = arith.constant 2 : i32
      %65 = arith.muli %c2_i32_38, %arg17 : i32
      %cst_39 = arith.constant 0.000000e+00 : f32
      %66 = vector.broadcast %cst_39 : f32 to vector<128x128xf32>
      %c2_i32_40 = arith.constant 2 : i32
      %67 = arith.muli %c2_i32_40, %65 : i32
      %c0_i32_41 = arith.constant 0 : i32
      %68 = arith.addi %67, %c0_i32_41 : i32
      %c0_42 = arith.constant 0 : index
      %69 = arith.index_cast %68 : i32 to index
      %c0_43 = arith.constant 0 : index
      %c0_44 = arith.constant 0 : index
      %70 = vector.load %arg14[%c0_42, %69, %c0_43, %c0_44] : memref<2x18x18x128xf32, #tpu.memory_space<vmem>>, vector<2x4x16x128xf32>
      %71 = vector.shape_cast %70 : vector<2x4x16x128xf32> to vector<128x128xf32>
      %c0_45 = arith.constant 0 : index
      %c0_46 = arith.constant 0 : index
      %c0_47 = arith.constant 0 : index
      %72 = vector.load %arg3[%c0_45, %c0_46, %c0_47] : memref<9x128x128xf32, #tpu.memory_space<vmem>>, vector<1x128x128xf32>
      %73 = vector.shape_cast %72 : vector<1x128x128xf32> to vector<128x128xf32>
      %cst_48 = arith.constant dense<0.000000e+00> : vector<128x128xf32>
      %74 = tpu.matmul %71, %73, %cst_48 {dimension_numbers = #tpu.dot_dimension_numbers<[1], [0], [0], [1], [0, 0, 1, 1], [], []>} : vector<128x128xf32>, vector<128x128xf32>, vector<128x128xf32> -> vector<128x128xf32>
      %75 = arith.addf %66, %74 : vector<128x128xf32>
      %c2_i32_49 = arith.constant 2 : i32
      %76 = arith.muli %c2_i32_49, %65 : i32
      %c0_i32_50 = arith.constant 0 : i32
      %77 = arith.addi %76, %c0_i32_50 : i32
      %c0_51 = arith.constant 0 : index
      %78 = arith.index_cast %77 : i32 to index
      %c1 = arith.constant 1 : index
      %c0_52 = arith.constant 0 : index
      %79 = vector.load %arg14[%c0_51, %78, %c1, %c0_52] : memref<2x18x18x128xf32, #tpu.memory_space<vmem>>, vector<2x4x16x128xf32>
      %80 = vector.shape_cast %79 : vector<2x4x16x128xf32> to vector<128x128xf32>
      %c1_53 = arith.constant 1 : index
      %c0_54 = arith.constant 0 : index
      %c0_55 = arith.constant 0 : index
      %81 = vector.load %arg3[%c1_53, %c0_54, %c0_55] : memref<9x128x128xf32, #tpu.memory_space<vmem>>, vector<1x128x128xf32>
      %82 = vector.shape_cast %81 : vector<1x128x128xf32> to vector<128x128xf32>
      %cst_56 = arith.constant dense<0.000000e+00> : vector<128x128xf32>
      %83 = tpu.matmul %80, %82, %cst_56 {dimension_numbers = #tpu.dot_dimension_numbers<[1], [0], [0], [1], [0, 0, 1, 1], [], []>} : vector<128x128xf32>, vector<128x128xf32>, vector<128x128xf32> -> vector<128x128xf32>
      %84 = arith.addf %75, %83 : vector<128x128xf32>
      %c2_i32_57 = arith.constant 2 : i32
      %85 = arith.muli %c2_i32_57, %65 : i32
      %c0_i32_58 = arith.constant 0 : i32
      %86 = arith.addi %85, %c0_i32_58 : i32
      %c0_59 = arith.constant 0 : index
      %87 = arith.index_cast %86 : i32 to index
      %c2 = arith.constant 2 : index
      %c0_60 = arith.constant 0 : index
      %88 = vector.load %arg14[%c0_59, %87, %c2, %c0_60] : memref<2x18x18x128xf32, #tpu.memory_space<vmem>>, vector<2x4x16x128xf32>
      %89 = vector.shape_cast %88 : vector<2x4x16x128xf32> to vector<128x128xf32>
      %c2_61 = arith.constant 2 : index
      %c0_62 = arith.constant 0 : index
      %c0_63 = arith.constant 0 : index
      %90 = vector.load %arg3[%c2_61, %c0_62, %c0_63] : memref<9x128x128xf32, #tpu.memory_space<vmem>>, vector<1x128x128xf32>
      %91 = vector.shape_cast %90 : vector<1x128x128xf32> to vector<128x128xf32>
      %cst_64 = arith.constant dense<0.000000e+00> : vector<128x128xf32>
      %92 = tpu.matmul %89, %91, %cst_64 {dimension_numbers = #tpu.dot_dimension_numbers<[1], [0], [0], [1], [0, 0, 1, 1], [], []>} : vector<128x128xf32>, vector<128x128xf32>, vector<128x128xf32> -> vector<128x128xf32>
      %93 = arith.addf %84, %92 : vector<128x128xf32>
      %c2_i32_65 = arith.constant 2 : i32
      %94 = arith.muli %c2_i32_65, %65 : i32
      %c1_i32_66 = arith.constant 1 : i32
      %95 = arith.addi %94, %c1_i32_66 : i32
      %c0_67 = arith.constant 0 : index
      %96 = arith.index_cast %95 : i32 to index
      %c0_68 = arith.constant 0 : index
      %c0_69 = arith.constant 0 : index
      %97 = vector.load %arg14[%c0_67, %96, %c0_68, %c0_69] : memref<2x18x18x128xf32, #tpu.memory_space<vmem>>, vector<2x4x16x128xf32>
      %98 = vector.shape_cast %97 : vector<2x4x16x128xf32> to vector<128x128xf32>
      %c3 = arith.constant 3 : index
      %c0_70 = arith.constant 0 : index
      %c0_71 = arith.constant 0 : index
      %99 = vector.load %arg3[%c3, %c0_70, %c0_71] : memref<9x128x128xf32, #tpu.memory_space<vmem>>, vector<1x128x128xf32>
      %100 = vector.shape_cast %99 : vector<1x128x128xf32> to vector<128x128xf32>
      %cst_72 = arith.constant dense<0.000000e+00> : vector<128x128xf32>
      %101 = tpu.matmul %98, %100, %cst_72 {dimension_numbers = #tpu.dot_dimension_numbers<[1], [0], [0], [1], [0, 0, 1, 1], [], []>} : vector<128x128xf32>, vector<128x128xf32>, vector<128x128xf32> -> vector<128x128xf32>
      %102 = arith.addf %93, %101 : vector<128x128xf32>
      %c2_i32_73 = arith.constant 2 : i32
      %103 = arith.muli %c2_i32_73, %65 : i32
      %c1_i32_74 = arith.constant 1 : i32
      %104 = arith.addi %103, %c1_i32_74 : i32
      %c0_75 = arith.constant 0 : index
      %105 = arith.index_cast %104 : i32 to index
      %c1_76 = arith.constant 1 : index
      %c0_77 = arith.constant 0 : index
      %106 = vector.load %arg14[%c0_75, %105, %c1_76, %c0_77] : memref<2x18x18x128xf32, #tpu.memory_space<vmem>>, vector<2x4x16x128xf32>
      %107 = vector.shape_cast %106 : vector<2x4x16x128xf32> to vector<128x128xf32>
      %c4 = arith.constant 4 : index
      %c0_78 = arith.constant 0 : index
      %c0_79 = arith.constant 0 : index
      %108 = vector.load %arg3[%c4, %c0_78, %c0_79] : memref<9x128x128xf32, #tpu.memory_space<vmem>>, vector<1x128x128xf32>
      %109 = vector.shape_cast %108 : vector<1x128x128xf32> to vector<128x128xf32>
      %cst_80 = arith.constant dense<0.000000e+00> : vector<128x128xf32>
      %110 = tpu.matmul %107, %109, %cst_80 {dimension_numbers = #tpu.dot_dimension_numbers<[1], [0], [0], [1], [0, 0, 1, 1], [], []>} : vector<128x128xf32>, vector<128x128xf32>, vector<128x128xf32> -> vector<128x128xf32>
      %111 = arith.addf %102, %110 : vector<128x128xf32>
      %c2_i32_81 = arith.constant 2 : i32
      %112 = arith.muli %c2_i32_81, %65 : i32
      %c1_i32_82 = arith.constant 1 : i32
      %113 = arith.addi %112, %c1_i32_82 : i32
      %c0_83 = arith.constant 0 : index
      %114 = arith.index_cast %113 : i32 to index
      %c2_84 = arith.constant 2 : index
      %c0_85 = arith.constant 0 : index
      %115 = vector.load %arg14[%c0_83, %114, %c2_84, %c0_85] : memref<2x18x18x128xf32, #tpu.memory_space<vmem>>, vector<2x4x16x128xf32>
      %116 = vector.shape_cast %115 : vector<2x4x16x128xf32> to vector<128x128xf32>
      %c5 = arith.constant 5 : index
      %c0_86 = arith.constant 0 : index
      %c0_87 = arith.constant 0 : index
      %117 = vector.load %arg3[%c5, %c0_86, %c0_87] : memref<9x128x128xf32, #tpu.memory_space<vmem>>, vector<1x128x128xf32>
      %118 = vector.shape_cast %117 : vector<1x128x128xf32> to vector<128x128xf32>
      %cst_88 = arith.constant dense<0.000000e+00> : vector<128x128xf32>
      %119 = tpu.matmul %116, %118, %cst_88 {dimension_numbers = #tpu.dot_dimension_numbers<[1], [0], [0], [1], [0, 0, 1, 1], [], []>} : vector<128x128xf32>, vector<128x128xf32>, vector<128x128xf32> -> vector<128x128xf32>
      %120 = arith.addf %111, %119 : vector<128x128xf32>
      %c2_i32_89 = arith.constant 2 : i32
      %121 = arith.muli %c2_i32_89, %65 : i32
      %c2_i32_90 = arith.constant 2 : i32
      %122 = arith.addi %121, %c2_i32_90 : i32
      %c0_91 = arith.constant 0 : index
      %123 = arith.index_cast %122 : i32 to index
      %c0_92 = arith.constant 0 : index
      %c0_93 = arith.constant 0 : index
      %124 = vector.load %arg14[%c0_91, %123, %c0_92, %c0_93] : memref<2x18x18x128xf32, #tpu.memory_space<vmem>>, vector<2x4x16x128xf32>
      %125 = vector.shape_cast %124 : vector<2x4x16x128xf32> to vector<128x128xf32>
      %c6 = arith.constant 6 : index
      %c0_94 = arith.constant 0 : index
      %c0_95 = arith.constant 0 : index
      %126 = vector.load %arg3[%c6, %c0_94, %c0_95] : memref<9x128x128xf32, #tpu.memory_space<vmem>>, vector<1x128x128xf32>
      %127 = vector.shape_cast %126 : vector<1x128x128xf32> to vector<128x128xf32>
      %cst_96 = arith.constant dense<0.000000e+00> : vector<128x128xf32>
      %128 = tpu.matmul %125, %127, %cst_96 {dimension_numbers = #tpu.dot_dimension_numbers<[1], [0], [0], [1], [0, 0, 1, 1], [], []>} : vector<128x128xf32>, vector<128x128xf32>, vector<128x128xf32> -> vector<128x128xf32>
      %129 = arith.addf %120, %128 : vector<128x128xf32>
      %c2_i32_97 = arith.constant 2 : i32
      %130 = arith.muli %c2_i32_97, %65 : i32
      %c2_i32_98 = arith.constant 2 : i32
      %131 = arith.addi %130, %c2_i32_98 : i32
      %c0_99 = arith.constant 0 : index
      %132 = arith.index_cast %131 : i32 to index
      %c1_100 = arith.constant 1 : index
      %c0_101 = arith.constant 0 : index
      %133 = vector.load %arg14[%c0_99, %132, %c1_100, %c0_101] : memref<2x18x18x128xf32, #tpu.memory_space<vmem>>, vector<2x4x16x128xf32>
      %134 = vector.shape_cast %133 : vector<2x4x16x128xf32> to vector<128x128xf32>
      %c7 = arith.constant 7 : index
      %c0_102 = arith.constant 0 : index
      %c0_103 = arith.constant 0 : index
      %135 = vector.load %arg3[%c7, %c0_102, %c0_103] : memref<9x128x128xf32, #tpu.memory_space<vmem>>, vector<1x128x128xf32>
      %136 = vector.shape_cast %135 : vector<1x128x128xf32> to vector<128x128xf32>
      %cst_104 = arith.constant dense<0.000000e+00> : vector<128x128xf32>
      %137 = tpu.matmul %134, %136, %cst_104 {dimension_numbers = #tpu.dot_dimension_numbers<[1], [0], [0], [1], [0, 0, 1, 1], [], []>} : vector<128x128xf32>, vector<128x128xf32>, vector<128x128xf32> -> vector<128x128xf32>
      %138 = arith.addf %129, %137 : vector<128x128xf32>
      %c2_i32_105 = arith.constant 2 : i32
      %139 = arith.muli %c2_i32_105, %65 : i32
      %c2_i32_106 = arith.constant 2 : i32
      %140 = arith.addi %139, %c2_i32_106 : i32
      %c0_107 = arith.constant 0 : index
      %141 = arith.index_cast %140 : i32 to index
      %c2_108 = arith.constant 2 : index
      %c0_109 = arith.constant 0 : index
      %142 = vector.load %arg14[%c0_107, %141, %c2_108, %c0_109] : memref<2x18x18x128xf32, #tpu.memory_space<vmem>>, vector<2x4x16x128xf32>
      %143 = vector.shape_cast %142 : vector<2x4x16x128xf32> to vector<128x128xf32>
      %c8 = arith.constant 8 : index
      %c0_110 = arith.constant 0 : index
      %c0_111 = arith.constant 0 : index
      %144 = vector.load %arg3[%c8, %c0_110, %c0_111] : memref<9x128x128xf32, #tpu.memory_space<vmem>>, vector<1x128x128xf32>
      %145 = vector.shape_cast %144 : vector<1x128x128xf32> to vector<128x128xf32>
      %cst_112 = arith.constant dense<0.000000e+00> : vector<128x128xf32>
      %146 = tpu.matmul %143, %145, %cst_112 {dimension_numbers = #tpu.dot_dimension_numbers<[1], [0], [0], [1], [0, 0, 1, 1], [], []>} : vector<128x128xf32>, vector<128x128xf32>, vector<128x128xf32> -> vector<128x128xf32>
      %147 = arith.addf %138, %146 : vector<128x128xf32>
      %c0_113 = arith.constant 0 : index
      %c0_114 = arith.constant 0 : index
      %148 = vector.load %arg4[%c0_113, %c0_114] : memref<1x128xf32, #tpu.memory_space<vmem>>, vector<1x128xf32>
      %149 = vector.broadcast %148 : vector<1x128xf32> to vector<128x128xf32>
      %150 = arith.addf %147, %149 : vector<128x128xf32>
      %cst_115 = arith.constant 0.000000e+00 : f32
      %151 = vector.broadcast %cst_115 : f32 to vector<128x128xf32>
      %152 = arith.maximumf %150, %151 : vector<128x128xf32>
      %153 = vector.shape_cast %152 : vector<128x128xf32> to vector<2x2x2x16x128xf32>
      %154 = vector.extract_strided_slice %153 {offsets = [0, 0, 0, 0, 0], sizes = [2, 2, 1, 16, 128], strides = [1, 1, 1, 1, 1]} : vector<2x2x2x16x128xf32> to vector<2x2x1x16x128xf32>
      %155 = vector.shape_cast %154 : vector<2x2x1x16x128xf32> to vector<2x2x16x128xf32>
      %156 = vector.extract_strided_slice %153 {offsets = [0, 0, 1, 0, 0], sizes = [2, 2, 1, 16, 128], strides = [1, 1, 1, 1, 1]} : vector<2x2x2x16x128xf32> to vector<2x2x1x16x128xf32>
      %157 = vector.shape_cast %156 : vector<2x2x1x16x128xf32> to vector<2x2x16x128xf32>
      %158 = arith.maximumf %155, %157 : vector<2x2x16x128xf32>
      %159 = vector.extract_strided_slice %158 {offsets = [0, 0, 0, 0], sizes = [2, 2, 1, 128], strides = [1, 1, 1, 1]} : vector<2x2x16x128xf32> to vector<2x2x1x128xf32>
      %160 = vector.extract_strided_slice %158 {offsets = [0, 0, 1, 0], sizes = [2, 2, 1, 128], strides = [1, 1, 1, 1]} : vector<2x2x16x128xf32> to vector<2x2x1x128xf32>
      %161 = arith.maximumf %159, %160 : vector<2x2x1x128xf32>
      %162 = vector.extract_strided_slice %158 {offsets = [0, 0, 2, 0], sizes = [2, 2, 1, 128], strides = [1, 1, 1, 1]} : vector<2x2x16x128xf32> to vector<2x2x1x128xf32>
      %163 = vector.extract_strided_slice %158 {offsets = [0, 0, 3, 0], sizes = [2, 2, 1, 128], strides = [1, 1, 1, 1]} : vector<2x2x16x128xf32> to vector<2x2x1x128xf32>
      %164 = arith.maximumf %162, %163 : vector<2x2x1x128xf32>
      %165 = vector.extract_strided_slice %158 {offsets = [0, 0, 4, 0], sizes = [2, 2, 1, 128], strides = [1, 1, 1, 1]} : vector<2x2x16x128xf32> to vector<2x2x1x128xf32>
      %166 = vector.extract_strided_slice %158 {offsets = [0, 0, 5, 0], sizes = [2, 2, 1, 128], strides = [1, 1, 1, 1]} : vector<2x2x16x128xf32> to vector<2x2x1x128xf32>
      %167 = arith.maximumf %165, %166 : vector<2x2x1x128xf32>
      %168 = vector.extract_strided_slice %158 {offsets = [0, 0, 6, 0], sizes = [2, 2, 1, 128], strides = [1, 1, 1, 1]} : vector<2x2x16x128xf32> to vector<2x2x1x128xf32>
      %169 = vector.extract_strided_slice %158 {offsets = [0, 0, 7, 0], sizes = [2, 2, 1, 128], strides = [1, 1, 1, 1]} : vector<2x2x16x128xf32> to vector<2x2x1x128xf32>
      %170 = arith.maximumf %168, %169 : vector<2x2x1x128xf32>
      %171 = vector.extract_strided_slice %158 {offsets = [0, 0, 8, 0], sizes = [2, 2, 1, 128], strides = [1, 1, 1, 1]} : vector<2x2x16x128xf32> to vector<2x2x1x128xf32>
      %172 = vector.extract_strided_slice %158 {offsets = [0, 0, 9, 0], sizes = [2, 2, 1, 128], strides = [1, 1, 1, 1]} : vector<2x2x16x128xf32> to vector<2x2x1x128xf32>
      %173 = arith.maximumf %171, %172 : vector<2x2x1x128xf32>
      %174 = vector.extract_strided_slice %158 {offsets = [0, 0, 10, 0], sizes = [2, 2, 1, 128], strides = [1, 1, 1, 1]} : vector<2x2x16x128xf32> to vector<2x2x1x128xf32>
      %175 = vector.extract_strided_slice %158 {offsets = [0, 0, 11, 0], sizes = [2, 2, 1, 128], strides = [1, 1, 1, 1]} : vector<2x2x16x128xf32> to vector<2x2x1x128xf32>
      %176 = arith.maximumf %174, %175 : vector<2x2x1x128xf32>
      %177 = vector.extract_strided_slice %158 {offsets = [0, 0, 12, 0], sizes = [2, 2, 1, 128], strides = [1, 1, 1, 1]} : vector<2x2x16x128xf32> to vector<2x2x1x128xf32>
      %178 = vector.extract_strided_slice %158 {offsets = [0, 0, 13, 0], sizes = [2, 2, 1, 128], strides = [1, 1, 1, 1]} : vector<2x2x16x128xf32> to vector<2x2x1x128xf32>
      %179 = arith.maximumf %177, %178 : vector<2x2x1x128xf32>
      %180 = vector.extract_strided_slice %158 {offsets = [0, 0, 14, 0], sizes = [2, 2, 1, 128], strides = [1, 1, 1, 1]} : vector<2x2x16x128xf32> to vector<2x2x1x128xf32>
      %181 = vector.extract_strided_slice %158 {offsets = [0, 0, 15, 0], sizes = [2, 2, 1, 128], strides = [1, 1, 1, 1]} : vector<2x2x16x128xf32> to vector<2x2x1x128xf32>
      %182 = arith.maximumf %180, %181 : vector<2x2x1x128xf32>
      %183 = tpu.concatenate %161, %164, %167, %170, %173, %176, %179, %182 in 2 : vector<2x2x1x128xf32>, vector<2x2x1x128xf32>, vector<2x2x1x128xf32>, vector<2x2x1x128xf32>, vector<2x2x1x128xf32>, vector<2x2x1x128xf32>, vector<2x2x1x128xf32>, vector<2x2x1x128xf32> -> vector<2x2x8x128xf32>
      %c1_i32_116 = arith.constant 1 : i32
      %184 = arith.addi %c1_i32_116, %65 : i32
      %c0_117 = arith.constant 0 : index
      %185 = arith.index_cast %184 : i32 to index
      %c1_118 = arith.constant 1 : index
      %c0_119 = arith.constant 0 : index
      %186 = vector.load %arg15[%c0_117, %185, %c1_118, %c0_119] : memref<2x10x10x128xf32, #tpu.memory_space<vmem>>, vector<2x2x8x128xf32>
      tpu.vector_store %arg15[%c0_117, %185, %c1_118, %c0_119], %183 {strides = array<i32>} : memref<2x10x10x128xf32, #tpu.memory_space<vmem>>, vector<2x2x8x128xf32>,
    }
    %c4_i32_11 = arith.constant 4 : i32
    %c0_i32_12 = arith.constant 0 : i32
    %c2_i32 = arith.constant 2 : i32
    %6 = arith.addi %c0_i32_12, %c2_i32 : i32
    %c1_i32_13 = arith.constant 1 : i32
    scf.for %arg17 = %c0_i32_12 to %6 step %c1_i32_13  : i32 {
      %c2_i32_38 = arith.constant 2 : i32
      %65 = arith.muli %c2_i32_38, %arg17 : i32
      %cst_39 = arith.constant 0.000000e+00 : f32
      %66 = vector.broadcast %cst_39 : f32 to vector<64x128xf32>
      %c2_i32_40 = arith.constant 2 : i32
      %67 = arith.muli %c2_i32_40, %65 : i32
      %c0_i32_41 = arith.constant 0 : i32
      %68 = arith.addi %67, %c0_i32_41 : i32
      %c0_42 = arith.constant 0 : index
      %69 = arith.index_cast %68 : i32 to index
      %c0_43 = arith.constant 0 : index
      %c0_44 = arith.constant 0 : index
      %70 = vector.load %arg15[%c0_42, %69, %c0_43, %c0_44] : memref<2x10x10x128xf32, #tpu.memory_space<vmem>>, vector<2x4x8x128xf32>
      %71 = vector.shape_cast %70 : vector<2x4x8x128xf32> to vector<64x128xf32>
      %c0_45 = arith.constant 0 : index
      %c0_46 = arith.constant 0 : index
      %c0_47 = arith.constant 0 : index
      %72 = vector.load %arg5[%c0_45, %c0_46, %c0_47] : memref<9x128x128xf32, #tpu.memory_space<vmem>>, vector<1x128x128xf32>
      %73 = vector.shape_cast %72 : vector<1x128x128xf32> to vector<128x128xf32>
      %cst_48 = arith.constant dense<0.000000e+00> : vector<64x128xf32>
      %74 = tpu.matmul %71, %73, %cst_48 {dimension_numbers = #tpu.dot_dimension_numbers<[1], [0], [0], [1], [0, 0, 1, 1], [], []>} : vector<64x128xf32>, vector<128x128xf32>, vector<64x128xf32> -> vector<64x128xf32>
      %75 = arith.addf %66, %74 : vector<64x128xf32>
      %c2_i32_49 = arith.constant 2 : i32
      %76 = arith.muli %c2_i32_49, %65 : i32
      %c0_i32_50 = arith.constant 0 : i32
      %77 = arith.addi %76, %c0_i32_50 : i32
      %c0_51 = arith.constant 0 : index
      %78 = arith.index_cast %77 : i32 to index
      %c1 = arith.constant 1 : index
      %c0_52 = arith.constant 0 : index
      %79 = vector.load %arg15[%c0_51, %78, %c1, %c0_52] : memref<2x10x10x128xf32, #tpu.memory_space<vmem>>, vector<2x4x8x128xf32>
      %80 = vector.shape_cast %79 : vector<2x4x8x128xf32> to vector<64x128xf32>
      %c1_53 = arith.constant 1 : index
      %c0_54 = arith.constant 0 : index
      %c0_55 = arith.constant 0 : index
      %81 = vector.load %arg5[%c1_53, %c0_54, %c0_55] : memref<9x128x128xf32, #tpu.memory_space<vmem>>, vector<1x128x128xf32>
      %82 = vector.shape_cast %81 : vector<1x128x128xf32> to vector<128x128xf32>
      %cst_56 = arith.constant dense<0.000000e+00> : vector<64x128xf32>
      %83 = tpu.matmul %80, %82, %cst_56 {dimension_numbers = #tpu.dot_dimension_numbers<[1], [0], [0], [1], [0, 0, 1, 1], [], []>} : vector<64x128xf32>, vector<128x128xf32>, vector<64x128xf32> -> vector<64x128xf32>
      %84 = arith.addf %75, %83 : vector<64x128xf32>
      %c2_i32_57 = arith.constant 2 : i32
      %85 = arith.muli %c2_i32_57, %65 : i32
      %c0_i32_58 = arith.constant 0 : i32
      %86 = arith.addi %85, %c0_i32_58 : i32
      %c0_59 = arith.constant 0 : index
      %87 = arith.index_cast %86 : i32 to index
      %c2 = arith.constant 2 : index
      %c0_60 = arith.constant 0 : index
      %88 = vector.load %arg15[%c0_59, %87, %c2, %c0_60] : memref<2x10x10x128xf32, #tpu.memory_space<vmem>>, vector<2x4x8x128xf32>
      %89 = vector.shape_cast %88 : vector<2x4x8x128xf32> to vector<64x128xf32>
      %c2_61 = arith.constant 2 : index
      %c0_62 = arith.constant 0 : index
      %c0_63 = arith.constant 0 : index
      %90 = vector.load %arg5[%c2_61, %c0_62, %c0_63] : memref<9x128x128xf32, #tpu.memory_space<vmem>>, vector<1x128x128xf32>
      %91 = vector.shape_cast %90 : vector<1x128x128xf32> to vector<128x128xf32>
      %cst_64 = arith.constant dense<0.000000e+00> : vector<64x128xf32>
      %92 = tpu.matmul %89, %91, %cst_64 {dimension_numbers = #tpu.dot_dimension_numbers<[1], [0], [0], [1], [0, 0, 1, 1], [], []>} : vector<64x128xf32>, vector<128x128xf32>, vector<64x128xf32> -> vector<64x128xf32>
      %93 = arith.addf %84, %92 : vector<64x128xf32>
      %c2_i32_65 = arith.constant 2 : i32
      %94 = arith.muli %c2_i32_65, %65 : i32
      %c1_i32_66 = arith.constant 1 : i32
      %95 = arith.addi %94, %c1_i32_66 : i32
      %c0_67 = arith.constant 0 : index
      %96 = arith.index_cast %95 : i32 to index
      %c0_68 = arith.constant 0 : index
      %c0_69 = arith.constant 0 : index
      %97 = vector.load %arg15[%c0_67, %96, %c0_68, %c0_69] : memref<2x10x10x128xf32, #tpu.memory_space<vmem>>, vector<2x4x8x128xf32>
      %98 = vector.shape_cast %97 : vector<2x4x8x128xf32> to vector<64x128xf32>
      %c3 = arith.constant 3 : index
      %c0_70 = arith.constant 0 : index
      %c0_71 = arith.constant 0 : index
      %99 = vector.load %arg5[%c3, %c0_70, %c0_71] : memref<9x128x128xf32, #tpu.memory_space<vmem>>, vector<1x128x128xf32>
      %100 = vector.shape_cast %99 : vector<1x128x128xf32> to vector<128x128xf32>
      %cst_72 = arith.constant dense<0.000000e+00> : vector<64x128xf32>
      %101 = tpu.matmul %98, %100, %cst_72 {dimension_numbers = #tpu.dot_dimension_numbers<[1], [0], [0], [1], [0, 0, 1, 1], [], []>} : vector<64x128xf32>, vector<128x128xf32>, vector<64x128xf32> -> vector<64x128xf32>
      %102 = arith.addf %93, %101 : vector<64x128xf32>
      %c2_i32_73 = arith.constant 2 : i32
      %103 = arith.muli %c2_i32_73, %65 : i32
      %c1_i32_74 = arith.constant 1 : i32
      %104 = arith.addi %103, %c1_i32_74 : i32
      %c0_75 = arith.constant 0 : index
      %105 = arith.index_cast %104 : i32 to index
      %c1_76 = arith.constant 1 : index
      %c0_77 = arith.constant 0 : index
      %106 = vector.load %arg15[%c0_75, %105, %c1_76, %c0_77] : memref<2x10x10x128xf32, #tpu.memory_space<vmem>>, vector<2x4x8x128xf32>
      %107 = vector.shape_cast %106 : vector<2x4x8x128xf32> to vector<64x128xf32>
      %c4 = arith.constant 4 : index
      %c0_78 = arith.constant 0 : index
      %c0_79 = arith.constant 0 : index
      %108 = vector.load %arg5[%c4, %c0_78, %c0_79] : memref<9x128x128xf32, #tpu.memory_space<vmem>>, vector<1x128x128xf32>
      %109 = vector.shape_cast %108 : vector<1x128x128xf32> to vector<128x128xf32>
      %cst_80 = arith.constant dense<0.000000e+00> : vector<64x128xf32>
      %110 = tpu.matmul %107, %109, %cst_80 {dimension_numbers = #tpu.dot_dimension_numbers<[1], [0], [0], [1], [0, 0, 1, 1], [], []>} : vector<64x128xf32>, vector<128x128xf32>, vector<64x128xf32> -> vector<64x128xf32>
      %111 = arith.addf %102, %110 : vector<64x128xf32>
      %c2_i32_81 = arith.constant 2 : i32
      %112 = arith.muli %c2_i32_81, %65 : i32
      %c1_i32_82 = arith.constant 1 : i32
      %113 = arith.addi %112, %c1_i32_82 : i32
      %c0_83 = arith.constant 0 : index
      %114 = arith.index_cast %113 : i32 to index
      %c2_84 = arith.constant 2 : index
      %c0_85 = arith.constant 0 : index
      %115 = vector.load %arg15[%c0_83, %114, %c2_84, %c0_85] : memref<2x10x10x128xf32, #tpu.memory_space<vmem>>, vector<2x4x8x128xf32>
      %116 = vector.shape_cast %115 : vector<2x4x8x128xf32> to vector<64x128xf32>
      %c5 = arith.constant 5 : index
      %c0_86 = arith.constant 0 : index
      %c0_87 = arith.constant 0 : index
      %117 = vector.load %arg5[%c5, %c0_86, %c0_87] : memref<9x128x128xf32, #tpu.memory_space<vmem>>, vector<1x128x128xf32>
      %118 = vector.shape_cast %117 : vector<1x128x128xf32> to vector<128x128xf32>
      %cst_88 = arith.constant dense<0.000000e+00> : vector<64x128xf32>
      %119 = tpu.matmul %116, %118, %cst_88 {dimension_numbers = #tpu.dot_dimension_numbers<[1], [0], [0], [1], [0, 0, 1, 1], [], []>} : vector<64x128xf32>, vector<128x128xf32>, vector<64x128xf32> -> vector<64x128xf32>
      %120 = arith.addf %111, %119 : vector<64x128xf32>
      %c2_i32_89 = arith.constant 2 : i32
      %121 = arith.muli %c2_i32_89, %65 : i32
      %c2_i32_90 = arith.constant 2 : i32
      %122 = arith.addi %121, %c2_i32_90 : i32
      %c0_91 = arith.constant 0 : index
      %123 = arith.index_cast %122 : i32 to index
      %c0_92 = arith.constant 0 : index
      %c0_93 = arith.constant 0 : index
      %124 = vector.load %arg15[%c0_91, %123, %c0_92, %c0_93] : memref<2x10x10x128xf32, #tpu.memory_space<vmem>>, vector<2x4x8x128xf32>
      %125 = vector.shape_cast %124 : vector<2x4x8x128xf32> to vector<64x128xf32>
      %c6 = arith.constant 6 : index
      %c0_94 = arith.constant 0 : index
      %c0_95 = arith.constant 0 : index
      %126 = vector.load %arg5[%c6, %c0_94, %c0_95] : memref<9x128x128xf32, #tpu.memory_space<vmem>>, vector<1x128x128xf32>
      %127 = vector.shape_cast %126 : vector<1x128x128xf32> to vector<128x128xf32>
      %cst_96 = arith.constant dense<0.000000e+00> : vector<64x128xf32>
      %128 = tpu.matmul %125, %127, %cst_96 {dimension_numbers = #tpu.dot_dimension_numbers<[1], [0], [0], [1], [0, 0, 1, 1], [], []>} : vector<64x128xf32>, vector<128x128xf32>, vector<64x128xf32> -> vector<64x128xf32>
      %129 = arith.addf %120, %128 : vector<64x128xf32>
      %c2_i32_97 = arith.constant 2 : i32
      %130 = arith.muli %c2_i32_97, %65 : i32
      %c2_i32_98 = arith.constant 2 : i32
      %131 = arith.addi %130, %c2_i32_98 : i32
      %c0_99 = arith.constant 0 : index
      %132 = arith.index_cast %131 : i32 to index
      %c1_100 = arith.constant 1 : index
      %c0_101 = arith.constant 0 : index
      %133 = vector.load %arg15[%c0_99, %132, %c1_100, %c0_101] : memref<2x10x10x128xf32, #tpu.memory_space<vmem>>, vector<2x4x8x128xf32>
      %134 = vector.shape_cast %133 : vector<2x4x8x128xf32> to vector<64x128xf32>
      %c7 = arith.constant 7 : index
      %c0_102 = arith.constant 0 : index
      %c0_103 = arith.constant 0 : index
      %135 = vector.load %arg5[%c7, %c0_102, %c0_103] : memref<9x128x128xf32, #tpu.memory_space<vmem>>, vector<1x128x128xf32>
      %136 = vector.shape_cast %135 : vector<1x128x128xf32> to vector<128x128xf32>
      %cst_104 = arith.constant dense<0.000000e+00> : vector<64x128xf32>
      %137 = tpu.matmul %134, %136, %cst_104 {dimension_numbers = #tpu.dot_dimension_numbers<[1], [0], [0], [1], [0, 0, 1, 1], [], []>} : vector<64x128xf32>, vector<128x128xf32>, vector<64x128xf32> -> vector<64x128xf32>
      %138 = arith.addf %129, %137 : vector<64x128xf32>
      %c2_i32_105 = arith.constant 2 : i32
      %139 = arith.muli %c2_i32_105, %65 : i32
      %c2_i32_106 = arith.constant 2 : i32
      %140 = arith.addi %139, %c2_i32_106 : i32
      %c0_107 = arith.constant 0 : index
      %141 = arith.index_cast %140 : i32 to index
      %c2_108 = arith.constant 2 : index
      %c0_109 = arith.constant 0 : index
      %142 = vector.load %arg15[%c0_107, %141, %c2_108, %c0_109] : memref<2x10x10x128xf32, #tpu.memory_space<vmem>>, vector<2x4x8x128xf32>
      %143 = vector.shape_cast %142 : vector<2x4x8x128xf32> to vector<64x128xf32>
      %c8 = arith.constant 8 : index
      %c0_110 = arith.constant 0 : index
      %c0_111 = arith.constant 0 : index
      %144 = vector.load %arg5[%c8, %c0_110, %c0_111] : memref<9x128x128xf32, #tpu.memory_space<vmem>>, vector<1x128x128xf32>
      %145 = vector.shape_cast %144 : vector<1x128x128xf32> to vector<128x128xf32>
      %cst_112 = arith.constant dense<0.000000e+00> : vector<64x128xf32>
      %146 = tpu.matmul %143, %145, %cst_112 {dimension_numbers = #tpu.dot_dimension_numbers<[1], [0], [0], [1], [0, 0, 1, 1], [], []>} : vector<64x128xf32>, vector<128x128xf32>, vector<64x128xf32> -> vector<64x128xf32>
      %147 = arith.addf %138, %146 : vector<64x128xf32>
      %c0_113 = arith.constant 0 : index
      %c0_114 = arith.constant 0 : index
      %148 = vector.load %arg6[%c0_113, %c0_114] : memref<1x128xf32, #tpu.memory_space<vmem>>, vector<1x128xf32>
      %149 = vector.broadcast %148 : vector<1x128xf32> to vector<64x128xf32>
      %150 = arith.addf %147, %149 : vector<64x128xf32>
      %cst_115 = arith.constant 0.000000e+00 : f32
      %151 = vector.broadcast %cst_115 : f32 to vector<64x128xf32>
      %152 = arith.maximumf %150, %151 : vector<64x128xf32>
      %153 = vector.shape_cast %152 : vector<64x128xf32> to vector<2x2x2x8x128xf32>
      %154 = vector.extract_strided_slice %153 {offsets = [0, 0, 0, 0, 0], sizes = [2, 2, 1, 8, 128], strides = [1, 1, 1, 1, 1]} : vector<2x2x2x8x128xf32> to vector<2x2x1x8x128xf32>
      %155 = vector.shape_cast %154 : vector<2x2x1x8x128xf32> to vector<2x2x8x128xf32>
      %156 = vector.extract_strided_slice %153 {offsets = [0, 0, 1, 0, 0], sizes = [2, 2, 1, 8, 128], strides = [1, 1, 1, 1, 1]} : vector<2x2x2x8x128xf32> to vector<2x2x1x8x128xf32>
      %157 = vector.shape_cast %156 : vector<2x2x1x8x128xf32> to vector<2x2x8x128xf32>
      %158 = arith.maximumf %155, %157 : vector<2x2x8x128xf32>
      %159 = vector.extract_strided_slice %158 {offsets = [0, 0, 0, 0], sizes = [2, 2, 1, 128], strides = [1, 1, 1, 1]} : vector<2x2x8x128xf32> to vector<2x2x1x128xf32>
      %160 = vector.extract_strided_slice %158 {offsets = [0, 0, 1, 0], sizes = [2, 2, 1, 128], strides = [1, 1, 1, 1]} : vector<2x2x8x128xf32> to vector<2x2x1x128xf32>
      %161 = arith.maximumf %159, %160 : vector<2x2x1x128xf32>
      %162 = vector.extract_strided_slice %158 {offsets = [0, 0, 2, 0], sizes = [2, 2, 1, 128], strides = [1, 1, 1, 1]} : vector<2x2x8x128xf32> to vector<2x2x1x128xf32>
      %163 = vector.extract_strided_slice %158 {offsets = [0, 0, 3, 0], sizes = [2, 2, 1, 128], strides = [1, 1, 1, 1]} : vector<2x2x8x128xf32> to vector<2x2x1x128xf32>
      %164 = arith.maximumf %162, %163 : vector<2x2x1x128xf32>
      %165 = vector.extract_strided_slice %158 {offsets = [0, 0, 4, 0], sizes = [2, 2, 1, 128], strides = [1, 1, 1, 1]} : vector<2x2x8x128xf32> to vector<2x2x1x128xf32>
      %166 = vector.extract_strided_slice %158 {offsets = [0, 0, 5, 0], sizes = [2, 2, 1, 128], strides = [1, 1, 1, 1]} : vector<2x2x8x128xf32> to vector<2x2x1x128xf32>
      %167 = arith.maximumf %165, %166 : vector<2x2x1x128xf32>
      %168 = vector.extract_strided_slice %158 {offsets = [0, 0, 6, 0], sizes = [2, 2, 1, 128], strides = [1, 1, 1, 1]} : vector<2x2x8x128xf32> to vector<2x2x1x128xf32>
      %169 = vector.extract_strided_slice %158 {offsets = [0, 0, 7, 0], sizes = [2, 2, 1, 128], strides = [1, 1, 1, 1]} : vector<2x2x8x128xf32> to vector<2x2x1x128xf32>
      %170 = arith.maximumf %168, %169 : vector<2x2x1x128xf32>
      %171 = tpu.concatenate %161, %164, %167, %170 in 2 : vector<2x2x1x128xf32>, vector<2x2x1x128xf32>, vector<2x2x1x128xf32>, vector<2x2x1x128xf32> -> vector<2x2x4x128xf32>
      %c0_i32_116 = arith.constant 0 : i32
      %172 = arith.addi %c0_i32_116, %65 : i32
      %c0_117 = arith.constant 0 : index
      %173 = arith.index_cast %172 : i32 to index
      %c0_118 = arith.constant 0 : index
      %c0_119 = arith.constant 0 : index
      %174 = vector.load %arg16[%c0_117, %173, %c0_118, %c0_119] : memref<2x4x4x128xf32, #tpu.memory_space<vmem>>, vector<2x2x4x128xf32>
      tpu.vector_store %arg16[%c0_117, %173, %c0_118, %c0_119], %171 {strides = array<i32>} : memref<2x4x4x128xf32, #tpu.memory_space<vmem>>, vector<2x2x4x128xf32>,
    }
    %c2_i32_14 = arith.constant 2 : i32
    %c0_15 = arith.constant 0 : index
    %c0_16 = arith.constant 0 : index
    %c0_17 = arith.constant 0 : index
    %c0_18 = arith.constant 0 : index
    %7 = vector.load %arg16[%c0_15, %c0_16, %c0_17, %c0_18] : memref<2x4x4x128xf32, #tpu.memory_space<vmem>>, vector<2x4x4x128xf32>
    %8 = vector.extract_strided_slice %7 {offsets = [0, 0, 0, 0], sizes = [1, 1, 1, 128], strides = [1, 1, 1, 1]} : vector<2x4x4x128xf32> to vector<1x1x1x128xf32>
    %9 = vector.extract_strided_slice %7 {offsets = [0, 0, 1, 0], sizes = [1, 1, 1, 128], strides = [1, 1, 1, 1]} : vector<2x4x4x128xf32> to vector<1x1x1x128xf32>
    %10 = vector.extract_strided_slice %7 {offsets = [0, 0, 2, 0], sizes = [1, 1, 1, 128], strides = [1, 1, 1, 1]} : vector<2x4x4x128xf32> to vector<1x1x1x128xf32>
    %11 = vector.extract_strided_slice %7 {offsets = [0, 0, 3, 0], sizes = [1, 1, 1, 128], strides = [1, 1, 1, 1]} : vector<2x4x4x128xf32> to vector<1x1x1x128xf32>
    %12 = vector.extract_strided_slice %7 {offsets = [0, 1, 0, 0], sizes = [1, 1, 1, 128], strides = [1, 1, 1, 1]} : vector<2x4x4x128xf32> to vector<1x1x1x128xf32>
    %13 = vector.extract_strided_slice %7 {offsets = [0, 1, 1, 0], sizes = [1, 1, 1, 128], strides = [1, 1, 1, 1]} : vector<2x4x4x128xf32> to vector<1x1x1x128xf32>
    %14 = vector.extract_strided_slice %7 {offsets = [0, 1, 2, 0], sizes = [1, 1, 1, 128], strides = [1, 1, 1, 1]} : vector<2x4x4x128xf32> to vector<1x1x1x128xf32>
    %15 = vector.extract_strided_slice %7 {offsets = [0, 1, 3, 0], sizes = [1, 1, 1, 128], strides = [1, 1, 1, 1]} : vector<2x4x4x128xf32> to vector<1x1x1x128xf32>
    %16 = vector.extract_strided_slice %7 {offsets = [0, 2, 0, 0], sizes = [1, 1, 1, 128], strides = [1, 1, 1, 1]} : vector<2x4x4x128xf32> to vector<1x1x1x128xf32>
    %17 = vector.extract_strided_slice %7 {offsets = [0, 2, 1, 0], sizes = [1, 1, 1, 128], strides = [1, 1, 1, 1]} : vector<2x4x4x128xf32> to vector<1x1x1x128xf32>
    %18 = vector.extract_strided_slice %7 {offsets = [0, 2, 2, 0], sizes = [1, 1, 1, 128], strides = [1, 1, 1, 1]} : vector<2x4x4x128xf32> to vector<1x1x1x128xf32>
    %19 = vector.extract_strided_slice %7 {offsets = [0, 2, 3, 0], sizes = [1, 1, 1, 128], strides = [1, 1, 1, 1]} : vector<2x4x4x128xf32> to vector<1x1x1x128xf32>
    %20 = vector.extract_strided_slice %7 {offsets = [0, 3, 0, 0], sizes = [1, 1, 1, 128], strides = [1, 1, 1, 1]} : vector<2x4x4x128xf32> to vector<1x1x1x128xf32>
    %21 = vector.extract_strided_slice %7 {offsets = [0, 3, 1, 0], sizes = [1, 1, 1, 128], strides = [1, 1, 1, 1]} : vector<2x4x4x128xf32> to vector<1x1x1x128xf32>
    %22 = vector.extract_strided_slice %7 {offsets = [0, 3, 2, 0], sizes = [1, 1, 1, 128], strides = [1, 1, 1, 1]} : vector<2x4x4x128xf32> to vector<1x1x1x128xf32>
    %23 = vector.extract_strided_slice %7 {offsets = [0, 3, 3, 0], sizes = [1, 1, 1, 128], strides = [1, 1, 1, 1]} : vector<2x4x4x128xf32> to vector<1x1x1x128xf32>
    %24 = tpu.concatenate %8, %9, %10, %11, %12, %13, %14, %15, %16, %17, %18, %19, %20, %21, %22, %23 in 3 : vector<1x1x1x128xf32>, vector<1x1x1x128xf32>, vector<1x1x1x128xf32>, vector<1x1x1x128xf32>, vector<1x1x1x128xf32>, vector<1x1x1x128xf32>, vector<1x1x1x128xf32>, vector<1x1x1x128xf32>, vector<1x1x1x128xf32>, vector<1x1x1x128xf32>, vector<1x1x1x128xf32>, vector<1x1x1x128xf32>, vector<1x1x1x128xf32>, vector<1x1x1x128xf32>, vector<1x1x1x128xf32>, vector<1x1x1x128xf32> -> vector<1x1x1x2048xf32>
    %25 = vector.shape_cast %24 : vector<1x1x1x2048xf32> to vector<1x2048xf32>
    %26 = vector.extract_strided_slice %7 {offsets = [1, 0, 0, 0], sizes = [1, 1, 1, 128], strides = [1, 1, 1, 1]} : vector<2x4x4x128xf32> to vector<1x1x1x128xf32>
    %27 = vector.extract_strided_slice %7 {offsets = [1, 0, 1, 0], sizes = [1, 1, 1, 128], strides = [1, 1, 1, 1]} : vector<2x4x4x128xf32> to vector<1x1x1x128xf32>
    %28 = vector.extract_strided_slice %7 {offsets = [1, 0, 2, 0], sizes = [1, 1, 1, 128], strides = [1, 1, 1, 1]} : vector<2x4x4x128xf32> to vector<1x1x1x128xf32>
    %29 = vector.extract_strided_slice %7 {offsets = [1, 0, 3, 0], sizes = [1, 1, 1, 128], strides = [1, 1, 1, 1]} : vector<2x4x4x128xf32> to vector<1x1x1x128xf32>
    %30 = vector.extract_strided_slice %7 {offsets = [1, 1, 0, 0], sizes = [1, 1, 1, 128], strides = [1, 1, 1, 1]} : vector<2x4x4x128xf32> to vector<1x1x1x128xf32>
    %31 = vector.extract_strided_slice %7 {offsets = [1, 1, 1, 0], sizes = [1, 1, 1, 128], strides = [1, 1, 1, 1]} : vector<2x4x4x128xf32> to vector<1x1x1x128xf32>
    %32 = vector.extract_strided_slice %7 {offsets = [1, 1, 2, 0], sizes = [1, 1, 1, 128], strides = [1, 1, 1, 1]} : vector<2x4x4x128xf32> to vector<1x1x1x128xf32>
    %33 = vector.extract_strided_slice %7 {offsets = [1, 1, 3, 0], sizes = [1, 1, 1, 128], strides = [1, 1, 1, 1]} : vector<2x4x4x128xf32> to vector<1x1x1x128xf32>
    %34 = vector.extract_strided_slice %7 {offsets = [1, 2, 0, 0], sizes = [1, 1, 1, 128], strides = [1, 1, 1, 1]} : vector<2x4x4x128xf32> to vector<1x1x1x128xf32>
    %35 = vector.extract_strided_slice %7 {offsets = [1, 2, 1, 0], sizes = [1, 1, 1, 128], strides = [1, 1, 1, 1]} : vector<2x4x4x128xf32> to vector<1x1x1x128xf32>
    %36 = vector.extract_strided_slice %7 {offsets = [1, 2, 2, 0], sizes = [1, 1, 1, 128], strides = [1, 1, 1, 1]} : vector<2x4x4x128xf32> to vector<1x1x1x128xf32>
    %37 = vector.extract_strided_slice %7 {offsets = [1, 2, 3, 0], sizes = [1, 1, 1, 128], strides = [1, 1, 1, 1]} : vector<2x4x4x128xf32> to vector<1x1x1x128xf32>
    %38 = vector.extract_strided_slice %7 {offsets = [1, 3, 0, 0], sizes = [1, 1, 1, 128], strides = [1, 1, 1, 1]} : vector<2x4x4x128xf32> to vector<1x1x1x128xf32>
    %39 = vector.extract_strided_slice %7 {offsets = [1, 3, 1, 0], sizes = [1, 1, 1, 128], strides = [1, 1, 1, 1]} : vector<2x4x4x128xf32> to vector<1x1x1x128xf32>
    %40 = vector.extract_strided_slice %7 {offsets = [1, 3, 2, 0], sizes = [1, 1, 1, 128], strides = [1, 1, 1, 1]} : vector<2x4x4x128xf32> to vector<1x1x1x128xf32>
    %41 = vector.extract_strided_slice %7 {offsets = [1, 3, 3, 0], sizes = [1, 1, 1, 128], strides = [1, 1, 1, 1]} : vector<2x4x4x128xf32> to vector<1x1x1x128xf32>
    %42 = tpu.concatenate %26, %27, %28, %29, %30, %31, %32, %33, %34, %35, %36, %37, %38, %39, %40, %41 in 3 : vector<1x1x1x128xf32>, vector<1x1x1x128xf32>, vector<1x1x1x128xf32>, vector<1x1x1x128xf32>, vector<1x1x1x128xf32>, vector<1x1x1x128xf32>, vector<1x1x1x128xf32>, vector<1x1x1x128xf32>, vector<1x1x1x128xf32>, vector<1x1x1x128xf32>, vector<1x1x1x128xf32>, vector<1x1x1x128xf32>, vector<1x1x1x128xf32>, vector<1x1x1x128xf32>, vector<1x1x1x128xf32>, vector<1x1x1x128xf32> -> vector<1x1x1x2048xf32>
    %43 = vector.shape_cast %42 : vector<1x1x1x2048xf32> to vector<1x2048xf32>
    %44 = tpu.concatenate %25, %43 in 0 : vector<1x2048xf32>, vector<1x2048xf32> -> vector<2x2048xf32>
    %c0_19 = arith.constant 0 : index
    %c0_20 = arith.constant 0 : index
    %45 = vector.load %arg7[%c0_19, %c0_20] : memref<2048x256xf32, #tpu.memory_space<vmem>>, vector<2048x256xf32>
    %cst_21 = arith.constant dense<0.000000e+00> : vector<2x256xf32>
    %46 = tpu.matmul %44, %45, %cst_21 {dimension_numbers = #tpu.dot_dimension_numbers<[1], [0], [0], [1], [0, 0, 1, 1], [], []>} : vector<2x2048xf32>, vector<2048x256xf32>, vector<2x256xf32> -> vector<2x256xf32>
    %c0_22 = arith.constant 0 : index
    %c0_23 = arith.constant 0 : index
    %47 = vector.load %arg8[%c0_22, %c0_23] : memref<1x256xf32, #tpu.memory_space<vmem>>, vector<1x256xf32>
    %48 = vector.broadcast %47 : vector<1x256xf32> to vector<2x256xf32>
    %49 = arith.addf %46, %48 : vector<2x256xf32>
    %cst_24 = arith.constant 0.000000e+00 : f32
    %50 = vector.broadcast %cst_24 : f32 to vector<2x256xf32>
    %51 = arith.maximumf %49, %50 : vector<2x256xf32>
    %c0_25 = arith.constant 0 : index
    %c0_26 = arith.constant 0 : index
    %52 = vector.load %arg9[%c0_25, %c0_26] : memref<256x128xf32, #tpu.memory_space<vmem>>, vector<256x128xf32>
    %cst_27 = arith.constant dense<0.000000e+00> : vector<2x128xf32>
    %53 = tpu.matmul %51, %52, %cst_27 {dimension_numbers = #tpu.dot_dimension_numbers<[1], [0], [0], [1], [0, 0, 1, 1], [], []>} : vector<2x256xf32>, vector<256x128xf32>, vector<2x128xf32> -> vector<2x128xf32>
    %c0_28 = arith.constant 0 : index
    %c0_29 = arith.constant 0 : index
    %54 = vector.load %arg10[%c0_28, %c0_29] : memref<1x128xf32, #tpu.memory_space<vmem>>, vector<1x128xf32>
    %55 = vector.broadcast %54 : vector<1x128xf32> to vector<2x128xf32>
    %56 = arith.addf %53, %55 : vector<2x128xf32>
    %cst_30 = arith.constant 0.000000e+00 : f32
    %57 = vector.broadcast %cst_30 : f32 to vector<2x128xf32>
    %58 = arith.maximumf %56, %57 : vector<2x128xf32>
    %c0_31 = arith.constant 0 : index
    %c0_32 = arith.constant 0 : index
    %59 = vector.load %arg11[%c0_31, %c0_32] : memref<128x128xf32, #tpu.memory_space<vmem>>, vector<128x128xf32>
    %cst_33 = arith.constant dense<0.000000e+00> : vector<2x128xf32>
    %60 = tpu.matmul %58, %59, %cst_33 {dimension_numbers = #tpu.dot_dimension_numbers<[1], [0], [0], [1], [0, 0, 1, 1], [], []>} : vector<2x128xf32>, vector<128x128xf32>, vector<2x128xf32> -> vector<2x128xf32>
    %c0_34 = arith.constant 0 : index
    %c0_35 = arith.constant 0 : index
    %61 = vector.load %arg12[%c0_34, %c0_35] : memref<1x128xf32, #tpu.memory_space<vmem>>, vector<1x128xf32>
    %62 = vector.broadcast %61 : vector<1x128xf32> to vector<2x128xf32>
    %63 = arith.addf %60, %62 : vector<2x128xf32>
    %c0_36 = arith.constant 0 : index
    %c0_37 = arith.constant 0 : index
    %64 = vector.load %arg13[%c0_36, %c0_37] : memref<2x128xf32, #tpu.memory_space<vmem>>, vector<2x128xf32>
    tpu.vector_store %arg13[%c0_36, %c0_37], %63 {strides = array<i32>} : memref<2x128xf32, #tpu.memory_space<vmem>>, vector<2x128xf32>,
    return
  }
}

</mosaic_0001>

<bundles_post_ra>
// kernel: net_forward.1
= control target key start
LH: loop header
LB: loop body
LE: loop exit
PB: predicated region body
PF: predicated region fallthrough
CT: control target
= control target key end

     0   :  { %18 = vsyncpa [#allocation6], 0  ;;  %v7471_v0 = vmov 0.0   ;;  %s7691_s25 = smov 0   ;;  %s12160_s0 = inlined_call_operand.vmem [shape: f32[2,34,34,8], index: 0, kind: input, shape index: {}]   ;;  %s12161_s1 = inlined_call_operand.vmem [shape: f32[9,8,128], index: 1, kind: input, shape index: {}]   ;;  %s12162_s2 = inlined_call_operand.vmem [shape: f32[1,128], index: 2, kind: input, shape index: {}]   ;;  %s12163_s3 = inlined_call_operand.vmem [shape: f32[9,128,128], index: 3, kind: input, shape index: {}]   ;;  %s12164_s4 = inlined_call_operand.vmem [shape: f32[1,128], index: 4, kind: input, shape index: {}]   ;;  %s12165_s5 = inlined_call_operand.vmem [shape: f32[9,128,128], index: 5, kind: input, shape index: {}]   ;;  %s12166_s6 = inlined_call_operand.vmem [shape: f32[1,128], index: 6, kind: input, shape index: {}]   ;;  %s12167_s7 = inlined_call_operand.vmem [shape: f32[2048,256], index: 7, kind: input, shape index: {}]   ;;  %s12168_s8 = inlined_call_operand.vmem [shape: f32[1,256], index: 8, kind: input, shape index: {}]   ;;  %s12169_s9 = inlined_call_operand.vmem [shape: f32[256,128], index: 9, kind: input, shape index: {}]   ;;  %s12170_s10 = inlined_call_operand.vmem [shape: f32[1,128], index: 10, kind: input, shape index: {}]   ;;  %s12171_s11 = inlined_call_operand.vmem [shape: f32[128,128], index: 11, kind: input, shape index: {}]   ;;  %s12172_s12 = inlined_call_operand.vmem [shape: f32[1,128], index: 12, kind: input, shape index: {}]   ;;  %s12173_s13 = inlined_call_operand.hbm [shape: f32[2,128], index: 13, kind: output, shape index: {}]  }
   0x1   :  { %45 = vst [vmem:[#allocation2] sm:$0xff] %v7471_v0 }
   0x2   :  { %46 = vst [vmem:[#allocation2 + $0x8] sm:$0xff] %v7471_v0 }
   0x3   :  { %47 = vst [vmem:[#allocation2 + $0x10] sm:$0x3] %v7471_v0 }
   0x4   :  { %48 = vst [vmem:[#allocation2 + $0x18] sm:$0xff] %v7471_v0 }
   0x5   :  { %49 = vst [vmem:[#allocation2 + $0x20] sm:$0xff] %v7471_v0 }
   0x6   :  { %50 = vst [vmem:[#allocation2 + $0x28] sm:$0x3] %v7471_v0 }
   0x7   :  { %51 = vst [vmem:[#allocation2 + $0x30] sm:$0xff] %v7471_v0 }
   0x8   :  { %52 = vst [vmem:[#allocation2 + $0x38] sm:$0xff] %v7471_v0 }
   0x9   :  { %53 = vst [vmem:[#allocation2 + $0x40] sm:$0x3] %v7471_v0 }
   0xa   :  { %54 = vst [vmem:[#allocation2 + $0x48] sm:$0xff] %v7471_v0 }
   0xb   :  { %55 = vst [vmem:[#allocation2 + $0x50] sm:$0xff] %v7471_v0 }
   0xc   :  { %56 = vst [vmem:[#allocation2 + $0x58] sm:$0x3] %v7471_v0 }
   0xd   :  { %57 = vst [vmem:[#allocation2 + $0x60] sm:$0xff] %v7471_v0 }
   0xe   :  { %58 = vst [vmem:[#allocation2 + $0x68] sm:$0xff] %v7471_v0 }
   0xf   :  { %59 = vst [vmem:[#allocation2 + $0x70] sm:$0x3] %v7471_v0 }
  0x10   :  { %60 = vst [vmem:[#allocation2 + $0x78] sm:$0xff] %v7471_v0 }
  0x11   :  { %61 = vst [vmem:[#allocation2 + $0x80] sm:$0xff] %v7471_v0 }
  0x12   :  { %62 = vst [vmem:[#allocation2 + $0x88] sm:$0x3] %v7471_v0 }
  0x13   :  { %63 = vst [vmem:[#allocation2 + $0x90] sm:$0xff] %v7471_v0 }
  0x14   :  { %64 = vst [vmem:[#allocation2 + $0x98] sm:$0xff] %v7471_v0 }
  0x15   :  { %65 = vst [vmem:[#allocation2 + $0xa0] sm:$0x3] %v7471_v0 }
  0x16   :  { %66 = vst [vmem:[#allocation2 + $0xa8] sm:$0xff] %v7471_v0 }
  0x17   :  { %67 = vst [vmem:[#allocation2 + $0xb0] sm:$0xff] %v7471_v0 }
  0x18   :  { %68 = vst [vmem:[#allocation2 + $0xb8] sm:$0x3] %v7471_v0 }
  0x19   :  { %69 = vst [vmem:[#allocation2 + $0xc0] sm:$0xff] %v7471_v0 }
  0x1a   :  { %70 = vst [vmem:[#allocation2 + $0xc8] sm:$0xff] %v7471_v0 }
  0x1b   :  { %71 = vst [vmem:[#allocation2 + $0xd0] sm:$0x3] %v7471_v0 }
  0x1c   :  { %72 = vst [vmem:[#allocation2 + $0xd8] sm:$0xff] %v7471_v0 }
  0x1d   :  { %73 = vst [vmem:[#allocation2 + $0xe0] sm:$0xff] %v7471_v0 }
  0x1e   :  { %74 = vst [vmem:[#allocation2 + $0xe8] sm:$0x3] %v7471_v0 }
  0x1f   :  { %75 = vst [vmem:[#allocation2 + $0xf0] sm:$0xff] %v7471_v0 }
  0x20   :  { %76 = vst [vmem:[#allocation2 + $0xf8] sm:$0xff] %v7471_v0 }
  0x21   :  { %77 = vst [vmem:[#allocation2 + $0x100] sm:$0x3] %v7471_v0 }
  0x22   :  { %78 = vst [vmem:[#allocation2 + $0x108] sm:$0xff] %v7471_v0 }
  0x23   :  { %79 = vst [vmem:[#allocation2 + $0x110] sm:$0xff] %v7471_v0 }
  0x24   :  { %80 = vst [vmem:[#allocation2 + $0x118] sm:$0x3] %v7471_v0 }
  0x25   :  { %81 = vst [vmem:[#allocation2 + $0x120] sm:$0xff] %v7471_v0 }
  0x26   :  { %82 = vst [vmem:[#allocation2 + $0x128] sm:$0xff] %v7471_v0 }
  0x27   :  { %83 = vst [vmem:[#allocation2 + $0x130] sm:$0x3] %v7471_v0 }
  0x28   :  { %84 = vst [vmem:[#allocation2 + $0x138] sm:$0xff] %v7471_v0 }
  0x29   :  { %85 = vst [vmem:[#allocation2 + $0x140] sm:$0xff] %v7471_v0 }
  0x2a   :  { %86 = vst [vmem:[#allocation2 + $0x148] sm:$0x3] %v7471_v0 }
  0x2b   :  { %87 = vst [vmem:[#allocation2 + $0x150] sm:$0xff] %v7471_v0 }
  0x2c   :  { %88 = vst [vmem:[#allocation2 + $0x158] sm:$0xff] %v7471_v0 }
  0x2d   :  { %89 = vst [vmem:[#allocation2 + $0x160] sm:$0x3] %v7471_v0 }
  0x2e   :  { %90 = vst [vmem:[#allocation2 + $0x168] sm:$0xff] %v7471_v0 }
  0x2f   :  { %91 = vst [vmem:[#allocation2 + $0x170] sm:$0xff] %v7471_v0 }
  0x30   :  { %92 = vst [vmem:[#allocation2 + $0x178] sm:$0x3] %v7471_v0 }
  0x31   :  { %93 = vst [vmem:[#allocation2 + $0x180] sm:$0xff] %v7471_v0 }
  0x32   :  { %94 = vst [vmem:[#allocation2 + $0x188] sm:$0xff] %v7471_v0 }
  0x33   :  { %95 = vst [vmem:[#allocation2 + $0x190] sm:$0x3] %v7471_v0 }
  0x34   :  { %96 = vst [vmem:[#allocation2 + $0x198] sm:$0xff] %v7471_v0 }
  0x35   :  { %97 = vst [vmem:[#allocation2 + $0x1a0] sm:$0xff] %v7471_v0 }
  0x36   :  { %98 = vst [vmem:[#allocation2 + $0x1a8] sm:$0x3] %v7471_v0 }
  0x37   :  { %99 = vst [vmem:[#allocation2 + $0x1b0] sm:$0xff] %v7471_v0 }
  0x38   :  { %100 = vst [vmem:[#allocation2 + $0x1b8] sm:$0xff] %v7471_v0 }
  0x39   :  { %101 = vst [vmem:[#allocation2 + $0x1c0] sm:$0x3] %v7471_v0 }
  0x3a   :  { %102 = vst [vmem:[#allocation2 + $0x1c8] sm:$0xff] %v7471_v0 }
  0x3b   :  { %103 = vst [vmem:[#allocation2 + $0x1d0] sm:$0xff] %v7471_v0 }
  0x3c   :  { %104 = vst [vmem:[#allocation2 + $0x1d8] sm:$0x3] %v7471_v0 }
  0x3d   :  { %105 = vst [vmem:[#allocation2 + $0x1e0] sm:$0xff] %v7471_v0 }
  0x3e   :  { %106 = vst [vmem:[#allocation2 + $0x1e8] sm:$0xff] %v7471_v0 }
  0x3f   :  { %107 = vst [vmem:[#allocation2 + $0x1f0] sm:$0x3] %v7471_v0 }
  0x40   :  { %108 = vst [vmem:[#allocation2 + $0x1f8] sm:$0xff] %v7471_v0 }
  0x41   :  { %109 = vst [vmem:[#allocation2 + $0x200] sm:$0xff] %v7471_v0 }
  0x42   :  { %110 = vst [vmem:[#allocation2 + $0x208] sm:$0x3] %v7471_v0 }
  0x43   :  { %111 = vst [vmem:[#allocation2 + $0x210] sm:$0xff] %v7471_v0 }
  0x44   :  { %112 = vst [vmem:[#allocation2 + $0x218] sm:$0xff] %v7471_v0 }
  0x45   :  { %113 = vst [vmem:[#allocation2 + $0x220] sm:$0x3] %v7471_v0 }
  0x46   :  { %114 = vst [vmem:[#allocation2 + $0x228] sm:$0xff] %v7471_v0 }
  0x47   :  { %115 = vst [vmem:[#allocation2 + $0x230] sm:$0xff] %v7471_v0 }
  0x48   :  { %116 = vst [vmem:[#allocation2 + $0x238] sm:$0x3] %v7471_v0 }
  0x49   :  { %117 = vst [vmem:[#allocation2 + $0x240] sm:$0xff] %v7471_v0 }
  0x4a   :  { %118 = vst [vmem:[#allocation2 + $0x248] sm:$0xff] %v7471_v0 }
  0x4b   :  { %119 = vst [vmem:[#allocation2 + $0x250] sm:$0x3] %v7471_v0 }
  0x4c   :  { %120 = vst [vmem:[#allocation2 + $0x258] sm:$0xff] %v7471_v0 }
  0x4d   :  { %121 = vst [vmem:[#allocation2 + $0x260] sm:$0xff] %v7471_v0 }
  0x4e   :  { %122 = vst [vmem:[#allocation2 + $0x268] sm:$0x3] %v7471_v0 }
  0x4f   :  { %123 = vst [vmem:[#allocation2 + $0x270] sm:$0xff] %v7471_v0 }
  0x50   :  { %124 = vst [vmem:[#allocation2 + $0x278] sm:$0xff] %v7471_v0 }
  0x51   :  { %125 = vst [vmem:[#allocation2 + $0x280] sm:$0x3] %v7471_v0 }
  0x52   :  { %126 = vst [vmem:[#allocation2 + $0x288] sm:$0xff] %v7471_v0 }
  0x53   :  { %127 = vst [vmem:[#allocation2 + $0x290] sm:$0xff] %v7471_v0 }
  0x54   :  { %128 = vst [vmem:[#allocation2 + $0x298] sm:$0x3] %v7471_v0 }
  0x55   :  { %129 = vst [vmem:[#allocation2 + $0x2a0] sm:$0xff] %v7471_v0 }
  0x56   :  { %130 = vst [vmem:[#allocation2 + $0x2a8] sm:$0xff] %v7471_v0 }
  0x57   :  { %131 = vst [vmem:[#allocation2 + $0x2b0] sm:$0x3] %v7471_v0 }
  0x58   :  { %132 = vst [vmem:[#allocation2 + $0x2b8] sm:$0xff] %v7471_v0 }
  0x59   :  { %133 = vst [vmem:[#allocation2 + $0x2c0] sm:$0xff] %v7471_v0 }
  0x5a   :  { %134 = vst [vmem:[#allocation2 + $0x2c8] sm:$0x3] %v7471_v0 }
  0x5b   :  { %135 = vst [vmem:[#allocation2 + $0x2d0] sm:$0xff] %v7471_v0 }
  0x5c   :  { %136 = vst [vmem:[#allocation2 + $0x2d8] sm:$0xff] %v7471_v0 }
  0x5d   :  { %137 = vst [vmem:[#allocation2 + $0x2e0] sm:$0x3] %v7471_v0 }
  0x5e   :  { %138 = vst [vmem:[#allocation2 + $0x2e8] sm:$0xff] %v7471_v0 }
  0x5f   :  { %139 = vst [vmem:[#allocation2 + $0x2f0] sm:$0xff] %v7471_v0 }
  0x60   :  { %140 = vst [vmem:[#allocation2 + $0x2f8] sm:$0x3] %v7471_v0 }
  0x61   :  { %141 = vst [vmem:[#allocation2 + $0x300] sm:$0xff] %v7471_v0 }
  0x62   :  { %142 = vst [vmem:[#allocation2 + $0x308] sm:$0xff] %v7471_v0 }
  0x63   :  { %143 = vst [vmem:[#allocation2 + $0x310] sm:$0x3] %v7471_v0 }
  0x64   :  { %144 = vst [vmem:[#allocation2 + $0x318] sm:$0xff] %v7471_v0 }
  0x65   :  { %145 = vst [vmem:[#allocation2 + $0x320] sm:$0xff] %v7471_v0 }
  0x66   :  { %146 = vst [vmem:[#allocation2 + $0x328] sm:$0x3] %v7471_v0 }
  0x67   :  { %147 = vst [vmem:[#allocation2 + $0x330] sm:$0xff] %v7471_v0 }
  0x68   :  { %148 = vst [vmem:[#allocation2 + $0x338] sm:$0xff] %v7471_v0 }
  0x69   :  { %149 = vst [vmem:[#allocation2 + $0x340] sm:$0x3] %v7471_v0 }
  0x6a   :  { %150 = vst [vmem:[#allocation2 + $0x348] sm:$0xff] %v7471_v0 }
  0x6b   :  { %151 = vst [vmem:[#allocation2 + $0x350] sm:$0xff] %v7471_v0 }
  0x6c   :  { %152 = vst [vmem:[#allocation2 + $0x358] sm:$0x3] %v7471_v0 }
  0x6d   :  { %153 = vst [vmem:[#allocation3] sm:$0xff] %v7471_v0 }
  0x6e   :  { %154 = vst [vmem:[#allocation3 + $0x8] sm:$0x3] %v7471_v0 }
  0x6f   :  { %155 = vst [vmem:[#allocation3 + $0x10] sm:$0xff] %v7471_v0 }
  0x70   :  { %156 = vst [vmem:[#allocation3 + $0x18] sm:$0x3] %v7471_v0 }
  0x71   :  { %157 = vst [vmem:[#allocation3 + $0x20] sm:$0xff] %v7471_v0 }
  0x72   :  { %158 = vst [vmem:[#allocation3 + $0x28] sm:$0x3] %v7471_v0 }
  0x73   :  { %159 = vst [vmem:[#allocation3 + $0x30] sm:$0xff] %v7471_v0 }
  0x74   :  { %160 = vst [vmem:[#allocation3 + $0x38] sm:$0x3] %v7471_v0 }
  0x75   :  { %161 = vst [vmem:[#allocation3 + $0x40] sm:$0xff] %v7471_v0 }
  0x76   :  { %162 = vst [vmem:[#allocation3 + $0x48] sm:$0x3] %v7471_v0 }
  0x77   :  { %163 = vst [vmem:[#allocation3 + $0x50] sm:$0xff] %v7471_v0 }
  0x78   :  { %164 = vst [vmem:[#allocation3 + $0x58] sm:$0x3] %v7471_v0 }
  0x79   :  { %165 = vst [vmem:[#allocation3 + $0x60] sm:$0xff] %v7471_v0 }
  0x7a   :  { %166 = vst [vmem:[#allocation3 + $0x68] sm:$0x3] %v7471_v0 }
  0x7b   :  { %167 = vst [vmem:[#allocation3 + $0x70] sm:$0xff] %v7471_v0 }
  0x7c   :  { %168 = vst [vmem:[#allocation3 + $0x78] sm:$0x3] %v7471_v0 }
  0x7d   :  { %169 = vst [vmem:[#allocation3 + $0x80] sm:$0xff] %v7471_v0 }
  0x7e   :  { %170 = vst [vmem:[#allocation3 + $0x88] sm:$0x3] %v7471_v0 }
  0x7f   :  { %171 = vst [vmem:[#allocation3 + $0x90] sm:$0xff] %v7471_v0 }
  0x80   :  { %172 = vst [vmem:[#allocation3 + $0x98] sm:$0x3] %v7471_v0 }
  0x81   :  { %173 = vst [vmem:[#allocation3 + $0xa0] sm:$0xff] %v7471_v0 }
  0x82   :  { %174 = vst [vmem:[#allocation3 + $0xa8] sm:$0x3] %v7471_v0 }
  0x83   :  { %175 = vst [vmem:[#allocation3 + $0xb0] sm:$0xff] %v7471_v0 }
  0x84   :  { %176 = vst [vmem:[#allocation3 + $0xb8] sm:$0x3] %v7471_v0 }
  0x85   :  { %177 = vst [vmem:[#allocation3 + $0xc0] sm:$0xff] %v7471_v0 }
  0x86   :  { %178 = vst [vmem:[#allocation3 + $0xc8] sm:$0x3] %v7471_v0 }
  0x87   :  { %179 = vst [vmem:[#allocation3 + $0xd0] sm:$0xff] %v7471_v0 }
  0x88   :  { %180 = vst [vmem:[#allocation3 + $0xd8] sm:$0x3] %v7471_v0 }
  0x89   :  { %181 = vst [vmem:[#allocation3 + $0xe0] sm:$0xff] %v7471_v0 }
  0x8a   :  { %182 = vst [vmem:[#allocation3 + $0xe8] sm:$0x3] %v7471_v0 }
  0x8b   :  { %183 = vst [vmem:[#allocation3 + $0xf0] sm:$0xff] %v7471_v0 }
  0x8c   :  { %184 = vst [vmem:[#allocation3 + $0xf8] sm:$0x3] %v7471_v0 }
  0x8d   :  { %185 = vst [vmem:[#allocation3 + $0x100] sm:$0xff] %v7471_v0 }
  0x8e   :  { %186 = vst [vmem:[#allocation3 + $0x108] sm:$0x3] %v7471_v0 }
  0x8f   :  { %187 = vst [vmem:[#allocation3 + $0x110] sm:$0xff] %v7471_v0 }
  0x90   :  { %188 = vst [vmem:[#allocation3 + $0x118] sm:$0x3] %v7471_v0 }
  0x91   :  { %189 = vst [vmem:[#allocation3 + $0x120] sm:$0xff] %v7471_v0 }
  0x92   :  { %190 = vst [vmem:[#allocation3 + $0x128] sm:$0x3] %v7471_v0 }
  0x93   :  { %191 = vst [vmem:[#allocation3 + $0x130] sm:$0xff] %v7471_v0 }
  0x94   :  { %192 = vst [vmem:[#allocation3 + $0x138] sm:$0x3] %v7471_v0 }
  0x95 LB: > { %v6367_v1 = vld [vmem:[%s12161_s1 + $0x8] sm:$0xff]  ;;  %v6432_v2 = vld [vmem:[%s12161_s1 + $0x10] sm:$0xff]  ;;  %v6499_v3 = vld [vmem:[%s12161_s1 + $0x18] sm:$0xff]  ;;  %s6366_s17 = smul.u32 160, %s7461_s25  ;;  %vm270_vm0 = vcmask 64512   ;;  %vm2896_vm1 = vcmask 1040384   ;;  %s7461_s25 = sphi %s7691_s25, %s198_s25  }
  0x96   : > { %7306 = vmatpush.msra.mxu1 %v6367_v1  ;;  %7307 = vmatpush.msra.mxu2 %v6367_v1  ;;  %v235_v4 = vld [vmem:[%s12161_s1] sm:$0xff]  ;;  %v6696_v26 = vld [vmem:[%s12161_s1 + $0x30] sm:$0xff]  ;;  %v6761_v27 = vld [vmem:[%s12161_s1 + $0x38] sm:$0xff]  ;;  %vm2901_vm2 = vcmask 1041408   ;;  %vm2906_vm3 = vcmask 1042432   ;;  %vm2911_vm4 = vcmask 1043456  }
  0x97   : > { %7308 = vmatpush.msra.mxu3 %v6367_v1  ;;  %v6564_v5 = vld [vmem:[%s12161_s1 + $0x20] sm:$0xff]  ;;  %s7715_s22 = scalar_lea.vmem %s12160_s0, %s6366_s17  ;;  %382 = vmatpush.msra.mxu0 %v6367_v1  ;;  %v6629_v28 = vld [vmem:[%s12161_s1 + $0x28] sm:$0xff]  ;;  %s6860_s17 = smul.u32 48, %s7461_s25  ;;  %vm2916_vm5 = vcmask 1044480   ;;  %vm2921_vm6 = vcmask 1045504   ;;  %vm2926_vm7 = vcmask 1046528  }
  0x98   : > { %834 = vmatpush.msrb.mxu2 %v6432_v2  ;;  %591 = vmatpush.msrb.mxu1 %v235_v4  ;;  %v7718_v6 = vld [vmem:[%s7715_s22 + $0x51] sm:$0xff]  ;;  %v7722_v8 = vld [vmem:[%s7715_s22 + $0x5a1] sm:$0xff]  ;;  %v7732_v10 = vld [vmem:[%s7715_s22 + $0x59] sm:$0xff]  ;;  %s198_s25 = sadd.s32 1, %s7461_s25  }
  0x99   : > { %1112 = vmatpush.msrb.mxu3 %v6499_v3  ;;  %v252_v7 = vld [vmem:[%s7715_s22 + $0x551] sm:$0xff]  ;;  %1387 = vmatpush.msrb.mxu0 %v6564_v5  ;;  %v236_v9 = vld [vmem:[%s7715_s22 + $0x1] sm:$0xff]  ;;  %v253_v11 = vld [vmem:[%s7715_s22 + $0x559] sm:$0xff]  ;;  %s8661_s18 = scalar_lea.vmem [#allocation2], %s6860_s17  ;;  %p195_p0 = scmp.ge.s32.totalorder %s198_s25, 8  }
  0x9a   : > { %6376 = vmatmul.msk.f32.vlgmr.msra.gmra.mxu1 %vm270_vm0, %v7718_v6  ;;  %6384 = vmatmul.msk.f32.vlgmr.msra.gmra.mxu2 %vm270_vm0, %v252_v7  ;;  %v7736_v12 = vld [vmem:[%s7715_s22 + $0x5a9] sm:$0xff]  ;;  %v7746_v14 = vld [vmem:[%s7715_s22 + $0x61] sm:$0xff]  ;;  %v7750_v16 = vld [vmem:[%s7715_s22 + $0x5b1] sm:$0xff]  ;;  %s8864_s21 = smov (%p195_p0), 0  }
  0x9b   : > { %6392 = vmatmul.msk.f32.vlgmr.msra.gmra.mxu3 %vm270_vm0, %v7722_v8  ;;  %6368 = vmatmul.msk.f32.vlgmr.msra.gmra.mxu0 %vm270_vm0, %v236_v9  ;;  %v237_v13 = vld [vmem:[%s7715_s22 + $0x9] sm:$0xff]  ;;  %v254_v15 = vld [vmem:[%s7715_s22 + $0x561] sm:$0xff]  ;;  %v238_v17 = vld [vmem:[%s7715_s22 + $0x11] sm:$0xff] }
  0x9c   : > { %v7760_v18 = vld [vmem:[%s7715_s22 + $0x69] sm:$0xff]  ;;  %v7764_v20 = vld [vmem:[%s7715_s22 + $0x5b9] sm:$0xff]  ;;  %1940 = vmatpush.msra.mxu2 %v6696_v26  ;;  %2215 = vmatpush.msra.mxu3 %v6761_v27  ;;  %v7800_v29 = vld [vmem:[%s7715_s22 + $0x81] sm:$0xff] }
  0x9d   : > { %v255_v19 = vld [vmem:[%s7715_s22 + $0x569] sm:$0xff]  ;;  %v239_v21 = vld [vmem:[%s7715_s22 + $0x19] sm:$0xff]  ;;  %1662 = vmatpush.msra.mxu1 %v6629_v28  ;;  %v7803_v30 = vld [vmem:[%s7715_s22 + $0x581] sm:$0xff] }
  0x9e   : > { %v7774_v22 = vld [vmem:[%s7715_s22 + $0x79] sm:$0xff]  ;;  %v7780_v24 = vld [vmem:[%s7715_s22 + $0x5c9] sm:$0xff]  ;;  %v7806_v31 = vld [vmem:[%s7715_s22 + $0x5d1] sm:$0xff] }
  0x9f   : > { %v7777_v23 = vld [vmem:[%s7715_s22 + $0x579] sm:$0xff]  ;;  %v240_v25 = vld [vmem:[%s7715_s22 + $0x29] sm:$0xff]  ;;  %v241_v32 = vld [vmem:[%s7715_s22 + $0x31] sm:$0xff] }
  0xa0   : > { %v6826_v33 = vld [vmem:[%s12161_s1 + $0x40] sm:$0xff]  ;;  %v7820_v34 = vld [vmem:[%s7715_s22 + $0x89] sm:$0xff]  ;;  %v7837_v38 = vld [vmem:[%s7715_s22 + $0x91] sm:$0xff] }
  0xa1   : > { %2490 = vmatpush.msra.mxu0 %v6826_v33  ;;  %v7823_v35 = vld [vmem:[%s7715_s22 + $0x589] sm:$0xff]  ;;  %v7826_v36 = vld [vmem:[%s7715_s22 + $0x5d9] sm:$0xff]  ;;  %v7840_v39 = vld [vmem:[%s7715_s22 + $0x591] sm:$0xff] }
  0xa2   : > { %6377 = vmatmul.msk.f32.gmra.mxu1 %vm270_vm0, %v7732_v10  ;;  %6385 = vmatmul.msk.f32.gmra.mxu2 %vm270_vm0, %v253_v11  ;;  %v242_v37 = vld [vmem:[%s7715_s22 + $0x39] sm:$0xff]  ;;  %v7843_v40 = vld [vmem:[%s7715_s22 + $0x5e1] sm:$0xff]  ;;  %v690_v46 = vld [vmem:[%s7715_s22 + $0xa] sm:$0xff] }
  0xa3   : > { %6393 = vmatmul.msk.f32.gmra.mxu3 %vm270_vm0, %v7736_v12  ;;  %6369 = vmatmul.msk.f32.gmra.mxu0 %vm270_vm0, %v237_v13  ;;  %v243_v41 = vld [vmem:[%s7715_s22 + $0x41] sm:$0xff]  ;;  %v6468_v47 = vld [vmem:[%s7715_s22 + $0x30] sm:$0xff]  ;;  %v6469_v50 = vld [vmem:[%s7715_s22 + $0x38] sm:$0xff] }
  0xa4   : > { %v203_v42 = vld [vmem:[%s7715_s22] sm:$0xff]  ;;  %v6467_v44 = vld [vmem:[%s7715_s22 + $0x28] sm:$0xff]  ;;  %v205_v48 = vld [vmem:[%s7715_s22 + $0x10] sm:$0xff] }
  0xa5   : > { %v689_v43 = vld [vmem:[%s7715_s22 + $0x2] sm:$0xff]  ;;  %v691_v49 = vld [vmem:[%s7715_s22 + $0x12] sm:$0xff]  ;;  %v692_v52 = vld [vmem:[%s7715_s22 + $0x1a] sm:$0xff] }
  0xa6   : > { %v204_v45 = vld [vmem:[%s7715_s22 + $0x8] sm:$0xff]  ;;  %v206_v51 = vld [vmem:[%s7715_s22 + $0x18] sm:$0xff]  ;;  %v6470_v53 = vld [vmem:[%s7715_s22 + $0x40] sm:$0xff] }
  0xa7   : > { %v7882_v54 = vld [vmem:[%s7715_s22 + $0x2a] sm:$0xff]  ;;  %v7895_v56 = vld [vmem:[%s7715_s22 + $0x32] sm:$0xff]  ;;  %v7908_v58 = vld [vmem:[%s7715_s22 + $0x3a] sm:$0xff] }
  0xa8   : > { %v7885_v55 = vld [vmem:[%s7715_s22 + $0x50] sm:$0xff]  ;;  %v7898_v57 = vld [vmem:[%s7715_s22 + $0x58] sm:$0xff]  ;;  %v7911_v59 = vld [vmem:[%s7715_s22 + $0x60] sm:$0xff] }
  0xa9   : > { %v7921_v60 = vld [vmem:[%s7715_s22 + $0x42] sm:$0xff]  ;;  %v7936_v63 = vld [vmem:[%s7715_s22 + $0x52] sm:$0xff]  ;;  %v7958_v5 = vld [vmem:[%s7715_s22 + $0x5a] sm:$0xff] }
  0xaa   : > { %6378 = vmatmul.msk.f32.gmra.mxu1 %vm270_vm0, %v7746_v14  ;;  %6386 = vmatmul.msk.f32.gmra.mxu2 %vm270_vm0, %v254_v15  ;;  %v7924_v61 = vld [vmem:[%s7715_s22 + $0x68] sm:$0xff]  ;;  %v7939_v0 = vld [vmem:[%s7715_s22 + $0x78] sm:$0xff]  ;;  %v7961_v7 = vld [vmem:[%s7715_s22 + $0x80] sm:$0xff] }
  0xab   : > { %6394 = vmatmul.msk.f32.gmra.mxu3 %vm270_vm0, %v7750_v16  ;;  %6370 = vmatmul.msk.f32.gmra.mxu0 %vm270_vm0, %v238_v17  ;;  %12194 = vst [vmem:[#allocation9_spill] sm:$0xff] %v7961_v7  ;;  %v7980_v17 = vld [vmem:[%s7715_s22 + $0x62] sm:$0xff]  ;;  %v8002_v26 = vld [vmem:[%s7715_s22 + $0x6a] sm:$0xff] }
  0xac   : > { %v8005_v27 = vld [vmem:[%s7715_s22 + $0x90] sm:$0xff] }
  0xad   : > { %12198 = vst [vmem:[#allocation13_spill] sm:$0xff] %v8005_v27 }
  0xb2   : > { %6379 = vmatmul.msk.f32.gmra.mxu1 %vm270_vm0, %v7760_v18  ;;  %6387 = vmatmul.msk.f32.gmra.mxu2 %vm270_vm0, %v255_v19 }
  0xb3   : > { %6395 = vmatmul.msk.f32.gmra.mxu3 %vm270_vm0, %v7764_v20  ;;  %6371 = vmatmul.msk.f32.gmra.mxu0 %vm270_vm0, %v239_v21 }
  0xba   : > { %6380 = vmatmul.msk.f32.gmra.mxu1 %vm270_vm0, %v7774_v22  ;;  %6388 = vmatmul.msk.f32.gmra.mxu2 %vm270_vm0, %v7777_v23 }
  0xbb   : > { %6396 = vmatmul.msk.f32.gmra.mxu3 %vm270_vm0, %v7780_v24  ;;  %6372 = vmatmul.msk.f32.gmra.mxu0 %vm270_vm0, %v240_v25 }
  0xc2   : > { %6381 = vmatmul.msk.f32.gmra.mxu1 %vm270_vm0, %v7800_v29  ;;  %6389 = vmatmul.msk.f32.gmra.mxu2 %vm270_vm0, %v7803_v30 }
  0xc3   : > { %6397 = vmatmul.msk.f32.gmra.mxu3 %vm270_vm0, %v7806_v31  ;;  %6373 = vmatmul.msk.f32.gmra.mxu0 %vm270_vm0, %v241_v32 }
  0xca   : > { %6382 = vmatmul.msk.f32.gmra.mxu1 %vm270_vm0, %v7820_v34  ;;  %6390 = vmatmul.msk.f32.gmra.mxu2 %vm270_vm0, %v7823_v35 }
  0xcb   : > { %6398 = vmatmul.msk.f32.gmra.mxu3 %vm270_vm0, %v7826_v36  ;;  %6374 = vmatmul.msk.f32.gmra.mxu0 %vm270_vm0, %v242_v37 }
  0xd2   : > { %6383 = vmatmul.msk.f32.gmra.mxu1 %vm270_vm0, %v7837_v38  ;;  %6391 = vmatmul.msk.f32.gmra.mxu2 %vm270_vm0, %v7840_v39 }
  0xd3   : > { %6399 = vmatmul.msk.f32.gmra.mxu3 %vm270_vm0, %v7843_v40  ;;  %6375 = vmatmul.msk.f32.gmra.mxu0 %vm270_vm0, %v243_v41 }
  0xda   : > { %6400 = vmatmul.msk.f32.vlgmr.msrb.gmra.mxu1 %vm270_vm0, %v203_v42  ;;  %6433 = vmatmul.msk.f32.vlgmr.msrb.gmra.mxu2 %vm270_vm0, %v689_v43  ;;  %v8032_v42 = vld [vmem:[%s7715_s22 + $0xa1] sm:$0xff] }
  0xdb   : > { %6500 = vmatmul.msk.f32.vlgmr.msrb.gmra.mxu3 %vm270_vm0, %v6467_v44  ;;  %6565 = vmatmul.msk.f32.vlgmr.msrb.gmra.mxu0 %vm270_vm0, %v240_v25  ;;  %12201 = vst [vmem:[#allocation16_spill] sm:$0xff] %v8032_v42 }
  0xe2   : > { %6401 = vmatmul.msk.f32.gmra.mxu1 %vm270_vm0, %v204_v45  ;;  %6434 = vmatmul.msk.f32.gmra.mxu2 %vm270_vm0, %v690_v46  ;;  %v8049_v45 = vld [vmem:[%s7715_s22 + $0x82] sm:$0xff] }
  0xe3   : > { %6501 = vmatmul.msk.f32.gmra.mxu3 %vm270_vm0, %v6468_v47  ;;  %6566 = vmatmul.msk.f32.gmra.mxu0 %vm270_vm0, %v241_v32  ;;  %12203 = vst [vmem:[#allocation18_spill] sm:$0xff] %v8049_v45  ;;  %v8052_v46 = vld [vmem:[%s7715_s22 + $0xa8] sm:$0xff] }
  0xe4   : > { %12204 = vst [vmem:[#allocation19_spill] sm:$0xff] %v8052_v46 }
  0xea   : > { %6402 = vmatmul.msk.f32.gmra.mxu1 %vm270_vm0, %v205_v48  ;;  %6435 = vmatmul.msk.f32.gmra.mxu2 %vm270_vm0, %v691_v49  ;;  %v8057_v48 = vld [vmem:[%s7715_s22 + $0xa9] sm:$0xff] }
  0xeb   : > { %6502 = vmatmul.msk.f32.gmra.mxu3 %vm270_vm0, %v6469_v50  ;;  %6567 = vmatmul.msk.f32.gmra.mxu0 %vm270_vm0, %v242_v37  ;;  %v8027_v37 = vld [vmem:[%s7715_s22 + $0xa0] sm:$0xff]  ;;  %12205 = vst [vmem:[#allocation20_spill] sm:$0xff] %v8057_v48 }
  0xec   : > { %12200 = vst [vmem:[#allocation15_spill] sm:$0xff] %v8027_v37 }
  0xf2   : > { %6403 = vmatmul.msk.f32.gmra.mxu1 %vm270_vm0, %v206_v51  ;;  %6436 = vmatmul.msk.f32.gmra.mxu2 %vm270_vm0, %v692_v52  ;;  %v8074_v52 = vld [vmem:[%s7715_s22 + $0x8a] sm:$0xff] }
  0xf3   : > { %6503 = vmatmul.msk.f32.gmra.mxu3 %vm270_vm0, %v6470_v53  ;;  %6568 = vmatmul.msk.f32.gmra.mxu0 %vm270_vm0, %v243_v41  ;;  %12208 = vst [vmem:[#allocation23_spill] sm:$0xff] %v8074_v52 }
  0xfa   : > { %6404 = vmatmul.msk.f32.gmra.mxu1 %vm270_vm0, %v6467_v44  ;;  %6437 = vmatmul.msk.f32.gmra.mxu2 %vm270_vm0, %v7882_v54 }
  0xfb   : > { %6504 = vmatmul.msk.f32.gmra.mxu3 %vm270_vm0, %v7885_v55  ;;  %6569 = vmatmul.msk.f32.gmra.mxu0 %vm270_vm0, %v7718_v6 }
 0x102   : > { %6405 = vmatmul.msk.f32.gmra.mxu1 %vm270_vm0, %v6468_v47  ;;  %6438 = vmatmul.msk.f32.gmra.mxu2 %vm270_vm0, %v7895_v56 }
 0x103   : > { %6505 = vmatmul.msk.f32.gmra.mxu3 %vm270_vm0, %v7898_v57  ;;  %6570 = vmatmul.msk.f32.gmra.mxu0 %vm270_vm0, %v7732_v10 }
 0x10a   : > { %6406 = vmatmul.msk.f32.gmra.mxu1 %vm270_vm0, %v6469_v50  ;;  %6439 = vmatmul.msk.f32.gmra.mxu2 %vm270_vm0, %v7908_v58 }
 0x10b   : > { %6506 = vmatmul.msk.f32.gmra.mxu3 %vm270_vm0, %v7911_v59  ;;  %6571 = vmatmul.msk.f32.gmra.mxu0 %vm270_vm0, %v7746_v14 }
 0x112   : > { %6407 = vmatmul.msk.f32.gmra.mxu1 %vm270_vm0, %v6470_v53  ;;  %6440 = vmatmul.msk.f32.gmra.mxu2 %vm270_vm0, %v7921_v60  ;;  %v8077_v53 = vld [vmem:[%s7715_s22 + $0xb0] sm:$0xff] }
 0x113   : > { %6507 = vmatmul.msk.f32.gmra.mxu3 %vm270_vm0, %v7924_v61  ;;  %6572 = vmatmul.msk.f32.gmra.mxu0 %vm270_vm0, %v7760_v18  ;;  %v7983_v18 = vld [vmem:[%s7715_s22 + $0x88] sm:$0xff]  ;;  %12209 = vst [vmem:[#allocation24_spill] sm:$0xff] %v8077_v53 }
 0x114   : > { %12196 = vst [vmem:[#allocation11_spill] sm:$0xff] %v7983_v18 }
 0x117   : > { %v7933_v62 = vpop.f32.mrf.mxu1 }
 0x118   : > { %v7941_v1 = vpop.f32.mrf.mxu0 }
 0x11a   : > { %6408 = vmatmul.msk.f32.gmra.mxu1 %vm270_vm0, %v7885_v55  ;;  %6441 = vmatmul.msk.f32.gmra.mxu2 %vm270_vm0, %v7936_v63 }
 0x11b   : > { %6508 = vmatmul.msk.f32.gmra.mxu3 %vm270_vm0, %v7939_v0  ;;  %6573 = vmatmul.msk.f32.gmra.mxu0 %vm270_vm0, %v7774_v22 }
 0x11d   : > { %v7951_v2 = vpop.f32.mrf.mxu2 }
 0x11e   : > { %v7953_v3 = vpop.f32.mrf.mxu3 }
 0x11f   : > { %12193 = vst [vmem:[#allocation8_spill] sm:$0xff] %v7953_v3  ;;  %v7955_v4 = vpop.f32.mrf.mxu1 }
 0x120   : > { %v7963_v9 = vpop.f32.mrf.mxu0 }
 0x122   : > { %6409 = vmatmul.msk.f32.gmra.mxu1 %vm270_vm0, %v7898_v57  ;;  %6442 = vmatmul.msk.f32.gmra.mxu2 %vm270_vm0, %v7958_v5 }
 0x123   : > { %6509 = vmatmul.msk.f32.gmra.mxu3 %vm270_vm0, %v7961_v7  ;;  %6574 = vmatmul.msk.f32.gmra.mxu0 %vm270_vm0, %v7800_v29 }
 0x125   : > { %v7973_v11 = vpop.f32.mrf.mxu2 }
 0x126   : > { %v7975_v13 = vpop.f32.mrf.mxu3 }
 0x127   : > { %12195 = vst [vmem:[#allocation10_spill] sm:$0xff] %v7975_v13  ;;  %v7977_v15 = vpop.f32.mrf.mxu1 }
 0x128   : > { %v7985_v19 = vpop.f32.mrf.mxu0 }
 0x12a   : > { %6410 = vmatmul.msk.f32.gmra.mxu1 %vm270_vm0, %v7911_v59  ;;  %6443 = vmatmul.msk.f32.gmra.mxu2 %vm270_vm0, %v7980_v17 }
 0x12b   : > { %6510 = vmatmul.msk.f32.gmra.mxu3 %vm270_vm0, %v7983_v18  ;;  %6575 = vmatmul.msk.f32.gmra.mxu0 %vm270_vm0, %v7820_v34  ;;  %v8024_v34 = vld [vmem:[%s7715_s22 + $0x7a] sm:$0xff] }
 0x12d   : > { %v7995_v21 = vpop.f32.mrf.mxu2 }
 0x12e   : > { %v7997_v22 = vpop.f32.mrf.mxu3 }
 0x12f   : > { %12197 = vst [vmem:[#allocation12_spill] sm:$0xff] %v7997_v22  ;;  %v7999_v25 = vpop.f32.mrf.mxu1 }
 0x130   : > { %v8007_v28 = vpop.f32.mrf.mxu0 }
 0x132   : > { %6411 = vmatmul.msk.f32.gmra.mxu1 %vm270_vm0, %v7924_v61  ;;  %6444 = vmatmul.msk.f32.gmra.mxu2 %vm270_vm0, %v8002_v26 }
 0x133   : > { %6511 = vmatmul.msk.f32.gmra.mxu3 %vm270_vm0, %v8005_v27  ;;  %6576 = vmatmul.msk.f32.gmra.mxu0 %vm270_vm0, %v7837_v38 }
 0x135   : > { %v8017_v29 = vpop.f32.mrf.mxu2 }
 0x136   : > { %v8019_v32 = vpop.f32.mrf.mxu3 }
 0x137   : > { %12199 = vst [vmem:[#allocation14_spill] sm:$0xff] %v8019_v32  ;;  %v8021_v33 = vpop.f32.mrf.mxu1  ;;  %v8082_v32 = vld [vmem:[%s7715_s22 + $0xb1] sm:$0xff] }
 0x138   : > { %v8029_v41 = vpop.f32.mrf.mxu0  ;;  %12210 = vst [vmem:[#allocation25_spill] sm:$0xff] %v8082_v32 }
 0x13a   : > { %6412 = vmatmul.msk.f32.gmra.mxu1 %vm270_vm0, %v7939_v0  ;;  %6445 = vmatmul.msk.f32.gmra.mxu2 %vm270_vm0, %v8024_v34 }
 0x13b   : > { %6512 = vmatmul.msk.f32.gmra.mxu3 %vm270_vm0, %v8027_v37  ;;  %6577 = vmatmul.msk.f32.gmra.mxu0 %vm270_vm0, %v8032_v42  ;;  %v8107_v42 = vld [vmem:[%s7715_s22 + $0xb9] sm:$0xff]  ;;  %v219_v37 = vld [vmem:[%s7715_s22 + $0x550] sm:$0xff] }
 0x13c   : > { %12215 = vst [vmem:[#allocation30_spill] sm:$0xff] %v8107_v42 }
 0x13d   : > { %v8042_v38 = vpop.f32.mrf.mxu2 }
 0x13e   : > { %v8044_v43 = vpop.f32.mrf.mxu3 }
 0x13f   : > { %12202 = vst [vmem:[#allocation17_spill] sm:$0xff] %v8044_v43  ;;  %v8046_v44 = vpop.f32.mrf.mxu1 }
 0x140   : > { %v8054_v47 = vpop.f32.mrf.mxu0 }
 0x142   : > { %6413 = vmatmul.msk.f32.gmra.mxu1 %vm270_vm0, %v7961_v7  ;;  %6446 = vmatmul.msk.f32.gmra.mxu2 %vm270_vm0, %v8049_v45 }
 0x143   : > { %6513 = vmatmul.msk.f32.gmra.mxu3 %vm270_vm0, %v8052_v46  ;;  %6578 = vmatmul.msk.f32.gmra.mxu0 %vm270_vm0, %v8057_v48  ;;  %v8099_v48 = vld [vmem:[%s7715_s22 + $0x92] sm:$0xff] }
 0x144   : > { %12213 = vst [vmem:[#allocation28_spill] sm:$0xff] %v8099_v48  ;;  %v8102_v46 = vld [vmem:[%s7715_s22 + $0xb8] sm:$0xff] }
 0x145   : > { %v8067_v49 = vpop.f32.mrf.mxu2  ;;  %12214 = vst [vmem:[#allocation29_spill] sm:$0xff] %v8102_v46 }
 0x146   : > { %12206 = vst [vmem:[#allocation21_spill] sm:$0xff] %v8067_v49  ;;  %v8069_v50 = vpop.f32.mrf.mxu3  ;;  %v706_v49 = vld [vmem:[%s7715_s22 + $0x55a] sm:$0xff] }
 0x147   : > { %12207 = vst [vmem:[#allocation22_spill] sm:$0xff] %v8069_v50  ;;  %v8071_v51 = vpop.f32.mrf.mxu1 }
 0x148   : > { %v8079_v43 = vpop.f32.mrf.mxu0 }
 0x14a   : > { %6414 = vmatmul.msk.f32.gmra.mxu1 %vm270_vm0, %v7983_v18  ;;  %6447 = vmatmul.msk.f32.gmra.mxu2 %vm270_vm0, %v8074_v52  ;;  %v220_v18 = vld [vmem:[%s7715_s22 + $0x558] sm:$0xff] }
 0x14b   : > { %6514 = vmatmul.msk.f32.gmra.mxu3 %vm270_vm0, %v8077_v53  ;;  %6579 = vmatmul.msk.f32.gmra.mxu0 %vm270_vm0, %v8082_v32 }
 0x14d   : > { %v8092_v50 = vpop.f32.mrf.mxu2 }
 0x14e   : > { %12211 = vst [vmem:[#allocation26_spill] sm:$0xff] %v8092_v50  ;;  %v8094_v22 = vpop.f32.mrf.mxu3  ;;  %v705_v50 = vld [vmem:[%s7715_s22 + $0x552] sm:$0xff] }
 0x14f   : > { %12212 = vst [vmem:[#allocation27_spill] sm:$0xff] %v8094_v22  ;;  %v8096_v13 = vpop.f32.mrf.mxu1 }
 0x150   : > { %v8104_v3 = vpop.f32.mrf.mxu0 }
 0x152   : > { %6415 = vmatmul.msk.f32.gmra.mxu1 %vm270_vm0, %v8005_v27  ;;  %6448 = vmatmul.msk.f32.gmra.mxu2 %vm270_vm0, %v8099_v48  ;;  %v6483_v27 = vld [vmem:[%s7715_s22 + $0x578] sm:$0xff] }
 0x153   : > { %6515 = vmatmul.msk.f32.gmra.mxu3 %vm270_vm0, %v8102_v46  ;;  %6580 = vmatmul.msk.f32.gmra.mxu0 %vm270_vm0, %v8107_v42 }
 0x155   : > { %v8117_v22 = vpop.f32.mrf.mxu2 }
 0x156   : > { %12216 = vst [vmem:[#allocation31_spill] sm:$0xff] %v8117_v22  ;;  %v8119_v32 = vpop.f32.mrf.mxu3 }
 0x157   : > { %12217 = vst [vmem:[#allocation32_spill] sm:$0xff] %v8119_v32  ;;  %v593_v53 = vpop.f32.mrf.mxu1 }
 0x158   : > { %v1389_v52 = vpop.f32.mrf.mxu0  ;;  %v594_v42 = vadd.f32 %v593_v53, %v7941_v1 }
 0x15a   : > { %6416 = vmatmul.msk.f32.gmra.mxu1 %vm270_vm0, %v219_v37  ;;  %6449 = vmatmul.msk.f32.gmra.mxu2 %vm270_vm0, %v705_v50  ;;  %v6484_v37 = vld [vmem:[%s7715_s22 + $0x580] sm:$0xff] }
 0x15b   : > { %6516 = vmatmul.msk.f32.gmra.mxu3 %vm270_vm0, %v6483_v27  ;;  %6581 = vmatmul.msk.f32.gmra.mxu0 %vm270_vm0, %v7777_v23 }
 0x15d   : > { %v836_v46 = vpop.f32.mrf.mxu2 }
 0x15e   : > { %v932_v32 = vadd.f32 %v836_v46, %v594_v42  ;;  %v1114_v22 = vpop.f32.mrf.mxu3 }
 0x15f   : > { %v596_v48 = vpop.f32.mrf.mxu1 }
 0x160   : > { %v1210_v45 = vadd.f32 %v1114_v22, %v932_v32  ;;  %v1392_v7 = vpop.f32.mrf.mxu0  ;;  %v597_v23 = vadd.f32 %v596_v48, %v7963_v9  ;;  %v221_v32 = vld [vmem:[%s7715_s22 + $0x560] sm:$0xff] }
 0x162   : > { %v8133_v50 = vadd.f32 %v1389_v52, %v1210_v45  ;;  %6417 = vmatmul.msk.f32.gmra.mxu1 %vm270_vm0, %v220_v18  ;;  %6450 = vmatmul.msk.f32.gmra.mxu2 %vm270_vm0, %v706_v49  ;;  %v707_v45 = vld [vmem:[%s7715_s22 + $0x562] sm:$0xff] }
 0x163   : > { %6517 = vmatmul.msk.f32.gmra.mxu3 %vm270_vm0, %v6484_v37  ;;  %6582 = vmatmul.msk.f32.gmra.mxu0 %vm270_vm0, %v7803_v30  ;;  %v6485_v18 = vld [vmem:[%s7715_s22 + $0x588] sm:$0xff] }
 0x165   : > { %v839_v1 = vpop.f32.mrf.mxu2 }
 0x166   : > { %v933_v42 = vadd.f32 %v839_v1, %v597_v23  ;;  %v1117_v46 = vpop.f32.mrf.mxu3 }
 0x167   : > { %v599_v22 = vpop.f32.mrf.mxu1 }
 0x168   : > { %v1211_v52 = vadd.f32 %v1117_v46, %v933_v42  ;;  %v1395_v53 = vpop.f32.mrf.mxu0  ;;  %v600_v30 = vadd.f32 %v599_v22, %v7985_v19  ;;  %v222_v42 = vld [vmem:[%s7715_s22 + $0x568] sm:$0xff] }
 0x169   : > { %v708_v46 = vld [vmem:[%s7715_s22 + $0x56a] sm:$0xff] }
 0x16a   : > { %v8144_v49 = vadd.f32 %v1392_v7, %v1211_v52  ;;  %6418 = vmatmul.msk.f32.gmra.mxu1 %vm270_vm0, %v221_v32  ;;  %6451 = vmatmul.msk.f32.gmra.mxu2 %vm270_vm0, %v707_v45  ;;  %v6486_v52 = vld [vmem:[%s7715_s22 + $0x590] sm:$0xff] }
 0x16b   : > { %6518 = vmatmul.msk.f32.gmra.mxu3 %vm270_vm0, %v6485_v18  ;;  %6583 = vmatmul.msk.f32.gmra.mxu0 %vm270_vm0, %v7823_v35 }
 0x16c   : > { %12218 = vst [vmem:[#allocation33_spill] sm:$0xff] %v8144_v49 }
 0x16d   : > { %v842_v9 = vpop.f32.mrf.mxu2 }
 0x16e   : > { %v934_v48 = vadd.f32 %v842_v9, %v600_v30  ;;  %v1120_v23 = vpop.f32.mrf.mxu3  ;;  %v8164_v9 = vld [vmem:[%s7715_s22 + $0x57a] sm:$0xff] }
 0x16f   : > { %v602_v1 = vpop.f32.mrf.mxu1 }
 0x170   : > { %v1212_v7 = vadd.f32 %v1120_v23, %v934_v48  ;;  %v1398_v32 = vpop.f32.mrf.mxu0  ;;  %v603_v35 = vadd.f32 %v602_v1, %v8007_v28  ;;  %v8167_v48 = vld [vmem:[%s7715_s22 + $0x5a0] sm:$0xff] }
 0x172   : > { %v8155_v49 = vadd.f32 %v1395_v53, %v1212_v7  ;;  %6419 = vmatmul.msk.f32.gmra.mxu1 %vm270_vm0, %v222_v42  ;;  %6452 = vmatmul.msk.f32.gmra.mxu2 %vm270_vm0, %v708_v46 }
 0x173   : > { %6519 = vmatmul.msk.f32.gmra.mxu3 %vm270_vm0, %v6486_v52  ;;  %6584 = vmatmul.msk.f32.gmra.mxu0 %vm270_vm0, %v7840_v39 }
 0x175   : > { %v845_v19 = vpop.f32.mrf.mxu2 }
 0x176   : > { %v935_v22 = vadd.f32 %v845_v19, %v603_v35  ;;  %v1123_v45 = vpop.f32.mrf.mxu3  ;;  %v8183_v35 = vld [vmem:[%s7715_s22 + $0x5a8] sm:$0xff] }
 0x177   : > { %v605_v30 = vpop.f32.mrf.mxu1 }
 0x178   : > { %v1213_v53 = vadd.f32 %v1123_v45, %v935_v22  ;;  %v1401_v23 = vpop.f32.mrf.mxu0  ;;  %v606_v39 = vadd.f32 %v605_v30, %v8029_v41 }
 0x17a   : > { %v8169_v42 = vadd.f32 %v1398_v32, %v1213_v53  ;;  %6420 = vmatmul.msk.f32.gmra.mxu1 %vm270_vm0, %v6483_v27  ;;  %6453 = vmatmul.msk.f32.gmra.mxu2 %vm270_vm0, %v8164_v9  ;;  %v8180_v32 = vld [vmem:[%s7715_s22 + $0x582] sm:$0xff] }
 0x17b   : > { %6520 = vmatmul.msk.f32.gmra.mxu3 %vm270_vm0, %v8167_v48  ;;  %6585 = vmatmul.msk.f32.gmra.mxu0 %vm270_vm0, %v7722_v8 }
 0x17d   : > { %v848_v28 = vpop.f32.mrf.mxu2 }
 0x17e   : > { %v936_v1 = vadd.f32 %v848_v28, %v606_v39  ;;  %v1126_v46 = vpop.f32.mrf.mxu3  ;;  %v8199_v39 = vld [vmem:[%s7715_s22 + $0x5b0] sm:$0xff] }
 0x17f   : > { %v608_v7 = vpop.f32.mrf.mxu1 }
 0x180   : > { %v1214_v27 = vadd.f32 %v1126_v46, %v936_v1  ;;  %v1404_v19 = vpop.f32.mrf.mxu0  ;;  %v609_v8 = vadd.f32 %v608_v7, %v8054_v47 }
 0x182   : > { %v8185_v22 = vadd.f32 %v1401_v23, %v1214_v27  ;;  %6421 = vmatmul.msk.f32.gmra.mxu1 %vm270_vm0, %v6484_v37  ;;  %6454 = vmatmul.msk.f32.gmra.mxu2 %vm270_vm0, %v8180_v32  ;;  %v8196_v23 = vld [vmem:[%s7715_s22 + $0x58a] sm:$0xff] }
 0x183   : > { %6521 = vmatmul.msk.f32.gmra.mxu3 %vm270_vm0, %v8183_v35  ;;  %6586 = vmatmul.msk.f32.gmra.mxu0 %vm270_vm0, %v7736_v12 }
 0x185   : > { %v851_v41 = vpop.f32.mrf.mxu2 }
 0x186   : > { %v937_v45 = vadd.f32 %v851_v41, %v609_v8  ;;  %v1129_v30 = vpop.f32.mrf.mxu3  ;;  %v8215_v8 = vld [vmem:[%s7715_s22 + $0x5b8] sm:$0xff] }
 0x187   : > { %v611_v53 = vpop.f32.mrf.mxu1 }
 0x188   : > { %v1215_v37 = vadd.f32 %v1129_v30, %v937_v45  ;;  %v1407_v28 = vpop.f32.mrf.mxu0  ;;  %v612_v12 = vadd.f32 %v611_v53, %v8079_v43 }
 0x18a   : > { %v8201_v1 = vadd.f32 %v1404_v19, %v1215_v37  ;;  %6422 = vmatmul.msk.f32.gmra.mxu1 %vm270_vm0, %v6485_v18  ;;  %6455 = vmatmul.msk.f32.gmra.mxu2 %vm270_vm0, %v8196_v23  ;;  %v8212_v19 = vld [vmem:[%s7715_s22 + $0x592] sm:$0xff] }
 0x18b   : > { %6522 = vmatmul.msk.f32.gmra.mxu3 %vm270_vm0, %v8199_v39  ;;  %6587 = vmatmul.msk.f32.gmra.mxu0 %vm270_vm0, %v7750_v16 }
 0x18d   : > { %v854_v47 = vpop.f32.mrf.mxu2 }
 0x18e   : > { %v938_v46 = vadd.f32 %v854_v47, %v612_v12  ;;  %v1132_v7 = vpop.f32.mrf.mxu3  ;;  %v8231_v12 = vld [vmem:[%s7715_s22 + $0x5c8] sm:$0xff] }
 0x18f   : > { %v614_v27 = vpop.f32.mrf.mxu1 }
 0x190   : > { %v1216_v18 = vadd.f32 %v1132_v7, %v938_v46  ;;  %v1410_v41 = vpop.f32.mrf.mxu0  ;;  %v615_v16 = vadd.f32 %v614_v27, %v8104_v3 }
 0x192   : > { %v8217_v45 = vadd.f32 %v1407_v28, %v1216_v18  ;;  %6423 = vmatmul.msk.f32.gmra.mxu1 %vm270_vm0, %v6486_v52  ;;  %6456 = vmatmul.msk.f32.gmra.mxu2 %vm270_vm0, %v8212_v19  ;;  %v8228_v28 = vld [vmem:[%s7715_s22 + $0x5a2] sm:$0xff] }
 0x193   : > { %6523 = vmatmul.msk.f32.gmra.mxu3 %vm270_vm0, %v8215_v8  ;;  %6588 = vmatmul.msk.f32.gmra.mxu0 %vm270_vm0, %v7764_v20 }
 0x195   : > { %v857_v43 = vpop.f32.mrf.mxu2 }
 0x196   : > { %v939_v30 = vadd.f32 %v857_v43, %v615_v16  ;;  %v1135_v53 = vpop.f32.mrf.mxu3  ;;  %v8248_v43 = vld [vmem:[%s7715_s22 + $0x5d0] sm:$0xff] }
 0x197   : > { %v617_v37 = vpop.f32.mrf.mxu1 }
 0x198   : > { %v1217_v52 = vadd.f32 %v1135_v53, %v939_v30  ;;  %v1413_v47 = vpop.f32.mrf.mxu0  ;;  %v618_v20 = vadd.f32 %v617_v37, %v7933_v62 }
 0x19a   : > { %v8233_v46 = vadd.f32 %v1410_v41, %v1217_v52  ;;  %6424 = vmatmul.msk.f32.gmra.mxu1 %vm270_vm0, %v8167_v48  ;;  %6457 = vmatmul.msk.f32.gmra.mxu2 %vm270_vm0, %v8228_v28  ;;  %v8245_v41 = vld [vmem:[%s7715_s22 + $0x5aa] sm:$0xff] }
 0x19b   : > { %6524 = vmatmul.msk.f32.gmra.mxu3 %vm270_vm0, %v8231_v12  ;;  %6589 = vmatmul.msk.f32.gmra.mxu0 %vm270_vm0, %v7780_v24 }
 0x19c   : > { %12219 = vst [vmem:[#allocation34_spill] sm:$0xff] %v8233_v46 }
 0x19d   : > { %v860_v3 = vpop.f32.mrf.mxu2 }
 0x19e   : > { %v940_v7 = vadd.f32 %v860_v3, %v618_v20  ;;  %v1138_v27 = vpop.f32.mrf.mxu3  ;;  %v8262_v20 = vld [vmem:[%s7715_s22 + $0x5b2] sm:$0xff] }
 0x19f   : > { %v620_v18 = vpop.f32.mrf.mxu1 }
 0x1a0   : > { %v1218_v16 = vadd.f32 %v1138_v27, %v940_v7  ;;  %v1416_v30 = vpop.f32.mrf.mxu0  ;;  %v621_v24 = vadd.f32 %v620_v18, %v7955_v4  ;;  %v8265_v7 = vld [vmem:[%s7715_s22 + $0x5d8] sm:$0xff] }
 0x1a2   : > { %v8250_v53 = vadd.f32 %v1413_v47, %v1218_v16  ;;  %6425 = vmatmul.msk.f32.gmra.mxu1 %vm270_vm0, %v8183_v35  ;;  %6458 = vmatmul.msk.f32.gmra.mxu2 %vm270_vm0, %v8245_v41 }
 0x1a3   : > { %6525 = vmatmul.msk.f32.gmra.mxu3 %vm270_vm0, %v8248_v43  ;;  %6590 = vmatmul.msk.f32.gmra.mxu0 %vm270_vm0, %v7806_v31 }
 0x1a4   : > { %12220 = vst [vmem:[#allocation35_spill] sm:$0xff] %v8250_v53 }
 0x1a5   : > { %v863_v62 = vpop.f32.mrf.mxu2 }
 0x1a6   : > { %v941_v37 = vadd.f32 %v863_v62, %v621_v24  ;;  %v1141_v52 = vpop.f32.mrf.mxu3  ;;  %v8279_v62 = vld [vmem:[%s7715_s22 + $0x5ba] sm:$0xff] }
 0x1a7   : > { %v623_v47 = vpop.f32.mrf.mxu1 }
 0x1a8   : > { %v1219_v3 = vadd.f32 %v1141_v52, %v941_v37  ;;  %v1419_v27 = vpop.f32.mrf.mxu0  ;;  %v624_v31 = vadd.f32 %v623_v47, %v7977_v15  ;;  %v8282_v52 = vld [vmem:[%s7715_s22 + $0x5e0] sm:$0xff] }
 0x1aa   : > { %v8267_v16 = vadd.f32 %v1416_v30, %v1219_v3  ;;  %6426 = vmatmul.msk.f32.gmra.mxu1 %vm270_vm0, %v8199_v39  ;;  %6459 = vmatmul.msk.f32.gmra.mxu2 %vm270_vm0, %v8262_v20 }
 0x1ab   : > { %6526 = vmatmul.msk.f32.gmra.mxu3 %vm270_vm0, %v8265_v7  ;;  %6591 = vmatmul.msk.f32.gmra.mxu0 %vm270_vm0, %v7826_v36 }
 0x1ac   : > { %12221 = vst [vmem:[#allocation36_spill] sm:$0xff] %v8267_v16 }
 0x1ad   : > { %v866_v4 = vpop.f32.mrf.mxu2 }
 0x1ae   : > { %v942_v18 = vadd.f32 %v866_v4, %v624_v31  ;;  %v1144_v24 = vpop.f32.mrf.mxu3 }
 0x1af   : > { %v626_v30 = vpop.f32.mrf.mxu1 }
 0x1b0   : > { %v1220_v37 = vadd.f32 %v1144_v24, %v942_v18  ;;  %v1422_v3 = vpop.f32.mrf.mxu0  ;;  %v627_v36 = vadd.f32 %v626_v30, %v7999_v25  ;;  %v6495_v24 = vld [vmem:[%s7715_s22 + $0x5f0] sm:$0xff] }
 0x1b2   : > { %v8284_v16 = vadd.f32 %v1419_v27, %v1220_v37  ;;  %6427 = vmatmul.msk.f32.gmra.mxu1 %vm270_vm0, %v8215_v8  ;;  %6460 = vmatmul.msk.f32.gmra.mxu2 %vm270_vm0, %v8279_v62  ;;  %v8296_v27 = vld [vmem:[%s7715_s22 + $0x5ca] sm:$0xff] }
 0x1b3   : > { %6527 = vmatmul.msk.f32.gmra.mxu3 %vm270_vm0, %v8282_v52  ;;  %6592 = vmatmul.msk.f32.gmra.mxu0 %vm270_vm0, %v7843_v40 }
 0x1b4   : > { %12222 = vst [vmem:[#allocation37_spill] sm:$0xff] %v8284_v16  ;;  %v8300_v16 = vld [vmem:[%s7715_s22 + $0x5f1] sm:$0xff] }
 0x1b5   : > { %v869_v15 = vpop.f32.mrf.mxu2  ;;  %12223 = vst [vmem:[#allocation38_spill] sm:$0xff] %v8300_v16 }
 0x1b6   : > { %v943_v47 = vadd.f32 %v869_v15, %v627_v36  ;;  %v1147_v31 = vpop.f32.mrf.mxu3 }
 0x1b7   : > { %v629_v4 = vpop.f32.mrf.mxu1 }
 0x1b8   : > { %v1221_v18 = vadd.f32 %v1147_v31, %v943_v47  ;;  %v1425_v37 = vpop.f32.mrf.mxu0  ;;  %v630_v40 = vadd.f32 %v629_v4, %v8021_v33  ;;  %v6496_v31 = vld [vmem:[%s7715_s22 + $0x5f8] sm:$0xff] }
 0x1ba   : > { %v8302_v53 = vadd.f32 %v1422_v3, %v1221_v18  ;;  %6428 = vmatmul.msk.f32.gmra.mxu1 %vm270_vm0, %v8231_v12  ;;  %6461 = vmatmul.msk.f32.gmra.mxu2 %vm270_vm0, %v8296_v27  ;;  %v8313_v3 = vld [vmem:[%s7715_s22 + $0x5d2] sm:$0xff] }
 0x1bb   : > { %6528 = vmatmul.msk.f32.gmra.mxu3 %vm270_vm0, %v6495_v24  ;;  %6593 = vmatmul.msk.f32.gmra.mxu0 %vm270_vm0, %v8300_v16  ;;  %v8334_v16 = vld [vmem:[%s7715_s22 + $0x601] sm:$0xff] }
 0x1bc   : > { %12224 = vst [vmem:[#allocation39_spill] sm:$0xff] %v8302_v53  ;;  %v8317_v53 = vld [vmem:[%s7715_s22 + $0x5f9] sm:$0xff] }
 0x1bd   : > { %v872_v25 = vpop.f32.mrf.mxu2  ;;  %12225 = vst [vmem:[#allocation40_spill] sm:$0xff] %v8317_v53 }
 0x1be   : > { %v944_v30 = vadd.f32 %v872_v25, %v630_v40  ;;  %v1150_v36 = vpop.f32.mrf.mxu3 }
 0x1bf   : > { %v632_v15 = vpop.f32.mrf.mxu1 }
 0x1c0   : > { %v1222_v47 = vadd.f32 %v1150_v36, %v944_v30  ;;  %v1428_v18 = vpop.f32.mrf.mxu0  ;;  %v633_v33 = vadd.f32 %v632_v15, %v8046_v44 }
 0x1c2   : > { %v8319_v24 = vadd.f32 %v1425_v37, %v1222_v47  ;;  %6429 = vmatmul.msk.f32.gmra.mxu1 %vm270_vm0, %v8248_v43  ;;  %6462 = vmatmul.msk.f32.gmra.mxu2 %vm270_vm0, %v8313_v3  ;;  %v8330_v37 = vld [vmem:[%s7715_s22 + $0x5da] sm:$0xff] }
 0x1c3   : > { %6529 = vmatmul.msk.f32.gmra.mxu3 %vm270_vm0, %v6496_v31  ;;  %6594 = vmatmul.msk.f32.gmra.mxu0 %vm270_vm0, %v8317_v53  ;;  %v6497_v47 = vld [vmem:[%s7715_s22 + $0x600] sm:$0xff]  ;;  %v8351_v53 = vld [vmem:[%s7715_s22 + $0x609] sm:$0xff] }
 0x1c4   : > { %12226 = vst [vmem:[#allocation41_spill] sm:$0xff] %v8319_v24 }
 0x1c5   : > { %v875_v4 = vpop.f32.mrf.mxu2 }
 0x1c6   : > { %v945_v40 = vadd.f32 %v875_v4, %v633_v33  ;;  %v1153_v25 = vpop.f32.mrf.mxu3 }
 0x1c7   : > { %v635_v30 = vpop.f32.mrf.mxu1 }
 0x1c8   : > { %v1223_v36 = vadd.f32 %v1153_v25, %v945_v40  ;;  %v1431_v24 = vpop.f32.mrf.mxu0  ;;  %v636_v44 = vadd.f32 %v635_v30, %v8071_v51  ;;  %v8347_v25 = vld [vmem:[%s7715_s22 + $0x5e2] sm:$0xff] }
 0x1ca   : > { %v8336_v31 = vadd.f32 %v1428_v18, %v1223_v36  ;;  %6430 = vmatmul.msk.f32.gmra.mxu1 %vm270_vm0, %v8265_v7  ;;  %6463 = vmatmul.msk.f32.gmra.mxu2 %vm270_vm0, %v8330_v37  ;;  %v6498_v36 = vld [vmem:[%s7715_s22 + $0x608] sm:$0xff] }
 0x1cb   : > { %6530 = vmatmul.msk.f32.gmra.mxu3 %vm270_vm0, %v6497_v47  ;;  %6595 = vmatmul.msk.f32.gmra.mxu0 %vm270_vm0, %v8334_v16 }
 0x1cc   : > { %12227 = vst [vmem:[#allocation42_spill] sm:$0xff] %v8336_v31 }
 0x1cd   : > { %v878_v15 = vpop.f32.mrf.mxu2 }
 0x1ce   : > { %v946_v33 = vadd.f32 %v878_v15, %v636_v44  ;;  %v1156_v4 = vpop.f32.mrf.mxu3 }
 0x1cf   : > { %v638_v40 = vpop.f32.mrf.mxu1 }
 0x1d0   : > { %v1224_v18 = vadd.f32 %v1156_v4, %v946_v33  ;;  %v1434_v31 = vpop.f32.mrf.mxu0  ;;  %v639_v51 = vadd.f32 %v638_v40, %v8096_v13 }
 0x1d2   : > { %v8353_v46 = vadd.f32 %v1431_v24, %v1224_v18  ;;  %6431 = vmatmul.msk.f32.gmra.mxu1 %vm270_vm0, %v8282_v52  ;;  %6464 = vmatmul.msk.f32.gmra.mxu2 %vm270_vm0, %v8347_v25 }
 0x1d3   : > { %6531 = vmatmul.msk.f32.gmra.mxu3 %vm270_vm0, %v6498_v36  ;;  %6596 = vmatmul.msk.f32.gmra.mxu0 %vm270_vm0, %v8351_v53 }
 0x1d5   : > { %v881_v30 = vpop.f32.mrf.mxu2 }
 0x1d6   : > { %v947_v47 = vadd.f32 %v881_v30, %v639_v51  ;;  %v1159_v44 = vpop.f32.mrf.mxu3 }
 0x1d7   : > { %v641_v15 = vpop.f32.mrf.mxu1 }
 0x1d8   : > { %v1225_v33 = vadd.f32 %v1159_v44, %v947_v47  ;;  %v1437_v24 = vpop.f32.mrf.mxu0  ;;  %v642_v13 = vadd.f32 %v641_v15, %v7951_v2 }
 0x1da   : > { %v8363_v4 = vadd.f32 %v1434_v31, %v1225_v33  ;;  %6630 = vmatmul.msk.f32.vlgmr.msra.gmra.mxu1 %vm270_vm0, %v7882_v54  ;;  %6697 = vmatmul.msk.f32.vlgmr.msra.gmra.mxu2 %vm270_vm0, %v7885_v55 }
 0x1db   : > { %6762 = vmatmul.msk.f32.vlgmr.msra.gmra.mxu3 %vm270_vm0, %v7718_v6  ;;  %6827 = vmatmul.msk.f32.vlgmr.msra.gmra.mxu0 %vm270_vm0, %v7936_v63 }
 0x1dd   : > { %v884_v40 = vpop.f32.mrf.mxu2 }
 0x1de   : > { %v948_v18 = vadd.f32 %v884_v40, %v642_v13  ;;  %v1162_v36 = vpop.f32.mrf.mxu3 }
 0x1df   : > { %v644_v51 = vpop.f32.mrf.mxu1 }
 0x1e0   : > { %v1226_v31 = vadd.f32 %v1162_v36, %v948_v18  ;;  %v1440_v30 = vpop.f32.mrf.mxu0  ;;  %v645_v6 = vadd.f32 %v644_v51, %v7973_v11  ;;  %v6732_v18 = vld [vmem:[%s7715_s22 + $0x69] sm:$0xff] }
 0x1e2   : > { %v8374_v47 = vadd.f32 %v1437_v24, %v1226_v31  ;;  %6631 = vmatmul.msk.f32.gmra.mxu1 %vm270_vm0, %v7895_v56  ;;  %6698 = vmatmul.msk.f32.gmra.mxu2 %vm270_vm0, %v7898_v57 }
 0x1e3   : > { %6763 = vmatmul.msk.f32.gmra.mxu3 %vm270_vm0, %v7732_v10  ;;  %6828 = vmatmul.msk.f32.gmra.mxu0 %vm270_vm0, %v7958_v5 }
 0x1e5   : > { %v887_v54 = vpop.f32.mrf.mxu2 }
 0x1e6   : > { %v949_v55 = vadd.f32 %v887_v54, %v645_v6  ;;  %v1165_v2 = vpop.f32.mrf.mxu3  ;;  %v6733_v6 = vld [vmem:[%s7715_s22 + $0x79] sm:$0xff] }
 0x1e7   : > { %v647_v44 = vpop.f32.mrf.mxu1 }
 0x1e8   : > { %v1227_v15 = vadd.f32 %v1165_v2, %v949_v55  ;;  %v1443_v33 = vpop.f32.mrf.mxu0  ;;  %v648_v10 = vadd.f32 %v647_v44, %v7995_v21 }
 0x1ea   : > { %v8385_v24 = vadd.f32 %v1440_v30, %v1227_v15  ;;  %6632 = vmatmul.msk.f32.gmra.mxu1 %vm270_vm0, %v7908_v58  ;;  %6699 = vmatmul.msk.f32.gmra.mxu2 %vm270_vm0, %v7911_v59 }
 0x1eb   : > { %6764 = vmatmul.msk.f32.gmra.mxu3 %vm270_vm0, %v7746_v14  ;;  %6829 = vmatmul.msk.f32.gmra.mxu0 %vm270_vm0, %v7980_v17 }
 0x1ed   : > { %v890_v56 = vpop.f32.mrf.mxu2 }
 0x1ee   : > { %v950_v57 = vadd.f32 %v890_v56, %v648_v10  ;;  %v1168_v11 = vpop.f32.mrf.mxu3 }
 0x1ef   : > { %v650_v13 = vpop.f32.mrf.mxu1 }
 0x1f0   : > { %v1228_v40 = vadd.f32 %v1168_v11, %v950_v57  ;;  %v1446_v36 = vpop.f32.mrf.mxu0  ;;  %v651_v14 = vadd.f32 %v650_v13, %v8017_v29 }
 0x1f2   : > { %v8397_v58 = vadd.f32 %v1443_v33, %v1228_v40  ;;  %6633 = vmatmul.msk.f32.gmra.mxu1 %vm270_vm0, %v7921_v60  ;;  %6700 = vmatmul.msk.f32.gmra.mxu2 %vm270_vm0, %v7924_v61  ;;  %v6734_v33 = vld [vmem:[%s7715_s22 + $0x81] sm:$0xff] }
 0x1f3   : > { %6765 = vmatmul.msk.f32.gmra.mxu3 %vm270_vm0, %v6732_v18  ;;  %6830 = vmatmul.msk.f32.gmra.mxu0 %vm270_vm0, %v8002_v26 }
 0x1f5   : > { %v893_v59 = vpop.f32.mrf.mxu2 }
 0x1f6   : > { %v951_v21 = vadd.f32 %v893_v59, %v651_v14  ;;  %v1171_v51 = vpop.f32.mrf.mxu3  ;;  %v6735_v14 = vld [vmem:[%s7715_s22 + $0x89] sm:$0xff] }
 0x1f7   : > { %v653_v31 = vpop.f32.mrf.mxu1 }
 0x1f8   : > { %v1229_v30 = vadd.f32 %v1171_v51, %v951_v21  ;;  %v1449_v54 = vpop.f32.mrf.mxu0  ;;  %v654_v60 = vadd.f32 %v653_v31, %v8042_v38  ;;  %v12230_v38 = vld [vmem:[#allocation21_spill] sm:$0xff]  ;;  %v12232_v51 = vld [vmem:[#allocation23_spill] sm:$0xff]  ;;  %v12233_v31 = vld [vmem:[#allocation26_spill] sm:$0xff] }
 0x1fa   : > { %v8408_v55 = vadd.f32 %v1446_v36, %v1229_v30  ;;  %6634 = vmatmul.msk.f32.gmra.mxu1 %vm270_vm0, %v7936_v63  ;;  %6701 = vmatmul.msk.f32.gmra.mxu2 %vm270_vm0, %v7939_v0  ;;  %v12228_v63 = vld [vmem:[#allocation9_spill] sm:$0xff]  ;;  %v12229_v0 = vld [vmem:[#allocation18_spill] sm:$0xff] }
 0x1fb   : > { %6766 = vmatmul.msk.f32.gmra.mxu3 %vm270_vm0, %v6733_v6  ;;  %6831 = vmatmul.msk.f32.gmra.mxu0 %vm270_vm0, %v8024_v34 }
 0x1fd   : > { %v896_v61 = vpop.f32.mrf.mxu2 }
 0x1fe   : > { %v952_v29 = vadd.f32 %v896_v61, %v654_v60  ;;  %v1174_v2 = vpop.f32.mrf.mxu3 }
 0x1ff   : > { %v656_v44 = vpop.f32.mrf.mxu1 }
 0x200   : > { %v1230_v15 = vadd.f32 %v1174_v2, %v952_v29  ;;  %v1452_v10 = vpop.f32.mrf.mxu0  ;;  %v657_v57 = vadd.f32 %v656_v44, %v12230_v38  ;;  %v6736_v2 = vld [vmem:[%s7715_s22 + $0x91] sm:$0xff] }
 0x202   : > { %v8419_v56 = vadd.f32 %v1449_v54, %v1230_v15  ;;  %6635 = vmatmul.msk.f32.gmra.mxu1 %vm270_vm0, %v7958_v5  ;;  %6702 = vmatmul.msk.f32.gmra.mxu2 %vm270_vm0, %v12228_v63  ;;  %v12231_v5 = vld [vmem:[#allocation11_spill] sm:$0xff] }
 0x203   : > { %6767 = vmatmul.msk.f32.gmra.mxu3 %vm270_vm0, %v6734_v33  ;;  %6832 = vmatmul.msk.f32.gmra.mxu0 %vm270_vm0, %v12229_v0  ;;  %v12235_v33 = vld [vmem:[#allocation28_spill] sm:$0xff] }
 0x205   : > { %v899_v11 = vpop.f32.mrf.mxu2 }
 0x206   : > { %v953_v13 = vadd.f32 %v899_v11, %v657_v57  ;;  %v1177_v40 = vpop.f32.mrf.mxu3 }
 0x207   : > { %v659_v18 = vpop.f32.mrf.mxu1 }
 0x208   : > { %v1231_v36 = vadd.f32 %v1177_v40, %v953_v13  ;;  %v1455_v59 = vpop.f32.mrf.mxu0  ;;  %v660_v30 = vadd.f32 %v659_v18, %v12233_v31 }
 0x20a   : > { %v8430_v21 = vadd.f32 %v1452_v10, %v1231_v36  ;;  %6636 = vmatmul.msk.f32.gmra.mxu1 %vm270_vm0, %v7980_v17  ;;  %6703 = vmatmul.msk.f32.gmra.mxu2 %vm270_vm0, %v12231_v5  ;;  %v12234_v17 = vld [vmem:[#allocation13_spill] sm:$0xff]  ;;  %v12236_v10 = vld [vmem:[#allocation31_spill] sm:$0xff]  ;;  %v6802_v36 = vld [vmem:[%s7715_s22 + $0xa2] sm:$0xff] }
 0x20b   : > { %6768 = vmatmul.msk.f32.gmra.mxu3 %vm270_vm0, %v6735_v14  ;;  %6833 = vmatmul.msk.f32.gmra.mxu0 %vm270_vm0, %v12232_v51  ;;  %v12239_v5 = vld [vmem:[#allocation8_spill] sm:$0xff] }
 0x20d   : > { %v902_v6 = vpop.f32.mrf.mxu2 }
 0x20e   : > { %v954_v54 = vadd.f32 %v902_v6, %v660_v30  ;;  %v1180_v60 = vpop.f32.mrf.mxu3 }
 0x20f   : > { %v662_v61 = vpop.f32.mrf.mxu1 }
 0x210   : > { %v1232_v29 = vadd.f32 %v1180_v60, %v954_v54  ;;  %v1458_v44 = vpop.f32.mrf.mxu0  ;;  %v663_v63 = vadd.f32 %v662_v61, %v12236_v10  ;;  %v12242_v10 = vld [vmem:[#allocation10_spill] sm:$0xff] }
 0x212   : > { %v8441_v15 = vadd.f32 %v1455_v59, %v1232_v29  ;;  %6637 = vmatmul.msk.f32.gmra.mxu1 %vm270_vm0, %v8002_v26  ;;  %6704 = vmatmul.msk.f32.gmra.mxu2 %vm270_vm0, %v12234_v17  ;;  %v12237_v26 = vld [vmem:[#allocation15_spill] sm:$0xff]  ;;  %v12238_v59 = vld [vmem:[#allocation16_spill] sm:$0xff] }
 0x213   : > { %6769 = vmatmul.msk.f32.gmra.mxu3 %vm270_vm0, %v6736_v2  ;;  %6834 = vmatmul.msk.f32.gmra.mxu0 %vm270_vm0, %v12235_v33  ;;  %v6803_v2 = vld [vmem:[%s7715_s22 + $0xaa] sm:$0xff]  ;;  %v12241_v17 = vld [vmem:[#allocation20_spill] sm:$0xff] }
 0x215   : > { %v905_v38 = vpop.f32.mrf.mxu2 }
 0x216   : > { %v955_v57 = vadd.f32 %v905_v38, %v663_v63  ;;  %v1183_v11 = vpop.f32.mrf.mxu3 }
 0x217   : > { %v665_v13 = vpop.f32.mrf.mxu1 }
 0x218   : > { %v1233_v40 = vadd.f32 %v1183_v11, %v955_v57  ;;  %v1461_v18 = vpop.f32.mrf.mxu0  ;;  %v666_v31 = vadd.f32 %v665_v13, %v12239_v5  ;;  %v12244_v5 = vld [vmem:[#allocation25_spill] sm:$0xff] }
 0x21a   : > { %v8452_v14 = vadd.f32 %v1458_v44, %v1233_v40  ;;  %6638 = vmatmul.msk.f32.gmra.mxu1 %vm270_vm0, %v8024_v34  ;;  %6705 = vmatmul.msk.f32.gmra.mxu2 %vm270_vm0, %v12237_v26  ;;  %v12240_v34 = vld [vmem:[#allocation19_spill] sm:$0xff]  ;;  %v6804_v26 = vld [vmem:[%s7715_s22 + $0xb2] sm:$0xff] }
 0x21b   : > { %6770 = vmatmul.msk.f32.gmra.mxu3 %vm270_vm0, %v12238_v59  ;;  %6835 = vmatmul.msk.f32.gmra.mxu0 %vm270_vm0, %v6802_v36 }
 0x21d   : > { %v908_v30 = vpop.f32.mrf.mxu2 }
 0x21e   : > { %v956_v6 = vadd.f32 %v908_v30, %v666_v31  ;;  %v1186_v54 = vpop.f32.mrf.mxu3  ;;  %v12245_v31 = vld [vmem:[#allocation12_spill] sm:$0xff] }
 0x21f   : > { %v668_v60 = vpop.f32.mrf.mxu1 }
 0x220   : > { %v1234_v61 = vadd.f32 %v1186_v54, %v956_v6  ;;  %v1464_v29 = vpop.f32.mrf.mxu0  ;;  %v669_v63 = vadd.f32 %v668_v60, %v12242_v10  ;;  %v12246_v10 = vld [vmem:[#allocation29_spill] sm:$0xff] }
 0x222   : > { %v8463_v44 = vadd.f32 %v1461_v18, %v1234_v61  ;;  %6639 = vmatmul.msk.f32.gmra.mxu1 %vm270_vm0, %v12229_v0  ;;  %6706 = vmatmul.msk.f32.gmra.mxu2 %vm270_vm0, %v12240_v34  ;;  %v12243_v0 = vld [vmem:[#allocation24_spill] sm:$0xff] }
 0x223   : > { %6771 = vmatmul.msk.f32.gmra.mxu3 %vm270_vm0, %v12241_v17  ;;  %6836 = vmatmul.msk.f32.gmra.mxu0 %vm270_vm0, %v6803_v2 }
 0x225   : > { %v911_v38 = vpop.f32.mrf.mxu2 }
 0x226   : > { %v957_v57 = vadd.f32 %v911_v38, %v669_v63  ;;  %v1189_v11 = vpop.f32.mrf.mxu3  ;;  %v12247_v63 = vld [vmem:[#allocation30_spill] sm:$0xff] }
 0x227   : > { %v671_v13 = vpop.f32.mrf.mxu1  ;;  %v12248_v38 = vld [vmem:[#allocation14_spill] sm:$0xff] }
 0x228   : > { %v1235_v40 = vadd.f32 %v1189_v11, %v957_v57  ;;  %v1467_v18 = vpop.f32.mrf.mxu0  ;;  %v672_v30 = vadd.f32 %v671_v13, %v12245_v31  ;;  %v6741_v31 = vld [vmem:[%s7715_s22 + $0xc9] sm:$0xff] }
 0x22a   : > { %v8474_v59 = vadd.f32 %v1464_v29, %v1235_v40  ;;  %6640 = vmatmul.msk.f32.gmra.mxu1 %vm270_vm0, %v12232_v51  ;;  %6707 = vmatmul.msk.f32.gmra.mxu2 %vm270_vm0, %v12243_v0  ;;  %v6805_v51 = vld [vmem:[%s7715_s22 + $0xba] sm:$0xff] }
 0x22b   : > { %6772 = vmatmul.msk.f32.gmra.mxu3 %vm270_vm0, %v12244_v5  ;;  %6837 = vmatmul.msk.f32.gmra.mxu0 %vm270_vm0, %v6804_v26 }
 0x22d   : > { %v914_v6 = vpop.f32.mrf.mxu2 }
 0x22e   : > { %v958_v54 = vadd.f32 %v914_v6, %v672_v30  ;;  %v1192_v60 = vpop.f32.mrf.mxu3  ;;  %v6806_v30 = vld [vmem:[%s7715_s22 + $0xca] sm:$0xff] }
 0x22f   : > { %v674_v61 = vpop.f32.mrf.mxu1 }
 0x230   : > { %v1236_v29 = vadd.f32 %v1192_v60, %v958_v54  ;;  %v1470_v34 = vpop.f32.mrf.mxu0  ;;  %v675_v57 = vadd.f32 %v674_v61, %v12248_v38  ;;  %v12249_v54 = vld [vmem:[#allocation17_spill] sm:$0xff] }
 0x231   : > { %v6677_v38 = vld [vmem:[%s7715_s22 + $0xd0] sm:$0xff] }
 0x232   : > { %v8485_v17 = vadd.f32 %v1467_v18, %v1236_v29  ;;  %6641 = vmatmul.msk.f32.gmra.mxu1 %vm270_vm0, %v12235_v33  ;;  %6708 = vmatmul.msk.f32.gmra.mxu2 %vm270_vm0, %v12246_v10  ;;  %v6676_v18 = vld [vmem:[%s7715_s22 + $0xc8] sm:$0xff] }
 0x233   : > { %6773 = vmatmul.msk.f32.gmra.mxu3 %vm270_vm0, %v12247_v63  ;;  %6838 = vmatmul.msk.f32.gmra.mxu0 %vm270_vm0, %v6805_v51 }
 0x235   : > { %v917_v11 = vpop.f32.mrf.mxu2 }
 0x236   : > { %v959_v13 = vadd.f32 %v917_v11, %v675_v57  ;;  %v1195_v40 = vpop.f32.mrf.mxu3 }
 0x237   : > { %v677_v0 = vpop.f32.mrf.mxu1 }
 0x238   : > { %v1237_v5 = vadd.f32 %v1195_v40, %v959_v13  ;;  %v1473_v33 = vpop.f32.mrf.mxu0  ;;  %v678_v60 = vadd.f32 %v677_v0, %v12249_v54  ;;  %v12250_v40 = vld [vmem:[#allocation22_spill] sm:$0xff] }
 0x239   : > { %v6678_v54 = vld [vmem:[%s7715_s22 + $0xd8] sm:$0xff] }
 0x23a   : > { %v8498_v6 = vadd.f32 %v1470_v34, %v1237_v5  ;;  %6642 = vmatmul.msk.f32.gmra.mxu1 %vm270_vm0, %v6802_v36  ;;  %6709 = vmatmul.msk.f32.gmra.mxu2 %vm270_vm0, %v6676_v18  ;;  %v6742_v34 = vld [vmem:[%s7715_s22 + $0xd1] sm:$0xff] }
 0x23b   : > { %6774 = vmatmul.msk.f32.gmra.mxu3 %vm270_vm0, %v6741_v31  ;;  %6839 = vmatmul.msk.f32.gmra.mxu0 %vm270_vm0, %v6806_v30  ;;  %v6807_v36 = vld [vmem:[%s7715_s22 + $0xd2] sm:$0xff] }
 0x23d   : > { %v920_v61 = vpop.f32.mrf.mxu2 }
 0x23e   : > { %v960_v29 = vadd.f32 %v920_v61, %v678_v60  ;;  %v1198_v10 = vpop.f32.mrf.mxu3 }
 0x23f   : > { %v680_v63 = vpop.f32.mrf.mxu1 }
 0x240   : > { %v1238_v57 = vadd.f32 %v1198_v10, %v960_v29  ;;  %v1476_v11 = vpop.f32.mrf.mxu0  ;;  %v681_v0 = vadd.f32 %v680_v63, %v12250_v40  ;;  %v12251_v10 = vld [vmem:[#allocation27_spill] sm:$0xff] }
 0x241   : > { %v6679_v40 = vld [vmem:[%s7715_s22 + $0xe0] sm:$0xff] }
 0x242   : > { %v8508_v13 = vadd.f32 %v1473_v33, %v1238_v57  ;;  %6643 = vmatmul.msk.f32.gmra.mxu1 %vm270_vm0, %v6803_v2  ;;  %6710 = vmatmul.msk.f32.gmra.mxu2 %vm270_vm0, %v6677_v38  ;;  %v6743_v33 = vld [vmem:[%s7715_s22 + $0xd9] sm:$0xff] }
 0x243   : > { %6775 = vmatmul.msk.f32.gmra.mxu3 %vm270_vm0, %v6742_v34  ;;  %6840 = vmatmul.msk.f32.gmra.mxu0 %vm270_vm0, %v6807_v36  ;;  %v6808_v2 = vld [vmem:[%s7715_s22 + $0xda] sm:$0xff] }
 0x245   : > { %v923_v18 = vpop.f32.mrf.mxu2 }
 0x246   : > { %v961_v5 = vadd.f32 %v923_v18, %v681_v0  ;;  %v1201_v31 = vpop.f32.mrf.mxu3  ;;  %v6744_v18 = vld [vmem:[%s7715_s22 + $0xe1] sm:$0xff] }
 0x247   : > { %v683_v30 = vpop.f32.mrf.mxu1 }
 0x248   : > { %v1239_v60 = vadd.f32 %v1201_v31, %v961_v5  ;;  %v1479_v61 = vpop.f32.mrf.mxu0  ;;  %v684_v63 = vadd.f32 %v683_v30, %v12251_v10  ;;  %v6809_v5 = vld [vmem:[%s7715_s22 + $0xe2] sm:$0xff] }
 0x24a   : > { %v8518_v29 = vadd.f32 %v1476_v11, %v1239_v60  ;;  %6644 = vmatmul.msk.f32.gmra.mxu1 %vm270_vm0, %v6804_v26  ;;  %6711 = vmatmul.msk.f32.gmra.mxu2 %vm270_vm0, %v6678_v54  ;;  %v12252_v26 = vld [vmem:[#allocation32_spill] sm:$0xff] }
 0x24b   : > { %6776 = vmatmul.msk.f32.gmra.mxu3 %vm270_vm0, %v6743_v33  ;;  %6841 = vmatmul.msk.f32.gmra.mxu0 %vm270_vm0, %v6808_v2 }
 0x24d   : > { %v926_v38 = vpop.f32.mrf.mxu2 }
 0x24e   : > { %v962_v57 = vadd.f32 %v926_v38, %v684_v63  ;;  %v1204_v34 = vpop.f32.mrf.mxu3  ;;  %v6745_v63 = vld [vmem:[%s7715_s22 + $0x5a1] sm:$0xff] }
 0x24f   : > { %v686_v36 = vpop.f32.mrf.mxu1 }
 0x250   : > { %v1240_v0 = vadd.f32 %v1204_v34, %v962_v57  ;;  %v1482_v11 = vpop.f32.mrf.mxu0  ;;  %v687_v30 = vadd.f32 %v686_v36, %v12252_v26  ;;  %v6746_v36 = vld [vmem:[%s7715_s22 + $0x5a9] sm:$0xff]  ;;  %v6748_v26 = vld [vmem:[%s7715_s22 + $0x5b9] sm:$0xff] }
 0x252   : > { %v8528_v31 = vadd.f32 %v1479_v61, %v1240_v0  ;;  %6645 = vmatmul.msk.f32.gmra.mxu1 %vm270_vm0, %v6805_v51  ;;  %6712 = vmatmul.msk.f32.gmra.mxu2 %vm270_vm0, %v6679_v40 }
 0x253   : > { %6777 = vmatmul.msk.f32.gmra.mxu3 %vm270_vm0, %v6744_v18  ;;  %6842 = vmatmul.msk.f32.gmra.mxu0 %vm270_vm0, %v6809_v5  ;;  %v6747_v18 = vld [vmem:[%s7715_s22 + $0x5b1] sm:$0xff] }
 0x255   : > { %v929_v54 = vpop.f32.mrf.mxu2 }
 0x256   : > { %v963_v60 = vadd.f32 %v929_v54, %v687_v30  ;;  %v1207_v33 = vpop.f32.mrf.mxu3 }
 0x257   : > { %v1664_v2 = vpop.f32.mrf.mxu1 }
 0x258   : > { %v1241_v10 = vadd.f32 %v1207_v33, %v963_v60  ;;  %v2492_v38 = vpop.f32.mrf.mxu0 }
 0x25a   : > { %v8536_v61 = vadd.f32 %v1482_v11, %v1241_v10  ;;  %6646 = vmatmul.msk.f32.gmra.mxu1 %vm270_vm0, %v8164_v9  ;;  %6713 = vmatmul.msk.f32.gmra.mxu2 %vm270_vm0, %v8167_v48  ;;  %v6749_v10 = vld [vmem:[%s7715_s22 + $0x5c9] sm:$0xff] }
 0x25b   : > { %6778 = vmatmul.msk.f32.gmra.mxu3 %vm270_vm0, %v6745_v63  ;;  %6843 = vmatmul.msk.f32.gmra.mxu0 %vm270_vm0, %v8228_v28 }
 0x25d   : > { %v1942_v51 = vpop.f32.mrf.mxu2 }
 0x25e   : > { %v2217_v57 = vpop.f32.mrf.mxu3 }
 0x25f   : > { %v1667_v34 = vpop.f32.mrf.mxu1 }
 0x260   : > { %v2495_v40 = vpop.f32.mrf.mxu0 }
 0x262   : > { %6647 = vmatmul.msk.f32.gmra.mxu1 %vm270_vm0, %v8180_v32  ;;  %6714 = vmatmul.msk.f32.gmra.mxu2 %vm270_vm0, %v8183_v35 }
 0x263   : > { %6779 = vmatmul.msk.f32.gmra.mxu3 %vm270_vm0, %v6746_v36  ;;  %6844 = vmatmul.msk.f32.gmra.mxu0 %vm270_vm0, %v8245_v41 }
 0x265   : > { %v1945_v9 = vpop.f32.mrf.mxu2 }
 0x266   : > { %v2220_v48 = vpop.f32.mrf.mxu3 }
 0x267   : > { %v1670_v0 = vpop.f32.mrf.mxu1 }
 0x268   : > { %v8554_v11 = vpop.f32.mrf.mxu0 }
 0x26a   : > { %6648 = vmatmul.msk.f32.gmra.mxu1 %vm270_vm0, %v8196_v23  ;;  %6715 = vmatmul.msk.f32.gmra.mxu2 %vm270_vm0, %v8199_v39  ;;  %v1760_v23 = vadd.f32 %v1664_v2, %v8133_v50  ;;  %v12253_v50 = vld [vmem:[#allocation33_spill] sm:$0xff] }
 0x26b   : > { %6780 = vmatmul.msk.f32.gmra.mxu3 %vm270_vm0, %v6747_v18  ;;  %6845 = vmatmul.msk.f32.gmra.mxu0 %vm270_vm0, %v8262_v20 }
 0x26c   : > { %v2038_v39 = vadd.f32 %v1942_v51, %v1760_v23 }
 0x26d   : > { %v1948_v32 = vpop.f32.mrf.mxu2 }
 0x26e   : > { %v2223_v35 = vpop.f32.mrf.mxu3 }
 0x26f   : > { %v8563_v5 = vpop.f32.mrf.mxu1 }
 0x270   : > { %v8566_v30 = vpop.f32.mrf.mxu0 }
 0x272   : > { %6649 = vmatmul.msk.f32.gmra.mxu1 %vm270_vm0, %v8212_v19  ;;  %6716 = vmatmul.msk.f32.gmra.mxu2 %vm270_vm0, %v8215_v8  ;;  %v2313_v19 = vadd.f32 %v2217_v57, %v2038_v39  ;;  %v1761_v8 = vadd.f32 %v1667_v34, %v12253_v50  ;;  %v8593_v57 = vld [vmem:[%s12162_s2] ss:$0 sm:$0xff]  ;;  %v6750_v39 = vld [vmem:[%s7715_s22 + $0x5d1] sm:$0xff]  ;;  %v1762_v34 = vadd.f32 %v1670_v0, %v8155_v49 }
 0x273   : > { %6781 = vmatmul.msk.f32.gmra.mxu3 %vm270_vm0, %v6748_v26  ;;  %6846 = vmatmul.msk.f32.gmra.mxu0 %vm270_vm0, %v8279_v62 }
 0x274   : > { %v2588_v51 = vadd.f32 %v2492_v38, %v2313_v19  ;;  %v2040_v38 = vadd.f32 %v1948_v32, %v1762_v34 }
 0x275   : > { %v8576_v54 = vpop.f32.mrf.mxu2 }
 0x276   : > { %v8578_v60 = vpop.f32.mrf.mxu3 }
 0x277   : > { %v1676_v33 = vpop.f32.mrf.mxu1 }
 0x278   : > { %v2504_v63 = vpop.f32.mrf.mxu0  ;;  %v1764_v2 = vadd.f32 %v1676_v33, %v8185_v22 }
 0x27a   : > { %6650 = vmatmul.msk.f32.gmra.mxu1 %vm270_vm0, %v8228_v28  ;;  %6717 = vmatmul.msk.f32.gmra.mxu2 %vm270_vm0, %v8231_v12  ;;  %v2039_v28 = vadd.f32 %v1945_v9, %v1761_v8 }
 0x27b   : > { %6782 = vmatmul.msk.f32.gmra.mxu3 %vm270_vm0, %v6749_v10  ;;  %6847 = vmatmul.msk.f32.gmra.mxu0 %vm270_vm0, %v8296_v27  ;;  %v2624_v27 = vadd.f32 %v8593_v57, %v2588_v51 }
 0x27c   : > { %v2314_v50 = vadd.f32 %v2220_v48, %v2039_v28 }
 0x27d   : > { %v1954_v36 = vpop.f32.mrf.mxu2  ;;  %v2656_v48 = vmax.f32 %v2624_v27, 0.0 }
 0x27e   : > { %v2042_v18 = vadd.f32 %v1954_v36, %v1764_v2  ;;  %v2229_v26 = vpop.f32.mrf.mxu3  ;;  %v2589_v0 = vadd.f32 %v2495_v40, %v2314_v50  ;;  %v2315_v2 = vadd.f32 %v2223_v35, %v2040_v38  ;;  %v6751_v36 = vld [vmem:[%s7715_s22 + $0x5d9] sm:$0xff]  ;;  %v6752_v38 = vld [vmem:[%s7715_s22 + $0x5e1] sm:$0xff] }
 0x27f   : > { %v1679_v12 = vpop.f32.mrf.mxu1 }
 0x280   : > { %v2317_v23 = vadd.f32 %v2229_v26, %v2042_v18  ;;  %v2507_v10 = vpop.f32.mrf.mxu0  ;;  %v1765_v9 = vadd.f32 %v1679_v12, %v8201_v1  ;;  %v2625_v18 = vadd.f32 %v8593_v57, %v2589_v0  ;;  %v2590_v1 = vadd.f32 %v8554_v11, %v2315_v2 }
 0x281   : > { %v1763_v26 = vadd.f32 %v8563_v5, %v8169_v42 }
 0x282   : > { %v2592_v22 = vadd.f32 %v2504_v63, %v2317_v23  ;;  %6651 = vmatmul.msk.f32.gmra.mxu1 %vm270_vm0, %v8245_v41  ;;  %6718 = vmatmul.msk.f32.gmra.mxu2 %vm270_vm0, %v8248_v43  ;;  %v2657_v23 = vmax.f32 %v2625_v18, 0.0  ;;  %v2626_v11 = vadd.f32 %v8593_v57, %v2590_v1  ;;  %v6621_v18 = vld [vmem:[%s7715_s22 + $0x5ca] sm:$0xff] }
 0x283   : > { %6783 = vmatmul.msk.f32.gmra.mxu3 %vm270_vm0, %v6750_v39  ;;  %6848 = vmatmul.msk.f32.gmra.mxu0 %vm270_vm0, %v8313_v3  ;;  %v2041_v27 = vadd.f32 %v8576_v54, %v1763_v26 }
 0x284   : > { %v2628_v33 = vadd.f32 %v8593_v57, %v2592_v22 }
 0x285   : > { %v1957_v49 = vpop.f32.mrf.mxu2  ;;  %v2316_v54 = vadd.f32 %v8578_v60, %v2041_v27 }
 0x286   : > { %v2660_v63 = vmax.f32 %v2628_v33, 0.0  ;;  %v2043_v19 = vadd.f32 %v1957_v49, %v1765_v9  ;;  %v2232_v41 = vpop.f32.mrf.mxu3  ;;  %v2658_v49 = vmax.f32 %v2626_v11, 0.0 }
 0x287   : > { %v1682_v8 = vpop.f32.mrf.mxu1  ;;  %v2591_v2 = vadd.f32 %v8566_v30, %v2316_v54  ;;  %v6689_v54 = vld [vmem:[%s7715_s22 + $0x5f8] sm:$0xff] }
 0x288   : > { %v2688_v43 = vmax.f32 %v2656_v48, %v2660_v63  ;;  %v2318_v51 = vadd.f32 %v2232_v41, %v2043_v19  ;;  %v2510_v28 = vpop.f32.mrf.mxu0  ;;  %v1766_v12 = vadd.f32 %v1682_v8, %v8217_v45 }
 0x28a   : > { %v2708_v3 = vrot.slane %v2688_v43, 1  ;;  %v2593_v32 = vadd.f32 %v2507_v10, %v2318_v51  ;;  %6652 = vmatmul.msk.f32.gmra.mxu1 %vm270_vm0, %v8262_v20  ;;  %6719 = vmatmul.msk.f32.gmra.mxu2 %vm270_vm0, %v8265_v7 }
 0x28b   : > { %6784 = vmatmul.msk.f32.gmra.mxu3 %vm270_vm0, %v6751_v36  ;;  %6849 = vmatmul.msk.f32.gmra.mxu0 %vm270_vm0, %v8330_v37 }
 0x28c   : > { %v2716_v40 = vmax.f32 %v2688_v43, %v2708_v3  ;;  %v2629_v35 = vadd.f32 %v8593_v57, %v2593_v32  ;;  %v6688_v3 = vld [vmem:[%s7715_s22 + $0x5f0] sm:$0xff] }
 0x28d   : > { %v1960_v20 = vpop.f32.mrf.mxu2 }
 0x28e   : > { %v2772_v39 = vrot.slane %v2716_v40, 1  ;;  %v2661_v7 = vmax.f32 %v2629_v35, 0.0  ;;  %v2235_v10 = vpop.f32.mrf.mxu3  ;;  %v2044_v37 = vadd.f32 %v1960_v20, %v1766_v12  ;;  %v2780_v50 = vrot.slane %v2716_v40, 2  ;;  %v8647_v35 = vld [vmem:[%s7715_s22 + $0x5f2] sm:$0xff] }
 0x28f   : > { %v1685_v34 = vpop.f32.mrf.mxu1  ;;  %v2788_v63 = vrot.slane %v2716_v40, 3 }
 0x290   : > { %v2689_v22 = vmax.f32 %v2657_v23, %v2661_v7  ;;  %v2513_v9 = vpop.f32.mrf.mxu0  ;;  %v2897_v42 = vsel %vm2896_vm1, %v2716_v40, %v2772_v39  ;;  %v2319_v45 = vadd.f32 %v2235_v10, %v2044_v37  ;;  %v2627_v39 = vadd.f32 %v8593_v57, %v2591_v2  ;;  %v12255_v37 = vld [vmem:[#allocation38_spill] sm:$0xff] }
 0x291   : > { %v2902_v48 = vsel %vm2901_vm2, %v2897_v42, %v2780_v50 }
 0x292   : > { %v2724_v5 = vrot.slane %v2689_v22, 1  ;;  %6653 = vmatmul.msk.f32.gmra.mxu1 %vm270_vm0, %v8279_v62  ;;  %6720 = vmatmul.msk.f32.gmra.mxu2 %vm270_vm0, %v8282_v52  ;;  %v2594_v33 = vadd.f32 %v2510_v28, %v2319_v45  ;;  %v12254_v62 = vld [vmem:[#allocation34_spill] sm:$0xff]  ;;  %v2907_v43 = vsel %vm2906_vm3, %v2902_v48, %v2788_v63 }
 0x293   : > { %6785 = vmatmul.msk.f32.gmra.mxu3 %vm270_vm0, %v6752_v38  ;;  %6850 = vmatmul.msk.f32.gmra.mxu0 %vm270_vm0, %v8347_v25  ;;  %v1767_v52 = vadd.f32 %v1685_v34, %v12254_v62  ;;  %v2659_v38 = vmax.f32 %v2627_v39, 0.0 }
 0x294   : > { %v2732_v0 = vmax.f32 %v2689_v22, %v2724_v5  ;;  %v2630_v60 = vadd.f32 %v8593_v57, %v2594_v33  ;;  %v6622_v5 = vld [vmem:[%s7715_s22 + $0x5d2] sm:$0xff] }
 0x295   : > { %v1963_v19 = vpop.f32.mrf.mxu2 }
 0x296   : > { %v2800_v41 = vrot.slane %v2732_v0, 4  ;;  %v2808_v8 = vrot.slane %v2732_v0, 5  ;;  %v2238_v25 = vpop.f32.mrf.mxu3  ;;  %v2662_v51 = vmax.f32 %v2630_v60, 0.0  ;;  %v2045_v36 = vadd.f32 %v1963_v19, %v1767_v52  ;;  %v12256_v52 = vld [vmem:[#allocation40_spill] sm:$0xff] }
 0x297   : > { %v8639_v28 = vpop.f32.mrf.mxu1  ;;  %v2816_v32 = vrot.slane %v2732_v0, 6  ;;  %v2824_v26 = vrot.slane %v2732_v0, 7 }
 0x298   : > { %v2912_v1 = vsel %vm2911_vm4, %v2907_v43, %v2800_v41  ;;  %v8644_v40 = vpop.f32.mrf.mxu0  ;;  %v2690_v12 = vmax.f32 %v2658_v49, %v2662_v51  ;;  %v2320_v20 = vadd.f32 %v2238_v25, %v2045_v36  ;;  %v8670_v49 = vld [vmem:[%s7715_s22 + $0x5fa] sm:$0xff] }
 0x299   : > { %v2917_v30 = vsel %vm2916_vm5, %v2912_v1, %v2808_v8  ;;  %v6623_v36 = vld [vmem:[%s7715_s22 + $0x5da] sm:$0xff]  ;;  %v8686_v1 = vld [vmem:[%s7715_s22 + $0x602] sm:$0xff] }
 0x29a   : > { %v2922_v23 = vsel %vm2921_vm6, %v2917_v30, %v2816_v32  ;;  %6654 = vmatmul.msk.f32.gmra.mxu1 %vm270_vm0, %v6621_v18  ;;  %6721 = vmatmul.msk.f32.gmra.mxu2 %vm270_vm0, %v6688_v3  ;;  %v2740_v10 = vrot.slane %v2690_v12, 1  ;;  %v2595_v27 = vadd.f32 %v2513_v9, %v2320_v20  ;;  %v6690_v18 = vld [vmem:[%s7715_s22 + $0x600] sm:$0xff] }
 0x29b   : > { %v2927_v7 = vsel %vm2926_vm7, %v2922_v23, %v2824_v26  ;;  %6786 = vmatmul.msk.f32.gmra.mxu3 %vm270_vm0, %v12255_v37  ;;  %6851 = vmatmul.msk.f32.gmra.mxu0 %vm270_vm0, %v8647_v35  ;;  %v6624_v37 = vld [vmem:[%s7715_s22 + $0x5e2] sm:$0xff] }
 0x29c   : > { %6861 = vst [vmem:[%s8661_s18 + $0x19] sm:$0xff] %v2927_v7  ;;  %v2748_v34 = vmax.f32 %v2690_v12, %v2740_v10  ;;  %v2631_v11 = vadd.f32 %v8593_v57, %v2595_v27 }
 0x29d   : > { %v1966_v50 = vpop.f32.mrf.mxu2 }
 0x29e   : > { %v2241_v22 = vpop.f32.mrf.mxu3  ;;  %v2836_v42 = vrot.slane %v2748_v34, 1  ;;  %v2663_v9 = vmax.f32 %v2631_v11, 0.0  ;;  %v2844_v48 = vrot.slane %v2748_v34, 2  ;;  %v2852_v8 = vrot.slane %v2748_v34, 3 }
 0x29f   : > { %v1691_v45 = vpop.f32.mrf.mxu1 }
 0x2a0   : > { %v8667_v33 = vpop.f32.mrf.mxu0  ;;  %v2691_v0 = vmax.f32 %v2659_v38, %v2663_v9  ;;  %v2931_v63 = vsel %vm2896_vm1, %v2748_v34, %v2836_v42  ;;  %v6691_v34 = vld [vmem:[%s7715_s22 + $0x608] sm:$0xff] }
 0x2a1   : > { %v2935_v60 = vsel %vm2901_vm2, %v2931_v63, %v2844_v48  ;;  %v8706_v38 = vld [vmem:[%s7715_s22 + $0x60a] sm:$0xff]  ;;  %v6757_v63 = vld [vmem:[%s7715_s22 + $0x619] sm:$0xff] }
 0x2a2   : > { %6655 = vmatmul.msk.f32.gmra.mxu1 %vm270_vm0, %v6622_v5  ;;  %6722 = vmatmul.msk.f32.gmra.mxu2 %vm270_vm0, %v6689_v54  ;;  %v2756_v62 = vrot.slane %v2691_v0, 1  ;;  %v2939_v3 = vsel %vm2906_vm3, %v2935_v60, %v2852_v8 }
 0x2a3   : > { %6787 = vmatmul.msk.f32.gmra.mxu3 %vm270_vm0, %v12256_v52  ;;  %6852 = vmatmul.msk.f32.gmra.mxu0 %vm270_vm0, %v8670_v49  ;;  %v6822_v52 = vld [vmem:[%s7715_s22 + $0x61a] sm:$0xff] }
 0x2a4   : > { %v2764_v19 = vmax.f32 %v2691_v0, %v2756_v62  ;;  %v6692_v0 = vld [vmem:[%s7715_s22 + $0x618] sm:$0xff] }
 0x2a5   : > { %v1969_v41 = vpop.f32.mrf.mxu2 }
 0x2a6   : > { %v2244_v25 = vpop.f32.mrf.mxu3  ;;  %v2864_v2 = vrot.slane %v2764_v19, 4  ;;  %v2872_v43 = vrot.slane %v2764_v19, 5  ;;  %v2880_v26 = vrot.slane %v2764_v19, 6  ;;  %v2888_v12 = vrot.slane %v2764_v19, 7 }
 0x2a7   : > { %v1694_v51 = vpop.f32.mrf.mxu1 }
 0x2a8   : > { %v8683_v32 = vpop.f32.mrf.mxu0  ;;  %v2943_v30 = vsel %vm2911_vm4, %v2939_v3, %v2864_v2  ;;  %v6693_v3 = vld [vmem:[%s7715_s22 + $0x620] sm:$0xff] }
 0x2a9   : > { %v2947_v20 = vsel %vm2916_vm5, %v2943_v30, %v2872_v43 }
 0x2aa   : > { %6656 = vmatmul.msk.f32.gmra.mxu1 %vm270_vm0, %v6623_v36  ;;  %6723 = vmatmul.msk.f32.gmra.mxu2 %vm270_vm0, %v6690_v18  ;;  %v2951_v23 = vsel %vm2921_vm6, %v2947_v20, %v2880_v26  ;;  %v6758_v26 = vld [vmem:[%s7715_s22 + $0x621] sm:$0xff] }
 0x2ab   : > { %6788 = vmatmul.msk.f32.gmra.mxu3 %vm270_vm0, %v8334_v16  ;;  %6853 = vmatmul.msk.f32.gmra.mxu0 %vm270_vm0, %v8686_v1  ;;  %v2955_v39 = vsel %vm2926_vm7, %v2951_v23, %v2888_v12  ;;  %v12257_v16 = vld [vmem:[#allocation35_spill] sm:$0xff]  ;;  %v6823_v12 = vld [vmem:[%s7715_s22 + $0x622] sm:$0xff] }
 0x2ac   : > { %6862 = vst [vmem:[%s8661_s18 + $0x21] sm:$0xff] %v2955_v39  ;;  %v1768_v42 = vadd.f32 %v8639_v28, %v12257_v16 }
 0x2ad   : > { %v1972_v7 = vpop.f32.mrf.mxu2 }
 0x2ae   : > { %v2247_v10 = vpop.f32.mrf.mxu3  ;;  %v2046_v9 = vadd.f32 %v1966_v50, %v1768_v42  ;;  %v12259_v50 = vld [vmem:[#allocation41_spill] sm:$0xff] }
 0x2af   : > { %v8699_v27 = vpop.f32.mrf.mxu1 }
 0x2b0   : > { %v8703_v11 = vpop.f32.mrf.mxu0  ;;  %v2321_v60 = vadd.f32 %v2241_v22, %v2046_v9 }
 0x2b2   : > { %6657 = vmatmul.msk.f32.gmra.mxu1 %vm270_vm0, %v6624_v37  ;;  %6724 = vmatmul.msk.f32.gmra.mxu2 %vm270_vm0, %v6691_v34  ;;  %v2596_v8 = vadd.f32 %v8644_v40, %v2321_v60  ;;  %v12260_v40 = vld [vmem:[#allocation37_spill] sm:$0xff] }
 0x2b3   : > { %6789 = vmatmul.msk.f32.gmra.mxu3 %vm270_vm0, %v8351_v53  ;;  %6854 = vmatmul.msk.f32.gmra.mxu0 %vm270_vm0, %v8706_v38  ;;  %v12258_v53 = vld [vmem:[#allocation36_spill] sm:$0xff] }
 0x2b4   : > { %v1769_v28 = vadd.f32 %v1691_v45, %v12258_v53  ;;  %v2632_v20 = vadd.f32 %v8593_v57, %v2596_v8  ;;  %v1770_v45 = vadd.f32 %v1694_v51, %v12260_v40  ;;  %v6759_v53 = vld [vmem:[%s7715_s22 + $0x629] sm:$0xff] }
 0x2b5   : > { %v8716_v5 = vpop.f32.mrf.mxu2  ;;  %v6824_v51 = vld [vmem:[%s7715_s22 + $0x62a] sm:$0xff] }
 0x2b6   : > { %v8718_v54 = vpop.f32.mrf.mxu3  ;;  %v2047_v43 = vadd.f32 %v1969_v41, %v1769_v28  ;;  %v12261_v41 = vld [vmem:[#allocation42_spill] sm:$0xff]  ;;  %v2048_v9 = vadd.f32 %v1972_v7, %v1770_v45 }
 0x2b7   : > { %v1700_v48 = vpop.f32.mrf.mxu1  ;;  %v6760_v45 = vld [vmem:[%s7715_s22 + $0x631] sm:$0xff] }
 0x2b8   : > { %v2528_v62 = vpop.f32.mrf.mxu0  ;;  %v1772_v19 = vadd.f32 %v1700_v48, %v12259_v50  ;;  %v2322_v23 = vadd.f32 %v2244_v25, %v2047_v43  ;;  %v2664_v25 = vmax.f32 %v2632_v20, 0.0  ;;  %v12262_v43 = vld [vmem:[#allocation39_spill] sm:$0xff] }
 0x2ba   : > { %6658 = vmatmul.msk.f32.gmra.mxu1 %vm270_vm0, %v8647_v35  ;;  %6725 = vmatmul.msk.f32.gmra.mxu2 %vm270_vm0, %v6692_v0  ;;  %v2597_v42 = vadd.f32 %v8667_v33, %v2322_v23  ;;  %v6695_v23 = vld [vmem:[%s7715_s22 + $0x630] sm:$0xff] }
 0x2bb   : > { %6790 = vmatmul.msk.f32.gmra.mxu3 %vm270_vm0, %v6757_v63  ;;  %6855 = vmatmul.msk.f32.gmra.mxu0 %vm270_vm0, %v6822_v52 }
 0x2bc   : > { %v2633_v50 = vadd.f32 %v8593_v57, %v2597_v42 }
 0x2bd   : > { %v1978_v2 = vpop.f32.mrf.mxu2 }
 0x2be   : > { %v2050_v36 = vadd.f32 %v1978_v2, %v1772_v19  ;;  %v2253_v22 = vpop.f32.mrf.mxu3  ;;  %v2323_v19 = vadd.f32 %v2247_v10, %v2048_v9 }
 0x2bf   : > { %v1703_v18 = vpop.f32.mrf.mxu1 }
 0x2c0   : > { %v2325_v35 = vadd.f32 %v2253_v22, %v2050_v36  ;;  %v2531_v30 = vpop.f32.mrf.mxu0  ;;  %v1773_v37 = vadd.f32 %v1703_v18, %v12261_v41  ;;  %v1771_v36 = vadd.f32 %v8699_v27, %v12262_v43  ;;  %v2665_v18 = vmax.f32 %v2633_v50, 0.0  ;;  %v6825_v27 = vld [vmem:[%s7715_s22 + $0x632] sm:$0xff] }
 0x2c2   : > { %v2600_v39 = vadd.f32 %v2528_v62, %v2325_v35  ;;  %6659 = vmatmul.msk.f32.gmra.mxu1 %vm270_vm0, %v8670_v49  ;;  %6726 = vmatmul.msk.f32.gmra.mxu2 %vm270_vm0, %v6693_v3  ;;  %v6694_v62 = vld [vmem:[%s7715_s22 + $0x628] sm:$0xff] }
 0x2c3   : > { %6791 = vmatmul.msk.f32.gmra.mxu3 %vm270_vm0, %v6758_v26  ;;  %6856 = vmatmul.msk.f32.gmra.mxu0 %vm270_vm0, %v6823_v12 }
 0x2c4   : > { %v2636_v34 = vadd.f32 %v8593_v57, %v2600_v39 }
 0x2c5   : > { %v1981_v16 = vpop.f32.mrf.mxu2 }
 0x2c6   : > { %v2668_v49 = vmax.f32 %v2636_v34, 0.0  ;;  %v2051_v48 = vadd.f32 %v1981_v16, %v1773_v37  ;;  %v2256_v0 = vpop.f32.mrf.mxu3 }
 0x2c7   : > { %v1706_v63 = vpop.f32.mrf.mxu1 }
 0x2c8   : > { %v2692_v52 = vmax.f32 %v2664_v25, %v2668_v49  ;;  %v2326_v60 = vadd.f32 %v2256_v0, %v2051_v48  ;;  %v2534_v28 = vpop.f32.mrf.mxu0  ;;  %v1774_v10 = vadd.f32 %v1706_v63, %v8353_v46 }
 0x2ca   : > { %v2709_v8 = vrot.slane %v2692_v52, 1  ;;  %v2601_v2 = vadd.f32 %v2531_v30, %v2326_v60  ;;  %6660 = vmatmul.msk.f32.gmra.mxu1 %vm270_vm0, %v8686_v1  ;;  %6727 = vmatmul.msk.f32.gmra.mxu2 %vm270_vm0, %v6694_v62  ;;  %v2598_v1 = vadd.f32 %v8683_v32, %v2323_v19  ;;  %v2049_v30 = vadd.f32 %v8716_v5, %v1771_v36 }
 0x2cb   : > { %6792 = vmatmul.msk.f32.gmra.mxu3 %vm270_vm0, %v6759_v53  ;;  %6857 = vmatmul.msk.f32.gmra.mxu0 %vm270_vm0, %v6824_v51 }
 0x2cc   : > { %v2717_v33 = vmax.f32 %v2692_v52, %v2709_v8  ;;  %v2637_v7 = vadd.f32 %v8593_v57, %v2601_v2  ;;  %v2634_v34 = vadd.f32 %v8593_v57, %v2598_v1  ;;  %v2324_v32 = vadd.f32 %v8718_v54, %v2049_v30 }
 0x2cd   : > { %v1984_v22 = vpop.f32.mrf.mxu2 }
 0x2ce   : > { %v2773_v3 = vrot.slane %v2717_v33, 1  ;;  %v2669_v35 = vmax.f32 %v2637_v7, 0.0  ;;  %v2259_v26 = vpop.f32.mrf.mxu3  ;;  %v2052_v12 = vadd.f32 %v1984_v22, %v1774_v10  ;;  %v2781_v39 = vrot.slane %v2717_v33, 2 }
 0x2cf   : > { %v1709_v20 = vpop.f32.mrf.mxu1  ;;  %v2789_v9 = vrot.slane %v2717_v33, 3  ;;  %v2666_v63 = vmax.f32 %v2634_v34, 0.0  ;;  %v2599_v54 = vadd.f32 %v8703_v11, %v2324_v32 }
 0x2d0   : > { %v2693_v40 = vmax.f32 %v2665_v18, %v2669_v35  ;;  %v2537_v41 = vpop.f32.mrf.mxu0  ;;  %v2898_v37 = vsel %vm2896_vm1, %v2717_v33, %v2773_v3  ;;  %v2327_v46 = vadd.f32 %v2259_v26, %v2052_v12  ;;  %v1775_v49 = vadd.f32 %v1709_v20, %v8363_v4 }
 0x2d1   : > { %v2903_v16 = vsel %vm2901_vm2, %v2898_v37, %v2781_v39  ;;  %v2635_v36 = vadd.f32 %v8593_v57, %v2599_v54 }
 0x2d2   : > { %v2725_v25 = vrot.slane %v2693_v40, 1  ;;  %6661 = vmatmul.msk.f32.gmra.mxu1 %vm270_vm0, %v8706_v38  ;;  %6728 = vmatmul.msk.f32.gmra.mxu2 %vm270_vm0, %v6695_v23  ;;  %v2602_v5 = vadd.f32 %v2534_v28, %v2327_v46  ;;  %v2908_v60 = vsel %vm2906_vm3, %v2903_v16, %v2789_v9 }
 0x2d3   : > { %6793 = vmatmul.msk.f32.gmra.mxu3 %vm270_vm0, %v6760_v45  ;;  %6858 = vmatmul.msk.f32.gmra.mxu0 %vm270_vm0, %v6825_v27  ;;  %v2667_v26 = vmax.f32 %v2635_v36, 0.0 }
 0x2d4   : > { %v2733_v42 = vmax.f32 %v2693_v40, %v2725_v25  ;;  %v2638_v48 = vadd.f32 %v8593_v57, %v2602_v5 }
 0x2d5   : > { %v1987_v0 = vpop.f32.mrf.mxu2 }
 0x2d6   : > { %v2801_v38 = vrot.slane %v2733_v42, 4  ;;  %v2809_v62 = vrot.slane %v2733_v42, 5  ;;  %v2262_v52 = vpop.f32.mrf.mxu3  ;;  %v2670_v53 = vmax.f32 %v2638_v48, 0.0  ;;  %v2053_v28 = vadd.f32 %v1987_v0, %v1775_v49 }
 0x2d7   : > { %v1712_v51 = vpop.f32.mrf.mxu1  ;;  %v2817_v50 = vrot.slane %v2733_v42, 6  ;;  %v2825_v4 = vrot.slane %v2733_v42, 7 }
 0x2d8   : > { %v2913_v19 = vsel %vm2911_vm4, %v2908_v60, %v2801_v38  ;;  %v2540_v8 = vpop.f32.mrf.mxu0  ;;  %v2694_v33 = vmax.f32 %v2666_v63, %v2670_v53  ;;  %v2328_v7 = vadd.f32 %v2262_v52, %v2053_v28  ;;  %v1776_v28 = vadd.f32 %v1712_v51, %v8374_v47 }
 0x2d9   : > { %v2918_v2 = vsel %vm2916_vm5, %v2913_v19, %v2809_v62 }
 0x2da   : > { %v2923_v43 = vsel %vm2921_vm6, %v2918_v2, %v2817_v50  ;;  %v2741_v10 = vrot.slane %v2694_v33, 1  ;;  %v2603_v22 = vadd.f32 %v2537_v41, %v2328_v7 }
 0x2db   : > { %v2928_v11 = vsel %vm2926_vm7, %v2923_v43, %v2825_v4 }
 0x2dc   : > { %6863 = vst [vmem:[%s8661_s18 + $0x31] sm:$0xff] %v2928_v11  ;;  %v2749_v18 = vmax.f32 %v2694_v33, %v2741_v10  ;;  %v2639_v1 = vadd.f32 %v8593_v57, %v2603_v22 }
 0x2dd   : > { %v1990_v3 = vpop.f32.mrf.mxu2 }
 0x2de   : > { %v2265_v35 = vpop.f32.mrf.mxu3  ;;  %v2837_v30 = vrot.slane %v2749_v18, 1  ;;  %v2671_v12 = vmax.f32 %v2639_v1, 0.0  ;;  %v2845_v39 = vrot.slane %v2749_v18, 2  ;;  %v2853_v34 = vrot.slane %v2749_v18, 3 }
 0x2df   : > { %v1715_v20 = vpop.f32.mrf.mxu1  ;;  %v2054_v50 = vadd.f32 %v1990_v3, %v1776_v28 }
 0x2e0   : > { %v2543_v23 = vpop.f32.mrf.mxu0  ;;  %v2695_v40 = vmax.f32 %v2667_v26, %v2671_v12  ;;  %v2932_v45 = vsel %vm2896_vm1, %v2749_v18, %v2837_v30  ;;  %v1777_v43 = vadd.f32 %v1715_v20, %v8385_v24 }
 0x2e1   : > { %v2936_v37 = vsel %vm2901_vm2, %v2932_v45, %v2845_v39  ;;  %v2329_v7 = vadd.f32 %v2265_v35, %v2054_v50 }
 0x2e2   : > { %v2757_v27 = vrot.slane %v2695_v40, 1  ;;  %v2940_v42 = vsel %vm2906_vm3, %v2936_v37, %v2853_v34 }
 0x2e3   : > { %v2604_v11 = vadd.f32 %v2540_v8, %v2329_v7 }
 0x2e4   : > { %v2765_v41 = vmax.f32 %v2695_v40, %v2757_v27 }
 0x2e5   : > { %v1993_v46 = vpop.f32.mrf.mxu2  ;;  %v2640_v47 = vadd.f32 %v8593_v57, %v2604_v11 }
 0x2e6   : > { %v2268_v25 = vpop.f32.mrf.mxu3  ;;  %v2865_v32 = vrot.slane %v2765_v41, 4  ;;  %v2873_v5 = vrot.slane %v2765_v41, 5  ;;  %v2881_v49 = vrot.slane %v2765_v41, 6  ;;  %v2889_v0 = vrot.slane %v2765_v41, 7 }
 0x2e7   : > { %v1718_v16 = vpop.f32.mrf.mxu1  ;;  %v2055_v22 = vadd.f32 %v1993_v46, %v1777_v43  ;;  %v2672_v20 = vmax.f32 %v2640_v47, 0.0 }
 0x2e8   : > { %v2546_v9 = vpop.f32.mrf.mxu0  ;;  %v2944_v48 = vsel %vm2911_vm4, %v2940_v42, %v2865_v32  ;;  %v1778_v39 = vadd.f32 %v1718_v16, %v8397_v58 }
 0x2e9   : > { %v2948_v63 = vsel %vm2916_vm5, %v2944_v48, %v2873_v5  ;;  %v2330_v51 = vadd.f32 %v2268_v25, %v2055_v22 }
 0x2ea   : > { %v2952_v38 = vsel %vm2921_vm6, %v2948_v63, %v2881_v49 }
 0x2eb   : > { %v2956_v62 = vsel %vm2926_vm7, %v2952_v38, %v2889_v0  ;;  %v2605_v8 = vadd.f32 %v2543_v23, %v2330_v51 }
 0x2ec   : > { %6864 = vst [vmem:[%s8661_s18 + $0x39] sm:$0xff] %v2956_v62 }
 0x2ed   : > { %v1996_v52 = vpop.f32.mrf.mxu2  ;;  %v2641_v25 = vadd.f32 %v8593_v57, %v2605_v8 }
 0x2ee   : > { %v2271_v54 = vpop.f32.mrf.mxu3  ;;  %v2056_v40 = vadd.f32 %v1996_v52, %v1778_v39 }
 0x2ef   : > { %v1721_v60 = vpop.f32.mrf.mxu1  ;;  %v2673_v0 = vmax.f32 %v2641_v25, 0.0 }
 0x2f0   : > { %v8790_v53 = vpop.f32.mrf.mxu0  ;;  %v2331_v5 = vadd.f32 %v2271_v54, %v2056_v40  ;;  %v1779_v49 = vadd.f32 %v1721_v60, %v8408_v55 }
 0x2f2   : > { %v2606_v63 = vadd.f32 %v2546_v9, %v2331_v5 }
 0x2f4   : > { %v2642_v11 = vadd.f32 %v8593_v57, %v2606_v63 }
 0x2f5   : > { %v1999_v19 = vpop.f32.mrf.mxu2 }
 0x2f6   : > { %v2274_v4 = vpop.f32.mrf.mxu3  ;;  %v2057_v28 = vadd.f32 %v1999_v19, %v1779_v49 }
 0x2f7   : > { %v1724_v2 = vpop.f32.mrf.mxu1 }
 0x2f8   : > { %v2552_v33 = vpop.f32.mrf.mxu0  ;;  %v1780_v36 = vadd.f32 %v1724_v2, %v8419_v56  ;;  %v2332_v60 = vadd.f32 %v2274_v4, %v2057_v28 }
 0x2fa   : > { %v2607_v51 = vadd.f32 %v8790_v53, %v2332_v60 }
 0x2fd   : > { %v2002_v10 = vpop.f32.mrf.mxu2 }
 0x2fe   : > { %v2058_v18 = vadd.f32 %v2002_v10, %v1780_v36  ;;  %v2277_v1 = vpop.f32.mrf.mxu3 }
 0x2ff   : > { %v1727_v26 = vpop.f32.mrf.mxu1 }
 0x300   : > { %v2333_v30 = vadd.f32 %v2277_v1, %v2058_v18  ;;  %v2555_v12 = vpop.f32.mrf.mxu0  ;;  %v1781_v35 = vadd.f32 %v1727_v26, %v8430_v21  ;;  %v2674_v26 = vmax.f32 %v2642_v11, 0.0 }
 0x302   : > { %v2608_v3 = vadd.f32 %v2552_v33, %v2333_v30 }
 0x304   : > { %v2644_v24 = vadd.f32 %v8593_v57, %v2608_v3 }
 0x305   : > { %v2005_v56 = vpop.f32.mrf.mxu2 }
 0x306   : > { %v2676_v45 = vmax.f32 %v2644_v24, 0.0  ;;  %v2059_v27 = vadd.f32 %v2005_v56, %v1781_v35  ;;  %v2280_v37 = vpop.f32.mrf.mxu3 }
 0x307   : > { %v1730_v41 = vpop.f32.mrf.mxu1 }
 0x308   : > { %v2696_v46 = vmax.f32 %v2672_v20, %v2676_v45  ;;  %v2334_v34 = vadd.f32 %v2280_v37, %v2059_v27  ;;  %v2558_v32 = vpop.f32.mrf.mxu0  ;;  %v1782_v23 = vadd.f32 %v1730_v41, %v8441_v15  ;;  %v2643_v37 = vadd.f32 %v8593_v57, %v2607_v51 }
 0x30a   : > { %v2710_v42 = vrot.slane %v2696_v46, 1  ;;  %v2609_v58 = vadd.f32 %v2555_v12, %v2334_v34 }
 0x30c   : > { %v2718_v16 = vmax.f32 %v2696_v46, %v2710_v42  ;;  %v2645_v21 = vadd.f32 %v8593_v57, %v2609_v58  ;;  %v2675_v42 = vmax.f32 %v2643_v37, 0.0 }
 0x30d   : > { %v2008_v48 = vpop.f32.mrf.mxu2 }
 0x30e   : > { %v2774_v38 = vrot.slane %v2718_v16, 1  ;;  %v2677_v62 = vmax.f32 %v2645_v21, 0.0  ;;  %v2283_v52 = vpop.f32.mrf.mxu3  ;;  %v2060_v50 = vadd.f32 %v2008_v48, %v1782_v23  ;;  %v2782_v33 = vrot.slane %v2718_v16, 2 }
 0x30f   : > { %v1733_v2 = vpop.f32.mrf.mxu1  ;;  %v2790_v22 = vrot.slane %v2718_v16, 3 }
 0x310   : > { %v2697_v54 = vmax.f32 %v2673_v0, %v2677_v62  ;;  %v2561_v7 = vpop.f32.mrf.mxu0  ;;  %v2899_v43 = vsel %vm2896_vm1, %v2718_v16, %v2774_v38  ;;  %v2335_v36 = vadd.f32 %v2283_v52, %v2060_v50  ;;  %v1783_v18 = vadd.f32 %v1733_v2, %v8452_v14 }
 0x311   : > { %v2904_v10 = vsel %vm2901_vm2, %v2899_v43, %v2782_v33 }
 0x312   : > { %v2726_v55 = vrot.slane %v2697_v54, 1  ;;  %v2610_v15 = vadd.f32 %v2558_v32, %v2335_v36  ;;  %v2909_v3 = vsel %vm2906_vm3, %v2904_v10, %v2790_v22 }
 0x314   : > { %v2734_v9 = vmax.f32 %v2697_v54, %v2726_v55  ;;  %v2646_v19 = vadd.f32 %v8593_v57, %v2610_v15 }
 0x315   : > { %v2011_v1 = vpop.f32.mrf.mxu2 }
 0x316   : > { %v2802_v30 = vrot.slane %v2734_v9, 4  ;;  %v2810_v12 = vrot.slane %v2734_v9, 5  ;;  %v2286_v47 = vpop.f32.mrf.mxu3  ;;  %v2678_v4 = vmax.f32 %v2646_v19, 0.0  ;;  %v2061_v39 = vadd.f32 %v2011_v1, %v1783_v18 }
 0x317   : > { %v1736_v35 = vpop.f32.mrf.mxu1  ;;  %v2818_v24 = vrot.slane %v2734_v9, 6  ;;  %v2826_v14 = vrot.slane %v2734_v9, 7 }
 0x318   : > { %v2914_v20 = vsel %vm2911_vm4, %v2909_v3, %v2802_v30  ;;  %v2564_v56 = vpop.f32.mrf.mxu0  ;;  %v2698_v40 = vmax.f32 %v2674_v26, %v2678_v4  ;;  %v2336_v45 = vadd.f32 %v2286_v47, %v2061_v39  ;;  %v1784_v1 = vadd.f32 %v1736_v35, %v8463_v44 }
 0x319   : > { %v2919_v8 = vsel %vm2916_vm5, %v2914_v20, %v2810_v12 }
 0x31a   : > { %v2924_v27 = vsel %vm2921_vm6, %v2919_v8, %v2818_v24  ;;  %v2742_v41 = vrot.slane %v2698_v40, 1  ;;  %v2611_v46 = vadd.f32 %v2561_v7, %v2336_v45 }
 0x31b   : > { %v2929_v53 = vsel %vm2926_vm7, %v2924_v27, %v2826_v14 }
 0x31c   : > { %6865 = vst [vmem:[%s8661_s18 + $0x1c9] sm:$0xff] %v2929_v53  ;;  %v2750_v34 = vmax.f32 %v2698_v40, %v2742_v41  ;;  %v2647_v32 = vadd.f32 %v8593_v57, %v2611_v46 }
 0x31d   : > { %v2014_v25 = vpop.f32.mrf.mxu2 }
 0x31e   : > { %v2289_v5 = vpop.f32.mrf.mxu3  ;;  %v2838_v58 = vrot.slane %v2750_v34, 1  ;;  %v2679_v16 = vmax.f32 %v2647_v32, 0.0  ;;  %v2846_v23 = vrot.slane %v2750_v34, 2  ;;  %v2854_v28 = vrot.slane %v2750_v34, 3 }
 0x31f   : > { %v1739_v21 = vpop.f32.mrf.mxu1  ;;  %v2062_v26 = vadd.f32 %v2014_v25, %v1784_v1 }
 0x320   : > { %v2567_v49 = vpop.f32.mrf.mxu0  ;;  %v2699_v48 = vmax.f32 %v2675_v42, %v2679_v16  ;;  %v2933_v0 = vsel %vm2896_vm1, %v2750_v34, %v2838_v58  ;;  %v1785_v4 = vadd.f32 %v1739_v21, %v8474_v59 }
 0x321   : > { %v2937_v38 = vsel %vm2901_vm2, %v2933_v0, %v2846_v23  ;;  %v2337_v51 = vadd.f32 %v2289_v5, %v2062_v26 }
 0x322   : > { %v2758_v63 = vrot.slane %v2699_v48, 1  ;;  %v2941_v7 = vsel %vm2906_vm3, %v2937_v38, %v2854_v28 }
 0x323   : > { %v2612_v24 = vadd.f32 %v2564_v56, %v2337_v51 }
 0x324   : > { %v2766_v62 = vmax.f32 %v2699_v48, %v2758_v63 }
 0x325   : > { %v2017_v52 = vpop.f32.mrf.mxu2  ;;  %v2648_v37 = vadd.f32 %v8593_v57, %v2612_v24 }
 0x326   : > { %v2292_v50 = vpop.f32.mrf.mxu3  ;;  %v2866_v2 = vrot.slane %v2766_v62, 4  ;;  %v2874_v33 = vrot.slane %v2766_v62, 5  ;;  %v2882_v36 = vrot.slane %v2766_v62, 6  ;;  %v2890_v55 = vrot.slane %v2766_v62, 7 }
 0x327   : > { %v1742_v54 = vpop.f32.mrf.mxu1  ;;  %v2063_v14 = vadd.f32 %v2017_v52, %v1785_v4  ;;  %v2680_v34 = vmax.f32 %v2648_v37, 0.0 }
 0x328   : > { %v2570_v43 = vpop.f32.mrf.mxu0  ;;  %v2945_v11 = vsel %vm2911_vm4, %v2941_v7, %v2866_v2  ;;  %v1786_v53 = vadd.f32 %v1742_v54, %v8485_v17 }
 0x329   : > { %v2949_v60 = vsel %vm2916_vm5, %v2945_v11, %v2874_v33  ;;  %v2338_v44 = vadd.f32 %v2292_v50, %v2063_v14 }
 0x32a   : > { %v2953_v15 = vsel %vm2921_vm6, %v2949_v60, %v2882_v36 }
 0x32b   : > { %v2957_v10 = vsel %vm2926_vm7, %v2953_v15, %v2890_v55  ;;  %v2613_v56 = vadd.f32 %v2567_v49, %v2338_v44 }
 0x32c   : > { %6866 = vst [vmem:[%s8661_s18 + $0x1d1] sm:$0xff] %v2957_v10 }
 0x32d   : > { %v2020_v9 = vpop.f32.mrf.mxu2  ;;  %v2649_v23 = vadd.f32 %v8593_v57, %v2613_v56 }
 0x32e   : > { %v2295_v22 = vpop.f32.mrf.mxu3  ;;  %v2064_v32 = vadd.f32 %v2020_v9, %v1786_v53 }
 0x32f   : > { %v1745_v18 = vpop.f32.mrf.mxu1  ;;  %v2681_v52 = vmax.f32 %v2649_v23, 0.0 }
 0x330   : > { %v8825_v19 = vpop.f32.mrf.mxu0  ;;  %v2339_v48 = vadd.f32 %v2295_v22, %v2064_v32  ;;  %v1787_v38 = vadd.f32 %v1745_v18, %v8498_v6 }
 0x332   : > { %v2614_v28 = vadd.f32 %v2570_v43, %v2339_v48 }
 0x334   : > { %v2650_v10 = vadd.f32 %v8593_v57, %v2614_v28 }
 0x335   : > { %v2023_v30 = vpop.f32.mrf.mxu2 }
 0x336   : > { %v2298_v12 = vpop.f32.mrf.mxu3  ;;  %v2065_v7 = vadd.f32 %v2023_v30, %v1787_v38  ;;  %v2682_v51 = vmax.f32 %v2650_v10, 0.0 }
 0x337   : > { %v1748_v47 = vpop.f32.mrf.mxu1 }
 0x338   : > { %v2576_v3 = vpop.f32.mrf.mxu0  ;;  %v1788_v39 = vadd.f32 %v1748_v47, %v8508_v13  ;;  %v2340_v22 = vadd.f32 %v2298_v12, %v2065_v7 }
 0x33a   : > { %v2615_v24 = vadd.f32 %v8825_v19, %v2340_v22  ;;  %v7416_v19 = vld [vmem:[%s12162_s2] ss:$0 sm:$0xff] }
 0x33d   : > { %v2026_v20 = vpop.f32.mrf.mxu2 }
 0x33e   : > { %v2066_v8 = vadd.f32 %v2026_v20, %v1788_v39  ;;  %v2301_v40 = vpop.f32.mrf.mxu3 }
 0x33f   : > { %v1751_v45 = vpop.f32.mrf.mxu1 }
 0x340   : > { %v2341_v27 = vadd.f32 %v2301_v40, %v2066_v8  ;;  %v1789_v41 = vadd.f32 %v1751_v45, %v8518_v29  ;;  %v2579_v59 = vpop.f32.mrf.mxu0 }
 0x342   : > { %v2616_v35 = vadd.f32 %v2576_v3, %v2341_v27 }
 0x344   : > { %v2652_v46 = vadd.f32 %v8593_v57, %v2616_v35  ;;  %v2651_v35 = vadd.f32 %v7416_v19, %v2615_v24 }
 0x345   : > { %v2029_v13 = vpop.f32.mrf.mxu2 }
 0x346   : > { %v2684_v25 = vmax.f32 %v2652_v46, 0.0  ;;  %v2067_v5 = vadd.f32 %v2029_v13, %v1789_v41  ;;  %v2304_v42 = vpop.f32.mrf.mxu3  ;;  %v2683_v13 = vmax.f32 %v2651_v35, 0.0 }
 0x347   : > { %v1754_v16 = vpop.f32.mrf.mxu1 }
 0x348   : > { %v2700_v58 = vmax.f32 %v2680_v34, %v2684_v25  ;;  %v2342_v21 = vadd.f32 %v2304_v42, %v2067_v5  ;;  %v1790_v62 = vadd.f32 %v1754_v16, %v8528_v31  ;;  %v2582_v54 = vpop.f32.mrf.mxu0 }
 0x34a   : > { %v2711_v0 = vrot.slane %v2700_v58, 1  ;;  %v2617_v17 = vadd.f32 %v2579_v59, %v2342_v21 }
 0x34c   : > { %v2719_v63 = vmax.f32 %v2700_v58, %v2711_v0  ;;  %v2653_v29 = vadd.f32 %v8593_v57, %v2617_v17 }
 0x34d   : > { %v2032_v49 = vpop.f32.mrf.mxu2 }
 0x34e   : > { %v2775_v50 = vrot.slane %v2719_v63, 1  ;;  %v2685_v2 = vmax.f32 %v2653_v29, 0.0  ;;  %v2307_v33 = vpop.f32.mrf.mxu3  ;;  %v2068_v36 = vadd.f32 %v2032_v49, %v1790_v62  ;;  %v2783_v11 = vrot.slane %v2719_v63, 2 }
 0x34f   : > { %v1757_v6 = vpop.f32.mrf.mxu1  ;;  %v2791_v1 = vrot.slane %v2719_v63, 3 }
 0x350   : > { %v2701_v55 = vmax.f32 %v2681_v52, %v2685_v2  ;;  %v2900_v60 = vsel %vm2896_vm1, %v2719_v63, %v2775_v50  ;;  %v2343_v15 = vadd.f32 %v2307_v33, %v2068_v36  ;;  %v1791_v26 = vadd.f32 %v1757_v6, %v8536_v61  ;;  %v2585_v45 = vpop.f32.mrf.mxu0 }
 0x351   : > { %v2905_v18 = vsel %vm2901_vm2, %v2900_v60, %v2783_v11 }
 0x352   : > { %v2727_v9 = vrot.slane %v2701_v55, 1  ;;  %v2618_v31 = vadd.f32 %v2582_v54, %v2343_v15  ;;  %v2910_v20 = vsel %vm2906_vm3, %v2905_v18, %v2791_v1 }
 0x354   : > { %v2735_v43 = vmax.f32 %v2701_v55, %v2727_v9  ;;  %v2654_v30 = vadd.f32 %v8593_v57, %v2618_v31 }
 0x355   : > { %v2035_v47 = vpop.f32.mrf.mxu2 }
 0x356   : > { %v2803_v3 = vrot.slane %v2735_v43, 4  ;;  %v2811_v4 = vrot.slane %v2735_v43, 5  ;;  %v2310_v39 = vpop.f32.mrf.mxu3  ;;  %v2686_v12 = vmax.f32 %v2654_v30, 0.0  ;;  %v2069_v14 = vadd.f32 %v2035_v47, %v1791_v26 }
 0x357   : > { %v2819_v8 = vrot.slane %v2735_v43, 6  ;;  %v2827_v27 = vrot.slane %v2735_v43, 7 }
 0x358   : > { %v2915_v40 = vsel %vm2911_vm4, %v2910_v20, %v2803_v3  ;;  %v2702_v57 = vmax.f32 %v2682_v51, %v2686_v12  ;;  %v2344_v37 = vadd.f32 %v2310_v39, %v2069_v14 }
 0x359   : > { %v2920_v61 = vsel %vm2916_vm5, %v2915_v40, %v2811_v4 }
 0x35a   : > { %v2925_v44 = vsel %vm2921_vm6, %v2920_v61, %v2819_v8  ;;  %v2743_v41 = vrot.slane %v2702_v57, 1  ;;  %v2619_v46 = vadd.f32 %v2585_v45, %v2344_v37 }
 0x35b   : > { %v2930_v53 = vsel %vm2926_vm7, %v2925_v44, %v2827_v27 }
 0x35c   : > { %6867 = vst [vmem:[%s8661_s18 + $0x1e1] sm:$0xff] %v2930_v53  ;;  %v2751_v59 = vmax.f32 %v2702_v57, %v2743_v41  ;;  %v2655_v34 = vadd.f32 %v7416_v19, %v2619_v46 }
 0x35e   : > { %v2839_v56 = vrot.slane %v2751_v59, 1  ;;  %v2687_v32 = vmax.f32 %v2655_v34, 0.0  ;;  %v2847_v25 = vrot.slane %v2751_v59, 2  ;;  %v2855_v23 = vrot.slane %v2751_v59, 3 }
 0x360   : > { %v2703_v5 = vmax.f32 %v2683_v13, %v2687_v32  ;;  %v2934_v42 = vsel %vm2896_vm1, %v2751_v59, %v2839_v56 }
 0x361   : > { %v2938_v16 = vsel %vm2901_vm2, %v2934_v42, %v2847_v25 }
 0x362   : > { %v2759_v58 = vrot.slane %v2703_v5, 1  ;;  %v2942_v17 = vsel %vm2906_vm3, %v2938_v16, %v2855_v23 }
 0x364   : > { %v2767_v21 = vmax.f32 %v2703_v5, %v2759_v58 }
 0x366   : > { %v2867_v48 = vrot.slane %v2767_v21, 4  ;;  %v2875_v0 = vrot.slane %v2767_v21, 5  ;;  %v2883_v63 = vrot.slane %v2767_v21, 6  ;;  %v2891_v38 = vrot.slane %v2767_v21, 7 }
 0x368   : > { %v2946_v29 = vsel %vm2911_vm4, %v2942_v17, %v2867_v48  ;;  %197 = sbr.rel (!%p195_p0) target bundleno = 149 (0x95), region = 129 }
 0x369   : > { %v2950_v62 = vsel %vm2916_vm5, %v2946_v29, %v2875_v0 }
 0x36a   : > { %v2954_v49 = vsel %vm2921_vm6, %v2950_v62, %v2883_v63 }
 0x36b   : > { %v2958_v52 = vsel %vm2926_vm7, %v2954_v49, %v2891_v38 }
 0x36c   : > { %6868 = vst [vmem:[%s8661_s18 + $0x1e9] sm:$0xff] %v2958_v52 }
 0x36d LB: > { %v6886_v28 = vld [vmem:[%s12163_s3 + $0xf8] sm:$0xff]  ;;  %v6885_v50 = vld [vmem:[%s12163_s3 + $0xf0] sm:$0xff]  ;;  %v6884_v2 = vld [vmem:[%s12163_s3 + $0xe8] sm:$0xff]  ;;  %s6870_s1 = smul.u32 96, %s7465_s21  ;;  %s7301_s23 = sshll.u32 %s7465_s21, 5  ;;  %s7465_s21 = sphi %s8864_s21, %s2975_s21  }
 0x36e   : > { %7309 = vmatpush.msra.mxu1 %v6886_v28  ;;  %7310 = vmatpush.msra.mxu2 %v6886_v28  ;;  %v6883_v33 = vld [vmem:[%s12163_s3 + $0xe0] sm:$0xff]  ;;  %v6882_v54 = vld [vmem:[%s12163_s3 + $0xd8] sm:$0xff]  ;;  %v6881_v7 = vld [vmem:[%s12163_s3 + $0xd0] sm:$0xff]  ;;  %s9675_s24 = scalar_lea.vmem [#allocation3], %s7301_s23  ;;  %s2975_s21 = sadd.s32 1, %s7465_s21  }
 0x36f   : > { %7311 = vmatpush.msra.mxu3 %v6886_v28  ;;  %3045 = vmatpush.msra.mxu0 %v6886_v28  ;;  %v6880_v36 = vld [vmem:[%s12163_s3 + $0xc8] sm:$0xff]  ;;  %v6879_v11 = vld [vmem:[%s12163_s3 + $0xc0] sm:$0xff]  ;;  %v6878_v55 = vld [vmem:[%s12163_s3 + $0xb8] sm:$0xff]  ;;  %s8918_s16 = scalar_lea.vmem [#allocation2], %s6870_s1  ;;  %p2972_p1 = scmp.ge.s32.totalorder %s2975_s21, 4  }
 0x370   : > { %7312 = vmatpush.msra.mxu1 %v6885_v50  ;;  %7313 = vmatpush.msra.mxu2 %v6885_v50  ;;  %v6877_v60 = vld [vmem:[%s12163_s3 + $0xb0] sm:$0xff]  ;;  %v6876_v15 = vld [vmem:[%s12163_s3 + $0xa8] sm:$0xff]  ;;  %v6875_v10 = vld [vmem:[%s12163_s3 + $0xa0] sm:$0xff]  ;;  %s9727_s26 = smov (%p2972_p1), 0  }
 0x371   : > { %7314 = vmatpush.msra.mxu3 %v6885_v50  ;;  %3046 = vmatpush.msra.mxu0 %v6885_v50  ;;  %v6874_v9 = vld [vmem:[%s12163_s3 + $0x98] sm:$0xff]  ;;  %v6873_v6 = vld [vmem:[%s12163_s3 + $0x90] sm:$0xff]  ;;  %v6872_v22 = vld [vmem:[%s12163_s3 + $0x88] sm:$0xff] }
 0x372   : > { %7315 = vmatpush.msra.mxu1 %v6884_v2  ;;  %7316 = vmatpush.msra.mxu2 %v6884_v2  ;;  %v6871_v31 = vld [vmem:[%s12163_s3 + $0x80] sm:$0xff]  ;;  %v6902_v1 = vld [vmem:[%s12163_s3 + $0x178] sm:$0xff]  ;;  %v6901_v47 = vld [vmem:[%s12163_s3 + $0x170] sm:$0xff] }
 0x373   : > { %7317 = vmatpush.msra.mxu3 %v6884_v2  ;;  %3047 = vmatpush.msra.mxu0 %v6884_v2  ;;  %v8921_v18 = vld [vmem:[%s8918_s16 + $0x31] sm:$0xff]  ;;  %v8931_v30 = vld [vmem:[%s8918_s16 + $0x1e1] sm:$0xff]  ;;  %v3021_v40 = vld [vmem:[%s8918_s16 + $0x1b9] sm:$0xff] }
 0x374   : > { %7318 = vmatpush.msra.mxu1 %v6883_v33  ;;  %7319 = vmatpush.msra.mxu2 %v6883_v33  ;;  %v3020_v43 = vld [vmem:[%s8918_s16 + $0x1b1] sm:$0xff]  ;;  %v6900_v4 = vld [vmem:[%s12163_s3 + $0x168] sm:$0xff]  ;;  %v6899_v12 = vld [vmem:[%s12163_s3 + $0x160] sm:$0xff] }
 0x375   : > { %7320 = vmatpush.msra.mxu3 %v6883_v33  ;;  %3048 = vmatpush.msra.mxu0 %v6883_v33  ;;  %v3011_v26 = vld [vmem:[%s12163_s3 + $0x78] sm:$0xff]  ;;  %v3010_v3 = vld [vmem:[%s12163_s3 + $0x70] sm:$0xff]  ;;  %v3009_v24 = vld [vmem:[%s12163_s3 + $0x68] sm:$0xff] }
 0x376   : > { %7321 = vmatpush.msra.mxu1 %v6882_v54  ;;  %7322 = vmatpush.msra.mxu2 %v6882_v54  ;;  %v6936_v51 = vld [vmem:[%s12163_s3 + $0x1f8] sm:$0xff]  ;;  %v6935_v39 = vld [vmem:[%s12163_s3 + $0x1f0] sm:$0xff]  ;;  %v3012_v20 = vld [vmem:[%s8918_s16 + $0x1] sm:$0xff] }
 0x377   : > { %7323 = vmatpush.msra.mxu3 %v6882_v54  ;;  %3049 = vmatpush.msra.mxu0 %v6882_v54  ;;  %v6934_v14 = vld [vmem:[%s12163_s3 + $0x1e8] sm:$0xff]  ;;  %v3008_v8 = vld [vmem:[%s12163_s3 + $0x60] sm:$0xff]  ;;  %v6898_v27 = vld [vmem:[%s12163_s3 + $0x158] sm:$0xff] }
 0x378   : > { %7324 = vmatpush.msra.mxu1 %v6881_v7  ;;  %7325 = vmatpush.msra.mxu2 %v6881_v7  ;;  %v8965_v45 = vld [vmem:[%s8918_s16 + $0x39] sm:$0xff]  ;;  %v8977_v37 = vld [vmem:[%s8918_s16 + $0x1e9] sm:$0xff] }
 0x379   : > { %7326 = vmatpush.msra.mxu3 %v6881_v7  ;;  %3050 = vmatpush.msra.mxu0 %v6881_v7  ;;  %v6933_v61 = vld [vmem:[%s12163_s3 + $0x1e0] sm:$0xff]  ;;  %v3007_v57 = vld [vmem:[%s12163_s3 + $0x58] sm:$0xff]  ;;  %v6897_v44 = vld [vmem:[%s12163_s3 + $0x150] sm:$0xff] }
 0x37a   : > { %7327 = vmatpush.msra.mxu1 %v6880_v36  ;;  %7328 = vmatpush.msra.mxu2 %v6880_v36  ;;  %v6932_v19 = vld [vmem:[%s12163_s3 + $0x1d8] sm:$0xff]  ;;  %v3006_v53 = vld [vmem:[%s12163_s3 + $0x50] sm:$0xff]  ;;  %v6896_v41 = vld [vmem:[%s12163_s3 + $0x148] sm:$0xff] }
 0x37b   : > { %7329 = vmatpush.msra.mxu3 %v6880_v36  ;;  %3051 = vmatpush.msra.mxu0 %v6880_v36  ;;  %v6968_v35 = vld [vmem:[%s12163_s3 + $0x278] sm:$0xff]  ;;  %v6931_v46 = vld [vmem:[%s12163_s3 + $0x1d0] sm:$0xff]  ;;  %v3005_v34 = vld [vmem:[%s12163_s3 + $0x48] sm:$0xff] }
 0x37c   : > { %7330 = vmatpush.msra.mxu1 %v6879_v11  ;;  %7331 = vmatpush.msra.mxu2 %v6879_v11  ;;  %v6967_v59 = vld [vmem:[%s12163_s3 + $0x270] sm:$0xff]  ;;  %v6895_v13 = vld [vmem:[%s12163_s3 + $0x140] sm:$0xff]  ;;  %v6930_v56 = vld [vmem:[%s12163_s3 + $0x1c8] sm:$0xff] }
 0x37d   : > { %7332 = vmatpush.msra.mxu3 %v6879_v11  ;;  %3052 = vmatpush.msra.mxu0 %v6879_v11  ;;  %v6966_v32 = vld [vmem:[%s12163_s3 + $0x268] sm:$0xff]  ;;  %v3004_v25 = vld [vmem:[%s12163_s3 + $0x40] sm:$0xff]  ;;  %v6894_v58 = vld [vmem:[%s12163_s3 + $0x138] sm:$0xff] }
 0x37e   : > { %7333 = vmatpush.msra.mxu1 %v6878_v55  ;;  %7334 = vmatpush.msra.mxu2 %v6878_v55  ;;  %v9018_v5 = vld [vmem:[%s8918_s16 + $0x1c9] sm:$0xff]  ;;  %v6929_v16 = vld [vmem:[%s12163_s3 + $0x1c0] sm:$0xff]  ;;  %v3003_v23 = vld [vmem:[%s12163_s3 + $0x38] sm:$0xff] }
 0x37f   : > { %7335 = vmatpush.msra.mxu3 %v6878_v55  ;;  %3053 = vmatpush.msra.mxu0 %v6878_v55  ;;  %v9021_v42 = vld [vmem:[%s8918_s16 + $0x49] sm:$0xff]  ;;  %v6965_v21 = vld [vmem:[%s12163_s3 + $0x260] sm:$0xff]  ;;  %v6928_v63 = vld [vmem:[%s12163_s3 + $0x1b8] sm:$0xff] }
 0x380   : > { %7336 = vmatpush.msra.mxu1 %v6877_v60  ;;  %7337 = vmatpush.msra.mxu2 %v6877_v60  ;;  %v3013_v48 = vld [vmem:[%s8918_s16 + $0x9] sm:$0xff]  ;;  %v9039_v0 = vld [vmem:[%s8918_s16 + $0x1f9] sm:$0xff]  ;;  %v9079_v7 = vld [vmem:[%s8918_s16 + $0x1d1] sm:$0xff] }
 0x381   : > { %7338 = vmatpush.msra.mxu3 %v6877_v60  ;;  %3054 = vmatpush.msra.mxu0 %v6877_v60  ;;  %v6893_v17 = vld [vmem:[%s12163_s3 + $0x130] sm:$0xff]  ;;  %v6964_v29 = vld [vmem:[%s12163_s3 + $0x258] sm:$0xff]  ;;  %v6892_v62 = vld [vmem:[%s12163_s3 + $0x128] sm:$0xff] }
 0x382   : > { %7339 = vmatpush.msra.mxu1 %v6876_v15  ;;  %7340 = vmatpush.msra.mxu2 %v6876_v15  ;;  %v3002_v38 = vld [vmem:[%s12163_s3 + $0x30] sm:$0xff]  ;;  %v3001_v28 = vld [vmem:[%s12163_s3 + $0x28] sm:$0xff]  ;;  %v6891_v50 = vld [vmem:[%s12163_s3 + $0x120] sm:$0xff] }
 0x383   : > { %7341 = vmatpush.msra.mxu3 %v6876_v15  ;;  %3055 = vmatpush.msra.mxu0 %v6876_v15  ;;  %v6927_v49 = vld [vmem:[%s12163_s3 + $0x1b0] sm:$0xff]  ;;  %v6926_v2 = vld [vmem:[%s12163_s3 + $0x1a8] sm:$0xff]  ;;  %v3000_v54 = vld [vmem:[%s12163_s3 + $0x20] sm:$0xff] }
 0x384   : > { %7342 = vmatpush.msra.mxu1 %v6875_v10  ;;  %7343 = vmatpush.msra.mxu2 %v6875_v10  ;;  %v6963_v52 = vld [vmem:[%s12163_s3 + $0x250] sm:$0xff]  ;;  %v6962_v33 = vld [vmem:[%s12163_s3 + $0x248] sm:$0xff]  ;;  %v6890_v11 = vld [vmem:[%s12163_s3 + $0x118] sm:$0xff] }
 0x385   : > { %7344 = vmatpush.msra.mxu3 %v6875_v10  ;;  %3056 = vmatpush.msra.mxu0 %v6875_v10  ;;  %v9082_v36 = vld [vmem:[%s8918_s16 + $0x51] sm:$0xff]  ;;  %v6925_v55 = vld [vmem:[%s12163_s3 + $0x1a0] sm:$0xff] }
 0x386   : > { %7345 = vmatpush.msra.mxu1 %v6874_v9  ;;  %7346 = vmatpush.msra.mxu2 %v6874_v9  ;;  %v6961_v60 = vld [vmem:[%s12163_s3 + $0x240] sm:$0xff]  ;;  %v2999_v15 = vld [vmem:[%s12163_s3 + $0x18] sm:$0xff] }
 0x387   : > { %7347 = vmatpush.msra.mxu3 %v6874_v9  ;;  %3057 = vmatpush.msra.mxu0 %v6874_v9  ;;  %v9098_v10 = vld [vmem:[%s8918_s16 + $0x19] sm:$0xff]  ;;  %v9102_v9 = vld [vmem:[%s8918_s16 + $0x201] sm:$0xff] }
 0x388   : > { %7348 = vmatpush.msra.mxu1 %v6873_v6  ;;  %7349 = vmatpush.msra.mxu2 %v6873_v6 }
 0x389   : > { %7350 = vmatpush.msra.mxu3 %v6873_v6  ;;  %3058 = vmatpush.msra.mxu0 %v6873_v6  ;;  %v6889_v6 = vld [vmem:[%s12163_s3 + $0x110] sm:$0xff] }
 0x38a   : > { %7351 = vmatpush.msra.mxu1 %v6872_v22  ;;  %7352 = vmatpush.msra.mxu2 %v6872_v22 }
 0x38b   : > { %7353 = vmatpush.msra.mxu3 %v6872_v22  ;;  %3059 = vmatpush.msra.mxu0 %v6872_v22  ;;  %v6924_v22 = vld [vmem:[%s12163_s3 + $0x198] sm:$0xff] }
 0x38c   : > { %7354 = vmatpush.msra.mxu1 %v6871_v31  ;;  %7355 = vmatpush.msra.mxu2 %v6871_v31 }
 0x38d   : > { %3073 = vmatmul.f32.vlgmr.msra.gmra.mxu1 %v8921_v18  ;;  %3085 = vmatmul.f32.vlgmr.msra.gmra.mxu2 %v3020_v43  ;;  %v2998_v43 = vld [vmem:[%s12163_s3 + $0x10] sm:$0xff] }
 0x38e   : > { %3208 = vmatpush.msrb.mxu2 %v6902_v1  ;;  %7356 = vmatpush.msra.mxu3 %v6871_v31  ;;  %v6888_v1 = vld [vmem:[%s12163_s3 + $0x108] sm:$0xff] }
 0x38f   : > { %3110 = vmatpush.msrb.mxu1 %v3011_v26  ;;  %3097 = vmatmul.f32.vlgmr.msra.gmra.mxu3 %v8931_v30  ;;  %v6923_v26 = vld [vmem:[%s12163_s3 + $0x190] sm:$0xff] }
 0x390   : > { %3209 = vmatpush.msrb.mxu2 %v6901_v47  ;;  %3325 = vmatpush.msrb.mxu3 %v6936_v51  ;;  %v6959_v47 = vld [vmem:[%s12163_s3 + $0x230] sm:$0xff]  ;;  %v2997_v51 = vld [vmem:[%s12163_s3 + $0x8] sm:$0xff] }
 0x391   : > { %3111 = vmatpush.msrb.mxu1 %v3010_v3  ;;  %3060 = vmatpush.msra.mxu0 %v6871_v31  ;;  %v6960_v31 = vld [vmem:[%s12163_s3 + $0x238] sm:$0xff]  ;;  %v6887_v3 = vld [vmem:[%s12163_s3 + $0x100] sm:$0xff] }
 0x392   : > { %3210 = vmatpush.msrb.mxu2 %v6900_v4  ;;  %3326 = vmatpush.msrb.mxu3 %v6935_v39  ;;  %v6922_v4 = vld [vmem:[%s12163_s3 + $0x188] sm:$0xff] }
 0x393   : > { %3112 = vmatpush.msrb.mxu1 %v3009_v24  ;;  %3061 = vmatmul.f32.vlgmr.msra.gmra.mxu0 %v3012_v20  ;;  %v6958_v39 = vld [vmem:[%s12163_s3 + $0x228] sm:$0xff]  ;;  %v2996_v24 = vld [vmem:[%s12163_s3] sm:$0xff] }
 0x394   : > { %3211 = vmatpush.msrb.mxu2 %v6899_v12  ;;  %3327 = vmatpush.msrb.mxu3 %v6934_v14  ;;  %v3175_v20 = vld [vmem:[%s8918_s16 + $0x2] sm:$0xff] }
 0x395   : > { %3113 = vmatpush.msrb.mxu1 %v3008_v8  ;;  %3088 = vmatmul.f32.gmra.mxu2 %v3021_v40  ;;  %v2980_v12 = vld [vmem:[%s8918_s16] sm:$0xff]  ;;  %v7034_v40 = vld [vmem:[%s12163_s3 + $0x378] sm:$0xff] }
 0x396   : > { %3076 = vmatmul.f32.gmra.mxu1 %v8965_v45  ;;  %3212 = vmatpush.msrb.mxu2 %v6898_v27  ;;  %v6921_v14 = vld [vmem:[%s12163_s3 + $0x180] sm:$0xff] }
 0x397   : > { %3328 = vmatpush.msrb.mxu3 %v6933_v61  ;;  %3114 = vmatpush.msrb.mxu1 %v3007_v57  ;;  %v6957_v8 = vld [vmem:[%s12163_s3 + $0x220] sm:$0xff]  ;;  %v6905_v61 = vld [vmem:[%s8918_s16 + $0x18] sm:$0xff] }
 0x398   : > { %3100 = vmatmul.f32.gmra.mxu3 %v8977_v37  ;;  %3213 = vmatpush.msrb.mxu2 %v6897_v44  ;;  %v9154_v27 = vld [vmem:[%s8918_s16 + $0x21] sm:$0xff]  ;;  %v6956_v57 = vld [vmem:[%s12163_s3 + $0x218] sm:$0xff] }
 0x399   : > { %3329 = vmatpush.msrb.mxu3 %v6932_v19  ;;  %3439 = vmatpush.msrb.mxu0 %v6968_v35  ;;  %v7066_v44 = vld [vmem:[%s12163_s3 + $0x3f8] sm:$0xff]  ;;  %v7033_v35 = vld [vmem:[%s12163_s3 + $0x370] sm:$0xff] }
 0x39a   : > { %3115 = vmatpush.msrb.mxu1 %v3006_v53  ;;  %3214 = vmatpush.msrb.mxu2 %v6896_v41  ;;  %v7000_v19 = vld [vmem:[%s12163_s3 + $0x2f8] sm:$0xff]  ;;  %v6955_v53 = vld [vmem:[%s12163_s3 + $0x210] sm:$0xff] }
 0x39b   : > { %3330 = vmatpush.msrb.mxu3 %v6931_v46  ;;  %3440 = vmatpush.msrb.mxu0 %v6967_v59  ;;  %v7065_v41 = vld [vmem:[%s12163_s3 + $0x3f0] sm:$0xff]  ;;  %v7032_v59 = vld [vmem:[%s12163_s3 + $0x368] sm:$0xff] }
 0x39c   : > { %3116 = vmatpush.msrb.mxu1 %v3005_v34  ;;  %3215 = vmatpush.msrb.mxu2 %v6895_v13  ;;  %v6999_v46 = vld [vmem:[%s12163_s3 + $0x2f0] sm:$0xff]  ;;  %v6954_v34 = vld [vmem:[%s12163_s3 + $0x208] sm:$0xff] }
 0x39d   : > { %3331 = vmatpush.msrb.mxu3 %v6930_v56  ;;  %3441 = vmatpush.msrb.mxu0 %v6966_v32  ;;  %v3176_v13 = vld [vmem:[%s8918_s16 + $0xa] sm:$0xff] }
 0x39e   : > { %3117 = vmatpush.msrb.mxu1 %v3004_v25  ;;  %3091 = vmatmul.f32.gmra.mxu2 %v9018_v5  ;;  %v2981_v56 = vld [vmem:[%s8918_s16 + $0x8] sm:$0xff]  ;;  %v6953_v25 = vld [vmem:[%s12163_s3 + $0x200] sm:$0xff] }
 0x39f   : > { %3079 = vmatmul.f32.gmra.mxu1 %v9021_v42  ;;  %3216 = vmatpush.msrb.mxu2 %v6894_v58  ;;  %v7064_v32 = vld [vmem:[%s12163_s3 + $0x3e8] sm:$0xff] }
 0x3a0   : > { %3332 = vmatpush.msrb.mxu3 %v6929_v16  ;;  %3442 = vmatpush.msrb.mxu0 %v6965_v21  ;;  %v6998_v58 = vld [vmem:[%s12163_s3 + $0x2e8] sm:$0xff]  ;;  %v6906_v16 = vld [vmem:[%s8918_s16 + $0x20] sm:$0xff]  ;;  %v7098_v21 = vld [vmem:[%s12163_s3 + $0x478] sm:$0xff] }
 0x3a1   : > { %3118 = vmatpush.msrb.mxu1 %v3003_v23  ;;  %3064 = vmatmul.f32.gmra.mxu0 %v3013_v48  ;;  %v7031_v23 = vld [vmem:[%s12163_s3 + $0x360] sm:$0xff] }
 0x3a2   : > { %3103 = vmatmul.f32.gmra.mxu3 %v9039_v0  ;;  %3217 = vmatpush.msrb.mxu2 %v6893_v17  ;;  %v7063_v48 = vld [vmem:[%s12163_s3 + $0x3e0] sm:$0xff] }
 0x3a3   : > { %3333 = vmatpush.msrb.mxu3 %v6928_v63  ;;  %3443 = vmatpush.msrb.mxu0 %v6964_v29  ;;  %v6997_v17 = vld [vmem:[%s12163_s3 + $0x2e0] sm:$0xff]  ;;  %v7097_v63 = vld [vmem:[%s12163_s3 + $0x470] sm:$0xff]  ;;  %v7030_v29 = vld [vmem:[%s12163_s3 + $0x358] sm:$0xff] }
 0x3a4   : > { %3119 = vmatpush.msrb.mxu1 %v3002_v38  ;;  %3218 = vmatpush.msrb.mxu2 %v6892_v62  ;;  %v7062_v38 = vld [vmem:[%s12163_s3 + $0x3d8] sm:$0xff] }
 0x3a5   : > { %3334 = vmatpush.msrb.mxu3 %v6927_v49  ;;  %3444 = vmatpush.msrb.mxu0 %v6963_v52  ;;  %v6996_v62 = vld [vmem:[%s12163_s3 + $0x2d8] sm:$0xff]  ;;  %v7096_v52 = vld [vmem:[%s12163_s3 + $0x468] sm:$0xff] }
 0x3a6   : > { %3120 = vmatpush.msrb.mxu1 %v3001_v28  ;;  %3219 = vmatpush.msrb.mxu2 %v6891_v50  ;;  %v9223_v49 = vld [vmem:[%s8918_s16 + $0x1a] sm:$0xff]  ;;  %v7029_v28 = vld [vmem:[%s12163_s3 + $0x350] sm:$0xff] }
 0x3a7   : > { %3335 = vmatpush.msrb.mxu3 %v6926_v2  ;;  %3445 = vmatpush.msrb.mxu0 %v6962_v33  ;;  %v7095_v50 = vld [vmem:[%s12163_s3 + $0x460] sm:$0xff]  ;;  %v7061_v2 = vld [vmem:[%s12163_s3 + $0x3d0] sm:$0xff] }
 0x3a8   : > { %3121 = vmatpush.msrb.mxu1 %v3000_v54  ;;  %3094 = vmatmul.f32.gmra.mxu2 %v9079_v7  ;;  %v9239_v33 = vld [vmem:[%s8918_s16 + $0x30] sm:$0xff]  ;;  %v7094_v54 = vld [vmem:[%s12163_s3 + $0x458] sm:$0xff] }
 0x3a9   : > { %3082 = vmatmul.f32.gmra.mxu1 %v9082_v36  ;;  %3220 = vmatpush.msrb.mxu2 %v6890_v11  ;;  %v6995_v11 = vld [vmem:[%s12163_s3 + $0x2d0] sm:$0xff] }
 0x3aa   : > { %3336 = vmatpush.msrb.mxu3 %v6925_v55  ;;  %3446 = vmatpush.msrb.mxu0 %v6961_v60  ;;  %v7028_v55 = vld [vmem:[%s12163_s3 + $0x348] sm:$0xff] }
 0x3ab   : > { %3122 = vmatpush.msrb.mxu1 %v2999_v15  ;;  %3067 = vmatmul.f32.gmra.mxu0 %v9098_v10  ;;  %v7060_v60 = vld [vmem:[%s12163_s3 + $0x3c8] sm:$0xff]  ;;  %v7093_v15 = vld [vmem:[%s12163_s3 + $0x450] sm:$0xff] }
 0x3ac   : > { %3106 = vmatmul.f32.gmra.mxu3 %v9102_v9  ;;  %3221 = vmatpush.msrb.mxu2 %v6889_v6  ;;  %v9262_v6 = vld [vmem:[%s8918_s16 + $0x22] sm:$0xff] }
 0x3ad   : > { %3337 = vmatpush.msrb.mxu3 %v6924_v22  ;;  %3447 = vmatpush.msrb.mxu0 %v6960_v31  ;;  %v9266_v22 = vld [vmem:[%s8918_s16 + $0x38] sm:$0xff]  ;;  %v7027_v31 = vld [vmem:[%s12163_s3 + $0x340] sm:$0xff] }
 0x3ae   : > { %3123 = vmatpush.msrb.mxu1 %v2998_v43  ;;  %3222 = vmatpush.msrb.mxu2 %v6888_v1  ;;  %v7059_v43 = vld [vmem:[%s12163_s3 + $0x3c0] sm:$0xff]  ;;  %v7092_v1 = vld [vmem:[%s12163_s3 + $0x448] sm:$0xff] }
 0x3af   : > { %3338 = vmatpush.msrb.mxu3 %v6923_v26  ;;  %3448 = vmatpush.msrb.mxu0 %v6959_v47  ;;  %v6993_v26 = vld [vmem:[%s12163_s3 + $0x2c0] sm:$0xff]  ;;  %v9283_v47 = vld [vmem:[%s8918_s16 + $0x32] sm:$0xff] }
 0x3b0   : > { %3124 = vmatpush.msrb.mxu1 %v2997_v51  ;;  %3223 = vmatpush.msrb.mxu2 %v6887_v3  ;;  %v9287_v51 = vld [vmem:[%s8918_s16 + $0x48] sm:$0xff]  ;;  %v7026_v3 = vld [vmem:[%s12163_s3 + $0x338] sm:$0xff] }
 0x3b1   : > { %3339 = vmatpush.msrb.mxu3 %v6922_v4  ;;  %3449 = vmatpush.msrb.mxu0 %v6958_v39  ;;  %v7058_v4 = vld [vmem:[%s12163_s3 + $0x3b8] sm:$0xff]  ;;  %v7091_v39 = vld [vmem:[%s12163_s3 + $0x440] sm:$0xff] }
 0x3b2   : > { %3125 = vmatpush.msrb.mxu1 %v2996_v24  ;;  %3224 = vmatmul.f32.vlgmr.msrb.gmra.mxu2 %v3175_v20  ;;  %v6992_v24 = vld [vmem:[%s12163_s3 + $0x2b8] sm:$0xff] }
 0x3b3   : > { %3126 = vmatmul.f32.vlgmr.msrb.gmra.mxu1 %v2980_v12  ;;  %3340 = vmatpush.msrb.mxu3 %v6921_v14  ;;  %v9305_v20 = vld [vmem:[%s8918_s16 + $0x3a] sm:$0xff]  ;;  %v9309_v12 = vld [vmem:[%s8918_s16 + $0x50] sm:$0xff] }
 0x3b4   : > { %3450 = vmatpush.msrb.mxu0 %v6957_v8  ;;  %3670 = vmatpush.msra.mxu2 %v7034_v40  ;;  %v7025_v14 = vld [vmem:[%s12163_s3 + $0x330] sm:$0xff]  ;;  %v7090_v40 = vld [vmem:[%s12163_s3 + $0x438] sm:$0xff] }
 0x3b5   : > { %3070 = vmatmul.f32.gmra.mxu0 %v9154_v27  ;;  %3341 = vmatmul.f32.vlgmr.msrb.gmra.mxu3 %v6905_v61  ;;  %v7057_v8 = vld [vmem:[%s12163_s3 + $0x3b0] sm:$0xff] }
 0x3b6   : > { %3451 = vmatpush.msrb.mxu0 %v6956_v57  ;;  %3784 = vmatpush.msra.mxu3 %v7066_v44  ;;  %v9331_v57 = vld [vmem:[%s8918_s16 + $0x60] sm:$0xff]  ;;  %v7024_v44 = vld [vmem:[%s12163_s3 + $0x328] sm:$0xff] }
 0x3b7   : > { %3553 = vmatpush.msra.mxu1 %v7000_v19  ;;  %3671 = vmatpush.msra.mxu2 %v7033_v35  ;;  %v7056_v19 = vld [vmem:[%s12163_s3 + $0x3a8] sm:$0xff]  ;;  %v7089_v35 = vld [vmem:[%s12163_s3 + $0x430] sm:$0xff] }
 0x3b8   : > { %3452 = vmatpush.msrb.mxu0 %v6955_v53  ;;  %3785 = vmatpush.msra.mxu3 %v7065_v41  ;;  %v6990_v53 = vld [vmem:[%s12163_s3 + $0x2a8] sm:$0xff]  ;;  %v9349_v41 = vld [vmem:[%s8918_s16 + $0x52] sm:$0xff] }
 0x3b9   : > { %3554 = vmatpush.msra.mxu1 %v6999_v46  ;;  %3672 = vmatpush.msra.mxu2 %v7032_v59  ;;  %v9353_v46 = vld [vmem:[%s8918_s16 + $0x68] sm:$0xff] }
 0x3ba   : > { %3453 = vmatpush.msrb.mxu0 %v6954_v34  ;;  %3227 = vmatmul.f32.gmra.mxu2 %v3176_v13  ;;  %v9356_v59 = vld [vmem:[%s8918_s16 + $0x61] sm:$0xff] }
 0x3bb   : > { %3129 = vmatmul.f32.gmra.mxu1 %v2981_v56  ;;  %3786 = vmatpush.msra.mxu3 %v7064_v32  ;;  %v7023_v34 = vld [vmem:[%s12163_s3 + $0x320] sm:$0xff]  ;;  %v7088_v56 = vld [vmem:[%s12163_s3 + $0x428] sm:$0xff] }
 0x3bc   : > { %3454 = vmatpush.msrb.mxu0 %v6953_v25  ;;  %3555 = vmatpush.msra.mxu1 %v6998_v58  ;;  %v7055_v13 = vld [vmem:[%s12163_s3 + $0x3a0] sm:$0xff]  ;;  %v3183_v25 = vld [vmem:[%s8918_s16 + $0x1b2] sm:$0xff] }
 0x3bd   : > { %3344 = vmatmul.f32.gmra.mxu3 %v6906_v16  ;;  %3455 = vmatmul.f32.vlgmr.msrb.gmra.mxu0 %v9098_v10  ;;  %v6994_v10 = vld [vmem:[%s12163_s3 + $0x2c8] sm:$0xff]  ;;  %v6989_v32 = vld [vmem:[%s12163_s3 + $0x2a0] sm:$0xff]  ;;  %v2988_v58 = vld [vmem:[%s8918_s16 + $0x1b0] sm:$0xff] }
 0x3be   : > { %3898 = vmatpush.msra.mxu0 %v7098_v21  ;;  %3673 = vmatpush.msra.mxu2 %v7031_v23  ;;  %v9377_v21 = vld [vmem:[%s8918_s16 + $0x69] sm:$0xff]  ;;  %v7022_v23 = vld [vmem:[%s12163_s3 + $0x318] sm:$0xff] }
 0x3bf   : > { %3787 = vmatpush.msra.mxu3 %v7063_v48  ;;  %3556 = vmatpush.msra.mxu1 %v6997_v17  ;;  %v7054_v48 = vld [vmem:[%s12163_s3 + $0x398] sm:$0xff]  ;;  %v7087_v17 = vld [vmem:[%s12163_s3 + $0x420] sm:$0xff] }
 0x3c0   : > { %3899 = vmatpush.msra.mxu0 %v7097_v63  ;;  %3674 = vmatpush.msra.mxu2 %v7030_v29  ;;  %v6988_v63 = vld [vmem:[%s12163_s3 + $0x298] sm:$0xff] }
 0x3c1   : > { %3788 = vmatpush.msra.mxu3 %v7062_v38  ;;  %3557 = vmatpush.msra.mxu1 %v6996_v62  ;;  %v3184_v29 = vld [vmem:[%s8918_s16 + $0x1ba] sm:$0xff]  ;;  %v6914_v62 = vld [vmem:[%s8918_s16 + $0x1d0] sm:$0xff] }
 0x3c2   : > { %3230 = vmatmul.f32.gmra.mxu2 %v9223_v49  ;;  %3900 = vmatpush.msra.mxu0 %v7096_v52  ;;  %v2989_v38 = vld [vmem:[%s8918_s16 + $0x1b8] sm:$0xff]  ;;  %v7021_v52 = vld [vmem:[%s12163_s3 + $0x310] sm:$0xff] }
 0x3c3   : > { %3132 = vmatmul.f32.gmra.mxu1 %v6905_v61  ;;  %3675 = vmatpush.msra.mxu2 %v7029_v28  ;;  %v9327_v61 = vld [vmem:[%s8918_s16 + $0x4a] sm:$0xff] }
 0x3c4   : > { %3901 = vmatpush.msra.mxu0 %v7095_v50  ;;  %3789 = vmatpush.msra.mxu3 %v7061_v2  ;;  %v7053_v28 = vld [vmem:[%s12163_s3 + $0x390] sm:$0xff]  ;;  %v7086_v50 = vld [vmem:[%s12163_s3 + $0x418] sm:$0xff] }
 0x3c5   : > { %3347 = vmatmul.f32.gmra.mxu3 %v9239_v33  ;;  %3458 = vmatmul.f32.gmra.mxu0 %v9154_v27  ;;  %v6991_v27 = vld [vmem:[%s12163_s3 + $0x2b0] sm:$0xff] }
 0x3c6   : > { %3902 = vmatpush.msra.mxu0 %v7094_v54  ;;  %3558 = vmatpush.msra.mxu1 %v6995_v11  ;;  %v6987_v2 = vld [vmem:[%s12163_s3 + $0x290] sm:$0xff]  ;;  %v7020_v11 = vld [vmem:[%s12163_s3 + $0x308] sm:$0xff] }
 0x3c7   : > { %3676 = vmatpush.msra.mxu2 %v7028_v55  ;;  %3790 = vmatpush.msra.mxu3 %v7060_v60  ;;  %v9409_v54 = vld [vmem:[%s8918_s16 + $0x1ca] sm:$0xff] }
 0x3c8   : > { %3903 = vmatpush.msra.mxu0 %v7093_v15  ;;  %3559 = vmatpush.msra.mxu1 %v6994_v10  ;;  %v7052_v55 = vld [vmem:[%s12163_s3 + $0x388] sm:$0xff]  ;;  %v7085_v60 = vld [vmem:[%s12163_s3 + $0x410] sm:$0xff] }
 0x3c9   : > { %3677 = vmatpush.msra.mxu2 %v7027_v31  ;;  %3791 = vmatpush.msra.mxu3 %v7059_v43  ;;  %v6986_v15 = vld [vmem:[%s12163_s3 + $0x288] sm:$0xff]  ;;  %v9430_v10 = vld [vmem:[%s8918_s16 + $0x1d2] sm:$0xff]  ;;  %v7019_v43 = vld [vmem:[%s12163_s3 + $0x300] sm:$0xff] }
 0x3ca   : > { %3233 = vmatmul.f32.gmra.mxu2 %v9262_v6  ;;  %3904 = vmatpush.msra.mxu0 %v7092_v1  ;;  %v7051_v1 = vld [vmem:[%s12163_s3 + $0x380] sm:$0xff] }
 0x3cb   : > { %3135 = vmatmul.f32.gmra.mxu1 %v6906_v16  ;;  %3678 = vmatpush.msra.mxu2 %v7026_v3  ;;  %v6913_v16 = vld [vmem:[%s8918_s16 + $0x1c8] sm:$0xff]  ;;  %v6985_v3 = vld [vmem:[%s12163_s3 + $0x280] sm:$0xff] }
 0x3cc   : > { %3560 = vmatpush.msra.mxu1 %v6993_v26  ;;  %3792 = vmatpush.msra.mxu3 %v7058_v4  ;;  %v7084_v26 = vld [vmem:[%s12163_s3 + $0x408] sm:$0xff] }
 0x3cd   : > { %3350 = vmatmul.f32.gmra.mxu3 %v9266_v22  ;;  %3461 = vmatmul.f32.gmra.mxu0 %v8921_v18  ;;  %v9453_v4 = vld [vmem:[%s8918_s16 + $0x1e2] sm:$0xff] }
 0x3ce   : > { %3905 = vmatpush.msra.mxu0 %v7091_v39  ;;  %3561 = vmatpush.msra.mxu1 %v6992_v24  ;;  %v9459_v39 = vld [vmem:[%s8918_s16 + $0x1f8] sm:$0xff] }
 0x3cf   : > { %3679 = vmatpush.msra.mxu2 %v7025_v14  ;;  %3793 = vmatpush.msra.mxu3 %v7057_v8 }
 0x3d0   : > { %3906 = vmatpush.msra.mxu0 %v7090_v40  ;;  %3562 = vmatpush.msra.mxu1 %v6991_v27  ;;  %v7083_v40 = vld [vmem:[%s12163_s3 + $0x400] sm:$0xff]  ;;  %v9472_v27 = vld [vmem:[%s8918_s16 + $0x1ea] sm:$0xff] }
 0x3d1   : > { %3680 = vmatpush.msra.mxu2 %v7024_v44  ;;  %3794 = vmatpush.msra.mxu3 %v7056_v19  ;;  %v9478_v19 = vld [vmem:[%s8918_s16 + $0x200] sm:$0xff] }
 0x3d2   : > { %3236 = vmatmul.f32.gmra.mxu2 %v9283_v47  ;;  %3907 = vmatpush.msra.mxu0 %v7089_v35 }
 0x3d3   : > { %3138 = vmatmul.f32.gmra.mxu1 %v9239_v33  ;;  %3681 = vmatpush.msra.mxu2 %v7023_v34  ;;  %v9488_v34 = vld [vmem:[%s8918_s16 + $0x1fa] sm:$0xff] }
 0x3d4   : > { %3563 = vmatpush.msra.mxu1 %v6990_v53  ;;  %3795 = vmatpush.msra.mxu3 %v7055_v13 }
 0x3d5   : > { %3353 = vmatmul.f32.gmra.mxu3 %v9287_v51  ;;  %3464 = vmatmul.f32.gmra.mxu0 %v8965_v45 }
 0x3d6   : > { %3908 = vmatpush.msra.mxu0 %v7088_v56  ;;  %3564 = vmatpush.msra.mxu1 %v6989_v32  ;;  %v9494_v56 = vld [vmem:[%s8918_s16 + $0x210] sm:$0xff] }
 0x3d7   : > { %3682 = vmatpush.msra.mxu2 %v7022_v23  ;;  %3796 = vmatpush.msra.mxu3 %v7054_v48  ;;  %v9511_v23 = vld [vmem:[%s8918_s16 + $0x211] sm:$0xff] }
 0x3d8   : > { %3909 = vmatpush.msra.mxu0 %v7087_v17  ;;  %3565 = vmatpush.msra.mxu1 %v6988_v63 }
 0x3d9   : > { %3683 = vmatpush.msra.mxu2 %v7021_v52  ;;  %3797 = vmatpush.msra.mxu3 %v7053_v28 }
 0x3da   : > { %3239 = vmatmul.f32.gmra.mxu2 %v9305_v20  ;;  %3910 = vmatpush.msra.mxu0 %v7086_v50 }
 0x3db   : > { %3141 = vmatmul.f32.gmra.mxu1 %v9266_v22  ;;  %3684 = vmatpush.msra.mxu2 %v7020_v11 }
 0x3dc   : > { %3566 = vmatpush.msra.mxu1 %v6987_v2  ;;  %3798 = vmatpush.msra.mxu3 %v7052_v55 }
 0x3dd   : > { %3356 = vmatmul.f32.gmra.mxu3 %v9309_v12  ;;  %3467 = vmatmul.f32.gmra.mxu0 %v9021_v42 }
 0x3de   : > { %3911 = vmatpush.msra.mxu0 %v7085_v60  ;;  %3567 = vmatpush.msra.mxu1 %v6986_v15 }
 0x3df   : > { %3685 = vmatpush.msra.mxu2 %v7019_v43  ;;  %3799 = vmatpush.msra.mxu3 %v7051_v1 }
 0x3e0   : > { %3912 = vmatpush.msra.mxu0 %v7084_v26  ;;  %3568 = vmatpush.msra.mxu1 %v6985_v3 }
 0x3e2   : > { %3242 = vmatmul.f32.gmra.mxu2 %v9327_v61  ;;  %3913 = vmatpush.msra.mxu0 %v7083_v40 }
 0x3e3   : > { %3144 = vmatmul.f32.gmra.mxu1 %v9287_v51 }
 0x3e5   : > { %3359 = vmatmul.f32.gmra.mxu3 %v9331_v57  ;;  %3470 = vmatmul.f32.gmra.mxu0 %v9082_v36 }
 0x3ea   : > { %3245 = vmatmul.f32.gmra.mxu2 %v9349_v41 }
 0x3eb   : > { %3147 = vmatmul.f32.gmra.mxu1 %v9309_v12 }
 0x3ed   : > { %3362 = vmatmul.f32.gmra.mxu3 %v9353_v46  ;;  %3473 = vmatmul.f32.gmra.mxu0 %v9356_v59 }
 0x3f2   : > { %3248 = vmatmul.f32.gmra.mxu2 %v3183_v25 }
 0x3f3   : > { %3150 = vmatmul.f32.gmra.mxu1 %v2988_v58 }
 0x3f5   : > { %3365 = vmatmul.f32.gmra.mxu3 %v6913_v16  ;;  %3476 = vmatmul.f32.gmra.mxu0 %v9377_v21 }
 0x3fa   : > { %3251 = vmatmul.f32.gmra.mxu2 %v3184_v29 }
 0x3fb   : > { %3153 = vmatmul.f32.gmra.mxu1 %v2989_v38  ;;  %v9522_v38 = vld [vmem:[%s8918_s16 + $0x219] sm:$0xff] }
 0x3fd   : > { %3368 = vmatmul.f32.gmra.mxu3 %v6914_v62  ;;  %3479 = vmatmul.f32.gmra.mxu0 %v9018_v5  ;;  %v9413_v5 = vld [vmem:[%s8918_s16 + $0x1e0] sm:$0xff] }
 0x402   : > { %3254 = vmatmul.f32.gmra.mxu2 %v9409_v54 }
 0x403   : > { %3156 = vmatmul.f32.gmra.mxu1 %v6913_v16  ;;  %v9508_v16 = vld [vmem:[%s8918_s16 + $0x218] sm:$0xff] }
 0x405   : > { %3371 = vmatmul.f32.gmra.mxu3 %v9413_v5  ;;  %3482 = vmatmul.f32.gmra.mxu0 %v9079_v7  ;;  %v9434_v7 = vld [vmem:[%s8918_s16 + $0x1e8] sm:$0xff] }
 0x40a   : > { %3257 = vmatmul.f32.gmra.mxu2 %v9430_v10  ;;  %v9436_v31 = vpop.f32.mrf.mxu1 }
 0x40b   : > { %3159 = vmatmul.f32.gmra.mxu1 %v6914_v62 }
 0x40d   : > { %3374 = vmatmul.f32.gmra.mxu3 %v9434_v7  ;;  %3485 = vmatmul.f32.gmra.mxu0 %v8931_v30 }
 0x410   : > { %v9455_v30 = vpop.f32.mrf.mxu2  ;;  %v3062_v8 = vpop.f32.mrf.mxu0 }
 0x412   : > { %3260 = vmatmul.f32.gmra.mxu2 %v9453_v4  ;;  %v9461_v24 = vpop.f32.mrf.mxu3 }
 0x413   : > { %3162 = vmatmul.f32.gmra.mxu1 %v9413_v5  ;;  %v9464_v14 = vpop.f32.mrf.mxu1 }
 0x415   : > { %3377 = vmatmul.f32.gmra.mxu3 %v9459_v39  ;;  %3488 = vmatmul.f32.gmra.mxu0 %v8977_v37 }
 0x418   : > { %v9474_v44 = vpop.f32.mrf.mxu2 }
 0x41a   : > { %3263 = vmatmul.f32.gmra.mxu2 %v9472_v27 }
 0x41b   : > { %3165 = vmatmul.f32.gmra.mxu1 %v9434_v7  ;;  %v9481_v35 = vpop.f32.mrf.mxu3 }
 0x41c   : > { %v9483_v37 = vpop.f32.mrf.mxu1 }
 0x41d   : > { %3380 = vmatmul.f32.gmra.mxu3 %v9478_v19  ;;  %3491 = vmatmul.f32.gmra.mxu0 %v9039_v0  ;;  %v9504_v0 = vld [vmem:[%s8918_s16 + $0x202] sm:$0xff] }
 0x41e   : > { %v3065_v53 = vpop.f32.mrf.mxu0 }
 0x421   : > { %v9490_v13 = vpop.f32.mrf.mxu2 }
 0x422   : > { %3266 = vmatmul.f32.gmra.mxu2 %v9488_v34 }
 0x423   : > { %3168 = vmatmul.f32.gmra.mxu1 %v9459_v39 }
 0x425   : > { %3383 = vmatmul.f32.gmra.mxu3 %v9494_v56  ;;  %3494 = vmatmul.f32.gmra.mxu0 %v9102_v9  ;;  %v9499_v32 = vpop.f32.mrf.mxu3 }
 0x426   : > { %v9501_v25 = vpop.f32.mrf.mxu1 }
 0x428   : > { %v3068_v58 = vpop.f32.mrf.mxu0 }
 0x42a   : > { %3269 = vmatmul.f32.gmra.mxu2 %v9504_v0 }
 0x42b   : > { %3171 = vmatmul.f32.gmra.mxu1 %v9478_v19  ;;  %v9514_v48 = vpop.f32.mrf.mxu2 }
 0x42d   : > { %3386 = vmatmul.f32.gmra.mxu3 %v9508_v16  ;;  %3497 = vmatmul.f32.gmra.mxu0 %v9511_v23 }
 0x42f   : > { %v9518_v17 = vpop.f32.mrf.mxu3 }
 0x430   : > { %v3127_v63 = vpop.f32.mrf.mxu1 }
 0x431   : > { %v3128_v62 = vadd.f32 %v3127_v63, %v3062_v8 }
 0x432   : > { %v3071_v29 = vpop.f32.mrf.mxu0  ;;  %3686 = vmatmul.f32.vlgmr.msra.gmra.mxu2 %v9239_v33 }
 0x433   : > { %3569 = vmatmul.f32.vlgmr.msra.gmra.mxu1 %v9223_v49 }
 0x435   : > { %3500 = vmatmul.f32.gmra.mxu0 %v9522_v38  ;;  %3800 = vmatmul.f32.vlgmr.msra.gmra.mxu3 %v8921_v18  ;;  %v3225_v52 = vpop.f32.mrf.mxu2 }
 0x436   : > { %v3273_v28 = vadd.f32 %v3225_v52, %v3128_v62 }
 0x438   : > { %v3130_v50 = vpop.f32.mrf.mxu1  ;;  %v3342_v2 = vpop.f32.mrf.mxu3 }
 0x439   : > { %v9527_v11 = vadd.f32 %v3342_v2, %v3273_v28  ;;  %v3131_v33 = vadd.f32 %v3130_v50, %v3065_v53  ;;  %v7009_v2 = vld [vmem:[%s8918_s16 + $0x78] sm:$0xff] }
 0x43a   : > { %v9529_v55 = vpop.f32.mrf.mxu0  ;;  %3689 = vmatmul.f32.gmra.mxu2 %v9266_v22 }
 0x43b   : > { %3572 = vmatmul.f32.gmra.mxu1 %v9262_v6 }
 0x43d   : > { %3803 = vmatmul.f32.gmra.mxu3 %v8965_v45  ;;  %3914 = vmatmul.f32.vlgmr.msra.gmra.mxu0 %v9283_v47  ;;  %v3228_v49 = vpop.f32.mrf.mxu2 }
 0x43e   : > { %v3274_v60 = vadd.f32 %v3228_v49, %v3131_v33 }
 0x440   : > { %v3133_v18 = vpop.f32.mrf.mxu1  ;;  %v3345_v15 = vpop.f32.mrf.mxu3 }
 0x441   : > { %v9535_v43 = vadd.f32 %v3345_v15, %v3274_v60  ;;  %v3134_v22 = vadd.f32 %v3133_v18, %v3068_v58 }
 0x442   : > { %v9537_v1 = vpop.f32.mrf.mxu0  ;;  %3692 = vmatmul.f32.gmra.mxu2 %v9287_v51 }
 0x443   : > { %3575 = vmatmul.f32.gmra.mxu1 %v9283_v47 }
 0x445   : > { %3806 = vmatmul.f32.gmra.mxu3 %v9021_v42  ;;  %3917 = vmatmul.f32.gmra.mxu0 %v9305_v20  ;;  %v3231_v45 = vpop.f32.mrf.mxu2 }
 0x446   : > { %v3275_v6 = vadd.f32 %v3231_v45, %v3134_v22  ;;  %v7010_v22 = vld [vmem:[%s8918_s16 + $0x80] sm:$0xff] }
 0x448   : > { %v3136_v26 = vpop.f32.mrf.mxu1  ;;  %v3348_v3 = vpop.f32.mrf.mxu3 }
 0x449   : > { %v9543_v8 = vadd.f32 %v3348_v3, %v3275_v6  ;;  %v3137_v51 = vadd.f32 %v3136_v26, %v3071_v29 }
 0x44a   : > { %v9545_v40 = vpop.f32.mrf.mxu0  ;;  %3695 = vmatmul.f32.gmra.mxu2 %v9309_v12 }
 0x44b   : > { %3578 = vmatmul.f32.gmra.mxu1 %v9305_v20 }
 0x44d   : > { %3809 = vmatmul.f32.gmra.mxu3 %v9082_v36  ;;  %3920 = vmatmul.f32.gmra.mxu0 %v9327_v61  ;;  %v3234_v42 = vpop.f32.mrf.mxu2 }
 0x44e   : > { %v3276_v47 = vadd.f32 %v3234_v42, %v3137_v51  ;;  %v7042_v51 = vld [vmem:[%s8918_s16 + $0x81] sm:$0xff] }
 0x44f   : > { %v7073_v42 = vld [vmem:[%s8918_s16 + $0x7a] sm:$0xff] }
 0x450   : > { %v3139_v53 = vpop.f32.mrf.mxu1  ;;  %v3351_v58 = vpop.f32.mrf.mxu3 }
 0x451   : > { %v9551_v63 = vadd.f32 %v3351_v58, %v3276_v47  ;;  %v3140_v20 = vadd.f32 %v3139_v53, %v9436_v31 }
 0x452   : > { %v9553_v62 = vpop.f32.mrf.mxu0  ;;  %3698 = vmatmul.f32.gmra.mxu2 %v9331_v57 }
 0x453   : > { %3581 = vmatmul.f32.gmra.mxu1 %v9327_v61  ;;  %v7071_v61 = vld [vmem:[%s8918_s16 + $0x62] sm:$0xff] }
 0x455   : > { %3812 = vmatmul.f32.gmra.mxu3 %v9356_v59  ;;  %3923 = vmatmul.f32.gmra.mxu0 %v9349_v41  ;;  %v3237_v36 = vpop.f32.mrf.mxu2 }
 0x456   : > { %v3277_v12 = vadd.f32 %v3237_v36, %v3140_v20 }
 0x458   : > { %v3142_v29 = vpop.f32.mrf.mxu1  ;;  %v3354_v52 = vpop.f32.mrf.mxu3 }
 0x459   : > { %v9560_v28 = vadd.f32 %v3354_v52, %v3277_v12  ;;  %v3143_v57 = vadd.f32 %v3142_v29, %v9464_v14  ;;  %v7043_v29 = vld [vmem:[%s8918_s16 + $0x1e1] sm:$0xff] }
 0x45a   : > { %v9562_v50 = vpop.f32.mrf.mxu0  ;;  %3701 = vmatmul.f32.gmra.mxu2 %v9353_v46  ;;  %v7041_v46 = vld [vmem:[%s8918_s16 + $0x79] sm:$0xff]  ;;  %v7074_v52 = vld [vmem:[%s8918_s16 + $0x82] sm:$0xff] }
 0x45b   : > { %3584 = vmatmul.f32.gmra.mxu1 %v9349_v41  ;;  %v7072_v41 = vld [vmem:[%s8918_s16 + $0x6a] sm:$0xff] }
 0x45d   : > { %3815 = vmatmul.f32.gmra.mxu3 %v9377_v21  ;;  %3926 = vmatmul.f32.gmra.mxu0 %v7071_v61  ;;  %v3240_v59 = vpop.f32.mrf.mxu2 }
 0x45e   : > { %v3278_v31 = vadd.f32 %v3240_v59, %v3143_v57 }
 0x460   : > { %v3145_v33 = vpop.f32.mrf.mxu1  ;;  %v3357_v49 = vpop.f32.mrf.mxu3 }
 0x461   : > { %v9570_v60 = vadd.f32 %v3357_v49, %v3278_v31  ;;  %v3146_v14 = vadd.f32 %v3145_v33, %v9483_v37  ;;  %v7044_v49 = vld [vmem:[%s8918_s16 + $0x1e9] sm:$0xff] }
 0x462   : > { %v9572_v18 = vpop.f32.mrf.mxu0  ;;  %3704 = vmatmul.f32.gmra.mxu2 %v7009_v2 }
 0x463   : > { %3587 = vmatmul.f32.gmra.mxu1 %v7071_v61 }
 0x465   : > { %3818 = vmatmul.f32.gmra.mxu3 %v7041_v46  ;;  %3929 = vmatmul.f32.gmra.mxu0 %v7072_v41  ;;  %v3243_v21 = vpop.f32.mrf.mxu2 }
 0x466   : > { %v3279_v15 = vadd.f32 %v3243_v21, %v3146_v14 }
 0x468   : > { %v3148_v45 = vpop.f32.mrf.mxu1  ;;  %v3360_v6 = vpop.f32.mrf.mxu3 }
 0x469   : > { %v9578_v26 = vadd.f32 %v3360_v6, %v3279_v15  ;;  %v3149_v47 = vadd.f32 %v3148_v45, %v9501_v25 }
 0x46a   : > { %v9580_v3 = vpop.f32.mrf.mxu0  ;;  %3707 = vmatmul.f32.gmra.mxu2 %v7010_v22  ;;  %v7045_v22 = vld [vmem:[%s8918_s16 + $0x1f9] sm:$0xff] }
 0x46b   : > { %3590 = vmatmul.f32.gmra.mxu1 %v7072_v41 }
 0x46d   : > { %3821 = vmatmul.f32.gmra.mxu3 %v7042_v51  ;;  %3932 = vmatmul.f32.gmra.mxu0 %v7073_v42  ;;  %v3246_v37 = vpop.f32.mrf.mxu2 }
 0x46e   : > { %v3280_v53 = vadd.f32 %v3246_v37, %v3149_v47 }
 0x470   : > { %v3151_v58 = vpop.f32.mrf.mxu1  ;;  %v3363_v20 = vpop.f32.mrf.mxu3 }
 0x471   : > { %v9585_v36 = vadd.f32 %v3363_v20, %v3280_v53  ;;  %v3152_v61 = vadd.f32 %v3151_v58, %v9455_v30 }
 0x472   : > { %v9587_v12 = vpop.f32.mrf.mxu0  ;;  %3710 = vmatmul.f32.gmra.mxu2 %v9413_v5 }
 0x473   : > { %3593 = vmatmul.f32.gmra.mxu1 %v9409_v54 }
 0x475   : > { %3824 = vmatmul.f32.gmra.mxu3 %v7043_v29  ;;  %3935 = vmatmul.f32.gmra.mxu0 %v7074_v52  ;;  %v3249_v25 = vpop.f32.mrf.mxu2 }
 0x476   : > { %v3281_v57 = vadd.f32 %v3249_v25, %v3152_v61 }
 0x478   : > { %v3154_v59 = vpop.f32.mrf.mxu1  ;;  %v3366_v31 = vpop.f32.mrf.mxu3 }
 0x479   : > { %v3398_v2 = vadd.f32 %v3366_v31, %v3281_v57  ;;  %v3155_v54 = vadd.f32 %v3154_v59, %v9474_v44  ;;  %v7017_v31 = vld [vmem:[%s8918_s16 + $0x228] sm:$0xff] }
 0x47a   : > { %v3480_v33 = vpop.f32.mrf.mxu0  ;;  %3713 = vmatmul.f32.gmra.mxu2 %v9434_v7 }
 0x47b   : > { %v9596_v46 = vadd.f32 %v3480_v33, %v3398_v2  ;;  %3596 = vmatmul.f32.gmra.mxu1 %v9430_v10 }
 0x47d   : > { %3827 = vmatmul.f32.gmra.mxu3 %v7044_v49  ;;  %3938 = vmatmul.f32.gmra.mxu0 %v9453_v4  ;;  %v3252_v5 = vpop.f32.mrf.mxu2 }
 0x47e   : > { %v3282_v30 = vadd.f32 %v3252_v5, %v3155_v54  ;;  %v7080_v5 = vld [vmem:[%s8918_s16 + $0x21a] sm:$0xff] }
 0x480   : > { %v3157_v41 = vpop.f32.mrf.mxu1  ;;  %v3369_v14 = vpop.f32.mrf.mxu3 }
 0x481   : > { %v3399_v21 = vadd.f32 %v3369_v14, %v3282_v30  ;;  %v3158_v10 = vadd.f32 %v3157_v41, %v9490_v13  ;;  %v7018_v41 = vld [vmem:[%s8918_s16 + $0x230] sm:$0xff] }
 0x482   : > { %v3483_v15 = vpop.f32.mrf.mxu0  ;;  %3716 = vmatmul.f32.gmra.mxu2 %v9459_v39 }
 0x483   : > { %v9603_v7 = vadd.f32 %v3483_v15, %v3399_v21  ;;  %3599 = vmatmul.f32.gmra.mxu1 %v9453_v4 }
 0x485   : > { %3830 = vmatmul.f32.gmra.mxu3 %v7045_v22  ;;  %3941 = vmatmul.f32.gmra.mxu0 %v9472_v27  ;;  %v3255_v44 = vpop.f32.mrf.mxu2 }
 0x486   : > { %v3283_v45 = vadd.f32 %v3255_v44, %v3158_v10  ;;  %v7050_v10 = vld [vmem:[%s8918_s16 + $0x231] sm:$0xff] }
 0x487   : > { %v7081_v44 = vld [vmem:[%s8918_s16 + $0x22a] sm:$0xff] }
 0x488   : > { %v3160_v6 = vpop.f32.mrf.mxu1  ;;  %v3372_v51 = vpop.f32.mrf.mxu3 }
 0x489   : > { %v3400_v42 = vadd.f32 %v3372_v51, %v3283_v45  ;;  %v3161_v39 = vadd.f32 %v3160_v6, %v9514_v48 }
 0x48a   : > { %v3486_v47 = vpop.f32.mrf.mxu0  ;;  %3719 = vmatmul.f32.gmra.mxu2 %v9478_v19 }
 0x48b   : > { %v9609_v37 = vadd.f32 %v3486_v47, %v3400_v42  ;;  %3602 = vmatmul.f32.gmra.mxu1 %v9472_v27 }
 0x48d   : > { %3833 = vmatmul.f32.gmra.mxu3 %v9102_v9  ;;  %3944 = vmatmul.f32.gmra.mxu0 %v9488_v34  ;;  %v3258_v4 = vpop.f32.mrf.mxu2 }
 0x48e   : > { %v3284_v13 = vadd.f32 %v3258_v4, %v3161_v39 }
 0x490   : > { %v3163_v53 = vpop.f32.mrf.mxu1  ;;  %v3375_v58 = vpop.f32.mrf.mxu3 }
 0x491   : > { %v3401_v20 = vadd.f32 %v3375_v58, %v3284_v13  ;;  %v3164_v27 = vadd.f32 %v3163_v53, %v9461_v24  ;;  %v7082_v13 = vld [vmem:[%s8918_s16 + $0x232] sm:$0xff] }
 0x492   : > { %v3489_v29 = vpop.f32.mrf.mxu0  ;;  %3722 = vmatmul.f32.gmra.mxu2 %v9494_v56  ;;  %v7079_v56 = vld [vmem:[%s8918_s16 + $0x212] sm:$0xff] }
 0x493   : > { %v9616_v19 = vadd.f32 %v3489_v29, %v3401_v20  ;;  %3605 = vmatmul.f32.gmra.mxu1 %v9488_v34 }
 0x495   : > { %3836 = vmatmul.f32.gmra.mxu3 %v9511_v23  ;;  %3947 = vmatmul.f32.gmra.mxu0 %v9504_v0  ;;  %v3261_v9 = vpop.f32.mrf.mxu2 }
 0x496   : > { %v3285_v48 = vadd.f32 %v3261_v9, %v3164_v27  ;;  %v3504_v9 = vadd.f32 %v9529_v55, %v9527_v11  ;;  %v9653_v11 = vld [vmem:[%s12164_s4] ss:$0 sm:$0xff] }
 0x498   : > { %v3166_v52 = vpop.f32.mrf.mxu1  ;;  %v3378_v61 = vpop.f32.mrf.mxu3 }
 0x499   : > { %v3402_v25 = vadd.f32 %v3378_v61, %v3285_v48  ;;  %v3167_v24 = vadd.f32 %v3166_v52, %v9481_v35 }
 0x49a   : > { %v3492_v57 = vpop.f32.mrf.mxu0  ;;  %3725 = vmatmul.f32.gmra.mxu2 %v9508_v16  ;;  %v7049_v16 = vld [vmem:[%s8918_s16 + $0x229] sm:$0xff] }
 0x49b   : > { %v9624_v59 = vadd.f32 %v3492_v57, %v3402_v25  ;;  %3608 = vmatmul.f32.gmra.mxu1 %v9504_v0  ;;  %v3506_v57 = vadd.f32 %v9545_v40, %v9543_v8  ;;  %v3507_v8 = vadd.f32 %v9553_v62, %v9551_v63 }
 0x49d   : > { %3839 = vmatmul.f32.gmra.mxu3 %v9522_v38  ;;  %3950 = vmatmul.f32.gmra.mxu0 %v7079_v56  ;;  %v3264_v34 = vpop.f32.mrf.mxu2 }
 0x49e   : > { %v3286_v23 = vadd.f32 %v3264_v34, %v3167_v24  ;;  %v3505_v24 = vadd.f32 %v9537_v1, %v9535_v43 }
 0x4a0   : > { %v3169_v2 = vpop.f32.mrf.mxu1  ;;  %v3381_v33 = vpop.f32.mrf.mxu3 }
 0x4a1   : > { %v3403_v49 = vadd.f32 %v3381_v33, %v3286_v23  ;;  %v3170_v35 = vadd.f32 %v3169_v2, %v9499_v32 }
 0x4a2   : > { %v3495_v54 = vpop.f32.mrf.mxu0  ;;  %3728 = vmatmul.f32.gmra.mxu2 %v7017_v31 }
 0x4a3   : > { %v9632_v30 = vadd.f32 %v3495_v54, %v3403_v49  ;;  %3611 = vmatmul.f32.gmra.mxu1 %v7079_v56 }
 0x4a5   : > { %3842 = vmatmul.f32.gmra.mxu3 %v7049_v16  ;;  %3953 = vmatmul.f32.gmra.mxu0 %v7080_v5  ;;  %v3267_v0 = vpop.f32.mrf.mxu2 }
 0x4a6   : > { %v3287_v38 = vadd.f32 %v3267_v0, %v3170_v35 }
 0x4a8   : > { %v3172_v14 = vpop.f32.mrf.mxu1  ;;  %v3384_v21 = vpop.f32.mrf.mxu3 }
 0x4a9   : > { %v3404_v15 = vadd.f32 %v3384_v21, %v3287_v38  ;;  %v3173_v6 = vadd.f32 %v3172_v14, %v9518_v17 }
 0x4aa   : > { %v3498_v22 = vpop.f32.mrf.mxu0  ;;  %3731 = vmatmul.f32.gmra.mxu2 %v7018_v41 }
 0x4ab   : > { %v9638_v45 = vadd.f32 %v3498_v22, %v3404_v15  ;;  %3614 = vmatmul.f32.gmra.mxu1 %v7080_v5 }
 0x4ad   : > { %3845 = vmatmul.f32.gmra.mxu3 %v7050_v10  ;;  %3956 = vmatmul.f32.gmra.mxu0 %v7081_v44  ;;  %v3270_v32 = vpop.f32.mrf.mxu2 }
 0x4ae   : > { %v3288_v51 = vadd.f32 %v3270_v32, %v3173_v6 }
 0x4b0   : > { %v3387_v42 = vpop.f32.mrf.mxu3  ;;  %v3570_v47 = vpop.f32.mrf.mxu1 }
 0x4b1   : > { %v3405_v39 = vadd.f32 %v3387_v42, %v3288_v51  ;;  %v3618_v17 = vadd.f32 %v3570_v47, %v3504_v9 }
 0x4b2   : > { %v3501_v4 = vpop.f32.mrf.mxu0 }
 0x4b3   : > { %v9642_v53 = vadd.f32 %v3501_v4, %v3405_v39 }
 0x4b5   : > { %3959 = vmatmul.f32.gmra.mxu0 %v7082_v13  ;;  %v3687_v58 = vpop.f32.mrf.mxu2 }
 0x4b6   : > { %v3735_v52 = vadd.f32 %v3687_v58, %v3618_v17 }
 0x4b8   : > { %v3573_v20 = vpop.f32.mrf.mxu1  ;;  %v3801_v29 = vpop.f32.mrf.mxu3 }
 0x4b9   : > { %v3849_v34 = vadd.f32 %v3801_v29, %v3735_v52  ;;  %v3619_v31 = vadd.f32 %v3573_v20, %v3505_v24 }
 0x4ba   : > { %v3915_v27 = vpop.f32.mrf.mxu0 }
 0x4bb   : > { %v3963_v49 = vadd.f32 %v3915_v27, %v3849_v34 }
 0x4bd   : > { %v3690_v48 = vpop.f32.mrf.mxu2  ;;  %v3983_v43 = vadd.f32 %v9653_v11, %v3963_v49 }
 0x4be   : > { %v3736_v55 = vadd.f32 %v3690_v48, %v3619_v31 }
 0x4bf   : > { %v3999_v21 = vmax.f32 %v3983_v43, 0.0  ;;  %v3509_v43 = vadd.f32 %v9572_v18, %v9570_v60  ;;  %v3511_v60 = vadd.f32 %v9587_v12, %v9585_v36 }
 0x4c0   : > { %v3576_v61 = vpop.f32.mrf.mxu1  ;;  %v3804_v25 = vpop.f32.mrf.mxu3 }
 0x4c1   : > { %v3620_v23 = vadd.f32 %v3576_v61, %v3506_v57  ;;  %v3850_v1 = vadd.f32 %v3804_v25, %v3736_v55  ;;  %v3508_v61 = vadd.f32 %v9562_v50, %v9560_v28  ;;  %v3510_v28 = vadd.f32 %v9580_v3, %v9578_v26 }
 0x4c2   : > { %v3918_v56 = vpop.f32.mrf.mxu0 }
 0x4c3   : > { %v3964_v15 = vadd.f32 %v3918_v56, %v3850_v1 }
 0x4c5   : > { %v3693_v2 = vpop.f32.mrf.mxu2  ;;  %v3984_v63 = vadd.f32 %v9653_v11, %v3964_v15 }
 0x4c6   : > { %v3737_v33 = vadd.f32 %v3693_v2, %v3620_v23 }
 0x4c7   : > { %v4000_v13 = vmax.f32 %v3984_v63, 0.0 }
 0x4c8   : > { %v3579_v54 = vpop.f32.mrf.mxu1  ;;  %v3807_v16 = vpop.f32.mrf.mxu3 }
 0x4c9   : > { %v3851_v5 = vadd.f32 %v3807_v16, %v3737_v33  ;;  %v3621_v0 = vadd.f32 %v3579_v54, %v3507_v8 }
 0x4ca   : > { %v3921_v40 = vpop.f32.mrf.mxu0 }
 0x4cb   : > { %v3965_v35 = vadd.f32 %v3921_v40, %v3851_v5 }
 0x4cd   : > { %v3985_v38 = vadd.f32 %v9653_v11, %v3965_v35  ;;  %v3696_v41 = vpop.f32.mrf.mxu2 }
 0x4ce   : > { %v3738_v14 = vadd.f32 %v3696_v41, %v3621_v0 }
 0x4cf   : > { %v4001_v22 = vmax.f32 %v3985_v38, 0.0 }
 0x4d0   : > { %v3582_v10 = vpop.f32.mrf.mxu1  ;;  %v3810_v44 = vpop.f32.mrf.mxu3 }
 0x4d1   : > { %v4015_v6 = vmax.f32 %v3999_v21, %v4001_v22  ;;  %v3852_v32 = vadd.f32 %v3810_v44, %v3738_v14  ;;  %v3622_v56 = vadd.f32 %v3582_v10, %v3508_v61 }
 0x4d2   : > { %v3924_v51 = vpop.f32.mrf.mxu0 }
 0x4d3   : > { %v4027_v62 = vrot.slane %v4015_v6, 1  ;;  %v3966_v42 = vadd.f32 %v3924_v51, %v3852_v32 }
 0x4d5   : > { %v4035_v47 = vmax.f32 %v4015_v6, %v4027_v62  ;;  %v3986_v39 = vadd.f32 %v9653_v11, %v3966_v42  ;;  %v3699_v4 = vpop.f32.mrf.mxu2 }
 0x4d6   : > { %v3739_v33 = vadd.f32 %v3699_v4, %v3622_v56 }
 0x4d7   : > { %v4059_v58 = vrot.slane %v4035_v47, 1  ;;  %v4002_v20 = vmax.f32 %v3986_v39, 0.0  ;;  %v4067_v9 = vrot.slane %v4035_v47, 2  ;;  %v4075_v23 = vrot.slane %v4035_v47, 3 }
 0x4d8   : > { %v3585_v29 = vpop.f32.mrf.mxu1  ;;  %v3813_v27 = vpop.f32.mrf.mxu3 }
 0x4d9   : > { %v4016_v17 = vmax.f32 %v4000_v13, %v4002_v20  ;;  %v4120_v48 = vsel %vm2896_vm1, %v4035_v47, %v4059_v58  ;;  %v3853_v35 = vadd.f32 %v3813_v27, %v3739_v33  ;;  %v3623_v41 = vadd.f32 %v3585_v29, %v3509_v43 }
 0x4da   : > { %v3927_v52 = vpop.f32.mrf.mxu0  ;;  %v4125_v57 = vsel %vm2901_vm2, %v4120_v48, %v4067_v9 }
 0x4db   : > { %v4043_v25 = vrot.slane %v4016_v17, 1  ;;  %v4130_v49 = vsel %vm2906_vm3, %v4125_v57, %v4075_v23  ;;  %v3967_v3 = vadd.f32 %v3927_v52, %v3853_v35 }
 0x4dd   : > { %v4051_v24 = vmax.f32 %v4016_v17, %v4043_v25  ;;  %v3702_v34 = vpop.f32.mrf.mxu2  ;;  %v3987_v44 = vadd.f32 %v9653_v11, %v3967_v3 }
 0x4de   : > { %v3740_v21 = vadd.f32 %v3702_v34, %v3623_v41 }
 0x4df   : > { %v4087_v31 = vrot.slane %v4051_v24, 4  ;;  %v4095_v2 = vrot.slane %v4051_v24, 5  ;;  %v4103_v16 = vrot.slane %v4051_v24, 6  ;;  %v4111_v50 = vrot.slane %v4051_v24, 7 }
 0x4e0   : > { %v3588_v55 = vpop.f32.mrf.mxu1  ;;  %v3816_v54 = vpop.f32.mrf.mxu3  ;;  %v4003_v47 = vmax.f32 %v3987_v44, 0.0 }
 0x4e1   : > { %v4135_v5 = vsel %vm2911_vm4, %v4130_v49, %v4087_v31  ;;  %v3624_v38 = vadd.f32 %v3588_v55, %v3510_v28  ;;  %v3854_v6 = vadd.f32 %v3816_v54, %v3740_v21 }
 0x4e2   : > { %v4140_v8 = vsel %vm2916_vm5, %v4135_v5, %v4095_v2  ;;  %v3930_v40 = vpop.f32.mrf.mxu0 }
 0x4e3   : > { %v4145_v1 = vsel %vm2921_vm6, %v4140_v8, %v4103_v16  ;;  %v3968_v39 = vadd.f32 %v3930_v40, %v3854_v6 }
 0x4e4   : > { %v4150_v0 = vsel %vm2926_vm7, %v4145_v1, %v4111_v50 }
 0x4e5   : > { %7101 = vst [vmem:[%s9675_s24 + $0x11] sm:$0xff] %v4150_v0  ;;  %v3705_v14 = vpop.f32.mrf.mxu2  ;;  %v3988_v36 = vadd.f32 %v9653_v11, %v3968_v39 }
 0x4e6   : > { %v3741_v26 = vadd.f32 %v3705_v14, %v3624_v38 }
 0x4e7   : > { %v4004_v61 = vmax.f32 %v3988_v36, 0.0 }
 0x4e8   : > { %v3591_v15 = vpop.f32.mrf.mxu1  ;;  %v3819_v22 = vpop.f32.mrf.mxu3 }
 0x4e9   : > { %v3855_v10 = vadd.f32 %v3819_v22, %v3741_v26  ;;  %v3625_v51 = vadd.f32 %v3591_v15, %v3511_v60 }
 0x4ea   : > { %v3933_v18 = vpop.f32.mrf.mxu0 }
 0x4eb   : > { %v3969_v32 = vadd.f32 %v3933_v18, %v3855_v10 }
 0x4ed   : > { %v3989_v63 = vadd.f32 %v9653_v11, %v3969_v32  ;;  %v3708_v62 = vpop.f32.mrf.mxu2 }
 0x4ee   : > { %v3742_v42 = vadd.f32 %v3708_v62, %v3625_v51 }
 0x4ef   : > { %v4005_v4 = vmax.f32 %v3989_v63, 0.0 }
 0x4f0   : > { %v3594_v13 = vpop.f32.mrf.mxu1  ;;  %v3822_v58 = vpop.f32.mrf.mxu3 }
 0x4f1   : > { %v4017_v20 = vmax.f32 %v4003_v47, %v4005_v4  ;;  %v3856_v29 = vadd.f32 %v3822_v58, %v3742_v42  ;;  %v3626_v55 = vadd.f32 %v3594_v13, %v9596_v46 }
 0x4f2   : > { %v3936_v27 = vpop.f32.mrf.mxu0 }
 0x4f3   : > { %v4028_v12 = vrot.slane %v4017_v20, 1  ;;  %v3970_v9 = vadd.f32 %v3936_v27, %v3856_v29 }
 0x4f5   : > { %v4036_v17 = vmax.f32 %v4017_v20, %v4028_v12  ;;  %v3990_v48 = vadd.f32 %v9653_v11, %v3970_v9  ;;  %v3711_v52 = vpop.f32.mrf.mxu2 }
 0x4f6   : > { %v3743_v8 = vadd.f32 %v3711_v52, %v3626_v55 }
 0x4f7   : > { %v4060_v25 = vrot.slane %v4036_v17, 1  ;;  %v4006_v57 = vmax.f32 %v3990_v48, 0.0  ;;  %v4068_v34 = vrot.slane %v4036_v17, 2  ;;  %v4076_v5 = vrot.slane %v4036_v17, 3 }
 0x4f8   : > { %v3597_v56 = vpop.f32.mrf.mxu1  ;;  %v3825_v24 = vpop.f32.mrf.mxu3 }
 0x4f9   : > { %v4018_v23 = vmax.f32 %v4004_v61, %v4006_v57  ;;  %v4121_v31 = vsel %vm2896_vm1, %v4036_v17, %v4060_v25  ;;  %v3857_v26 = vadd.f32 %v3825_v24, %v3743_v8  ;;  %v3627_v15 = vadd.f32 %v3597_v56, %v9603_v7 }
 0x4fa   : > { %v3939_v2 = vpop.f32.mrf.mxu0  ;;  %v4126_v49 = vsel %vm2901_vm2, %v4121_v31, %v4068_v34 }
 0x4fb   : > { %v4044_v33 = vrot.slane %v4018_v23, 1  ;;  %v4131_v40 = vsel %vm2906_vm3, %v4126_v49, %v4076_v5  ;;  %v3971_v60 = vadd.f32 %v3939_v2, %v3857_v26 }
 0x4fd   : > { %v4052_v54 = vmax.f32 %v4018_v23, %v4044_v33  ;;  %v3714_v16 = vpop.f32.mrf.mxu2  ;;  %v3991_v63 = vadd.f32 %v9653_v11, %v3971_v60 }
 0x4fe   : > { %v3744_v18 = vadd.f32 %v3714_v16, %v3627_v15 }
 0x4ff   : > { %v4088_v28 = vrot.slane %v4052_v54, 4  ;;  %v4096_v50 = vrot.slane %v4052_v54, 5  ;;  %v4104_v35 = vrot.slane %v4052_v54, 6  ;;  %v4112_v38 = vrot.slane %v4052_v54, 7 }
 0x500   : > { %v3600_v43 = vpop.f32.mrf.mxu1  ;;  %v3828_v1 = vpop.f32.mrf.mxu3  ;;  %v4007_v13 = vmax.f32 %v3991_v63, 0.0 }
 0x501   : > { %v4136_v0 = vsel %vm2911_vm4, %v4131_v40, %v4088_v28  ;;  %v3628_v21 = vadd.f32 %v3600_v43, %v9609_v37  ;;  %v3858_v62 = vadd.f32 %v3828_v1, %v3744_v18 }
 0x502   : > { %v4141_v41 = vsel %vm2916_vm5, %v4136_v0, %v4096_v50  ;;  %v3942_v14 = vpop.f32.mrf.mxu0 }
 0x503   : > { %v4146_v46 = vsel %vm2921_vm6, %v4141_v41, %v4104_v35  ;;  %v3972_v7 = vadd.f32 %v3942_v14, %v3858_v62 }
 0x504   : > { %v4151_v3 = vsel %vm2926_vm7, %v4146_v46, %v4112_v38 }
 0x505   : > { %7102 = vst [vmem:[%s9675_s24 + $0x21] sm:$0xff] %v4151_v3  ;;  %v3717_v22 = vpop.f32.mrf.mxu2  ;;  %v3992_v9 = vadd.f32 %v9653_v11, %v3972_v7 }
 0x506   : > { %v3745_v10 = vadd.f32 %v3717_v22, %v3628_v21 }
 0x507   : > { %v4008_v25 = vmax.f32 %v3992_v9, 0.0 }
 0x508   : > { %v3603_v44 = vpop.f32.mrf.mxu1  ;;  %v3831_v6 = vpop.f32.mrf.mxu3 }
 0x509   : > { %v3859_v32 = vadd.f32 %v3831_v6, %v3745_v10  ;;  %v3629_v47 = vadd.f32 %v3603_v44, %v9616_v19 }
 0x50a   : > { %v3945_v51 = vpop.f32.mrf.mxu0 }
 0x50b   : > { %v3973_v42 = vadd.f32 %v3945_v51, %v3859_v32 }
 0x50d   : > { %v3993_v39 = vadd.f32 %v9653_v11, %v3973_v42  ;;  %v3720_v37 = vpop.f32.mrf.mxu2 }
 0x50e   : > { %v3746_v4 = vadd.f32 %v3720_v37, %v3629_v47 }
 0x50f   : > { %v4009_v58 = vmax.f32 %v3993_v39, 0.0 }
 0x510   : > { %v3606_v20 = vpop.f32.mrf.mxu1  ;;  %v3834_v29 = vpop.f32.mrf.mxu3 }
 0x511   : > { %v4019_v27 = vmax.f32 %v4007_v13, %v4009_v58  ;;  %v3860_v36 = vadd.f32 %v3834_v29, %v3746_v4  ;;  %v3630_v54 = vadd.f32 %v3606_v20, %v9624_v59 }
 0x512   : > { %v3948_v12 = vpop.f32.mrf.mxu0 }
 0x513   : > { %v4029_v17 = vrot.slane %v4019_v27, 1  ;;  %v3974_v48 = vadd.f32 %v3948_v12, %v3860_v36 }
 0x515   : > { %v4037_v52 = vmax.f32 %v4019_v27, %v4029_v17  ;;  %v3994_v61 = vadd.f32 %v9653_v11, %v3974_v48  ;;  %v3723_v19 = vpop.f32.mrf.mxu2 }
 0x516   : > { %v3747_v40 = vadd.f32 %v3723_v19, %v3630_v54 }
 0x517   : > { %v4061_v57 = vrot.slane %v4037_v52, 1  ;;  %v4010_v56 = vmax.f32 %v3994_v61, 0.0  ;;  %v4069_v23 = vrot.slane %v4037_v52, 2  ;;  %v4077_v28 = vrot.slane %v4037_v52, 3 }
 0x518   : > { %v3609_v24 = vpop.f32.mrf.mxu1  ;;  %v3837_v34 = vpop.f32.mrf.mxu3 }
 0x519   : > { %v4020_v31 = vmax.f32 %v4008_v25, %v4010_v56  ;;  %v4122_v2 = vsel %vm2896_vm1, %v4037_v52, %v4061_v57  ;;  %v3861_v26 = vadd.f32 %v3837_v34, %v3747_v40  ;;  %v3631_v15 = vadd.f32 %v3609_v24, %v9632_v30 }
 0x51a   : > { %v3951_v33 = vpop.f32.mrf.mxu0  ;;  %v4127_v55 = vsel %vm2901_vm2, %v4122_v2, %v4069_v23 }
 0x51b   : > { %v4045_v49 = vrot.slane %v4020_v31, 1  ;;  %v4132_v43 = vsel %vm2906_vm3, %v4127_v55, %v4077_v28  ;;  %v3975_v60 = vadd.f32 %v3951_v33, %v3861_v26 }
 0x51d   : > { %v4053_v16 = vmax.f32 %v4020_v31, %v4045_v49  ;;  %v3726_v5 = vpop.f32.mrf.mxu2  ;;  %v3995_v63 = vadd.f32 %v9653_v11, %v3975_v60 }
 0x51e   : > { %v3748_v18 = vadd.f32 %v3726_v5, %v3631_v15 }
 0x51f   : > { %v4089_v50 = vrot.slane %v4053_v16, 4  ;;  %v4097_v8 = vrot.slane %v4053_v16, 5  ;;  %v4105_v0 = vrot.slane %v4053_v16, 6  ;;  %v4113_v41 = vrot.slane %v4053_v16, 7 }
 0x520   : > { %v3612_v1 = vpop.f32.mrf.mxu1  ;;  %v3840_v35 = vpop.f32.mrf.mxu3  ;;  %v4011_v4 = vmax.f32 %v3995_v63, 0.0 }
 0x521   : > { %v4137_v38 = vsel %vm2911_vm4, %v4132_v43, %v4089_v50  ;;  %v3632_v21 = vadd.f32 %v3612_v1, %v9638_v45  ;;  %v3862_v62 = vadd.f32 %v3840_v35, %v3748_v18 }
 0x522   : > { %v4142_v14 = vsel %vm2916_vm5, %v4137_v38, %v4097_v8  ;;  %v3954_v46 = vpop.f32.mrf.mxu0 }
 0x523   : > { %v4147_v59 = vsel %vm2921_vm6, %v4142_v14, %v4105_v0  ;;  %v3976_v30 = vadd.f32 %v3954_v46, %v3862_v62 }
 0x524   : > { %v4152_v3 = vsel %vm2926_vm7, %v4147_v59, %v4113_v41 }
 0x525   : > { %7103 = vst [vmem:[%s9675_s24 + $0xb1] sm:$0xff] %v4152_v3  ;;  %v3729_v22 = vpop.f32.mrf.mxu2  ;;  %v3996_v27 = vadd.f32 %v9653_v11, %v3976_v30 }
 0x526   : > { %v3749_v10 = vadd.f32 %v3729_v22, %v3632_v21 }
 0x527   : > { %v4012_v48 = vmax.f32 %v3996_v27, 0.0 }
 0x528   : > { %v3843_v44 = vpop.f32.mrf.mxu3  ;;  %v3615_v6 = vpop.f32.mrf.mxu1 }
 0x529   : > { %v3863_v32 = vadd.f32 %v3843_v44, %v3749_v10  ;;  %v3633_v47 = vadd.f32 %v3615_v6, %v9642_v53 }
 0x52a   : > { %v3957_v51 = vpop.f32.mrf.mxu0 }
 0x52b   : > { %v3977_v42 = vadd.f32 %v3957_v51, %v3863_v32 }
 0x52d   : > { %v3997_v39 = vadd.f32 %v9653_v11, %v3977_v42  ;;  %v3732_v45 = vpop.f32.mrf.mxu2 }
 0x52e   : > { %v3750_v37 = vadd.f32 %v3732_v45, %v3633_v47 }
 0x52f   : > { %v4013_v13 = vmax.f32 %v3997_v39, 0.0 }
 0x530   : > { %v3846_v7 = vpop.f32.mrf.mxu3 }
 0x531   : > { %v4021_v58 = vmax.f32 %v4011_v4, %v4013_v13  ;;  %v3864_v20 = vadd.f32 %v3846_v7, %v3750_v37 }
 0x532   : > { %v3960_v29 = vpop.f32.mrf.mxu0 }
 0x533   : > { %v4030_v36 = vrot.slane %v4021_v58, 1  ;;  %v3978_v12 = vadd.f32 %v3960_v29, %v3864_v20 }
 0x535   : > { %v4038_v9 = vmax.f32 %v4021_v58, %v4030_v36  ;;  %v3998_v17 = vadd.f32 %v9653_v11, %v3978_v12 }
 0x537   : > { %v4062_v53 = vrot.slane %v4038_v9, 1  ;;  %v4014_v52 = vmax.f32 %v3998_v17, 0.0  ;;  %v4070_v61 = vrot.slane %v4038_v9, 2  ;;  %v4078_v34 = vrot.slane %v4038_v9, 3 }
 0x539   : > { %v4022_v19 = vmax.f32 %v4012_v48, %v4014_v52  ;;  %v4123_v25 = vsel %vm2896_vm1, %v4038_v9, %v4062_v53 }
 0x53a   : > { %v4128_v56 = vsel %vm2901_vm2, %v4123_v25, %v4070_v61 }
 0x53b   : > { %v4046_v57 = vrot.slane %v4022_v19, 1  ;;  %v4133_v2 = vsel %vm2906_vm3, %v4128_v56, %v4078_v34 }
 0x53d   : > { %v4054_v24 = vmax.f32 %v4022_v19, %v4046_v57 }
 0x53f   : > { %v4090_v23 = vrot.slane %v4054_v24, 4  ;;  %v4098_v31 = vrot.slane %v4054_v24, 5  ;;  %v4106_v33 = vrot.slane %v4054_v24, 6  ;;  %v4114_v49 = vrot.slane %v4054_v24, 7 }
 0x541   : > { %v4138_v11 = vsel %vm2911_vm4, %v4133_v2, %v4090_v23  ;;  %2974 = sbr.rel (!%p2972_p1) target bundleno = 877 (0x36d), region = 140 }
 0x542   : > { %v4143_v55 = vsel %vm2916_vm5, %v4138_v11, %v4098_v31 }
 0x543   : > { %v4148_v54 = vsel %vm2921_vm6, %v4143_v55, %v4106_v33 }
 0x544   : > { %v4153_v16 = vsel %vm2926_vm7, %v4148_v54, %v4114_v49 }
 0x545   : > { %7104 = vst [vmem:[%s9675_s24 + $0xc1] sm:$0xff] %v4153_v16 }
 0x546 LB: > { %v7123_v5 = vld [vmem:[%s12165_s5 + $0xf8] sm:$0xff]  ;;  %v7122_v28 = vld [vmem:[%s12165_s5 + $0xf0] sm:$0xff]  ;;  %v7121_v50 = vld [vmem:[%s12165_s5 + $0xe8] sm:$0xff]  ;;  %s7302_s27 = sshll.u32 %s7469_s26, 6  ;;  %s7305_s4 = sshll.u32 %s7469_s26, 3  ;;  %s7469_s26 = sphi %s9727_s26, %s4166_s26  }
 0x547   : > { %7357 = vmatpush.msra.mxu1 %v7123_v5  ;;  %4220 = vmatpush.msra.mxu0 %v7123_v5  ;;  %v7139_v8 = vld [vmem:[%s12165_s5 + $0x178] sm:$0xff]  ;;  %v7138_v40 = vld [vmem:[%s12165_s5 + $0x170] sm:$0xff]  ;;  %v7120_v43 = vld [vmem:[%s12165_s5 + $0xe0] sm:$0xff]  ;;  %s9856_s24 = scalar_lea.vmem [#allocation3], %s7302_s27  ;;  %s10352_s28 = scalar_lea.vmem [#allocation4], %s7305_s4 }
 0x548   : > { %4327 = vmatpush.msra.mxu2 %v7139_v8  ;;  %v7137_v1 = vld [vmem:[%s12165_s5 + $0x168] sm:$0xff]  ;;  %v7119_v35 = vld [vmem:[%s12165_s5 + $0xd8] sm:$0xff]  ;;  %v7136_v0 = vld [vmem:[%s12165_s5 + $0x160] sm:$0xff]  ;;  %s4166_s26 = sadd.s32 1, %s7469_s26  }
 0x549   : > { %7358 = vmatpush.msra.mxu1 %v7122_v28  ;;  %4221 = vmatpush.msra.mxu0 %v7122_v28  ;;  %v7118_v38 = vld [vmem:[%s12165_s5 + $0xd0] sm:$0xff]  ;;  %v7165_v41 = vld [vmem:[%s12165_s5 + $0x1f8] sm:$0xff]  ;;  %v7117_v59 = vld [vmem:[%s12165_s5 + $0xc8] sm:$0xff]  ;;  %p4163_p2 = scmp.ge.s32.totalorder %s4166_s26, 2  }
 0x54a   : > { %4328 = vmatpush.msra.mxu2 %v7138_v40  ;;  %v7135_v14 = vld [vmem:[%s12165_s5 + $0x158] sm:$0xff]  ;;  %v7164_v46 = vld [vmem:[%s12165_s5 + $0x1f0] sm:$0xff]  ;;  %4404 = vmatpush.msra.mxu3 %v7165_v41  ;;  %v7163_v3 = vld [vmem:[%s12165_s5 + $0x1e8] sm:$0xff]  ;;  %s7472_s20 = smov (%p4163_p2), [#allocation5]  }
 0x54b   : > { %7359 = vmatpush.msra.mxu1 %v7121_v50  ;;  %4222 = vmatpush.msra.mxu0 %v7121_v50  ;;  %v7134_v26 = vld [vmem:[%s12165_s5 + $0x150] sm:$0xff]  ;;  %v7116_v21 = vld [vmem:[%s12165_s5 + $0xc0] sm:$0xff]  ;;  %v7133_v15 = vld [vmem:[%s12165_s5 + $0x148] sm:$0xff]  ;;  %s6299_s26 = sshll.u32 (%p4163_p2), %s7472_s20, 4  ;;  %s6300_s26 = int_to_ptr.vmem [resolvable:$true] %s6299_s26 }
 0x54c   : > { %4329 = vmatpush.msra.mxu2 %v7137_v1  ;;  %4405 = vmatpush.msra.mxu3 %v7164_v46  ;;  %v7162_v22 = vld [vmem:[%s12165_s5 + $0x1e0] sm:$0xff]  ;;  %v7115_v10 = vld [vmem:[%s12165_s5 + $0xb8] sm:$0xff]  ;;  %v7114_v44 = vld [vmem:[%s12165_s5 + $0xb0] sm:$0xff] }
 0x54d   : > { %7360 = vmatpush.msra.mxu1 %v7120_v43  ;;  %4223 = vmatpush.msra.mxu0 %v7120_v43  ;;  %v7132_v60 = vld [vmem:[%s12165_s5 + $0x140] sm:$0xff]  ;;  %v7161_v18 = vld [vmem:[%s12165_s5 + $0x1d8] sm:$0xff]  ;;  %v7160_v32 = vld [vmem:[%s12165_s5 + $0x1d0] sm:$0xff] }
 0x54e   : > { %4330 = vmatpush.msra.mxu2 %v7136_v0  ;;  %4406 = vmatpush.msra.mxu3 %v7163_v3  ;;  %v7131_v6 = vld [vmem:[%s12165_s5 + $0x138] sm:$0xff]  ;;  %v7113_v51 = vld [vmem:[%s12165_s5 + $0xa8] sm:$0xff]  ;;  %v7130_v63 = vld [vmem:[%s12165_s5 + $0x130] sm:$0xff] }
 0x54f   : > { %7361 = vmatpush.msra.mxu1 %v7119_v35  ;;  %4224 = vmatpush.msra.mxu0 %v7119_v35  ;;  %v7159_v62 = vld [vmem:[%s12165_s5 + $0x1c8] sm:$0xff]  ;;  %v7112_v42 = vld [vmem:[%s12165_s5 + $0xa0] sm:$0xff]  ;;  %v7111_v45 = vld [vmem:[%s12165_s5 + $0x98] sm:$0xff] }
 0x550   : > { %4331 = vmatpush.msra.mxu2 %v7135_v14  ;;  %4407 = vmatpush.msra.mxu3 %v7162_v22  ;;  %v7129_v47 = vld [vmem:[%s12165_s5 + $0x128] sm:$0xff]  ;;  %v7158_v39 = vld [vmem:[%s12165_s5 + $0x1c0] sm:$0xff]  ;;  %v7157_v4 = vld [vmem:[%s12165_s5 + $0x1b8] sm:$0xff] }
 0x551   : > { %7362 = vmatpush.msra.mxu1 %v7118_v38  ;;  %4225 = vmatpush.msra.mxu0 %v7118_v38  ;;  %v7128_v37 = vld [vmem:[%s12165_s5 + $0x120] sm:$0xff]  ;;  %v7110_v30 = vld [vmem:[%s12165_s5 + $0x90] sm:$0xff]  ;;  %v7127_v13 = vld [vmem:[%s12165_s5 + $0x118] sm:$0xff] }
 0x552   : > { %4332 = vmatpush.msra.mxu2 %v7134_v26  ;;  %4408 = vmatpush.msra.mxu3 %v7161_v18  ;;  %v7156_v7 = vld [vmem:[%s12165_s5 + $0x1b0] sm:$0xff]  ;;  %v7109_v58 = vld [vmem:[%s12165_s5 + $0x88] sm:$0xff]  ;;  %v7108_v27 = vld [vmem:[%s12165_s5 + $0x80] sm:$0xff] }
 0x553   : > { %7363 = vmatpush.msra.mxu1 %v7117_v59  ;;  %4226 = vmatpush.msra.mxu0 %v7117_v59  ;;  %v7126_v20 = vld [vmem:[%s12165_s5 + $0x110] sm:$0xff]  ;;  %v7155_v29 = vld [vmem:[%s12165_s5 + $0x1a8] sm:$0xff]  ;;  %v4194_v9 = vld [vmem:[%s12165_s5 + $0x78] sm:$0xff] }
 0x554   : > { %4333 = vmatpush.msra.mxu2 %v7133_v15  ;;  %4409 = vmatpush.msra.mxu3 %v7160_v32  ;;  %v4199_v36 = vld [vmem:[%s9856_s24 + $0xa1] sm:$0xff]  ;;  %v7189_v17 = vld [vmem:[%s12165_s5 + $0x278] sm:$0xff]  ;;  %v4193_v52 = vld [vmem:[%s12165_s5 + $0x70] sm:$0xff] }
 0x555   : > { %7364 = vmatpush.msra.mxu1 %v7116_v21  ;;  %4227 = vmatpush.msra.mxu0 %v7116_v21  ;;  %v4195_v12 = vld [vmem:[%s9856_s24 + $0x1] sm:$0xff]  ;;  %v7188_v61 = vld [vmem:[%s12165_s5 + $0x270] sm:$0xff]  ;;  %v7153_v25 = vld [vmem:[%s12165_s5 + $0x198] sm:$0xff] }
 0x556   : > { %4334 = vmatpush.msra.mxu2 %v7132_v60  ;;  %4410 = vmatpush.msra.mxu3 %v7159_v62  ;;  %v7125_v48 = vld [vmem:[%s12165_s5 + $0x108] sm:$0xff]  ;;  %v7154_v53 = vld [vmem:[%s12165_s5 + $0x1a0] sm:$0xff]  ;;  %v7152_v34 = vld [vmem:[%s12165_s5 + $0x190] sm:$0xff] }
 0x557   : > { %7365 = vmatpush.msra.mxu1 %v7115_v10  ;;  %4228 = vmatpush.msra.mxu0 %v7115_v10  ;;  %v7124_v19 = vld [vmem:[%s12165_s5 + $0x100] sm:$0xff]  ;;  %v4192_v57 = vld [vmem:[%s12165_s5 + $0x68] sm:$0xff]  ;;  %v9901_v2 = vld [vmem:[%s9856_s24 + $0xb1] sm:$0xff] }
 0x558   : > { %4335 = vmatpush.msra.mxu2 %v7131_v6  ;;  %4411 = vmatpush.msra.mxu3 %v7158_v39  ;;  %v7187_v56 = vld [vmem:[%s12165_s5 + $0x268] sm:$0xff]  ;;  %v4191_v23 = vld [vmem:[%s12165_s5 + $0x60] sm:$0xff]  ;;  %v9904_v33 = vld [vmem:[%s9856_s24 + $0x11] sm:$0xff] }
 0x559   : > { %7366 = vmatpush.msra.mxu1 %v7114_v44  ;;  %4229 = vmatpush.msra.mxu0 %v7114_v44  ;;  %v4302_v24 = vld [vmem:[%s9856_s24 + $0x2] sm:$0xff]  ;;  %v4190_v11 = vld [vmem:[%s12165_s5 + $0x58] sm:$0xff]  ;;  %v4189_v16 = vld [vmem:[%s12165_s5 + $0x50] sm:$0xff] }
 0x55a   : > { %4336 = vmatpush.msra.mxu2 %v7130_v63  ;;  %4412 = vmatpush.msra.mxu3 %v7157_v4  ;;  %v7186_v31 = vld [vmem:[%s12165_s5 + $0x260] sm:$0xff]  ;;  %v7185_v49 = vld [vmem:[%s12165_s5 + $0x258] sm:$0xff]  ;;  %v7151_v54 = vld [vmem:[%s12165_s5 + $0x188] sm:$0xff] }
 0x55b   : > { %7367 = vmatpush.msra.mxu1 %v7113_v51  ;;  %4230 = vmatpush.msra.mxu0 %v7113_v51  ;;  %v7239_v55 = vld [vmem:[%s12165_s5 + $0x378] sm:$0xff]  ;;  %v7184_v5 = vld [vmem:[%s12165_s5 + $0x250] sm:$0xff]  ;;  %v7150_v50 = vld [vmem:[%s12165_s5 + $0x180] sm:$0xff] }
 0x55c   : > { %4337 = vmatpush.msra.mxu2 %v7129_v47  ;;  %4413 = vmatpush.msra.mxu3 %v7156_v7  ;;  %v7238_v28 = vld [vmem:[%s12165_s5 + $0x370] sm:$0xff]  ;;  %v4188_v8 = vld [vmem:[%s12165_s5 + $0x48] sm:$0xff]  ;;  %v4187_v35 = vld [vmem:[%s12165_s5 + $0x40] sm:$0xff] }
 0x55d   : > { %7368 = vmatpush.msra.mxu1 %v7112_v42  ;;  %4231 = vmatpush.msra.mxu0 %v7112_v42  ;;  %v7183_v40 = vld [vmem:[%s12165_s5 + $0x248] sm:$0xff]  ;;  %v9939_v43 = vld [vmem:[%s9856_s24 + $0x12] sm:$0xff]  ;;  %v7182_v0 = vld [vmem:[%s12165_s5 + $0x240] sm:$0xff] }
 0x55e   : > { %4338 = vmatpush.msra.mxu2 %v7128_v37  ;;  %4414 = vmatpush.msra.mxu3 %v7155_v29  ;;  %v9942_v1 = vld [vmem:[%s9856_s24 + $0x10] sm:$0xff]  ;;  %v9951_v38 = vld [vmem:[%s9856_s24 + $0xc1] sm:$0xff]  ;;  %v4186_v14 = vld [vmem:[%s12165_s5 + $0x38] sm:$0xff] }
 0x55f   : > { %7369 = vmatpush.msra.mxu1 %v7111_v45  ;;  %4232 = vmatpush.msra.mxu0 %v7111_v45  ;;  %v9954_v41 = vld [vmem:[%s9856_s24 + $0x21] sm:$0xff]  ;;  %v7181_v46 = vld [vmem:[%s12165_s5 + $0x238] sm:$0xff]  ;;  %v4185_v3 = vld [vmem:[%s12165_s5 + $0x30] sm:$0xff] }
 0x560   : > { %4339 = vmatpush.msra.mxu2 %v7127_v13  ;;  %4415 = vmatpush.msra.mxu3 %v7154_v53  ;;  %v7237_v59 = vld [vmem:[%s12165_s5 + $0x368] sm:$0xff]  ;;  %v7263_v26 = vld [vmem:[%s12165_s5 + $0x3f8] sm:$0xff]  ;;  %v7180_v21 = vld [vmem:[%s12165_s5 + $0x230] sm:$0xff] }
 0x561   : > { %7370 = vmatpush.msra.mxu1 %v7110_v30  ;;  %4233 = vmatpush.msra.mxu0 %v7110_v30  ;;  %v7236_v15 = vld [vmem:[%s12165_s5 + $0x360] sm:$0xff]  ;;  %v7262_v22 = vld [vmem:[%s12165_s5 + $0x3f0] sm:$0xff]  ;;  %v4184_v10 = vld [vmem:[%s12165_s5 + $0x28] sm:$0xff] }
 0x562   : > { %4340 = vmatpush.msra.mxu2 %v7126_v20  ;;  %4416 = vmatpush.msra.mxu3 %v7153_v25  ;;  %v7179_v60 = vld [vmem:[%s12165_s5 + $0x228] sm:$0xff]  ;;  %v9994_v44 = vld [vmem:[%s9856_s24 + $0x20] sm:$0xff]  ;;  %v10003_v51 = vld [vmem:[%s9856_s24 + $0xd1] sm:$0xff] }
 0x563   : > { %7371 = vmatpush.msra.mxu1 %v7109_v58  ;;  %4234 = vmatpush.msra.mxu0 %v7109_v58  ;;  %v9991_v18 = vld [vmem:[%s9856_s24 + $0x22] sm:$0xff]  ;;  %v10006_v63 = vld [vmem:[%s9856_s24 + $0x31] sm:$0xff] }
 0x564   : > { %4341 = vmatpush.msra.mxu2 %v7125_v48  ;;  %4417 = vmatpush.msra.mxu3 %v7152_v34  ;;  %v4183_v6 = vld [vmem:[%s12165_s5 + $0x20] sm:$0xff]  ;;  %v4182_v62 = vld [vmem:[%s12165_s5 + $0x18] sm:$0xff]  ;;  %v7261_v39 = vld [vmem:[%s12165_s5 + $0x3e8] sm:$0xff] }
 0x565   : > { %7372 = vmatpush.msra.mxu1 %v7108_v27  ;;  %4235 = vmatpush.msra.mxu0 %v7108_v27  ;;  %v7178_v32 = vld [vmem:[%s12165_s5 + $0x220] sm:$0xff]  ;;  %v7177_v42 = vld [vmem:[%s12165_s5 + $0x218] sm:$0xff]  ;;  %v4181_v45 = vld [vmem:[%s12165_s5 + $0x10] sm:$0xff] }
 0x566   : > { %4248 = vmatmul.f32.vlgmr.msra.gmra.mxu1 %v4199_v36  ;;  %4236 = vmatmul.f32.vlgmr.msra.gmra.mxu0 %v4195_v12  ;;  %v7235_v47 = vld [vmem:[%s12165_s5 + $0x358] sm:$0xff]  ;;  %v7176_v37 = vld [vmem:[%s12165_s5 + $0x210] sm:$0xff]  ;;  %v7260_v30 = vld [vmem:[%s12165_s5 + $0x3e0] sm:$0xff] }
 0x567   : > { %4261 = vmatpush.msrb.mxu1 %v4194_v9  ;;  %4478 = vmatpush.msrb.mxu0 %v7189_v17  ;;  %v7234_v4 = vld [vmem:[%s12165_s5 + $0x350] sm:$0xff]  ;;  %v4180_v13 = vld [vmem:[%s12165_s5 + $0x8] sm:$0xff]  ;;  %v4179_v29 = vld [vmem:[%s12165_s5] sm:$0xff] }
 0x568   : > { %4342 = vmatpush.msra.mxu2 %v7124_v19  ;;  %4418 = vmatpush.msra.mxu3 %v7151_v54  ;;  %v7175_v7 = vld [vmem:[%s12165_s5 + $0x208] sm:$0xff]  ;;  %v10043_v58 = vld [vmem:[%s9856_s24 + $0x32] sm:$0xff]  ;;  %v7174_v27 = vld [vmem:[%s12165_s5 + $0x200] sm:$0xff] }
 0x569   : > { %4262 = vmatpush.msrb.mxu1 %v4193_v52  ;;  %4479 = vmatpush.msrb.mxu0 %v7188_v61  ;;  %v10046_v20 = vld [vmem:[%s9856_s24 + $0x30] sm:$0xff]  ;;  %v4171_v36 = vld [vmem:[%s9856_s24] sm:$0xff]  ;;  %v7213_v12 = vld [vmem:[%s12165_s5 + $0x2f8] sm:$0xff] }
 0x56a   : > { %4343 = vmatmul.f32.vlgmr.msra.gmra.mxu2 %v4302_v24  ;;  %4419 = vmatpush.msra.mxu3 %v7150_v50  ;;  %v7233_v9 = vld [vmem:[%s12165_s5 + $0x348] sm:$0xff]  ;;  %v7259_v17 = vld [vmem:[%s12165_s5 + $0x3d8] sm:$0xff]  ;;  %v7212_v53 = vld [vmem:[%s12165_s5 + $0x2f0] sm:$0xff] }
 0x56b   : > { %4263 = vmatpush.msrb.mxu1 %v4192_v57  ;;  %4480 = vmatpush.msrb.mxu0 %v7187_v56  ;;  %v10069_v48 = vld [vmem:[%s12165_s5 + $0x478] sm:$0xff]  ;;  %v7232_v52 = vld [vmem:[%s12165_s5 + $0x340] sm:$0xff]  ;;  %v7258_v61 = vld [vmem:[%s12165_s5 + $0x3d0] sm:$0xff] }
 0x56c   : > { %4629 = vmatpush.msrb.mxu2 %v7239_v55  ;;  %4420 = vmatmul.f32.vlgmr.msra.gmra.mxu3 %v9942_v1  ;;  %v10084_v19 = vld [vmem:[%s12165_s5 + $0x470] sm:$0xff]  ;;  %v7211_v25 = vld [vmem:[%s12165_s5 + $0x2e8] sm:$0xff]  ;;  %v7231_v57 = vld [vmem:[%s12165_s5 + $0x338] sm:$0xff] }
 0x56d   : > { %4264 = vmatpush.msrb.mxu1 %v4191_v23  ;;  %4481 = vmatpush.msrb.mxu0 %v7186_v31  ;;  %v4306_v56 = vld [vmem:[%s9856_s24 + $0xa2] sm:$0xff]  ;;  %v7230_v23 = vld [vmem:[%s12165_s5 + $0x330] sm:$0xff]  ;;  %v7209_v31 = vld [vmem:[%s12165_s5 + $0x2d8] sm:$0xff] }
 0x56e   : > { %4251 = vmatmul.f32.gmra.mxu1 %v9901_v2  ;;  %4239 = vmatmul.f32.gmra.mxu0 %v9904_v33  ;;  %v10095_v24 = vld [vmem:[%s9856_s24 + $0x40] sm:$0xff]  ;;  %v7208_v55 = vld [vmem:[%s12165_s5 + $0x2d0] sm:$0xff]  ;;  %v7255_v50 = vld [vmem:[%s12165_s5 + $0x3b8] sm:$0xff] }
 0x56f   : > { %4265 = vmatpush.msrb.mxu1 %v4190_v11  ;;  %4482 = vmatpush.msrb.mxu0 %v7185_v49  ;;  %v7210_v34 = vld [vmem:[%s12165_s5 + $0x2e0] sm:$0xff]  ;;  %v7229_v11 = vld [vmem:[%s12165_s5 + $0x328] sm:$0xff] }
 0x570   : > { %4630 = vmatpush.msrb.mxu2 %v7238_v28  ;;  %4703 = vmatpush.msrb.mxu3 %v7263_v26  ;;  %v10117_v49 = vld [vmem:[%s12165_s5 + $0x468] sm:$0xff]  ;;  %v7256_v54 = vld [vmem:[%s12165_s5 + $0x3c0] sm:$0xff]  ;;  %v7204_v26 = vld [vmem:[%s12165_s5 + $0x2b0] sm:$0xff] }
 0x571   : > { %4266 = vmatpush.msrb.mxu1 %v4189_v16  ;;  %4483 = vmatpush.msrb.mxu0 %v7184_v5  ;;  %v7228_v16 = vld [vmem:[%s12165_s5 + $0x320] sm:$0xff]  ;;  %v7207_v28 = vld [vmem:[%s12165_s5 + $0x2c8] sm:$0xff] }
 0x572   : > { %4346 = vmatmul.f32.gmra.mxu2 %v9939_v43  ;;  %4704 = vmatpush.msrb.mxu3 %v7262_v22  ;;  %v10133_v5 = vld [vmem:[%s12165_s5 + $0x460] sm:$0xff]  ;;  %v7203_v22 = vld [vmem:[%s12165_s5 + $0x2a8] sm:$0xff] }
 0x573   : > { %4267 = vmatpush.msrb.mxu1 %v4188_v8  ;;  %4484 = vmatpush.msrb.mxu0 %v7183_v40  ;;  %v10143_v8 = vld [vmem:[%s9856_s24 + $0xb2] sm:$0xff] }
 0x574   : > { %4631 = vmatpush.msrb.mxu2 %v7237_v59  ;;  %4423 = vmatmul.f32.gmra.mxu3 %v9994_v44  ;;  %v10146_v40 = vld [vmem:[%s9856_s24 + $0xb0] sm:$0xff]  ;;  %v10169_v59 = vld [vmem:[%s12165_s5 + $0x458] sm:$0xff] }
 0x575   : > { %4268 = vmatpush.msrb.mxu1 %v4187_v35  ;;  %4485 = vmatpush.msrb.mxu0 %v7182_v0  ;;  %v7227_v35 = vld [vmem:[%s12165_s5 + $0x318] sm:$0xff] }
 0x576   : > { %4254 = vmatmul.f32.gmra.mxu1 %v9951_v38  ;;  %4242 = vmatmul.f32.gmra.mxu0 %v9954_v41  ;;  %v7205_v0 = vld [vmem:[%s12165_s5 + $0x2b8] sm:$0xff] }
 0x577   : > { %4269 = vmatpush.msrb.mxu1 %v4186_v14  ;;  %4486 = vmatpush.msrb.mxu0 %v7181_v46  ;;  %v7254_v14 = vld [vmem:[%s12165_s5 + $0x3b0] sm:$0xff] }
 0x578   : > { %4632 = vmatpush.msrb.mxu2 %v7236_v15  ;;  %4705 = vmatpush.msrb.mxu3 %v7261_v39  ;;  %v7226_v46 = vld [vmem:[%s12165_s5 + $0x310] sm:$0xff]  ;;  %v7281_v39 = vld [vmem:[%s12165_s5 + $0x448] sm:$0xff] }
 0x579   : > { %4270 = vmatpush.msrb.mxu1 %v4185_v3  ;;  %4487 = vmatpush.msrb.mxu0 %v7180_v21  ;;  %v7253_v3 = vld [vmem:[%s12165_s5 + $0x3a8] sm:$0xff]  ;;  %v10185_v15 = vld [vmem:[%s12165_s5 + $0x450] sm:$0xff] }
 0x57a   : > { %4349 = vmatmul.f32.gmra.mxu2 %v9991_v18  ;;  %4706 = vmatpush.msrb.mxu3 %v7260_v30  ;;  %v7225_v21 = vld [vmem:[%s12165_s5 + $0x308] sm:$0xff]  ;;  %v7200_v30 = vld [vmem:[%s12165_s5 + $0x290] sm:$0xff] }
 0x57b   : > { %4271 = vmatpush.msrb.mxu1 %v4184_v10  ;;  %4488 = vmatpush.msrb.mxu0 %v7179_v60  ;;  %v7252_v10 = vld [vmem:[%s12165_s5 + $0x3a0] sm:$0xff] }
 0x57c   : > { %4633 = vmatpush.msrb.mxu2 %v7235_v47  ;;  %4426 = vmatmul.f32.gmra.mxu3 %v10046_v20  ;;  %v10195_v60 = vld [vmem:[%s9856_s24 + $0xc2] sm:$0xff]  ;;  %v7251_v47 = vld [vmem:[%s12165_s5 + $0x398] sm:$0xff] }
 0x57d   : > { %4272 = vmatpush.msrb.mxu1 %v4183_v6  ;;  %4489 = vmatpush.msrb.mxu0 %v7178_v32  ;;  %v10198_v6 = vld [vmem:[%s9856_s24 + $0xc0] sm:$0xff] }
 0x57e   : > { %4257 = vmatmul.f32.gmra.mxu1 %v10003_v51  ;;  %4245 = vmatmul.f32.gmra.mxu0 %v10006_v63  ;;  %v7202_v32 = vld [vmem:[%s12165_s5 + $0x2a0] sm:$0xff] }
 0x57f   : > { %4273 = vmatpush.msrb.mxu1 %v4182_v62  ;;  %4490 = vmatpush.msrb.mxu0 %v7177_v42  ;;  %v7224_v62 = vld [vmem:[%s12165_s5 + $0x300] sm:$0xff] }
 0x580   : > { %4634 = vmatpush.msrb.mxu2 %v7234_v4  ;;  %4707 = vmatpush.msrb.mxu3 %v7259_v17  ;;  %v10208_v42 = vld [vmem:[%s9856_s24 + $0x41] sm:$0xff] }
 0x581   : > { %4274 = vmatpush.msrb.mxu1 %v4181_v45  ;;  %4491 = vmatpush.msrb.mxu0 %v7176_v37  ;;  %v7201_v45 = vld [vmem:[%s12165_s5 + $0x298] sm:$0xff]  ;;  %v7250_v37 = vld [vmem:[%s12165_s5 + $0x390] sm:$0xff]  ;;  %v7280_v4 = vld [vmem:[%s12165_s5 + $0x440] sm:$0xff] }
 0x582   : > { %4352 = vmatmul.f32.gmra.mxu2 %v10043_v58  ;;  %4708 = vmatpush.msrb.mxu3 %v7258_v61  ;;  %v7248_v17 = vld [vmem:[%s12165_s5 + $0x380] sm:$0xff] }
 0x583   : > { %4275 = vmatpush.msrb.mxu1 %v4180_v13  ;;  %4492 = vmatpush.msrb.mxu0 %v7175_v7  ;;  %v7249_v13 = vld [vmem:[%s12165_s5 + $0x388] sm:$0xff]  ;;  %v7279_v7 = vld [vmem:[%s12165_s5 + $0x438] sm:$0xff]  ;;  %v7149_v61 = vld [vmem:[%s9856_s24 + $0xe0] sm:$0xff] }
 0x584   : > { %4635 = vmatpush.msrb.mxu2 %v7233_v9  ;;  %4429 = vmatmul.f32.gmra.mxu3 %v10095_v24  ;;  %v7278_v9 = vld [vmem:[%s12165_s5 + $0x430] sm:$0xff] }
 0x585   : > { %4276 = vmatpush.msrb.mxu1 %v4179_v29  ;;  %4493 = vmatpush.msrb.mxu0 %v7174_v27  ;;  %v10240_v29 = vld [vmem:[%s9856_s24 + $0xd2] sm:$0xff] }
 0x586   : > { %4277 = vmatmul.f32.vlgmr.msrb.gmra.mxu1 %v4171_v36  ;;  %4494 = vmatmul.f32.vlgmr.msrb.gmra.mxu0 %v9904_v33  ;;  %v7257_v33 = vld [vmem:[%s12165_s5 + $0x3c8] sm:$0xff]  ;;  %v10243_v27 = vld [vmem:[%s9856_s24 + $0xd0] sm:$0xff] }
 0x587   : > { %4552 = vmatpush.msra.mxu1 %v7213_v12  ;;  %4777 = vmatpush.msra.mxu0 %v10069_v48  ;;  %v7199_v36 = vld [vmem:[%s12165_s5 + $0x288] sm:$0xff]  ;;  %v4175_v12 = vld [vmem:[%s9856_s24 + $0xa0] sm:$0xff] }
 0x588   : > { %4636 = vmatpush.msrb.mxu2 %v7232_v52  ;;  %4709 = vmatpush.msrb.mxu3 %v7257_v33  ;;  %v7276_v52 = vld [vmem:[%s12165_s5 + $0x420] sm:$0xff] }
 0x589   : > { %4553 = vmatpush.msra.mxu1 %v7212_v53  ;;  %4778 = vmatpush.msra.mxu0 %v10084_v19  ;;  %v7277_v53 = vld [vmem:[%s12165_s5 + $0x428] sm:$0xff] }
 0x58a   : > { %4637 = vmatpush.msrb.mxu2 %v7231_v57  ;;  %4710 = vmatpush.msrb.mxu3 %v7256_v54  ;;  %v7173_v57 = vld [vmem:[%s9856_s24 + $0xe1] sm:$0xff] }
 0x58b   : > { %4554 = vmatpush.msra.mxu1 %v7211_v25  ;;  %4355 = vmatmul.f32.gmra.mxu2 %v4306_v56  ;;  %v7273_v25 = vld [vmem:[%s12165_s5 + $0x408] sm:$0xff]  ;;  %v7223_v56 = vld [vmem:[%s9856_s24 + $0xf0] sm:$0xff] }
 0x58c   : > { %4638 = vmatpush.msrb.mxu2 %v7230_v23  ;;  %4779 = vmatpush.msra.mxu0 %v10117_v49 }
 0x58d   : > { %4555 = vmatpush.msra.mxu1 %v7210_v34  ;;  %4711 = vmatpush.msrb.mxu3 %v7255_v50  ;;  %v7247_v34 = vld [vmem:[%s9856_s24 + $0xf1] sm:$0xff] }
 0x58e   : > { %4280 = vmatmul.f32.gmra.mxu1 %v9942_v1  ;;  %4497 = vmatmul.f32.gmra.mxu0 %v9954_v41  ;;  %v7206_v1 = vld [vmem:[%s12165_s5 + $0x2c0] sm:$0xff] }
 0x58f   : > { %4556 = vmatpush.msra.mxu1 %v7209_v31  ;;  %4639 = vmatpush.msrb.mxu2 %v7229_v11  ;;  %v7271_v31 = vld [vmem:[%s9856_s24 + $0xf2] sm:$0xff] }
 0x590   : > { %4780 = vmatpush.msra.mxu0 %v10133_v5  ;;  %4432 = vmatmul.f32.gmra.mxu3 %v10146_v40 }
 0x591   : > { %4557 = vmatpush.msra.mxu1 %v7208_v55  ;;  %4640 = vmatpush.msrb.mxu2 %v7228_v16 }
 0x592   : > { %4712 = vmatpush.msrb.mxu3 %v7254_v14  ;;  %4781 = vmatpush.msra.mxu0 %v10169_v59 }
 0x593   : > { %4558 = vmatpush.msra.mxu1 %v7207_v28  ;;  %4358 = vmatmul.f32.gmra.mxu2 %v10143_v8 }
 0x594   : > { %4641 = vmatpush.msrb.mxu2 %v7227_v35  ;;  %4713 = vmatpush.msrb.mxu3 %v7253_v3 }
 0x595   : > { %4559 = vmatpush.msra.mxu1 %v7206_v1  ;;  %4782 = vmatpush.msra.mxu0 %v10185_v15 }
 0x596   : > { %4283 = vmatmul.f32.gmra.mxu1 %v9994_v44  ;;  %4500 = vmatmul.f32.gmra.mxu0 %v10006_v63 }
 0x597   : > { %4560 = vmatpush.msra.mxu1 %v7205_v0  ;;  %4642 = vmatpush.msrb.mxu2 %v7226_v46 }
 0x598   : > { %4714 = vmatpush.msrb.mxu3 %v7252_v10  ;;  %4783 = vmatpush.msra.mxu0 %v7281_v39 }
 0x599   : > { %4561 = vmatpush.msra.mxu1 %v7204_v26  ;;  %4643 = vmatpush.msrb.mxu2 %v7225_v21 }
 0x59a   : > { %4435 = vmatmul.f32.gmra.mxu3 %v10198_v6  ;;  %4784 = vmatpush.msra.mxu0 %v7280_v4 }
 0x59b   : > { %4562 = vmatpush.msra.mxu1 %v7203_v22  ;;  %4361 = vmatmul.f32.gmra.mxu2 %v10195_v60 }
 0x59c   : > { %4644 = vmatpush.msrb.mxu2 %v7224_v62  ;;  %4715 = vmatpush.msrb.mxu3 %v7251_v47 }
 0x59d   : > { %4563 = vmatpush.msra.mxu1 %v7202_v32  ;;  %4785 = vmatpush.msra.mxu0 %v7279_v7 }
 0x59e   : > { %4286 = vmatmul.f32.gmra.mxu1 %v10046_v20  ;;  %4503 = vmatmul.f32.gmra.mxu0 %v10208_v42 }
 0x59f   : > { %4564 = vmatpush.msra.mxu1 %v7201_v45  ;;  %7373 = vmatpush.msra.mxu2 %v10069_v48  ;;  %v7198_v48 = vld [vmem:[%s12165_s5 + $0x280] sm:$0xff] }
 0x5a0   : > { %4716 = vmatpush.msrb.mxu3 %v7250_v37  ;;  %4786 = vmatpush.msra.mxu0 %v7278_v9 }
 0x5a1   : > { %4565 = vmatpush.msra.mxu1 %v7200_v30  ;;  %7374 = vmatpush.msra.mxu2 %v10084_v19  ;;  %v7275_v19 = vld [vmem:[%s12165_s5 + $0x418] sm:$0xff] }
 0x5a2   : > { %4717 = vmatpush.msrb.mxu3 %v7249_v13  ;;  %4787 = vmatpush.msra.mxu0 %v7277_v53 }
 0x5a3   : > { %4364 = vmatmul.f32.gmra.mxu2 %v10240_v29  ;;  %4438 = vmatmul.f32.gmra.mxu3 %v10243_v27 }
 0x5a4   : > { %4566 = vmatpush.msra.mxu1 %v7199_v36  ;;  %7375 = vmatpush.msra.mxu2 %v10117_v49 }
 0x5a5   : > { %4718 = vmatpush.msrb.mxu3 %v7248_v17  ;;  %4788 = vmatpush.msra.mxu0 %v7276_v52 }
 0x5a6   : > { %4289 = vmatmul.f32.gmra.mxu1 %v4175_v12  ;;  %4506 = vmatmul.f32.gmra.mxu0 %v9901_v2  ;;  %v7274_v2 = vld [vmem:[%s12165_s5 + $0x410] sm:$0xff] }
 0x5a7   : > { %4567 = vmatpush.msra.mxu1 %v7198_v48  ;;  %7376 = vmatpush.msra.mxu2 %v10133_v5 }
 0x5a8   : > { %4789 = vmatpush.msra.mxu0 %v7275_v19 }
 0x5a9   : > { %7377 = vmatpush.msra.mxu2 %v10169_v59 }
 0x5aa   : > { %4790 = vmatpush.msra.mxu0 %v7274_v2 }
 0x5ab   : > { %4645 = vmatmul.f32.vlgmr.msrb.gmra.mxu2 %v9994_v44  ;;  %4441 = vmatmul.f32.gmra.mxu3 %v7149_v61  ;;  %v7272_v44 = vld [vmem:[%s12165_s5 + $0x400] sm:$0xff] }
 0x5ac   : > { %7378 = vmatpush.msra.mxu2 %v10185_v15  ;;  %4791 = vmatpush.msra.mxu0 %v7273_v25 }
 0x5ae   : > { %4292 = vmatmul.f32.gmra.mxu1 %v10146_v40  ;;  %4509 = vmatmul.f32.gmra.mxu0 %v9951_v38 }
 0x5af   : > { %7379 = vmatpush.msra.mxu2 %v7281_v39  ;;  %4792 = vmatpush.msra.mxu0 %v7272_v44 }
 0x5b1   : > { %7380 = vmatpush.msra.mxu2 %v7280_v4 }
 0x5b3   : > { %7381 = vmatpush.msra.mxu2 %v7279_v7  ;;  %4719 = vmatmul.f32.vlgmr.msrb.gmra.mxu3 %v9954_v41  ;;  %v7219_v41 = vld [vmem:[%s9856_s24 + $0x50] sm:$0xff] }
 0x5b4   : > { %4648 = vmatmul.f32.gmra.mxu2 %v10046_v20  ;;  %v7243_v20 = vld [vmem:[%s9856_s24 + $0x51] sm:$0xff] }
 0x5b5   : > { %7382 = vmatpush.msra.mxu2 %v7278_v9 }
 0x5b6   : > { %4295 = vmatmul.f32.gmra.mxu1 %v10198_v6  ;;  %4512 = vmatmul.f32.gmra.mxu0 %v10003_v51 }
 0x5b7   : > { %7383 = vmatpush.msra.mxu2 %v7277_v53 }
 0x5b9   : > { %7384 = vmatpush.msra.mxu2 %v7276_v52 }
 0x5bb   : > { %7385 = vmatpush.msra.mxu2 %v7275_v19  ;;  %4722 = vmatmul.f32.gmra.mxu3 %v10006_v63  ;;  %v7266_v63 = vld [vmem:[%s9856_s24 + $0x42] sm:$0xff] }
 0x5bc   : > { %4651 = vmatmul.f32.gmra.mxu2 %v10095_v24 }
 0x5bd   : > { %7386 = vmatpush.msra.mxu2 %v7274_v2 }
 0x5be   : > { %4298 = vmatmul.f32.gmra.mxu1 %v10243_v27  ;;  %4515 = vmatmul.f32.gmra.mxu0 %v7173_v57 }
 0x5bf   : > { %7387 = vmatpush.msra.mxu2 %v7273_v25 }
 0x5c1   : > { %7388 = vmatpush.msra.mxu2 %v7272_v44 }
 0x5c3   : > { %4725 = vmatmul.f32.gmra.mxu3 %v10208_v42 }
 0x5c4   : > { %4654 = vmatmul.f32.gmra.mxu2 %v7219_v41 }
 0x5c6   : > { %4568 = vmatmul.f32.vlgmr.msra.gmra.mxu1 %v9939_v43  ;;  %4793 = vmatmul.f32.vlgmr.msra.gmra.mxu0 %v9991_v18  ;;  %v7267_v43 = vld [vmem:[%s9856_s24 + $0x52] sm:$0xff] }
 0x5cb   : > { %4728 = vmatmul.f32.gmra.mxu3 %v7243_v20 }
 0x5cc   : > { %4657 = vmatmul.f32.gmra.mxu2 %v10198_v6 }
 0x5ce   : > { %4571 = vmatmul.f32.gmra.mxu1 %v9991_v18  ;;  %4796 = vmatmul.f32.gmra.mxu0 %v10043_v58 }
 0x5d3   : > { %4731 = vmatmul.f32.gmra.mxu3 %v9951_v38  ;;  %v7270_v38 = vld [vmem:[%s9856_s24 + $0xe2] sm:$0xff] }
 0x5d4   : > { %4660 = vmatmul.f32.gmra.mxu2 %v10243_v27 }
 0x5d6   : > { %4574 = vmatmul.f32.gmra.mxu1 %v10043_v58  ;;  %4799 = vmatmul.f32.gmra.mxu0 %v7266_v63 }
 0x5db   : > { %4734 = vmatmul.f32.gmra.mxu3 %v10003_v51 }
 0x5dc   : > { %4663 = vmatmul.f32.gmra.mxu2 %v7149_v61 }
 0x5de   : > { %4577 = vmatmul.f32.gmra.mxu1 %v7266_v63  ;;  %4802 = vmatmul.f32.gmra.mxu0 %v7267_v43 }
 0x5e3   : > { %v4249_v18 = vpop.f32.mrf.mxu1  ;;  %v4237_v24 = vpop.f32.mrf.mxu0  ;;  %4737 = vmatmul.f32.gmra.mxu3 %v7173_v57 }
 0x5e4   : > { %4666 = vmatmul.f32.gmra.mxu2 %v7223_v56 }
 0x5e6   : > { %4580 = vmatmul.f32.gmra.mxu1 %v10143_v8  ;;  %4805 = vmatmul.f32.gmra.mxu0 %v10195_v60 }
 0x5eb   : > { %v4252_v58 = vpop.f32.mrf.mxu1  ;;  %v4240_v23 = vpop.f32.mrf.mxu0  ;;  %4740 = vmatmul.f32.gmra.mxu3 %v7247_v34 }
 0x5ec   : > { %4811 = vmatmul.f32.vlgmr.msra.gmra.mxu2 %v7270_v38 }
 0x5ed   : > { %v4344_v51 = vpop.f32.mrf.mxu2 }
 0x5ee   : > { %4583 = vmatmul.f32.gmra.mxu1 %v10195_v60  ;;  %4808 = vmatmul.f32.gmra.mxu0 %v10240_v29 }
 0x5ef   : > { %v4421_v55 = vpop.f32.mrf.mxu3 }
 0x5f3   : > { %v4255_v33 = vpop.f32.mrf.mxu1  ;;  %v4243_v11 = vpop.f32.mrf.mxu0 }
 0x5f4   : > { %4814 = vmatmul.f32.gmra.mxu2 %v7271_v31 }
 0x5f5   : > { %v4347_v49 = vpop.f32.mrf.mxu2 }
 0x5f6   : > { %4586 = vmatmul.f32.gmra.mxu1 %v10240_v29 }
 0x5f7   : > { %v4424_v28 = vpop.f32.mrf.mxu3 }
 0x5fb   : > { %v4258_v54 = vpop.f32.mrf.mxu1  ;;  %v4246_v16 = vpop.f32.mrf.mxu0 }
 0x5fd   : > { %v4350_v5 = vpop.f32.mrf.mxu2 }
 0x5fe   : > { %4589 = vmatmul.f32.gmra.mxu1 %v7270_v38 }
 0x5ff   : > { %v4427_v0 = vpop.f32.mrf.mxu3 }
 0x603   : > { %v4278_v50 = vpop.f32.mrf.mxu1  ;;  %v4495_v8 = vpop.f32.mrf.mxu0 }
 0x604   : > { %v4279_v40 = vadd.f32 %v4278_v50, %v4237_v24 }
 0x605   : > { %v4353_v35 = vpop.f32.mrf.mxu2 }
 0x606   : > { %v4368_v1 = vadd.f32 %v4344_v51, %v4279_v40 }
 0x607   : > { %v10319_v22 = vpop.f32.mrf.mxu3 }
 0x608   : > { %v4445_v14 = vadd.f32 %v4421_v55, %v4368_v1 }
 0x60a   : > { %v4519_v46 = vadd.f32 %v4495_v8, %v4445_v14 }
 0x60b   : > { %v4281_v59 = vpop.f32.mrf.mxu1  ;;  %v4498_v26 = vpop.f32.mrf.mxu0 }
 0x60c   : > { %v4282_v3 = vadd.f32 %v4281_v59, %v4240_v23 }
 0x60e   : > { %v4369_v21 = vadd.f32 %v4347_v49, %v4282_v3  ;;  %v4356_v15 = vpop.f32.mrf.mxu2 }
 0x613   : > { %v4284_v10 = vpop.f32.mrf.mxu1  ;;  %v4501_v60 = vpop.f32.mrf.mxu0 }
 0x614   : > { %v4285_v6 = vadd.f32 %v4284_v10, %v4243_v11  ;;  %v4433_v42 = vpop.f32.mrf.mxu3 }
 0x616   : > { %v4370_v32 = vadd.f32 %v4350_v5, %v4285_v6  ;;  %v4359_v62 = vpop.f32.mrf.mxu2 }
 0x618   : > { %v4447_v47 = vadd.f32 %v4427_v0, %v4370_v32 }
 0x61a   : > { %v4521_v39 = vadd.f32 %v4501_v60, %v4447_v47 }
 0x61b   : > { %v4287_v45 = vpop.f32.mrf.mxu1  ;;  %v10321_v37 = vpop.f32.mrf.mxu0 }
 0x61c   : > { %v4288_v4 = vadd.f32 %v4287_v45, %v4246_v16  ;;  %v4446_v16 = vadd.f32 %v4424_v28, %v4369_v21 }
 0x61d   : > { %v10323_v7 = vpop.f32.mrf.mxu3 }
 0x61e   : > { %v4371_v30 = vadd.f32 %v4353_v35, %v4288_v4  ;;  %v4362_v13 = vpop.f32.mrf.mxu2  ;;  %v4520_v50 = vadd.f32 %v4498_v26, %v4446_v16 }
 0x620   : > { %v4448_v6 = vadd.f32 %v10319_v22, %v4371_v30 }
 0x623   : > { %v4290_v29 = vpop.f32.mrf.mxu1  ;;  %v4507_v27 = vpop.f32.mrf.mxu0 }
 0x624   : > { %v4291_v36 = vadd.f32 %v4290_v29, %v4249_v18 }
 0x626   : > { %v4372_v12 = vadd.f32 %v4356_v15, %v4291_v36  ;;  %v4365_v9 = vpop.f32.mrf.mxu2  ;;  %v4439_v17 = vpop.f32.mrf.mxu3 }
 0x628   : > { %v4449_v48 = vadd.f32 %v4433_v42, %v4372_v12 }
 0x62a   : > { %v10325_v53 = vadd.f32 %v4507_v27, %v4449_v48 }
 0x62b   : > { %v4293_v52 = vpop.f32.mrf.mxu1  ;;  %v10327_v61 = vpop.f32.mrf.mxu0 }
 0x62c   : > { %v4294_v19 = vadd.f32 %v4293_v52, %v4252_v58 }
 0x62e   : > { %v10329_v2 = vadd.f32 %v4359_v62, %v4294_v19  ;;  %v4646_v25 = vpop.f32.mrf.mxu2  ;;  %v10331_v44 = vpop.f32.mrf.mxu3 }
 0x633   : > { %v4296_v57 = vpop.f32.mrf.mxu1  ;;  %v4513_v41 = vpop.f32.mrf.mxu0 }
 0x634   : > { %v4297_v20 = vadd.f32 %v4296_v57, %v4255_v33 }
 0x636   : > { %v4374_v63 = vadd.f32 %v4362_v13, %v4297_v20  ;;  %v4720_v18 = vpop.f32.mrf.mxu3  ;;  %v4522_v13 = vadd.f32 %v10321_v37, %v4448_v6 }
 0x637   : > { %v4649_v43 = vpop.f32.mrf.mxu2 }
 0x638   : > { %v4451_v56 = vadd.f32 %v4439_v17, %v4374_v63 }
 0x63a   : > { %v10333_v24 = vadd.f32 %v4513_v41, %v4451_v56 }
 0x63b   : > { %v4299_v38 = vpop.f32.mrf.mxu1  ;;  %v10335_v34 = vpop.f32.mrf.mxu0 }
 0x63c   : > { %v4300_v23 = vadd.f32 %v4299_v38, %v4258_v54  ;;  %v10342_v54 = vld [vmem:[%s12166_s6] ss:$0 sm:$0xff] }
 0x63e   : > { %v10337_v51 = vadd.f32 %v4365_v9, %v4300_v23  ;;  %v4723_v31 = vpop.f32.mrf.mxu3 }
 0x63f   : > { %v4652_v58 = vpop.f32.mrf.mxu2 }
 0x643   : > { %v4569_v11 = vpop.f32.mrf.mxu1  ;;  %v4794_v49 = vpop.f32.mrf.mxu0 }
 0x644   : > { %v4593_v55 = vadd.f32 %v4569_v11, %v4519_v46 }
 0x646   : > { %v4670_v5 = vadd.f32 %v4646_v25, %v4593_v55  ;;  %v4726_v0 = vpop.f32.mrf.mxu3 }
 0x647   : > { %v4655_v33 = vpop.f32.mrf.mxu2 }
 0x648   : > { %v4744_v8 = vadd.f32 %v4720_v18, %v4670_v5 }
 0x64a   : > { %v4818_v14 = vadd.f32 %v4794_v49, %v4744_v8 }
 0x64b   : > { %v4572_v40 = vpop.f32.mrf.mxu1  ;;  %v4797_v1 = vpop.f32.mrf.mxu0 }
 0x64c   : > { %v4594_v35 = vadd.f32 %v4572_v40, %v4520_v50  ;;  %v4830_v46 = vadd.f32 %v10342_v54, %v4818_v14 }
 0x64e   : > { %v4671_v59 = vadd.f32 %v4649_v43, %v4594_v35  ;;  %v4838_v32 = vmax.f32 %v4830_v46, 0.0  ;;  %v4729_v42 = vpop.f32.mrf.mxu3 }
 0x64f   : > { %v4658_v3 = vpop.f32.mrf.mxu2 }
 0x650   : > { %v4745_v15 = vadd.f32 %v4723_v31, %v4671_v59 }
 0x652   : > { %v4819_v28 = vadd.f32 %v4797_v1, %v4745_v15 }
 0x653   : > { %v4575_v21 = vpop.f32.mrf.mxu1  ;;  %v4800_v10 = vpop.f32.mrf.mxu0 }
 0x654   : > { %v4831_v26 = vadd.f32 %v10342_v54, %v4819_v28  ;;  %v4595_v60 = vadd.f32 %v4575_v21, %v4521_v39 }
 0x656   : > { %v4839_v62 = vmax.f32 %v4831_v26, 0.0  ;;  %v4672_v47 = vadd.f32 %v4652_v58, %v4595_v60  ;;  %v4732_v25 = vpop.f32.mrf.mxu3  ;;  %v4450_v58 = vadd.f32 %v10323_v7, %v10329_v2 }
 0x657   : > { %v4661_v4 = vpop.f32.mrf.mxu2 }
 0x658   : > { %v4846_v45 = vmax.f32 %v4838_v32, %v4839_v62  ;;  %v4746_v27 = vadd.f32 %v4726_v0, %v4672_v47  ;;  %v4524_v16 = vadd.f32 %v10327_v61, %v4450_v58  ;;  %v4452_v32 = vadd.f32 %v10331_v44, %v10337_v51 }
 0x65a   : > { %v4854_v29 = vrot.slane %v4846_v45, 1  ;;  %v4820_v39 = vadd.f32 %v4800_v10, %v4746_v27 }
 0x65b   : > { %v4578_v36 = vpop.f32.mrf.mxu1  ;;  %v4803_v12 = vpop.f32.mrf.mxu0 }
 0x65c   : > { %v4862_v9 = vmax.f32 %v4846_v45, %v4854_v29  ;;  %v4596_v17 = vadd.f32 %v4578_v36, %v4522_v13  ;;  %v4832_v63 = vadd.f32 %v10342_v54, %v4820_v39  ;;  %v4526_v13 = vadd.f32 %v10335_v34, %v4452_v32  ;;  %v5130_v32 = vld [vmem:[%s12167_s7 + $0x390] sm:$0xff] (%p4163_p2) }
 0x65e   : > { %v4870_v48 = vrot.slane %v4862_v9, 1  ;;  %v4878_v52 = vrot.slane %v4862_v9, 2  ;;  %v4673_v19 = vadd.f32 %v4655_v33, %v4596_v17  ;;  %v4886_v22 = vrot.slane %v4862_v9, 3  ;;  %v4735_v33 = vpop.f32.mrf.mxu3 }
 0x65f   : > { %v4664_v20 = vpop.f32.mrf.mxu2  ;;  %v4840_v11 = vmax.f32 %v4832_v63, 0.0 }
 0x660   : > { %v4895_v30 = vsel %vm2896_vm1, %v4862_v9, %v4870_v48  ;;  %v4747_v41 = vadd.f32 %v4729_v42, %v4673_v19 }
 0x661   : > { %v4900_v57 = vsel %vm2901_vm2, %v4895_v30, %v4878_v52 }
 0x662   : > { %v4905_v37 = vsel %vm2906_vm3, %v4900_v57, %v4886_v22  ;;  %v4821_v43 = vadd.f32 %v4803_v12, %v4747_v41 }
 0x663   : > { %4911 = vst [vmem:[%s10352_s28] sm:$0xf] %v4905_v37  ;;  %v4581_v56 = vpop.f32.mrf.mxu1  ;;  %v4806_v23 = vpop.f32.mrf.mxu0 }
 0x664   : > { %v4597_v18 = vadd.f32 %v4581_v56, %v10325_v53  ;;  %v4833_v38 = vadd.f32 %v10342_v54, %v4821_v43 }
 0x666   : > { %v4674_v31 = vadd.f32 %v4658_v3, %v4597_v18  ;;  %v4841_v49 = vmax.f32 %v4833_v38, 0.0  ;;  %v4738_v6 = vpop.f32.mrf.mxu3 }
 0x667   : > { %v4667_v1 = vpop.f32.mrf.mxu2 }
 0x668   : > { %v4847_v55 = vmax.f32 %v4840_v11, %v4841_v49  ;;  %v4748_v5 = vadd.f32 %v4732_v25, %v4674_v31  ;;  %v5110_v49 = vld [vmem:[%s12167_s7 + $0x2f0] sm:$0xff] (%p4163_p2) }
 0x669   :  { %5574 = vmatpush.msra.mxu2 (%p4163_p2), %v5110_v49  ;;  %v5112_v49 = vld [vmem:[%s12167_s7 + $0x300] sm:$0xff] (%p4163_p2) }
 0x66a   : > { %v4855_v50 = vrot.slane %v4847_v55, 1  ;;  %v4822_v35 = vadd.f32 %v4806_v23, %v4748_v5  ;;  %v5108_v5 = vld [vmem:[%s12167_s7 + $0x2e0] sm:$0xff] (%p4163_p2) }
 0x66b   : > { %v4584_v8 = vpop.f32.mrf.mxu1  ;;  %v4809_v15 = vpop.f32.mrf.mxu0  ;;  %5575 = vmatpush.msra.mxu2 (%p4163_p2), %v5108_v5  ;;  %v5236_v5 = vld [vmem:[%s12167_s7 + $0x6e0] sm:$0xff] (%p4163_p2) }
 0x66c   : > { %v4598_v40 = vadd.f32 %v4584_v8, %v4524_v16  ;;  %v4863_v53 = vmax.f32 %v4847_v55, %v4855_v50  ;;  %v4834_v61 = vadd.f32 %v10342_v54, %v4822_v35  ;;  %v5044_v55 = vld [vmem:[%s12167_s7 + $0xe0] sm:$0xff] (%p4163_p2)  ;;  %v5078_v16 = vld [vmem:[%s12167_s7 + $0x1f0] sm:$0xff] (%p4163_p2) }
 0x66d   :  { %5554 = vmatpush.msra.mxu1 (%p4163_p2), %v5078_v16  ;;  %v5042_v50 = vld [vmem:[%s12167_s7 + $0xd0] sm:$0xff] (%p4163_p2)  ;;  %v5076_v8 = vld [vmem:[%s12167_s7 + $0x1e0] sm:$0xff] (%p4163_p2) }
 0x66e   : > { %v4675_v0 = vadd.f32 %v4661_v4, %v4598_v40  ;;  %v4871_v14 = vrot.slane %v4863_v53, 1  ;;  %v4879_v59 = vrot.slane %v4863_v53, 2  ;;  %v4887_v2 = vrot.slane %v4863_v53, 3  ;;  %v5106_v40 = vld [vmem:[%s12167_s7 + $0x2d0] sm:$0xff] (%p4163_p2)  ;;  %v5040_v35 = vld [vmem:[%s12167_s7 + $0xc0] sm:$0xff] (%p4163_p2) }
 0x66f   : > { %v4842_v62 = vmax.f32 %v4834_v61, 0.0  ;;  %v4812_v47 = vpop.f32.mrf.mxu2  ;;  %5555 = vmatpush.msra.mxu1 (%p4163_p2), %v5076_v8  ;;  %5576 = vmatpush.msra.mxu2 (%p4163_p2), %v5106_v40  ;;  %v5036_v61 = vld [vmem:[%s12167_s7 + $0xa0] sm:$0xff] (%p4163_p2)  ;;  %v5206_v16 = vld [vmem:[%s12167_s7 + $0x5f0] sm:$0xff] (%p4163_p2) }
 0x670   : > { %v4749_v7 = vadd.f32 %v4735_v33, %v4675_v0  ;;  %v4896_v3 = vsel %vm2896_vm1, %v4863_v53, %v4871_v14  ;;  %v5142_v33 = vld [vmem:[%s12167_s7 + $0x3f0] sm:$0xff] (%p4163_p2)  ;;  %v5104_v0 = vld [vmem:[%s12167_s7 + $0x2c0] sm:$0xff] (%p4163_p2) }
 0x671   : > { %v4901_v46 = vsel %vm2901_vm2, %v4896_v3, %v4879_v59  ;;  %5594 = vmatpush.msra.mxu3 (%p4163_p2), %v5142_v33  ;;  %v5074_v53 = vld [vmem:[%s12167_s7 + $0x1d0] sm:$0xff] (%p4163_p2)  ;;  %v5072_v59 = vld [vmem:[%s12167_s7 + $0x1c0] sm:$0xff] (%p4163_p2)  ;;  %5577 = vmatpush.msra.mxu2 (%p4163_p2), %v5104_v0 }
 0x672   : > { %v4823_v28 = vadd.f32 %v4809_v15, %v4749_v7  ;;  %v4906_v21 = vsel %vm2906_vm3, %v4901_v46, %v4887_v2  ;;  %v5138_v14 = vld [vmem:[%s12167_s7 + $0x3d0] sm:$0xff] (%p4163_p2)  ;;  %v5136_v15 = vld [vmem:[%s12167_s7 + $0x3c0] sm:$0xff] (%p4163_p2)  ;;  %5556 = vmatpush.msra.mxu1 (%p4163_p2), %v5074_v53 }
 0x673   : > { %v4587_v10 = vpop.f32.mrf.mxu1  ;;  %4912 = vst [vmem:[%s10352_s28 + $0x4] sm:$0xf] %v4906_v21  ;;  %v5038_v7 = vld [vmem:[%s12167_s7 + $0xb0] sm:$0xff] (%p4163_p2)  ;;  %v5068_v21 = vld [vmem:[%s12167_s7 + $0x1a0] sm:$0xff] (%p4163_p2) }
 0x674   : > { %v4835_v26 = vadd.f32 %v10342_v54, %v4823_v28  ;;  %v4599_v60 = vadd.f32 %v4587_v10, %v10333_v24  ;;  %v4741_v24 = vpop.f32.mrf.mxu3  ;;  %v5102_v2 = vld [vmem:[%s12167_s7 + $0x2b0] sm:$0xff] (%p4163_p2)  ;;  %5557 = vmatpush.msra.mxu1 (%p4163_p2), %v5072_v59  ;;  %v5100_v28 = vld [vmem:[%s12167_s7 + $0x2a0] sm:$0xff] (%p4163_p2) }
 0x675   :  { %v5070_v3 = vld [vmem:[%s12167_s7 + $0x1b0] sm:$0xff] (%p4163_p2)  ;;  %5578 = vmatpush.msra.mxu2 (%p4163_p2), %v5102_v2  ;;  %v5132_v10 = vld [vmem:[%s12167_s7 + $0x3a0] sm:$0xff] (%p4163_p2) }
 0x676   : > { %v4843_v42 = vmax.f32 %v4835_v26, 0.0  ;;  %v4676_v45 = vadd.f32 %v4664_v20, %v4599_v60  ;;  %v5134_v46 = vld [vmem:[%s12167_s7 + $0x3b0] sm:$0xff] (%p4163_p2)  ;;  %5558 = vmatpush.msra.mxu1 (%p4163_p2), %v5070_v3  ;;  %v5204_v8 = vld [vmem:[%s12167_s7 + $0x5e0] sm:$0xff] (%p4163_p2) }
 0x677   : > { %v4815_v51 = vpop.f32.mrf.mxu2  ;;  %v5034_v26 = vld [vmem:[%s12167_s7 + $0x90] sm:$0xff] (%p4163_p2)  ;;  %5579 = vmatpush.msra.mxu2 (%p4163_p2), %v5100_v28  ;;  %v5168_v53 = vld [vmem:[%s12167_s7 + $0x4c0] sm:$0xff] (%p4163_p2) }
 0x678   : > { %v4848_v4 = vmax.f32 %v4842_v62, %v4843_v42  ;;  %v4750_v27 = vadd.f32 %v4738_v6, %v4676_v45  ;;  %v5098_v60 = vld [vmem:[%s12167_s7 + $0x290] sm:$0xff] (%p4163_p2)  ;;  %5559 = vmatpush.msra.mxu1 (%p4163_p2), %v5068_v21  ;;  %v5032_v62 = vld [vmem:[%s12167_s7 + $0x80] sm:$0xff] (%p4163_p2) }
 0x679   :  { %v5066_v6 = vld [vmem:[%s12167_s7 + $0x190] sm:$0xff] (%p4163_p2)  ;;  %v5096_v42 = vld [vmem:[%s12167_s7 + $0x280] sm:$0xff] (%p4163_p2)  ;;  %5580 = vmatpush.msra.mxu2 (%p4163_p2), %v5098_v60 }
 0x67a   : > { %v4856_v29 = vrot.slane %v4848_v4, 1  ;;  %v4824_v52 = vadd.f32 %v4812_v47, %v4750_v27  ;;  %v5064_v47 = vld [vmem:[%s12167_s7 + $0x180] sm:$0xff] (%p4163_p2)  ;;  %5560 = vmatpush.msra.mxu1 (%p4163_p2), %v5066_v6  ;;  %v5126_v27 = vld [vmem:[%s12167_s7 + $0x370] sm:$0xff] (%p4163_p2) }
 0x67b   : > { %v4590_v36 = vpop.f32.mrf.mxu1  ;;  %v5128_v45 = vld [vmem:[%s12167_s7 + $0x380] sm:$0xff] (%p4163_p2)  ;;  %5581 = vmatpush.msra.mxu2 (%p4163_p2), %v5096_v42  ;;  %v5270_v33 = vld [vmem:[%s12167_s7 + $0x7f0] sm:$0xff] (%p4163_p2) }
 0x67c   : > { %v4864_v12 = vmax.f32 %v4848_v4, %v4856_v29  ;;  %v4600_v9 = vadd.f32 %v4590_v36, %v4526_v13  ;;  %v4836_v25 = vadd.f32 %v10342_v54, %v4824_v52  ;;  %v5030_v4 = vld [vmem:[%s12167_s7 + $0x70] sm:$0xff] (%p4163_p2)  ;;  %5561 = vmatpush.msra.mxu1 (%p4163_p2), %v5064_v47  ;;  %v5028_v36 = vld [vmem:[%s12167_s7 + $0x60] sm:$0xff] (%p4163_p2) }
 0x67d   :  { %v5094_v13 = vld [vmem:[%s12167_s7 + $0x270] sm:$0xff] (%p4163_p2)  ;;  %v5232_v0 = vld [vmem:[%s12167_s7 + $0x6c0] sm:$0xff] (%p4163_p2) }
 0x67e   : > { %v4872_v17 = vrot.slane %v4864_v12, 1  ;;  %v4880_v48 = vrot.slane %v4864_v12, 2  ;;  %v4677_v39 = vadd.f32 %v4667_v1, %v4600_v9  ;;  %v4888_v19 = vrot.slane %v4864_v12, 3  ;;  %v5140_v1 = vld [vmem:[%s12167_s7 + $0x3e0] sm:$0xff] (%p4163_p2)  ;;  %v5062_v29 = vld [vmem:[%s12167_s7 + $0x170] sm:$0xff] (%p4163_p2)  ;;  %5582 = vmatpush.msra.mxu2 (%p4163_p2), %v5094_v13 }
 0x67f   : > { %v4844_v37 = vmax.f32 %v4836_v25, 0.0  ;;  %5595 = vmatpush.msra.mxu3 (%p4163_p2), %v5140_v1  ;;  %v5060_v9 = vld [vmem:[%s12167_s7 + $0x160] sm:$0xff] (%p4163_p2)  ;;  %5562 = vmatpush.msra.mxu1 (%p4163_p2), %v5062_v29  ;;  %v5058_v52 = vld [vmem:[%s12167_s7 + $0x150] sm:$0xff] (%p4163_p2) }
 0x680   : > { %v4897_v44 = vsel %vm2896_vm1, %v4864_v12, %v4872_v17  ;;  %v4751_v30 = vadd.f32 %v4741_v24, %v4677_v39  ;;  %v5092_v12 = vld [vmem:[%s12167_s7 + $0x260] sm:$0xff] (%p4163_p2)  ;;  %v5090_v24 = vld [vmem:[%s12167_s7 + $0x250] sm:$0xff] (%p4163_p2) }
 0x681   : > { %v4902_v22 = vsel %vm2901_vm2, %v4897_v44, %v4880_v48  ;;  %5596 = vmatpush.msra.mxu3 (%p4163_p2), %v5138_v14  ;;  %v5124_v17 = vld [vmem:[%s12167_s7 + $0x360] sm:$0xff] (%p4163_p2)  ;;  %v5026_v48 = vld [vmem:[%s12167_s7 + $0x50] sm:$0xff] (%p4163_p2)  ;;  %5583 = vmatpush.msra.mxu2 (%p4163_p2), %v5092_v12 }
 0x682   : > { %v4907_v34 = vsel %vm2906_vm3, %v4902_v22, %v4888_v19  ;;  %v4825_v57 = vadd.f32 %v4815_v51, %v4751_v30  ;;  %v5122_v39 = vld [vmem:[%s12167_s7 + $0x350] sm:$0xff] (%p4163_p2)  ;;  %5563 = vmatpush.msra.mxu1 (%p4163_p2), %v5060_v9  ;;  %v5024_v19 = vld [vmem:[%s12167_s7 + $0x40] sm:$0xff] (%p4163_p2) }
 0x683   : > { %4913 = vst [vmem:[%s10352_s28 + $0x10] sm:$0xf] %v4907_v34  ;;  %5597 = vmatpush.msra.mxu3 (%p4163_p2), %v5136_v15  ;;  %v5088_v44 = vld [vmem:[%s12167_s7 + $0x240] sm:$0xff] (%p4163_p2)  ;;  %5584 = vmatpush.msra.mxu2 (%p4163_p2), %v5090_v24  ;;  %v5022_v30 = vld [vmem:[%s12167_s7 + $0x30] sm:$0xff] (%p4163_p2) }
 0x684   : > { %v4837_v41 = vadd.f32 %v10342_v54, %v4825_v57  ;;  %v5046_v54 = vld [vmem:[%s12167_s7 + $0xf0] sm:$0xff] (%p4163_p2)  ;;  %v5056_v51 = vld [vmem:[%s12167_s7 + $0x140] sm:$0xff] (%p4163_p2)  ;;  %5564 = vmatpush.msra.mxu1 (%p4163_p2), %v5058_v52 }
 0x685   :  { %5534 = vmatpush.msra.mxu0 (%p4163_p2), %v5046_v54  ;;  %5598 = vmatpush.msra.mxu3 (%p4163_p2), %v5134_v46  ;;  %v5120_v22 = vld [vmem:[%s12167_s7 + $0x340] sm:$0xff] (%p4163_p2)  ;;  %v5086_v34 = vld [vmem:[%s12167_s7 + $0x230] sm:$0xff] (%p4163_p2) }
 0x686   : > { %v4845_v20 = vmax.f32 %v4837_v41, 0.0  ;;  %5585 = vmatpush.msra.mxu2 (%p4163_p2), %v5088_v44  ;;  %v5054_v25 = vld [vmem:[%s12167_s7 + $0x130] sm:$0xff] (%p4163_p2)  ;;  %5565 = vmatpush.msra.mxu1 (%p4163_p2), %v5056_v51  ;;  %v5020_v41 = vld [vmem:[%s12167_s7 + $0x20] sm:$0xff] (%p4163_p2) }
 0x687   :  { %5535 = vmatpush.msra.mxu0 (%p4163_p2), %v5044_v55  ;;  %5599 = vmatpush.msra.mxu3 (%p4163_p2), %v5132_v10  ;;  %v5118_v57 = vld [vmem:[%s12167_s7 + $0x330] sm:$0xff] (%p4163_p2)  ;;  %v5048_v54 = vld [vmem:[%s12167_s7 + $0x100] sm:$0xff] (%p4163_p2) }
 0x688   : > { %v4849_v63 = vmax.f32 %v4844_v37, %v4845_v20  ;;  %v5084_v37 = vld [vmem:[%s12167_s7 + $0x220] sm:$0xff] (%p4163_p2)  ;;  %5586 = vmatpush.msra.mxu2 (%p4163_p2), %v5086_v34  ;;  %5566 = vmatpush.msra.mxu1 (%p4163_p2), %v5054_v25  ;;  %v5234_v40 = vld [vmem:[%s12167_s7 + $0x6d0] sm:$0xff] (%p4163_p2) }
 0x689   :  { %5536 = vmatpush.msra.mxu0 (%p4163_p2), %v5042_v50  ;;  %5600 = vmatpush.msra.mxu3 (%p4163_p2), %v5130_v32  ;;  %v5052_v20 = vld [vmem:[%s12167_s7 + $0x120] sm:$0xff] (%p4163_p2)  ;;  %v5170_v50 = vld [vmem:[%s12167_s7 + $0x4d0] sm:$0xff] (%p4163_p2) }
 0x68a   : > { %v4857_v43 = vrot.slane %v4849_v63, 1  ;;  %5587 = vmatpush.msra.mxu2 (%p4163_p2), %v5084_v37  ;;  %5567 = vmatpush.msra.mxu1 (%p4163_p2), %v5052_v20  ;;  %v5172_v55 = vld [vmem:[%s12167_s7 + $0x4e0] sm:$0xff] (%p4163_p2)  ;;  %v5266_v14 = vld [vmem:[%s12167_s7 + $0x7d0] sm:$0xff] (%p4163_p2) }
 0x68b   :  { %5537 = vmatpush.msra.mxu0 (%p4163_p2), %v5040_v35  ;;  %5601 = vmatpush.msra.mxu3 (%p4163_p2), %v5128_v45  ;;  %v5268_v1 = vld [vmem:[%s12167_s7 + $0x7e0] sm:$0xff] (%p4163_p2)  ;;  %v5202_v35 = vld [vmem:[%s12167_s7 + $0x5d0] sm:$0xff] (%p4163_p2) }
 0x68c   : > { %v4865_v56 = vmax.f32 %v4849_v63, %v4857_v43  ;;  %v5116_v63 = vld [vmem:[%s12167_s7 + $0x320] sm:$0xff] (%p4163_p2)  ;;  %v5018_v43 = vld [vmem:[%s12167_s7 + $0x10] sm:$0xff] (%p4163_p2) }
 0x68d   :  { %5538 = vmatpush.msra.mxu0 (%p4163_p2), %v5038_v7  ;;  %5602 = vmatpush.msra.mxu3 (%p4163_p2), %v5126_v27  ;;  %v5166_v59 = vld [vmem:[%s12167_s7 + $0x4b0] sm:$0xff] (%p4163_p2)  ;;  %v5200_v15 = vld [vmem:[%s12167_s7 + $0x5c0] sm:$0xff] (%p4163_p2) }
 0x68e   : > { %v4873_v18 = vrot.slane %v4865_v56, 1  ;;  %v4881_v38 = vrot.slane %v4865_v56, 2  ;;  %v4889_v23 = vrot.slane %v4865_v56, 3  ;;  %v5230_v7 = vld [vmem:[%s12167_s7 + $0x6b0] sm:$0xff] (%p4163_p2)  ;;  %v5264_v2 = vld [vmem:[%s12167_s7 + $0x7c0] sm:$0xff] (%p4163_p2) }
 0x68f   :  { %4165 = sbr.rel (!%p4163_p2) target bundleno = 1350 (0x546), region = 151  ;;  %5539 = vmatpush.msra.mxu0 (%p4163_p2), %v5036_v61  ;;  %5603 = vmatpush.msra.mxu3 (%p4163_p2), %v5124_v17  ;;  %v5164_v3 = vld [vmem:[%s12167_s7 + $0x4a0] sm:$0xff] (%p4163_p2)  ;;  %v5198_v46 = vld [vmem:[%s12167_s7 + $0x5b0] sm:$0xff] (%p4163_p2) }
 0x690   : > { %v4898_v58 = vsel %vm2896_vm1, %v4865_v56, %v4873_v18  ;;  %v5082_v56 = vld [vmem:[%s12167_s7 + $0x210] sm:$0xff] (%p4163_p2)  ;;  %v5228_v61 = vld [vmem:[%s12167_s7 + $0x6a0] sm:$0xff] (%p4163_p2) }
 0x691   : > { %v4903_v31 = vsel %vm2901_vm2, %v4898_v58, %v4881_v38  ;;  %5540 = vmatpush.msra.mxu0 (%p4163_p2), %v5034_v26  ;;  %5604 = vmatpush.msra.mxu3 (%p4163_p2), %v5122_v39  ;;  %v5050_v18 = vld [vmem:[%s12167_s7 + $0x110] sm:$0xff] (%p4163_p2)  ;;  %v5080_v58 = vld [vmem:[%s12167_s7 + $0x200] sm:$0xff] (%p4163_p2) }
 0x692   : > { %v4908_v11 = vsel %vm2906_vm3, %v4903_v31, %v4889_v23  ;;  %v5114_v38 = vld [vmem:[%s12167_s7 + $0x310] sm:$0xff] (%p4163_p2)  ;;  %v5016_v23 = vld [vmem:[%s12167_s7] sm:$0xff] (%p4163_p2)  ;;  %5588 = vmatpush.msra.mxu2 (%p4163_p2), %v5082_v56  ;;  %5568 = vmatpush.msra.mxu1 (%p4163_p2), %v5050_v18 }
 0x693   : > { %4914 = vst [vmem:[%s10352_s28 + $0x14] sm:$0xf] %v4908_v11  ;;  %5541 = vmatpush.msra.mxu0 (%p4163_p2), %v5032_v62  ;;  %5605 = vmatpush.msra.mxu3 (%p4163_p2), %v5120_v22  ;;  %v5174_v31 = vld [vmem:[%s12167_s7 + $0x4f0] sm:$0xff] (%p4163_p2)  ;;  %v5196_v10 = vld [vmem:[%s12167_s7 + $0x5a0] sm:$0xff] (%p4163_p2) }
 0x694   :  { %v5238_v11 = vld [vmem:[%s12167_s7 + $0x6f0] sm:$0xff]  ;;  %5589 = vmatpush.msra.mxu2 %v5080_v58  ;;  %5569 = vmatpush.msra.mxu1 %v5048_v54  ;;  %v5260_v60 = vld [vmem:[%s12167_s7 + $0x7a0] sm:$0xff] }
 0x695   :  { %5542 = vmatpush.msra.mxu0 %v5030_v4  ;;  %5606 = vmatpush.msra.mxu3 %v5118_v57  ;;  %v5262_v28 = vld [vmem:[%s12167_s7 + $0x7b0] sm:$0xff]  ;;  %v5160_v6 = vld [vmem:[%s12167_s7 + $0x480] sm:$0xff] }
 0x696   :  { %5654 = vmatpush.msrb.mxu2 %v5238_v11  ;;  %5634 = vmatpush.msrb.mxu1 %v5206_v16  ;;  %v5162_v21 = vld [vmem:[%s12167_s7 + $0x490] sm:$0xff]  ;;  %v5224_v62 = vld [vmem:[%s12167_s7 + $0x680] sm:$0xff] }
 0x697   :  { %5543 = vmatpush.msra.mxu0 %v5028_v36  ;;  %5607 = vmatpush.msra.mxu3 %v5116_v63  ;;  %v5226_v26 = vld [vmem:[%s12167_s7 + $0x690] sm:$0xff]  ;;  %v5192_v45 = vld [vmem:[%s12167_s7 + $0x580] sm:$0xff] }
 0x698   :  { %5655 = vmatpush.msrb.mxu2 %v5236_v5  ;;  %5635 = vmatpush.msrb.mxu1 %v5204_v8  ;;  %v5194_v32 = vld [vmem:[%s12167_s7 + $0x590] sm:$0xff]  ;;  %v5256_v13 = vld [vmem:[%s12167_s7 + $0x780] sm:$0xff] }
 0x699   :  { %5544 = vmatpush.msra.mxu0 %v5026_v48  ;;  %5608 = vmatpush.msra.mxu3 %v5114_v38  ;;  %v5258_v42 = vld [vmem:[%s12167_s7 + $0x790] sm:$0xff]  ;;  %v5156_v29 = vld [vmem:[%s12167_s7 + $0x460] sm:$0xff] }
 0x69a   :  { %5656 = vmatpush.msrb.mxu2 %v5234_v40  ;;  %5636 = vmatpush.msrb.mxu1 %v5202_v35  ;;  %v5158_v47 = vld [vmem:[%s12167_s7 + $0x470] sm:$0xff]  ;;  %v5220_v36 = vld [vmem:[%s12167_s7 + $0x660] sm:$0xff] }
 0x69b   :  { %5545 = vmatpush.msra.mxu0 %v5024_v19  ;;  %5609 = vmatpush.msra.mxu3 %v5112_v49  ;;  %v5222_v4 = vld [vmem:[%s12167_s7 + $0x670] sm:$0xff]  ;;  %v5188_v17 = vld [vmem:[%s12167_s7 + $0x560] sm:$0xff] }
 0x69c   :  { %5657 = vmatpush.msrb.mxu2 %v5232_v0  ;;  %5637 = vmatpush.msrb.mxu1 %v5200_v15  ;;  %v5190_v27 = vld [vmem:[%s12167_s7 + $0x570] sm:$0xff]  ;;  %v5252_v24 = vld [vmem:[%s12167_s7 + $0x760] sm:$0xff] }
 0x69d   :  { %5546 = vmatpush.msra.mxu0 %v5022_v30  ;;  %5674 = vmatpush.msrb.mxu3 %v5270_v33  ;;  %v5254_v12 = vld [vmem:[%s12167_s7 + $0x770] sm:$0xff]  ;;  %v5152_v52 = vld [vmem:[%s12167_s7 + $0x440] sm:$0xff] }
 0x69e   :  { %5658 = vmatpush.msrb.mxu2 %v5230_v7  ;;  %5638 = vmatpush.msrb.mxu1 %v5198_v46  ;;  %v5154_v9 = vld [vmem:[%s12167_s7 + $0x450] sm:$0xff]  ;;  %v5216_v19 = vld [vmem:[%s12167_s7 + $0x640] sm:$0xff] }
 0x69f   :  { %5547 = vmatpush.msra.mxu0 %v5020_v41  ;;  %5675 = vmatpush.msrb.mxu3 %v5268_v1  ;;  %v5218_v48 = vld [vmem:[%s12167_s7 + $0x650] sm:$0xff]  ;;  %v5184_v22 = vld [vmem:[%s12167_s7 + $0x540] sm:$0xff] }
 0x6a0   :  { %5659 = vmatpush.msrb.mxu2 %v5228_v61  ;;  %5639 = vmatpush.msrb.mxu1 %v5196_v10  ;;  %v5186_v39 = vld [vmem:[%s12167_s7 + $0x550] sm:$0xff]  ;;  %v5248_v34 = vld [vmem:[%s12167_s7 + $0x740] sm:$0xff] }
 0x6a1   :  { %5548 = vmatpush.msra.mxu0 %v5018_v43  ;;  %5676 = vmatpush.msrb.mxu3 %v5266_v14  ;;  %v5250_v44 = vld [vmem:[%s12167_s7 + $0x750] sm:$0xff]  ;;  %v4915_v25 = vld [vmem:[#allocation4] sm:$0xf] }
 0x6a2   :  { %5660 = vmatpush.msrb.mxu2 %v5226_v26  ;;  %5640 = vmatpush.msrb.mxu1 %v5194_v32  ;;  %v5150_v51 = vld [vmem:[%s12167_s7 + $0x430] sm:$0xff]  ;;  %v5148_v41 = vld [vmem:[%s12167_s7 + $0x420] sm:$0xff]  ;;  %v4926_v38 = vrot.slane %v4915_v25, 2  ;;  %v4924_v16 = vrot.slane %v4915_v25, 1  ;;  %v4928_v5 = vrot.slane %v4915_v25, 3 }
 0x6a3   :  { %5549 = vmatpush.msra.mxu0 %v5016_v23  ;;  %5677 = vmatpush.msrb.mxu3 %v5264_v2  ;;  %v5214_v30 = vld [vmem:[%s12167_s7 + $0x630] sm:$0xff]  ;;  %v5212_v20 = vld [vmem:[%s12167_s7 + $0x620] sm:$0xff] }
 0x6a4   :  { %5661 = vmatpush.msrb.mxu2 %v5224_v62  ;;  %5641 = vmatpush.msrb.mxu1 %v5192_v45  ;;  %v4919_v57 = vld [vmem:[#allocation4 + $0x10] sm:$0xf]  ;;  %v5180_v56 = vld [vmem:[%s12167_s7 + $0x520] sm:$0xff]  ;;  %v4920_v15 = vld [vmem:[#allocation4 + $0x14] sm:$0xf] }
 0x6a5   :  { %5614 = vmatpush.msrb.mxu0 %v5174_v31  ;;  %5678 = vmatpush.msrb.mxu3 %v5262_v28  ;;  %v5182_v37 = vld [vmem:[%s12167_s7 + $0x530] sm:$0xff]  ;;  %v4967_v18 = vrot.slane %v4919_v57, 7  ;;  %v7290_v23 = vrot.slane %v4919_v57, 9  ;;  %v5244_v31 = vld [vmem:[%s12167_s7 + $0x720] sm:$0xff]  ;;  %v7291_v33 = vrot.slane %v4919_v57, 10  ;;  %v10783_v0 = vsel %vm2896_vm1, %v4924_v16, %v4919_v57 }
 0x6a6   :  { %5662 = vmatpush.msrb.mxu2 %v5222_v4  ;;  %5642 = vmatpush.msrb.mxu1 %v5190_v27  ;;  %v5246_v63 = vld [vmem:[%s12167_s7 + $0x730] sm:$0xff]  ;;  %v5144_v11 = vld [vmem:[%s12167_s7 + $0x400] sm:$0xff]  ;;  %v7293_v10 = vrot.slane %v4920_v15, 9  ;;  %v4971_v62 = vrot.slane %v4920_v15, 7  ;;  %v7294_v4 = vrot.slane %v4920_v15, 10 }
 0x6a7   :  { %5615 = vmatpush.msrb.mxu0 %v5172_v55  ;;  %5679 = vmatpush.msrb.mxu3 %v5260_v60  ;;  %v5146_v43 = vld [vmem:[%s12167_s7 + $0x410] sm:$0xff]  ;;  %v5208_v49 = vld [vmem:[%s12167_s7 + $0x600] sm:$0xff]  ;;  %v10766_v8 = vsel %vm2896_vm1, %v4926_v38, %v7290_v23  ;;  %v10786_v14 = vsel %vm2896_vm1, %v4928_v5, %v7291_v33 }
 0x6a8   :  { %5663 = vmatpush.msrb.mxu2 %v5220_v36  ;;  %5643 = vmatpush.msrb.mxu1 %v5188_v17  ;;  %v5210_v58 = vld [vmem:[%s12167_s7 + $0x610] sm:$0xff]  ;;  %v5240_v35 = vld [vmem:[%s12167_s7 + $0x700] sm:$0xff] }
 0x6a9   :  { %5616 = vmatpush.msrb.mxu0 %v5170_v50  ;;  %5680 = vmatpush.msrb.mxu3 %v5258_v42  ;;  %v5178_v54 = vld [vmem:[%s12167_s7 + $0x510] sm:$0xff]  ;;  %v10763_v50 = vsel %vm2896_vm1, %v4915_v25, %v4967_v18  ;;  %v5300_v7 = vld [vmem:[%s12167_s7 + $0x8e0] sm:$0xff] }
 0x6aa   :  { %5664 = vmatpush.msrb.mxu2 %v5218_v48  ;;  %5644 = vmatpush.msrb.mxu1 %v5186_v39  ;;  %v5242_v55 = vld [vmem:[%s12167_s7 + $0x710] sm:$0xff]  ;;  %v5332_v28 = vld [vmem:[%s12167_s7 + $0x9e0] sm:$0xff] }
 0x6ab   :  { %5617 = vmatpush.msrb.mxu0 %v5168_v53  ;;  %5681 = vmatpush.msrb.mxu3 %v5256_v13  ;;  %v5302_v40 = vld [vmem:[%s12167_s7 + $0x8f0] sm:$0xff]  ;;  %v5176_v53 = vld [vmem:[%s12167_s7 + $0x500] sm:$0xff] }
 0x6ac   :  { %5665 = vmatpush.msrb.mxu2 %v5216_v19  ;;  %5645 = vmatpush.msrb.mxu1 %v5184_v22  ;;  %v5366_v1 = vld [vmem:[%s12167_s7 + $0xaf0] sm:$0xff]  ;;  %v5396_v60 = vld [vmem:[%s12167_s7 + $0xbe0] sm:$0xff] }
 0x6ad   :  { %5618 = vmatpush.msrb.mxu0 %v5166_v59  ;;  %5682 = vmatpush.msrb.mxu3 %v5254_v12  ;;  %v4916_v59 = vld [vmem:[#allocation4 + $0x4] sm:$0xf]  ;;  %v5334_v2 = vld [vmem:[%s12167_s7 + $0x9f0] sm:$0xff] }
 0x6ae   :  { %5666 = vmatpush.msrb.mxu2 %v5214_v30  ;;  %5646 = vmatpush.msrb.mxu1 %v5182_v37  ;;  %v5398_v46 = vld [vmem:[%s12167_s7 + $0xbf0] sm:$0xff]  ;;  %v5360_v42 = vld [vmem:[%s12167_s7 + $0xac0] sm:$0xff]  ;;  %v4935_v45 = vrot.slane %v4916_v59, 3  ;;  %v4931_v12 = vrot.slane %v4916_v59, 1  ;;  %v10842_v17 = vsel %vm2896_vm1, %v4916_v59, %v4971_v62 }
 0x6af   :  { %5619 = vmatpush.msrb.mxu0 %v5164_v3  ;;  %5683 = vmatpush.msrb.mxu3 %v5252_v24  ;;  %v5364_v3 = vld [vmem:[%s12167_s7 + $0xae0] sm:$0xff]  ;;  %v5298_v61 = vld [vmem:[%s12167_s7 + $0x8d0] sm:$0xff] }
 0x6b0   :  { %5667 = vmatpush.msrb.mxu2 %v5212_v20  ;;  %5647 = vmatpush.msrb.mxu1 %v5180_v56  ;;  %v5362_v26 = vld [vmem:[%s12167_s7 + $0xad0] sm:$0xff]  ;;  %v5328_v27 = vld [vmem:[%s12167_s7 + $0x9c0] sm:$0xff]  ;;  %v10846_v48 = vsel %vm2896_vm1, %v4935_v45, %v7294_v4 }
 0x6b1   :  { %5620 = vmatpush.msrb.mxu0 %v5162_v21  ;;  %5684 = vmatpush.msrb.mxu3 %v5250_v44  ;;  %v4933_v21 = vrot.slane %v4916_v59, 2  ;;  %v5330_v32 = vld [vmem:[%s12167_s7 + $0x9d0] sm:$0xff]  ;;  %v5292_v24 = vld [vmem:[%s12167_s7 + $0x8a0] sm:$0xff]  ;;  %v10862_v44 = vsel %vm2896_vm1, %v4931_v12, %v4920_v15  ;;  %v4917_v59 = vld [vmem:[#allocation4 + $0x8] sm:$0xf] }
 0x6b2   :  { %5668 = vmatpush.msrb.mxu2 %v5210_v58  ;;  %5648 = vmatpush.msrb.mxu1 %v5178_v54  ;;  %v5358_v36 = vld [vmem:[%s12167_s7 + $0xab0] sm:$0xff]  ;;  %v5356_v39 = vld [vmem:[%s12167_s7 + $0xaa0] sm:$0xff]  ;;  %v4921_v15 = vld [vmem:[#allocation4 + $0x18] sm:$0xf]  ;;  %v4938_v45 = vrot.slane %v4917_v59, 1  ;;  %v4942_v4 = vrot.slane %v4917_v59, 3 }
 0x6b3   :  { %5621 = vmatpush.msrb.mxu0 %v5160_v6  ;;  %5685 = vmatpush.msrb.mxu3 %v5248_v34  ;;  %v5296_v6 = vld [vmem:[%s12167_s7 + $0x8c0] sm:$0xff]  ;;  %v10827_v13 = vsel %vm2896_vm1, %v4933_v21, %v7293_v10  ;;  %v5390_v19 = vld [vmem:[%s12167_s7 + $0xbb0] sm:$0xff]  ;;  %v4975_v21 = vrot.slane %v4921_v15, 7  ;;  %v4940_v10 = vrot.slane %v4917_v59, 2 }
 0x6b4   :  { %5669 = vmatpush.msrb.mxu2 %v5208_v49  ;;  %5550 = vmatmul.f32.vlgmr.msra.gmra.mxu0 %v10763_v50  ;;  %v5324_v22 = vld [vmem:[%s12167_s7 + $0x9a0] sm:$0xff]  ;;  %v5354_v30 = vld [vmem:[%s12167_s7 + $0xa90] sm:$0xff] }
 0x6b5   :  { %5622 = vmatpush.msrb.mxu0 %v5158_v47  ;;  %5686 = vmatpush.msrb.mxu3 %v5246_v63  ;;  %v5394_v47 = vld [vmem:[%s12167_s7 + $0xbd0] sm:$0xff]  ;;  %v5388_v34 = vld [vmem:[%s12167_s7 + $0xba0] sm:$0xff] }
 0x6b6   :  { %5590 = vmatmul.f32.vlgmr.msra.gmra.mxu2 %v10766_v8  ;;  %5649 = vmatpush.msrb.mxu1 %v5176_v53  ;;  %v5288_v25 = vld [vmem:[%s12167_s7 + $0x880] sm:$0xff]  ;;  %v5322_v57 = vld [vmem:[%s12167_s7 + $0x990] sm:$0xff] }
 0x6b7   :  { %5623 = vmatpush.msrb.mxu0 %v5156_v29  ;;  %5687 = vmatpush.msrb.mxu3 %v5244_v31  ;;  %v5294_v29 = vld [vmem:[%s12167_s7 + $0x8b0] sm:$0xff]  ;;  %v5320_v63 = vld [vmem:[%s12167_s7 + $0x980] sm:$0xff] }
 0x6b8   :  { %5734 = vmatpush.msra.mxu2 %v5366_v1  ;;  %5570 = vmatmul.f32.vlgmr.msra.gmra.mxu1 %v10783_v0  ;;  %v5386_v37 = vld [vmem:[%s12167_s7 + $0xb90] sm:$0xff]  ;;  %v5384_v56 = vld [vmem:[%s12167_s7 + $0xb80] sm:$0xff] }
 0x6b9   :  { %5624 = vmatpush.msrb.mxu0 %v5154_v9  ;;  %5688 = vmatpush.msrb.mxu3 %v5242_v55  ;;  %v5392_v9 = vld [vmem:[%s12167_s7 + $0xbc0] sm:$0xff]  ;;  %v5286_v20 = vld [vmem:[%s12167_s7 + $0x870] sm:$0xff] }
 0x6ba   :  { %5610 = vmatmul.f32.vlgmr.msra.gmra.mxu3 %v10786_v14  ;;  %5714 = vmatpush.msra.mxu1 %v5334_v2  ;;  %v5284_v18 = vld [vmem:[%s12167_s7 + $0x860] sm:$0xff]  ;;  %v5318_v38 = vld [vmem:[%s12167_s7 + $0x970] sm:$0xff] }
 0x6bb   :  { %5625 = vmatpush.msrb.mxu0 %v5152_v52  ;;  %5689 = vmatpush.msrb.mxu3 %v5240_v35  ;;  %v5326_v52 = vld [vmem:[%s12167_s7 + $0x9b0] sm:$0xff]  ;;  %v5348_v23 = vld [vmem:[%s12167_s7 + $0xa60] sm:$0xff] }
 0x6bc   :  { %5735 = vmatpush.msra.mxu2 %v5364_v3  ;;  %5715 = vmatpush.msra.mxu1 %v5332_v28  ;;  %v5382_v58 = vld [vmem:[%s12167_s7 + $0xb70] sm:$0xff]  ;;  %v5380_v49 = vld [vmem:[%s12167_s7 + $0xb60] sm:$0xff] }
 0x6bd   :  { %5626 = vmatpush.msrb.mxu0 %v5150_v51  ;;  %5754 = vmatpush.msra.mxu3 %v5398_v46  ;;  %v5290_v51 = vld [vmem:[%s12167_s7 + $0x890] sm:$0xff]  ;;  %v5280_v55 = vld [vmem:[%s12167_s7 + $0x840] sm:$0xff] }
 0x6be   :  { %5736 = vmatpush.msra.mxu2 %v5362_v26  ;;  %5716 = vmatpush.msra.mxu1 %v5330_v32  ;;  %v5282_v31 = vld [vmem:[%s12167_s7 + $0x850] sm:$0xff]  ;;  %v5344_v5 = vld [vmem:[%s12167_s7 + $0xa40] sm:$0xff]  ;;  %v7296_v26 = vrot.slane %v4921_v15, 9 }
 0x6bf   :  { %5627 = vmatpush.msrb.mxu0 %v5148_v41  ;;  %5755 = vmatpush.msra.mxu3 %v5396_v60  ;;  %v5352_v41 = vld [vmem:[%s12167_s7 + $0xa80] sm:$0xff]  ;;  %v5346_v54 = vld [vmem:[%s12167_s7 + $0xa50] sm:$0xff] }
 0x6c0   :  { %5737 = vmatpush.msra.mxu2 %v5360_v42  ;;  %5717 = vmatpush.msra.mxu1 %v5328_v27  ;;  %v5314_v16 = vld [vmem:[%s12167_s7 + $0x950] sm:$0xff]  ;;  %v5312_v1 = vld [vmem:[%s12167_s7 + $0x940] sm:$0xff]  ;;  %v10987_v27 = vsel %vm2896_vm1, %v4917_v59, %v4975_v21 }
 0x6c1   :  { %5628 = vmatpush.msrb.mxu0 %v5146_v43  ;;  %5756 = vmatpush.msra.mxu3 %v5394_v47  ;;  %v5350_v43 = vld [vmem:[%s12167_s7 + $0xa70] sm:$0xff]  ;;  %v5376_v35 = vld [vmem:[%s12167_s7 + $0xb40] sm:$0xff] }
 0x6c2   :  { %5670 = vmatmul.f32.vlgmr.msrb.gmra.mxu2 %v10827_v13  ;;  %5690 = vmatmul.f32.vlgmr.msrb.gmra.mxu3 %v10846_v48  ;;  %v5378_v33 = vld [vmem:[%s12167_s7 + $0xb50] sm:$0xff]  ;;  %v5340_v3 = vld [vmem:[%s12167_s7 + $0xa20] sm:$0xff] }
 0x6c3   :  { %5629 = vmatpush.msrb.mxu0 %v5144_v11  ;;  %5738 = vmatpush.msra.mxu2 %v5358_v36  ;;  %v5316_v11 = vld [vmem:[%s12167_s7 + $0x960] sm:$0xff]  ;;  %v5342_v53 = vld [vmem:[%s12167_s7 + $0xa30] sm:$0xff]  ;;  %v10990_v36 = vsel %vm2896_vm1, %v4940_v10, %v7296_v26 }
 0x6c4   :  { %5757 = vmatpush.msra.mxu3 %v5392_v9  ;;  %5630 = vmatmul.f32.vlgmr.msrb.gmra.mxu0 %v10842_v17  ;;  %v5310_v2 = vld [vmem:[%s12167_s7 + $0x930] sm:$0xff]  ;;  %v5308_v28 = vld [vmem:[%s12167_s7 + $0x920] sm:$0xff] }
 0x6c5   :  { %5694 = vmatpush.msra.mxu0 %v5302_v40  ;;  %5718 = vmatpush.msra.mxu1 %v5326_v52  ;;  %v5278_v40 = vld [vmem:[%s12167_s7 + $0x830] sm:$0xff]  ;;  %v5272_v32 = vld [vmem:[%s12167_s7 + $0x800] sm:$0xff] }
 0x6c6   :  { %5739 = vmatpush.msra.mxu2 %v5356_v39  ;;  %5758 = vmatpush.msra.mxu3 %v5390_v19  ;;  %v5374_v46 = vld [vmem:[%s12167_s7 + $0xb30] sm:$0xff]  ;;  %v5336_v42 = vld [vmem:[%s12167_s7 + $0xa00] sm:$0xff]  ;;  %v11007_v39 = vsel %vm2896_vm1, %v4938_v45, %v4921_v15 }
 0x6c7   :  { %5695 = vmatpush.msra.mxu0 %v5300_v7  ;;  %5650 = vmatmul.f32.vlgmr.msrb.gmra.mxu1 %v10862_v44  ;;  %v5276_v7 = vld [vmem:[%s12167_s7 + $0x820] sm:$0xff]  ;;  %v5338_v60 = vld [vmem:[%s12167_s7 + $0xa10] sm:$0xff] }
 0x6c8   :  { %5719 = vmatpush.msra.mxu1 %v5324_v22  ;;  %5740 = vmatpush.msra.mxu2 %v5354_v30  ;;  %v5306_v62 = vld [vmem:[%s12167_s7 + $0x910] sm:$0xff]  ;;  %v5368_v52 = vld [vmem:[%s12167_s7 + $0xb00] sm:$0xff] }
 0x6c9   :  { %5696 = vmatpush.msra.mxu0 %v5298_v61  ;;  %5759 = vmatpush.msra.mxu3 %v5388_v34  ;;  %v5274_v61 = vld [vmem:[%s12167_s7 + $0x810] sm:$0xff]  ;;  %v5492_v30 = vld [vmem:[%s12167_s7 + $0xee0] sm:$0xff] }
 0x6ca   :  { %5720 = vmatpush.msra.mxu1 %v5322_v57  ;;  %5741 = vmatpush.msra.mxu2 %v5352_v41  ;;  %v5370_v47 = vld [vmem:[%s12167_s7 + $0xb10] sm:$0xff]  ;;  %v5460_v57 = vld [vmem:[%s12167_s7 + $0xde0] sm:$0xff] }
 0x6cb   :  { %5697 = vmatpush.msra.mxu0 %v5296_v6  ;;  %5760 = vmatpush.msra.mxu3 %v5386_v37  ;;  %v5372_v6 = vld [vmem:[%s12167_s7 + $0xb20] sm:$0xff]  ;;  %v5430_v12 = vld [vmem:[%s12167_s7 + $0xcf0] sm:$0xff] }
 0x6cc   :  { %5721 = vmatpush.msra.mxu1 %v5320_v63  ;;  %5742 = vmatpush.msra.mxu2 %v5350_v43  ;;  %v5494_v9 = vld [vmem:[%s12167_s7 + $0xef0] sm:$0xff]  ;;  %v5524_v37 = vld [vmem:[%s12167_s7 + $0xfe0] sm:$0xff] }
 0x6cd   :  { %5698 = vmatpush.msra.mxu0 %v5294_v29  ;;  %5761 = vmatpush.msra.mxu3 %v5384_v56  ;;  %v7297_v29 = vrot.slane %v4921_v15, 10  ;;  %v5462_v22 = vld [vmem:[%s12167_s7 + $0xdf0] sm:$0xff]  ;;  %v5488_v43 = vld [vmem:[%s12167_s7 + $0xec0] sm:$0xff] }
 0x6ce   :  { %5722 = vmatpush.msra.mxu1 %v5318_v38  ;;  %5743 = vmatpush.msra.mxu2 %v5348_v23  ;;  %v5526_v34 = vld [vmem:[%s12167_s7 + $0xff0] sm:$0xff]  ;;  %v5456_v38 = vld [vmem:[%s12167_s7 + $0xdc0] sm:$0xff] }
 0x6cf   :  { %5699 = vmatpush.msra.mxu0 %v5292_v24  ;;  %5762 = vmatpush.msra.mxu3 %v5382_v58  ;;  %v5304_v24 = vld [vmem:[%s12167_s7 + $0x900] sm:$0xff]  ;;  %v11010_v19 = vsel %vm2896_vm1, %v4942_v4, %v7297_v29  ;;  %v5490_v41 = vld [vmem:[%s12167_s7 + $0xed0] sm:$0xff] }
 0x6d0   :  { %5723 = vmatpush.msra.mxu1 %v5316_v11  ;;  %5744 = vmatpush.msra.mxu2 %v5346_v54  ;;  %v5458_v63 = vld [vmem:[%s12167_s7 + $0xdd0] sm:$0xff]  ;;  %v5520_v58 = vld [vmem:[%s12167_s7 + $0xfc0] sm:$0xff] }
 0x6d1   :  { %5700 = vmatpush.msra.mxu0 %v5290_v51  ;;  %5763 = vmatpush.msra.mxu3 %v5380_v49  ;;  %v5428_v51 = vld [vmem:[%s12167_s7 + $0xce0] sm:$0xff]  ;;  %v5522_v56 = vld [vmem:[%s12167_s7 + $0xfd0] sm:$0xff] }
 0x6d2   :  { %5724 = vmatpush.msra.mxu1 %v5314_v16  ;;  %5745 = vmatpush.msra.mxu2 %v5344_v5  ;;  %v5486_v23 = vld [vmem:[%s12167_s7 + $0xeb0] sm:$0xff]  ;;  %v5484_v54 = vld [vmem:[%s12167_s7 + $0xea0] sm:$0xff] }
 0x6d3   :  { %5701 = vmatpush.msra.mxu0 %v5288_v25  ;;  %5764 = vmatpush.msra.mxu3 %v5378_v33  ;;  %v5426_v25 = vld [vmem:[%s12167_s7 + $0xcd0] sm:$0xff]  ;;  %v5452_v16 = vld [vmem:[%s12167_s7 + $0xda0] sm:$0xff] }
 0x6d4   :  { %5725 = vmatpush.msra.mxu1 %v5312_v1  ;;  %5746 = vmatpush.msra.mxu2 %v5342_v53  ;;  %v5454_v11 = vld [vmem:[%s12167_s7 + $0xdb0] sm:$0xff]  ;;  %v5516_v33 = vld [vmem:[%s12167_s7 + $0xfa0] sm:$0xff] }
 0x6d5   :  { %5702 = vmatpush.msra.mxu0 %v5286_v20  ;;  %5765 = vmatpush.msra.mxu3 %v5376_v35  ;;  %v5424_v20 = vld [vmem:[%s12167_s7 + $0xcc0] sm:$0xff]  ;;  %v5518_v49 = vld [vmem:[%s12167_s7 + $0xfb0] sm:$0xff] }
 0x6d6   :  { %5726 = vmatpush.msra.mxu1 %v5310_v2  ;;  %5747 = vmatpush.msra.mxu2 %v5340_v3  ;;  %v5482_v5 = vld [vmem:[%s12167_s7 + $0xe90] sm:$0xff]  ;;  %v5480_v53 = vld [vmem:[%s12167_s7 + $0xe80] sm:$0xff] }
 0x6d7   :  { %5703 = vmatpush.msra.mxu0 %v5284_v18  ;;  %5766 = vmatpush.msra.mxu3 %v5374_v46  ;;  %v5422_v18 = vld [vmem:[%s12167_s7 + $0xcb0] sm:$0xff]  ;;  %v5448_v15 = vld [vmem:[%s12167_s7 + $0xd80] sm:$0xff] }
 0x6d8   :  { %5727 = vmatpush.msra.mxu1 %v5308_v28  ;;  %5748 = vmatpush.msra.mxu2 %v5338_v60  ;;  %v5450_v1 = vld [vmem:[%s12167_s7 + $0xd90] sm:$0xff]  ;;  %v5512_v2 = vld [vmem:[%s12167_s7 + $0xf80] sm:$0xff] }
 0x6d9   :  { %5704 = vmatpush.msra.mxu0 %v5282_v31  ;;  %5767 = vmatpush.msra.mxu3 %v5372_v6  ;;  %v5420_v31 = vld [vmem:[%s12167_s7 + $0xca0] sm:$0xff]  ;;  %v5514_v35 = vld [vmem:[%s12167_s7 + $0xf90] sm:$0xff] }
 0x6da   :  { %5728 = vmatpush.msra.mxu1 %v5306_v62  ;;  %5749 = vmatpush.msra.mxu2 %v5336_v42  ;;  %v5414_v59 = vld [vmem:[%s12167_s7 + $0xc70] sm:$0xff]  ;;  %v5412_v3 = vld [vmem:[%s12167_s7 + $0xc60] sm:$0xff] }
 0x6db   :  { %5705 = vmatpush.msra.mxu0 %v5280_v55  ;;  %5768 = vmatpush.msra.mxu3 %v5370_v47  ;;  %v5418_v55 = vld [vmem:[%s12167_s7 + $0xc90] sm:$0xff]  ;;  %v5444_v10 = vld [vmem:[%s12167_s7 + $0xd60] sm:$0xff] }
 0x6dc   :  { %5750 = vmatmul.f32.vlgmr.msra.gmra.mxu2 %v10990_v36  ;;  %5729 = vmatpush.msra.mxu1 %v5304_v24  ;;  %v5446_v46 = vld [vmem:[%s12167_s7 + $0xd70] sm:$0xff]  ;;  %v5508_v60 = vld [vmem:[%s12167_s7 + $0xf60] sm:$0xff] }
 0x6dd   :  { %5706 = vmatpush.msra.mxu0 %v5278_v40  ;;  %5814 = vmatpush.msrb.mxu2 %v5494_v9  ;;  %v5416_v40 = vld [vmem:[%s12167_s7 + $0xc80] sm:$0xff]  ;;  %v5510_v28 = vld [vmem:[%s12167_s7 + $0xf70] sm:$0xff]  ;;  %v4922_v9 = vld [vmem:[#allocation4 + $0x1c] sm:$0xf] }
 0x6de   :  { %5769 = vmatpush.msra.mxu3 %v5368_v52  ;;  %5730 = vmatmul.f32.vlgmr.msra.gmra.mxu1 %v11007_v39  ;;  %v5410_v21 = vld [vmem:[%s12167_s7 + $0xc50] sm:$0xff]  ;;  %v5408_v6 = vld [vmem:[%s12167_s7 + $0xc40] sm:$0xff] }
 0x6df   :  { %5707 = vmatpush.msra.mxu0 %v5276_v7  ;;  %5770 = vmatmul.f32.vlgmr.msra.gmra.mxu3 %v11010_v19  ;;  %v5478_v7 = vld [vmem:[%s12167_s7 + $0xe70] sm:$0xff]  ;;  %v5472_v62 = vld [vmem:[%s12167_s7 + $0xe40] sm:$0xff] }
 0x6e0   :  { %5794 = vmatpush.msrb.mxu1 %v5462_v22  ;;  %5815 = vmatpush.msrb.mxu2 %v5492_v30  ;;  %v5474_v26 = vld [vmem:[%s12167_s7 + $0xe50] sm:$0xff]  ;;  %v5440_v45 = vld [vmem:[%s12167_s7 + $0xd40] sm:$0xff] }
 0x6e1   :  { %5708 = vmatpush.msra.mxu0 %v5274_v61  ;;  %5834 = vmatpush.msrb.mxu3 %v5526_v34  ;;  %v5476_v61 = vld [vmem:[%s12167_s7 + $0xe60] sm:$0xff]  ;;  %v5506_v42 = vld [vmem:[%s12167_s7 + $0xf50] sm:$0xff] }
 0x6e2   :  { %5795 = vmatpush.msrb.mxu1 %v5460_v57  ;;  %5816 = vmatpush.msrb.mxu2 %v5490_v41  ;;  %v5406_v47 = vld [vmem:[%s12167_s7 + $0xc30] sm:$0xff]  ;;  %v5504_v29 = vld [vmem:[%s12167_s7 + $0xf40] sm:$0xff]  ;;  %v7299_v41 = vrot.slane %v4922_v9, 9 }
 0x6e3   :  { %5709 = vmatpush.msra.mxu0 %v5272_v32  ;;  %5835 = vmatpush.msrb.mxu3 %v5524_v37  ;;  %v5442_v32 = vld [vmem:[%s12167_s7 + $0xd50] sm:$0xff]  ;;  %v5404_v24 = vld [vmem:[%s12167_s7 + $0xc20] sm:$0xff] }
 0x6e4   :  { %5710 = vmatmul.f32.vlgmr.msra.gmra.mxu0 %v10987_v27  ;;  %5796 = vmatpush.msrb.mxu1 %v5458_v63  ;;  %v5470_v4 = vld [vmem:[%s12167_s7 + $0xe30] sm:$0xff]  ;;  %v5436_v34 = vld [vmem:[%s12167_s7 + $0xd20] sm:$0xff] }
 0x6e5   :  { %5774 = vmatpush.msrb.mxu0 %v5430_v12  ;;  %5817 = vmatpush.msrb.mxu2 %v5488_v43  ;;  %v4918_v12 = vld [vmem:[#allocation4 + $0xc] sm:$0xf]  ;;  %v5438_v52 = vld [vmem:[%s12167_s7 + $0xd30] sm:$0xff]  ;;  %v5400_v63 = vld [vmem:[%s12167_s7 + $0xc00] sm:$0xff] }
 0x6e6   :  { %5836 = vmatpush.msrb.mxu3 %v5522_v56  ;;  %5797 = vmatpush.msrb.mxu1 %v5456_v38  ;;  %v5502_v22 = vld [vmem:[%s12167_s7 + $0xf30] sm:$0xff]  ;;  %v4947_v57 = vrot.slane %v4918_v12, 2  ;;  %v5464_v56 = vld [vmem:[%s12167_s7 + $0xe00] sm:$0xff]  ;;  %v4945_v38 = vrot.slane %v4918_v12, 1 }
 0x6e7   :  { %5775 = vmatpush.msrb.mxu0 %v5428_v51  ;;  %5818 = vmatpush.msrb.mxu2 %v5486_v23  ;;  %v5468_v51 = vld [vmem:[%s12167_s7 + $0xe20] sm:$0xff]  ;;  %v5402_v30 = vld [vmem:[%s12167_s7 + $0xc10] sm:$0xff]  ;;  %v4949_v23 = vrot.slane %v4918_v12, 3 }
 0x6e8   :  { %5837 = vmatpush.msrb.mxu3 %v5520_v58  ;;  %5798 = vmatpush.msrb.mxu1 %v5454_v11  ;;  %v5466_v37 = vld [vmem:[%s12167_s7 + $0xe10] sm:$0xff]  ;;  %v7300_v58 = vrot.slane %v4922_v9, 10  ;;  %v11198_v11 = vsel %vm2896_vm1, %v4947_v57, %v7299_v41  ;;  %v5063_v57 = vld [vmem:[%s12167_s7 + $0x178] sm:$0xff]  ;;  %v5093_v41 = vld [vmem:[%s12167_s7 + $0x268] sm:$0xff] }
 0x6e9   :  { %5776 = vmatpush.msrb.mxu0 %v5426_v25  ;;  %5819 = vmatpush.msrb.mxu2 %v5484_v54  ;;  %v4979_v25 = vrot.slane %v4922_v9, 7  ;;  %v5434_v43 = vld [vmem:[%s12167_s7 + $0xd10] sm:$0xff]  ;;  %v5047_v54 = vld [vmem:[%s12167_s7 + $0xf8] sm:$0xff] }
 0x6ea   :  { %5838 = vmatpush.msrb.mxu3 %v5518_v49  ;;  %5799 = vmatpush.msrb.mxu1 %v5452_v16  ;;  %v5111_v49 = vld [vmem:[%s12167_s7 + $0x2f8] sm:$0xff]  ;;  %v5496_v16 = vld [vmem:[%s12167_s7 + $0xf00] sm:$0xff] }
 0x6eb   :  { %5777 = vmatpush.msrb.mxu0 %v5424_v20  ;;  %5820 = vmatpush.msrb.mxu2 %v5482_v5  ;;  %v5500_v20 = vld [vmem:[%s12167_s7 + $0xf20] sm:$0xff]  ;;  %v11215_v5 = vsel %vm2896_vm1, %v4945_v38, %v4922_v9  ;;  %v5067_v9 = vld [vmem:[%s12167_s7 + $0x198] sm:$0xff] }
 0x6ec   :  { %5839 = vmatpush.msrb.mxu3 %v5516_v33  ;;  %5800 = vmatpush.msrb.mxu1 %v5450_v1  ;;  %v11218_v33 = vsel %vm2896_vm1, %v4949_v23, %v7300_v58  ;;  %v5079_v1 = vld [vmem:[%s12167_s7 + $0x1f8] sm:$0xff]  ;;  %v5089_v23 = vld [vmem:[%s12167_s7 + $0x248] sm:$0xff] }
 0x6ed   :  { %5778 = vmatpush.msrb.mxu0 %v5422_v18  ;;  %5821 = vmatpush.msrb.mxu2 %v5480_v53  ;;  %v5498_v18 = vld [vmem:[%s12167_s7 + $0xf10] sm:$0xff]  ;;  %v5109_v53 = vld [vmem:[%s12167_s7 + $0x2e8] sm:$0xff]  ;;  %v5059_v38 = vld [vmem:[%s12167_s7 + $0x158] sm:$0xff] }
 0x6ee   :  { %5840 = vmatpush.msrb.mxu3 %v5514_v35  ;;  %5801 = vmatpush.msrb.mxu1 %v5448_v15  ;;  %v5143_v35 = vld [vmem:[%s12167_s7 + $0x3f8] sm:$0xff]  ;;  %v5077_v15 = vld [vmem:[%s12167_s7 + $0x1e8] sm:$0xff] }
 0x6ef   :  { %5779 = vmatpush.msrb.mxu0 %v5420_v31  ;;  %5822 = vmatpush.msrb.mxu2 %v5478_v7  ;;  %v11195_v31 = vsel %vm2896_vm1, %v4918_v12, %v4979_v25  ;;  %v5107_v7 = vld [vmem:[%s12167_s7 + $0x2d8] sm:$0xff]  ;;  %v5033_v12 = vld [vmem:[%s12167_s7 + $0x88] sm:$0xff] }
 0x6f0   :  { %5841 = vmatpush.msrb.mxu3 %v5512_v2  ;;  %5802 = vmatpush.msrb.mxu1 %v5446_v46  ;;  %v5141_v2 = vld [vmem:[%s12167_s7 + $0x3e8] sm:$0xff]  ;;  %v5075_v46 = vld [vmem:[%s12167_s7 + $0x1d8] sm:$0xff] }
 0x6f1   :  { %5780 = vmatpush.msrb.mxu0 %v5418_v55  ;;  %5823 = vmatpush.msrb.mxu2 %v5476_v61  ;;  %v5432_v55 = vld [vmem:[%s12167_s7 + $0xd00] sm:$0xff]  ;;  %v5105_v61 = vld [vmem:[%s12167_s7 + $0x2c8] sm:$0xff]  ;;  %v5123_v58 = vld [vmem:[%s12167_s7 + $0x358] sm:$0xff] }
 0x6f2   :  { %5842 = vmatpush.msrb.mxu3 %v5510_v28  ;;  %5803 = vmatpush.msrb.mxu1 %v5444_v10  ;;  %v5139_v28 = vld [vmem:[%s12167_s7 + $0x3d8] sm:$0xff]  ;;  %v5073_v10 = vld [vmem:[%s12167_s7 + $0x1c8] sm:$0xff] }
 0x6f3   :  { %5781 = vmatpush.msrb.mxu0 %v5416_v40  ;;  %5824 = vmatpush.msrb.mxu2 %v5474_v26  ;;  %v5045_v40 = vld [vmem:[%s12167_s7 + $0xe8] sm:$0xff]  ;;  %v5103_v26 = vld [vmem:[%s12167_s7 + $0x2b8] sm:$0xff] }
 0x6f4   :  { %5843 = vmatpush.msrb.mxu3 %v5508_v60  ;;  %5804 = vmatpush.msrb.mxu1 %v5442_v32  ;;  %v5137_v60 = vld [vmem:[%s12167_s7 + $0x3c8] sm:$0xff]  ;;  %v5071_v32 = vld [vmem:[%s12167_s7 + $0x1b8] sm:$0xff] }
 0x6f5   :  { %5782 = vmatpush.msrb.mxu0 %v5414_v59  ;;  %5825 = vmatpush.msrb.mxu2 %v5472_v62  ;;  %v5043_v59 = vld [vmem:[%s12167_s7 + $0xd8] sm:$0xff]  ;;  %v5101_v62 = vld [vmem:[%s12167_s7 + $0x2a8] sm:$0xff] }
 0x6f6   :  { %5844 = vmatpush.msrb.mxu3 %v5506_v42  ;;  %5805 = vmatpush.msrb.mxu1 %v5440_v45  ;;  %v5135_v42 = vld [vmem:[%s12167_s7 + $0x3b8] sm:$0xff]  ;;  %v5069_v45 = vld [vmem:[%s12167_s7 + $0x1a8] sm:$0xff] }
 0x6f7   :  { %5783 = vmatpush.msrb.mxu0 %v5412_v3  ;;  %5826 = vmatpush.msrb.mxu2 %v5470_v4  ;;  %v5041_v3 = vld [vmem:[%s12167_s7 + $0xc8] sm:$0xff]  ;;  %v5099_v4 = vld [vmem:[%s12167_s7 + $0x298] sm:$0xff] }
 0x6f8   :  { %5845 = vmatpush.msrb.mxu3 %v5504_v29  ;;  %5806 = vmatpush.msrb.mxu1 %v5438_v52  ;;  %v5133_v29 = vld [vmem:[%s12167_s7 + $0x3a8] sm:$0xff]  ;;  %v5131_v52 = vld [vmem:[%s12167_s7 + $0x398] sm:$0xff] }
 0x6f9   :  { %5784 = vmatpush.msrb.mxu0 %v5410_v21  ;;  %5827 = vmatpush.msrb.mxu2 %v5468_v51  ;;  %v5039_v21 = vld [vmem:[%s12167_s7 + $0xb8] sm:$0xff]  ;;  %v5029_v25 = vld [vmem:[%s12167_s7 + $0x68] sm:$0xff] }
 0x6fa   :  { %5846 = vmatpush.msrb.mxu3 %v5502_v22  ;;  %5807 = vmatpush.msrb.mxu1 %v5436_v34  ;;  %v5031_v51 = vld [vmem:[%s12167_s7 + $0x78] sm:$0xff]  ;;  %v5065_v22 = vld [vmem:[%s12167_s7 + $0x188] sm:$0xff] }
 0x6fb   :  { %5785 = vmatpush.msrb.mxu0 %v5408_v6  ;;  %5828 = vmatpush.msrb.mxu2 %v5466_v37  ;;  %v5037_v6 = vld [vmem:[%s12167_s7 + $0xa8] sm:$0xff]  ;;  %v5127_v37 = vld [vmem:[%s12167_s7 + $0x378] sm:$0xff] }
 0x6fc   :  { %5847 = vmatpush.msrb.mxu3 %v5500_v20  ;;  %5808 = vmatpush.msrb.mxu1 %v5434_v43  ;;  %v5129_v34 = vld [vmem:[%s12167_s7 + $0x388] sm:$0xff]  ;;  %v5027_v20 = vld [vmem:[%s12167_s7 + $0x58] sm:$0xff] }
 0x6fd   :  { %5786 = vmatpush.msrb.mxu0 %v5406_v47  ;;  %5829 = vmatpush.msrb.mxu2 %v5464_v56  ;;  %v5035_v47 = vld [vmem:[%s12167_s7 + $0x98] sm:$0xff]  ;;  %v5125_v56 = vld [vmem:[%s12167_s7 + $0x368] sm:$0xff] }
 0x6fe   :  { %5848 = vmatpush.msrb.mxu3 %v5498_v18  ;;  %5830 = vmatmul.f32.vlgmr.msrb.gmra.mxu2 %v11198_v11  ;;  %v5091_v43 = vld [vmem:[%s12167_s7 + $0x258] sm:$0xff]  ;;  %v5025_v18 = vld [vmem:[%s12167_s7 + $0x48] sm:$0xff] }
 0x6ff   :  { %5787 = vmatpush.msrb.mxu0 %v5404_v24  ;;  %5894 = vmatpush.msra.mxu2 %v5111_v49  ;;  %v5097_v24 = vld [vmem:[%s12167_s7 + $0x288] sm:$0xff] }
 0x700   :  { %5809 = vmatpush.msrb.mxu1 %v5432_v55  ;;  %5849 = vmatpush.msrb.mxu3 %v5496_v16  ;;  %v5057_v49 = vld [vmem:[%s12167_s7 + $0x148] sm:$0xff]  ;;  %v5087_v55 = vld [vmem:[%s12167_s7 + $0x238] sm:$0xff] }
 0x701   :  { %5788 = vmatpush.msrb.mxu0 %v5402_v30  ;;  %5810 = vmatmul.f32.vlgmr.msrb.gmra.mxu1 %v11215_v5  ;;  %v5095_v30 = vld [vmem:[%s12167_s7 + $0x278] sm:$0xff]  ;;  %v5121_v16 = vld [vmem:[%s12167_s7 + $0x348] sm:$0xff] }
 0x702   :  { %5850 = vmatmul.f32.vlgmr.msrb.gmra.mxu3 %v11218_v33  ;;  %5874 = vmatpush.msra.mxu1 %v5079_v1  ;;  %v5055_v1 = vld [vmem:[%s12167_s7 + $0x138] sm:$0xff] }
 0x703   :  { %5789 = vmatpush.msrb.mxu0 %v5400_v63  ;;  %5895 = vmatpush.msra.mxu2 %v5109_v53  ;;  %v5061_v63 = vld [vmem:[%s12167_s7 + $0x168] sm:$0xff] }
 0x704   :  { %5790 = vmatmul.f32.vlgmr.msrb.gmra.mxu0 %v11195_v31  ;;  %5914 = vmatpush.msra.mxu3 %v5143_v35  ;;  %v5085_v53 = vld [vmem:[%s12167_s7 + $0x228] sm:$0xff]  ;;  %v5119_v35 = vld [vmem:[%s12167_s7 + $0x338] sm:$0xff] }
 0x705   :  { %5854 = vmatpush.msra.mxu0 %v5047_v54  ;;  %5875 = vmatpush.msra.mxu1 %v5077_v15  ;;  %v5023_v54 = vld [vmem:[%s12167_s7 + $0x38] sm:$0xff]  ;;  %v5053_v15 = vld [vmem:[%s12167_s7 + $0x128] sm:$0xff] }
 0x706   :  { %5896 = vmatpush.msra.mxu2 %v5107_v7  ;;  %5915 = vmatpush.msra.mxu3 %v5141_v2  ;;  %v5083_v7 = vld [vmem:[%s12167_s7 + $0x218] sm:$0xff]  ;;  %v5117_v2 = vld [vmem:[%s12167_s7 + $0x328] sm:$0xff] }
 0x707   :  { %5855 = vmatpush.msra.mxu0 %v5045_v40  ;;  %5876 = vmatpush.msra.mxu1 %v5075_v46  ;;  %v5021_v40 = vld [vmem:[%s12167_s7 + $0x28] sm:$0xff]  ;;  %v5051_v46 = vld [vmem:[%s12167_s7 + $0x118] sm:$0xff] }
 0x708   :  { %5897 = vmatpush.msra.mxu2 %v5105_v61  ;;  %5916 = vmatpush.msra.mxu3 %v5139_v28  ;;  %v5081_v61 = vld [vmem:[%s12167_s7 + $0x208] sm:$0xff]  ;;  %v5115_v28 = vld [vmem:[%s12167_s7 + $0x318] sm:$0xff] }
 0x709   :  { %5856 = vmatpush.msra.mxu0 %v5043_v59  ;;  %5877 = vmatpush.msra.mxu1 %v5073_v10  ;;  %v5019_v59 = vld [vmem:[%s12167_s7 + $0x18] sm:$0xff] }
 0x70a   :  { %5898 = vmatpush.msra.mxu2 %v5103_v26  ;;  %5917 = vmatpush.msra.mxu3 %v5137_v60  ;;  %v5239_v10 = vld [vmem:[%s12167_s7 + $0x6f8] sm:$0xff]  ;;  %v5049_v26 = vld [vmem:[%s12167_s7 + $0x108] sm:$0xff] }
 0x70b   :  { %5857 = vmatpush.msra.mxu0 %v5041_v3  ;;  %5878 = vmatpush.msra.mxu1 %v5071_v32  ;;  %v5017_v3 = vld [vmem:[%s12167_s7 + $0x8] sm:$0xff]  ;;  %v5207_v32 = vld [vmem:[%s12167_s7 + $0x5f8] sm:$0xff] }
 0x70c   :  { %5899 = vmatpush.msra.mxu2 %v5101_v62  ;;  %5918 = vmatpush.msra.mxu3 %v5135_v42  ;;  %v5113_v60 = vld [vmem:[%s12167_s7 + $0x308] sm:$0xff]  ;;  %v5271_v42 = vld [vmem:[%s12167_s7 + $0x7f8] sm:$0xff] }
 0x70d   :  { %5858 = vmatpush.msra.mxu0 %v5039_v21  ;;  %5879 = vmatpush.msra.mxu1 %v5069_v45  ;;  %v5175_v21 = vld [vmem:[%s12167_s7 + $0x4f8] sm:$0xff]  ;;  %v5237_v62 = vld [vmem:[%s12167_s7 + $0x6e8] sm:$0xff] }
 0x70e   :  { %5900 = vmatpush.msra.mxu2 %v5099_v4  ;;  %5919 = vmatpush.msra.mxu3 %v5133_v29  ;;  %v5205_v45 = vld [vmem:[%s12167_s7 + $0x5e8] sm:$0xff]  ;;  %v5235_v4 = vld [vmem:[%s12167_s7 + $0x6d8] sm:$0xff] }
 0x70f   :  { %5859 = vmatpush.msra.mxu0 %v5037_v6  ;;  %5880 = vmatpush.msra.mxu1 %v5067_v9  ;;  %v5173_v6 = vld [vmem:[%s12167_s7 + $0x4e8] sm:$0xff]  ;;  %v5203_v9 = vld [vmem:[%s12167_s7 + $0x5d8] sm:$0xff] }
 0x710   :  { %5901 = vmatpush.msra.mxu2 %v5097_v24  ;;  %5920 = vmatpush.msra.mxu3 %v5131_v52  ;;  %v5269_v29 = vld [vmem:[%s12167_s7 + $0x7e8] sm:$0xff]  ;;  %v5267_v52 = vld [vmem:[%s12167_s7 + $0x7d8] sm:$0xff] }
 0x711   :  { %5860 = vmatpush.msra.mxu0 %v5035_v47  ;;  %5881 = vmatpush.msra.mxu1 %v5065_v22  ;;  %v5171_v47 = vld [vmem:[%s12167_s7 + $0x4d8] sm:$0xff]  ;;  %v5233_v24 = vld [vmem:[%s12167_s7 + $0x6c8] sm:$0xff] }
 0x712   :  { %5902 = vmatpush.msra.mxu2 %v5095_v30  ;;  %5921 = vmatpush.msra.mxu3 %v5129_v34  ;;  %v5201_v22 = vld [vmem:[%s12167_s7 + $0x5c8] sm:$0xff]  ;;  %v5231_v30 = vld [vmem:[%s12167_s7 + $0x6b8] sm:$0xff] }
 0x713   :  { %5861 = vmatpush.msra.mxu0 %v5033_v12  ;;  %5882 = vmatpush.msra.mxu1 %v5063_v57  ;;  %v5169_v12 = vld [vmem:[%s12167_s7 + $0x4c8] sm:$0xff]  ;;  %v5199_v57 = vld [vmem:[%s12167_s7 + $0x5b8] sm:$0xff] }
 0x714   :  { %5903 = vmatpush.msra.mxu2 %v5093_v41  ;;  %5922 = vmatpush.msra.mxu3 %v5127_v37  ;;  %v5265_v34 = vld [vmem:[%s12167_s7 + $0x7c8] sm:$0xff]  ;;  %v5263_v37 = vld [vmem:[%s12167_s7 + $0x7b8] sm:$0xff] }
 0x715   :  { %5862 = vmatpush.msra.mxu0 %v5031_v51  ;;  %5883 = vmatpush.msra.mxu1 %v5061_v63  ;;  %v5167_v51 = vld [vmem:[%s12167_s7 + $0x4b8] sm:$0xff]  ;;  %v5229_v41 = vld [vmem:[%s12167_s7 + $0x6a8] sm:$0xff] }
 0x716   :  { %5904 = vmatpush.msra.mxu2 %v5091_v43  ;;  %5923 = vmatpush.msra.mxu3 %v5125_v56  ;;  %v5197_v63 = vld [vmem:[%s12167_s7 + $0x5a8] sm:$0xff]  ;;  %v5227_v43 = vld [vmem:[%s12167_s7 + $0x698] sm:$0xff] }
 0x717   :  { %5863 = vmatpush.msra.mxu0 %v5029_v25  ;;  %5884 = vmatpush.msra.mxu1 %v5059_v38  ;;  %v5165_v25 = vld [vmem:[%s12167_s7 + $0x4a8] sm:$0xff]  ;;  %v5195_v38 = vld [vmem:[%s12167_s7 + $0x598] sm:$0xff] }
 0x718   :  { %5905 = vmatpush.msra.mxu2 %v5089_v23  ;;  %5924 = vmatpush.msra.mxu3 %v5123_v58  ;;  %v5261_v56 = vld [vmem:[%s12167_s7 + $0x7a8] sm:$0xff]  ;;  %v5259_v58 = vld [vmem:[%s12167_s7 + $0x798] sm:$0xff] }
 0x719   :  { %5864 = vmatpush.msra.mxu0 %v5027_v20  ;;  %5885 = vmatpush.msra.mxu1 %v5057_v49  ;;  %v5163_v20 = vld [vmem:[%s12167_s7 + $0x498] sm:$0xff]  ;;  %v5225_v23 = vld [vmem:[%s12167_s7 + $0x688] sm:$0xff] }
 0x71a   :  { %5906 = vmatpush.msra.mxu2 %v5087_v55  ;;  %5925 = vmatpush.msra.mxu3 %v5121_v16  ;;  %v5193_v49 = vld [vmem:[%s12167_s7 + $0x588] sm:$0xff]  ;;  %v5223_v55 = vld [vmem:[%s12167_s7 + $0x678] sm:$0xff] }
 0x71b   :  { %5865 = vmatpush.msra.mxu0 %v5025_v18  ;;  %5886 = vmatpush.msra.mxu1 %v5055_v1  ;;  %v5161_v18 = vld [vmem:[%s12167_s7 + $0x488] sm:$0xff]  ;;  %v5191_v1 = vld [vmem:[%s12167_s7 + $0x578] sm:$0xff] }
 0x71c   :  { %5907 = vmatpush.msra.mxu2 %v5085_v53  ;;  %5926 = vmatpush.msra.mxu3 %v5119_v35  ;;  %v5257_v16 = vld [vmem:[%s12167_s7 + $0x788] sm:$0xff]  ;;  %v5255_v35 = vld [vmem:[%s12167_s7 + $0x778] sm:$0xff] }
 0x71d   :  { %5866 = vmatpush.msra.mxu0 %v5023_v54  ;;  %5887 = vmatpush.msra.mxu1 %v5053_v15  ;;  %v5159_v54 = vld [vmem:[%s12167_s7 + $0x478] sm:$0xff]  ;;  %v5221_v53 = vld [vmem:[%s12167_s7 + $0x668] sm:$0xff] }
 0x71e   :  { %5908 = vmatpush.msra.mxu2 %v5083_v7  ;;  %5927 = vmatpush.msra.mxu3 %v5117_v2  ;;  %v5189_v15 = vld [vmem:[%s12167_s7 + $0x568] sm:$0xff]  ;;  %v5219_v7 = vld [vmem:[%s12167_s7 + $0x658] sm:$0xff] }
 0x71f   :  { %5867 = vmatpush.msra.mxu0 %v5021_v40  ;;  %5888 = vmatpush.msra.mxu1 %v5051_v46  ;;  %v5157_v40 = vld [vmem:[%s12167_s7 + $0x468] sm:$0xff]  ;;  %v5187_v46 = vld [vmem:[%s12167_s7 + $0x558] sm:$0xff] }
 0x720   :  { %5909 = vmatpush.msra.mxu2 %v5081_v61  ;;  %5928 = vmatpush.msra.mxu3 %v5115_v28  ;;  %v5253_v2 = vld [vmem:[%s12167_s7 + $0x768] sm:$0xff]  ;;  %v5251_v28 = vld [vmem:[%s12167_s7 + $0x758] sm:$0xff] }
 0x721   :  { %5868 = vmatpush.msra.mxu0 %v5019_v59  ;;  %5889 = vmatpush.msra.mxu1 %v5049_v26  ;;  %v5155_v59 = vld [vmem:[%s12167_s7 + $0x458] sm:$0xff]  ;;  %v5217_v61 = vld [vmem:[%s12167_s7 + $0x648] sm:$0xff] }
 0x722   :  { %5974 = vmatpush.msrb.mxu2 %v5239_v10  ;;  %5929 = vmatpush.msra.mxu3 %v5113_v60  ;;  %v5185_v10 = vld [vmem:[%s12167_s7 + $0x548] sm:$0xff]  ;;  %v5215_v26 = vld [vmem:[%s12167_s7 + $0x638] sm:$0xff] }
 0x723   :  { %5869 = vmatpush.msra.mxu0 %v5017_v3  ;;  %5954 = vmatpush.msrb.mxu1 %v5207_v32  ;;  %v5153_v3 = vld [vmem:[%s12167_s7 + $0x448] sm:$0xff]  ;;  %v5183_v32 = vld [vmem:[%s12167_s7 + $0x538] sm:$0xff] }
 0x724   :  { %5975 = vmatpush.msrb.mxu2 %v5237_v62  ;;  %5994 = vmatpush.msrb.mxu3 %v5271_v42  ;;  %v5249_v60 = vld [vmem:[%s12167_s7 + $0x748] sm:$0xff]  ;;  %v5247_v42 = vld [vmem:[%s12167_s7 + $0x738] sm:$0xff] }
 0x725   :  { %5934 = vmatpush.msrb.mxu0 %v5175_v21  ;;  %5955 = vmatpush.msrb.mxu1 %v5205_v45  ;;  %v5151_v21 = vld [vmem:[%s12167_s7 + $0x438] sm:$0xff]  ;;  %v5213_v62 = vld [vmem:[%s12167_s7 + $0x628] sm:$0xff] }
 0x726   :  { %5976 = vmatpush.msrb.mxu2 %v5235_v4  ;;  %5995 = vmatpush.msrb.mxu3 %v5269_v29  ;;  %v5181_v45 = vld [vmem:[%s12167_s7 + $0x528] sm:$0xff]  ;;  %v5211_v4 = vld [vmem:[%s12167_s7 + $0x618] sm:$0xff] }
 0x727   :  { %5935 = vmatpush.msrb.mxu0 %v5173_v6  ;;  %5956 = vmatpush.msrb.mxu1 %v5203_v9  ;;  %v5149_v6 = vld [vmem:[%s12167_s7 + $0x428] sm:$0xff]  ;;  %v5179_v9 = vld [vmem:[%s12167_s7 + $0x518] sm:$0xff] }
 0x728   :  { %5977 = vmatpush.msrb.mxu2 %v5233_v24  ;;  %5996 = vmatpush.msrb.mxu3 %v5267_v52  ;;  %v5245_v29 = vld [vmem:[%s12167_s7 + $0x728] sm:$0xff]  ;;  %v5243_v52 = vld [vmem:[%s12167_s7 + $0x718] sm:$0xff] }
 0x729   :  { %5936 = vmatpush.msrb.mxu0 %v5171_v47  ;;  %5957 = vmatpush.msrb.mxu1 %v5201_v22  ;;  %v5147_v47 = vld [vmem:[%s12167_s7 + $0x418] sm:$0xff]  ;;  %v5209_v24 = vld [vmem:[%s12167_s7 + $0x608] sm:$0xff] }
 0x72a   :  { %5978 = vmatpush.msrb.mxu2 %v5231_v30  ;;  %5997 = vmatpush.msrb.mxu3 %v5265_v34  ;;  %v5367_v22 = vld [vmem:[%s12167_s7 + $0xaf8] sm:$0xff]  ;;  %v5177_v30 = vld [vmem:[%s12167_s7 + $0x508] sm:$0xff] }
 0x72b   :  { %5937 = vmatpush.msrb.mxu0 %v5169_v12  ;;  %5958 = vmatpush.msrb.mxu1 %v5199_v57  ;;  %v5145_v12 = vld [vmem:[%s12167_s7 + $0x408] sm:$0xff]  ;;  %v5335_v57 = vld [vmem:[%s12167_s7 + $0x9f8] sm:$0xff] }
 0x72c   :  { %5979 = vmatpush.msrb.mxu2 %v5229_v41  ;;  %5998 = vmatpush.msrb.mxu3 %v5263_v37  ;;  %v5241_v34 = vld [vmem:[%s12167_s7 + $0x708] sm:$0xff] }
 0x72d   :  { %5938 = vmatpush.msrb.mxu0 %v5167_v51  ;;  %5959 = vmatpush.msrb.mxu1 %v5197_v63  ;;  %v5303_v51 = vld [vmem:[%s12167_s7 + $0x8f8] sm:$0xff]  ;;  %v5365_v41 = vld [vmem:[%s12167_s7 + $0xae8] sm:$0xff] }
 0x72e   :  { %5980 = vmatpush.msrb.mxu2 %v5227_v43  ;;  %5999 = vmatpush.msrb.mxu3 %v5261_v56  ;;  %v5333_v37 = vld [vmem:[%s12167_s7 + $0x9e8] sm:$0xff]  ;;  %v5331_v63 = vld [vmem:[%s12167_s7 + $0x9d8] sm:$0xff] }
 0x72f   :  { %5939 = vmatpush.msrb.mxu0 %v5165_v25  ;;  %5960 = vmatpush.msrb.mxu1 %v5195_v38  ;;  %v5301_v25 = vld [vmem:[%s12167_s7 + $0x8e8] sm:$0xff]  ;;  %v5395_v56 = vld [vmem:[%s12167_s7 + $0xbd8] sm:$0xff] }
 0x730   :  { %5981 = vmatpush.msrb.mxu2 %v5225_v23  ;;  %6000 = vmatpush.msrb.mxu3 %v5259_v58  ;;  %v5361_v43 = vld [vmem:[%s12167_s7 + $0xac8] sm:$0xff]  ;;  %v5359_v23 = vld [vmem:[%s12167_s7 + $0xab8] sm:$0xff] }
 0x731   :  { %5940 = vmatpush.msrb.mxu0 %v5163_v20  ;;  %5961 = vmatpush.msrb.mxu1 %v5193_v49  ;;  %v5363_v20 = vld [vmem:[%s12167_s7 + $0xad8] sm:$0xff]  ;;  %v5329_v38 = vld [vmem:[%s12167_s7 + $0x9c8] sm:$0xff] }
 0x732   :  { %5982 = vmatpush.msrb.mxu2 %v5223_v55  ;;  %6001 = vmatpush.msrb.mxu3 %v5257_v16  ;;  %v5393_v58 = vld [vmem:[%s12167_s7 + $0xbc8] sm:$0xff]  ;;  %v5327_v49 = vld [vmem:[%s12167_s7 + $0x9b8] sm:$0xff] }
 0x733   :  { %5941 = vmatpush.msrb.mxu0 %v5161_v18  ;;  %5962 = vmatpush.msrb.mxu1 %v5191_v1  ;;  %v5295_v18 = vld [vmem:[%s12167_s7 + $0x8b8] sm:$0xff]  ;;  %v5357_v55 = vld [vmem:[%s12167_s7 + $0xaa8] sm:$0xff] }
 0x734   :  { %5983 = vmatpush.msrb.mxu2 %v5221_v53  ;;  %6002 = vmatpush.msrb.mxu3 %v5255_v35  ;;  %v5291_v16 = vld [vmem:[%s12167_s7 + $0x898] sm:$0xff]  ;;  %v5389_v1 = vld [vmem:[%s12167_s7 + $0xba8] sm:$0xff] }
 0x735   :  { %5942 = vmatpush.msrb.mxu0 %v5159_v54  ;;  %5963 = vmatpush.msrb.mxu1 %v5189_v15  ;;  %v5293_v54 = vld [vmem:[%s12167_s7 + $0x8a8] sm:$0xff]  ;;  %v5323_v53 = vld [vmem:[%s12167_s7 + $0x998] sm:$0xff] }
 0x736   :  { %5984 = vmatpush.msrb.mxu2 %v5219_v7  ;;  %6003 = vmatpush.msrb.mxu3 %v5253_v2  ;;  %v5353_v35 = vld [vmem:[%s12167_s7 + $0xa88] sm:$0xff]  ;;  %v5351_v7 = vld [vmem:[%s12167_s7 + $0xa78] sm:$0xff] }
 0x737   :  { %5943 = vmatpush.msrb.mxu0 %v5157_v40  ;;  %5964 = vmatpush.msrb.mxu1 %v5187_v46  ;;  %v5325_v40 = vld [vmem:[%s12167_s7 + $0x9a8] sm:$0xff]  ;;  %v5319_v46 = vld [vmem:[%s12167_s7 + $0x978] sm:$0xff] }
 0x738   :  { %5985 = vmatpush.msrb.mxu2 %v5217_v61  ;;  %6004 = vmatpush.msrb.mxu3 %v5251_v28  ;;  %v5321_v15 = vld [vmem:[%s12167_s7 + $0x988] sm:$0xff]  ;;  %v5383_v28 = vld [vmem:[%s12167_s7 + $0xb78] sm:$0xff] }
 0x739   :  { %5944 = vmatpush.msrb.mxu0 %v5155_v59  ;;  %5965 = vmatpush.msrb.mxu1 %v5185_v10  ;;  %v5387_v59 = vld [vmem:[%s12167_s7 + $0xb98] sm:$0xff]  ;;  %v5385_v2 = vld [vmem:[%s12167_s7 + $0xb88] sm:$0xff] }
 0x73a   :  { %5986 = vmatpush.msrb.mxu2 %v5215_v26  ;;  %6005 = vmatpush.msrb.mxu3 %v5249_v60  ;;  %v5349_v61 = vld [vmem:[%s12167_s7 + $0xa68] sm:$0xff]  ;;  %v5347_v26 = vld [vmem:[%s12167_s7 + $0xa58] sm:$0xff] }
 0x73b   :  { %5945 = vmatpush.msrb.mxu0 %v5153_v3  ;;  %5966 = vmatpush.msrb.mxu1 %v5183_v32  ;;  %v5285_v3 = vld [vmem:[%s12167_s7 + $0x868] sm:$0xff]  ;;  %v5315_v32 = vld [vmem:[%s12167_s7 + $0x958] sm:$0xff] }
 0x73c   :  { %5987 = vmatpush.msrb.mxu2 %v5213_v62  ;;  %6006 = vmatpush.msrb.mxu3 %v5247_v42  ;;  %v5317_v10 = vld [vmem:[%s12167_s7 + $0x968] sm:$0xff]  ;;  %v5379_v42 = vld [vmem:[%s12167_s7 + $0xb58] sm:$0xff] }
 0x73d   :  { %5946 = vmatpush.msrb.mxu0 %v5151_v21  ;;  %5967 = vmatpush.msrb.mxu1 %v5181_v45  ;;  %v5283_v21 = vld [vmem:[%s12167_s7 + $0x858] sm:$0xff]  ;;  %v5381_v60 = vld [vmem:[%s12167_s7 + $0xb68] sm:$0xff] }
 0x73e   :  { %5988 = vmatpush.msrb.mxu2 %v5211_v4  ;;  %6007 = vmatpush.msrb.mxu3 %v5245_v29  ;;  %v5345_v62 = vld [vmem:[%s12167_s7 + $0xa48] sm:$0xff]  ;;  %v5343_v4 = vld [vmem:[%s12167_s7 + $0xa38] sm:$0xff] }
 0x73f   :  { %5947 = vmatpush.msrb.mxu0 %v5149_v6  ;;  %5968 = vmatpush.msrb.mxu1 %v5179_v9  ;;  %v5281_v6 = vld [vmem:[%s12167_s7 + $0x848] sm:$0xff]  ;;  %v5311_v9 = vld [vmem:[%s12167_s7 + $0x938] sm:$0xff] }
 0x740   :  { %5989 = vmatpush.msrb.mxu2 %v5209_v24  ;;  %6008 = vmatpush.msrb.mxu3 %v5243_v52  ;;  %v5313_v45 = vld [vmem:[%s12167_s7 + $0x948] sm:$0xff]  ;;  %v5375_v52 = vld [vmem:[%s12167_s7 + $0xb38] sm:$0xff] }
 0x741   :  { %5948 = vmatpush.msrb.mxu0 %v5147_v47  ;;  %5910 = vmatmul.f32.vlgmr.msra.gmra.mxu2 %v10766_v8  ;;  %v5299_v8 = vld [vmem:[%s12167_s7 + $0x8d8] sm:$0xff]  ;;  %v5377_v29 = vld [vmem:[%s12167_s7 + $0xb48] sm:$0xff] }
 0x742   :  { %5870 = vmatmul.f32.vlgmr.msra.gmra.mxu0 %v10763_v50  ;;  %6054 = vmatpush.msra.mxu2 %v5367_v22  ;;  %v5399_v50 = vld [vmem:[%s12167_s7 + $0xbf8] sm:$0xff]  ;;  %v5341_v24 = vld [vmem:[%s12167_s7 + $0xa28] sm:$0xff] }
 0x743   :  { %5949 = vmatpush.msrb.mxu0 %v5145_v12  ;;  %5969 = vmatpush.msrb.mxu1 %v5177_v30  ;;  %v5279_v47 = vld [vmem:[%s12167_s7 + $0x838] sm:$0xff]  ;;  %v5277_v12 = vld [vmem:[%s12167_s7 + $0x828] sm:$0xff] }
 0x744   :  { %6009 = vmatpush.msrb.mxu3 %v5241_v34  ;;  %5890 = vmatmul.f32.vlgmr.msra.gmra.mxu1 %v10783_v0  ;;  %v5397_v0 = vld [vmem:[%s12167_s7 + $0xbe8] sm:$0xff]  ;;  %v5339_v30 = vld [vmem:[%s12167_s7 + $0xa18] sm:$0xff] }
 0x745   :  { %6014 = vmatpush.msra.mxu0 %v5303_v51  ;;  %5930 = vmatmul.f32.vlgmr.msra.gmra.mxu3 %v10786_v14  ;;  %v5297_v14 = vld [vmem:[%s12167_s7 + $0x8c8] sm:$0xff]  ;;  %v5275_v51 = vld [vmem:[%s12167_s7 + $0x818] sm:$0xff] }
 0x746   :  { %6034 = vmatpush.msra.mxu1 %v5335_v57  ;;  %6055 = vmatpush.msra.mxu2 %v5365_v41  ;;  %v5309_v22 = vld [vmem:[%s12167_s7 + $0x928] sm:$0xff]  ;;  %v5307_v57 = vld [vmem:[%s12167_s7 + $0x918] sm:$0xff] }
 0x747   :  { %6015 = vmatpush.msra.mxu0 %v5301_v25  ;;  %6074 = vmatpush.msra.mxu3 %v5399_v50  ;;  %v5373_v34 = vld [vmem:[%s12167_s7 + $0xb28] sm:$0xff]  ;;  %v5371_v50 = vld [vmem:[%s12167_s7 + $0xb18] sm:$0xff] }
 0x748   :  { %6035 = vmatpush.msra.mxu1 %v5333_v37  ;;  %6056 = vmatpush.msra.mxu2 %v5363_v20  ;;  %v5273_v25 = vld [vmem:[%s12167_s7 + $0x808] sm:$0xff]  ;;  %v5495_v37 = vld [vmem:[%s12167_s7 + $0xef8] sm:$0xff] }
 0x749   :  { %6016 = vmatpush.msra.mxu0 %v5299_v8  ;;  %6075 = vmatpush.msra.mxu3 %v5397_v0  ;;  %v5337_v41 = vld [vmem:[%s12167_s7 + $0xa08] sm:$0xff]  ;;  %v5431_v8 = vld [vmem:[%s12167_s7 + $0xcf8] sm:$0xff] }
 0x74a   :  { %6036 = vmatpush.msra.mxu1 %v5331_v63  ;;  %6057 = vmatpush.msra.mxu2 %v5361_v43  ;;  %v5305_v20 = vld [vmem:[%s12167_s7 + $0x908] sm:$0xff]  ;;  %v5463_v43 = vld [vmem:[%s12167_s7 + $0xdf8] sm:$0xff] }
 0x74b   :  { %6017 = vmatpush.msra.mxu0 %v5297_v14  ;;  %6076 = vmatpush.msra.mxu3 %v5395_v56  ;;  %v5369_v0 = vld [vmem:[%s12167_s7 + $0xb08] sm:$0xff]  ;;  %v11811_v14 = vld [vmem:[%s12168_s8] sm:$0x3]  ;;  %v5427_v56 = vld [vmem:[%s12167_s7 + $0xcd8] sm:$0xff] }
 0x74c   :  { %5990 = vmatmul.f32.vlgmr.msrb.gmra.mxu2 %v10827_v13  ;;  %6037 = vmatpush.msra.mxu1 %v5329_v38  ;;  %v5391_v13 = vld [vmem:[%s12167_s7 + $0xbb8] sm:$0xff]  ;;  %v5429_v63 = vld [vmem:[%s12167_s7 + $0xce8] sm:$0xff]  ;;  %v5530_v38 = vperm.slane %v11811_v14, 0 }
 0x74d   :  { %6018 = vmatpush.msra.mxu0 %v5295_v18  ;;  %6058 = vmatpush.msra.mxu2 %v5359_v23  ;;  %v5461_v18 = vld [vmem:[%s12167_s7 + $0xde8] sm:$0xff]  ;;  %v5491_v23 = vld [vmem:[%s12167_s7 + $0xed8] sm:$0xff] }
 0x74e   :  { %6077 = vmatpush.msra.mxu3 %v5393_v58  ;;  %5950 = vmatmul.f32.vlgmr.msrb.gmra.mxu0 %v10842_v17  ;;  %v5355_v17 = vld [vmem:[%s12167_s7 + $0xa98] sm:$0xff]  ;;  %v5425_v58 = vld [vmem:[%s12167_s7 + $0xcc8] sm:$0xff] }
 0x74f   :  { %6010 = vmatmul.f32.vlgmr.msrb.gmra.mxu3 %v10846_v48  ;;  %6019 = vmatpush.msra.mxu0 %v5293_v54  ;;  %v5289_v48 = vld [vmem:[%s12167_s7 + $0x888] sm:$0xff]  ;;  %v5459_v54 = vld [vmem:[%s12167_s7 + $0xdd8] sm:$0xff] }
 0x750   :  { %6038 = vmatpush.msra.mxu1 %v5327_v49  ;;  %6059 = vmatpush.msra.mxu2 %v5357_v55  ;;  %v5489_v49 = vld [vmem:[%s12167_s7 + $0xec8] sm:$0xff]  ;;  %v5523_v55 = vld [vmem:[%s12167_s7 + $0xfd8] sm:$0xff] }
 0x751   :  { %6078 = vmatpush.msra.mxu3 %v5391_v13  ;;  %5970 = vmatmul.f32.vlgmr.msrb.gmra.mxu1 %v10862_v44  ;;  %v5287_v44 = vld [vmem:[%s12167_s7 + $0x878] sm:$0xff] }
 0x752   :  { %6020 = vmatpush.msra.mxu0 %v5291_v16  ;;  %6039 = vmatpush.msra.mxu1 %v5325_v40  ;;  %v5423_v13 = vld [vmem:[%s12167_s7 + $0xcb8] sm:$0xff]  ;;  %v5457_v16 = vld [vmem:[%s12167_s7 + $0xdc8] sm:$0xff] }
 0x753   :  { %6060 = vmatpush.msra.mxu2 %v5355_v17  ;;  %6079 = vmatpush.msra.mxu3 %v5389_v1  ;;  %v5487_v17 = vld [vmem:[%s12167_s7 + $0xeb8] sm:$0xff]  ;;  %v5521_v1 = vld [vmem:[%s12167_s7 + $0xfc8] sm:$0xff] }
 0x754   :  { %6021 = vmatpush.msra.mxu0 %v5289_v48  ;;  %6040 = vmatpush.msra.mxu1 %v5323_v53  ;;  %v5571_v48 = vpop.f32.mrf.mxu1  ;;  %v5421_v53 = vld [vmem:[%s12167_s7 + $0xca8] sm:$0xff] }
 0x755   :  { %6061 = vmatpush.msra.mxu2 %v5353_v35  ;;  %6080 = vmatpush.msra.mxu3 %v5387_v59  ;;  %v5455_v35 = vld [vmem:[%s12167_s7 + $0xdb8] sm:$0xff]  ;;  %v5485_v59 = vld [vmem:[%s12167_s7 + $0xea8] sm:$0xff] }
 0x756   :  { %6022 = vmatpush.msra.mxu0 %v5287_v44  ;;  %6041 = vmatpush.msra.mxu1 %v5321_v15  ;;  %v5519_v44 = vld [vmem:[%s12167_s7 + $0xfb8] sm:$0xff] }
 0x757   :  { %6062 = vmatpush.msra.mxu2 %v5351_v7  ;;  %6081 = vmatpush.msra.mxu3 %v5385_v2  ;;  %v5419_v15 = vld [vmem:[%s12167_s7 + $0xc98] sm:$0xff]  ;;  %v5453_v7 = vld [vmem:[%s12167_s7 + $0xda8] sm:$0xff] }
 0x758   :  { %6023 = vmatpush.msra.mxu0 %v5285_v3  ;;  %6042 = vmatpush.msra.mxu1 %v5319_v46  ;;  %v5483_v3 = vld [vmem:[%s12167_s7 + $0xe98] sm:$0xff]  ;;  %v5517_v46 = vld [vmem:[%s12167_s7 + $0xfa8] sm:$0xff] }
 0x759   :  { %6063 = vmatpush.msra.mxu2 %v5349_v61  ;;  %6082 = vmatpush.msra.mxu3 %v5383_v28  ;;  %v5591_v61 = vpop.f32.mrf.mxu2  ;;  %v5417_v28 = vld [vmem:[%s12167_s7 + $0xc88] sm:$0xff] }
 0x75a   :  { %6024 = vmatpush.msra.mxu0 %v5283_v21  ;;  %6043 = vmatpush.msra.mxu1 %v5317_v10  ;;  %v5451_v21 = vld [vmem:[%s12167_s7 + $0xd98] sm:$0xff]  ;;  %v5481_v10 = vld [vmem:[%s12167_s7 + $0xe88] sm:$0xff] }
 0x75b   :  { %6064 = vmatpush.msra.mxu2 %v5347_v26  ;;  %6083 = vmatpush.msra.mxu3 %v5381_v60  ;;  %v5515_v26 = vld [vmem:[%s12167_s7 + $0xf98] sm:$0xff] }
 0x75c   :  { %6025 = vmatpush.msra.mxu0 %v5281_v6  ;;  %6044 = vmatpush.msra.mxu1 %v5315_v32  ;;  %v5415_v60 = vld [vmem:[%s12167_s7 + $0xc78] sm:$0xff]  ;;  %v5449_v6 = vld [vmem:[%s12167_s7 + $0xd88] sm:$0xff] }
 0x75d   :  { %6065 = vmatpush.msra.mxu2 %v5345_v62  ;;  %6084 = vmatpush.msra.mxu3 %v5379_v42  ;;  %v5479_v62 = vld [vmem:[%s12167_s7 + $0xe78] sm:$0xff]  ;;  %v5513_v42 = vld [vmem:[%s12167_s7 + $0xf88] sm:$0xff] }
 0x75e   :  { %6026 = vmatpush.msra.mxu0 %v5279_v47  ;;  %6045 = vmatpush.msra.mxu1 %v5313_v45  ;;  %v5611_v47 = vpop.f32.mrf.mxu3  ;;  %v5413_v45 = vld [vmem:[%s12167_s7 + $0xc68] sm:$0xff] }
 0x75f   :  { %6066 = vmatpush.msra.mxu2 %v5343_v4  ;;  %6085 = vmatpush.msra.mxu3 %v5377_v29  ;;  %v5447_v4 = vld [vmem:[%s12167_s7 + $0xd78] sm:$0xff]  ;;  %v5477_v29 = vld [vmem:[%s12167_s7 + $0xe68] sm:$0xff] }
 0x760   :  { %6027 = vmatpush.msra.mxu0 %v5277_v12  ;;  %6046 = vmatpush.msra.mxu1 %v5311_v9  ;;  %v5511_v12 = vld [vmem:[%s12167_s7 + $0xf78] sm:$0xff] }
 0x761   :  { %6067 = vmatpush.msra.mxu2 %v5341_v24  ;;  %6086 = vmatpush.msra.mxu3 %v5375_v52  ;;  %v5411_v9 = vld [vmem:[%s12167_s7 + $0xc58] sm:$0xff]  ;;  %v5445_v24 = vld [vmem:[%s12167_s7 + $0xd68] sm:$0xff] }
 0x762   :  { %6028 = vmatpush.msra.mxu0 %v5275_v51  ;;  %6047 = vmatpush.msra.mxu1 %v5309_v22  ;;  %v5475_v51 = vld [vmem:[%s12167_s7 + $0xe58] sm:$0xff]  ;;  %v5509_v22 = vld [vmem:[%s12167_s7 + $0xf68] sm:$0xff] }
 0x763   :  { %6068 = vmatpush.msra.mxu2 %v5339_v30  ;;  %6087 = vmatpush.msra.mxu3 %v5373_v34  ;;  %v5409_v34 = vld [vmem:[%s12167_s7 + $0xc48] sm:$0xff] }
 0x764   :  { %6029 = vmatpush.msra.mxu0 %v5273_v25  ;;  %6048 = vmatpush.msra.mxu1 %v5307_v57  ;;  %v5443_v25 = vld [vmem:[%s12167_s7 + $0xd58] sm:$0xff]  ;;  %v5473_v57 = vld [vmem:[%s12167_s7 + $0xe48] sm:$0xff] }
 0x765   :  { %6069 = vmatpush.msra.mxu2 %v5337_v41  ;;  %6088 = vmatpush.msra.mxu3 %v5371_v50  ;;  %v5507_v41 = vld [vmem:[%s12167_s7 + $0xf58] sm:$0xff] }
 0x766   :  { %6030 = vmatmul.f32.vlgmr.msra.gmra.mxu0 %v10987_v27  ;;  %6070 = vmatmul.f32.vlgmr.msra.gmra.mxu2 %v10990_v36  ;;  %v5493_v27 = vld [vmem:[%s12167_s7 + $0xee8] sm:$0xff]  ;;  %v5527_v36 = vld [vmem:[%s12167_s7 + $0xff8] sm:$0xff] }
 0x767   :  { %6094 = vmatpush.msrb.mxu0 %v5431_v8  ;;  %6134 = vmatpush.msrb.mxu2 %v5495_v37  ;;  %v5407_v50 = vld [vmem:[%s12167_s7 + $0xc38] sm:$0xff]  ;;  %v5441_v8 = vld [vmem:[%s12167_s7 + $0xd48] sm:$0xff] }
 0x768   :  { %6049 = vmatpush.msra.mxu1 %v5305_v20  ;;  %6089 = vmatpush.msra.mxu3 %v5369_v0  ;;  %v5471_v20 = vld [vmem:[%s12167_s7 + $0xe38] sm:$0xff]  ;;  %v5505_v0 = vld [vmem:[%s12167_s7 + $0xf48] sm:$0xff] }
 0x769   :  { %6050 = vmatmul.f32.vlgmr.msra.gmra.mxu1 %v11007_v39  ;;  %6090 = vmatmul.f32.vlgmr.msra.gmra.mxu3 %v11010_v19  ;;  %v5525_v39 = vld [vmem:[%s12167_s7 + $0xfe8] sm:$0xff]  ;;  %v5551_v19 = vpop.f32.mrf.mxu0 }
 0x76a   :  { %6095 = vmatpush.msrb.mxu0 %v5429_v63  ;;  %6114 = vmatpush.msrb.mxu1 %v5463_v43  ;;  %v5552_v40 = vadd.f32 %v5551_v19, %v5530_v38  ;;  %v5651_v63 = vpop.f32.mrf.mxu1  ;;  %v5405_v43 = vld [vmem:[%s12167_s7 + $0xc28] sm:$0xff] }
 0x76b   :  { %6135 = vmatpush.msrb.mxu2 %v5493_v27  ;;  %6154 = vmatpush.msrb.mxu3 %v5527_v36  ;;  %v5439_v27 = vld [vmem:[%s12167_s7 + $0xd38] sm:$0xff]  ;;  %v5469_v36 = vld [vmem:[%s12167_s7 + $0xe28] sm:$0xff] }
 0x76c   :  { %6096 = vmatpush.msrb.mxu0 %v5427_v56  ;;  %6115 = vmatpush.msrb.mxu1 %v5461_v18  ;;  %v5572_v2 = vadd.f32 %v5571_v48, %v5552_v40  ;;  %v5503_v56 = vld [vmem:[%s12167_s7 + $0xf38] sm:$0xff]  ;;  %v5437_v38 = vld [vmem:[%s12167_s7 + $0xd28] sm:$0xff] }
 0x76d   :  { %6136 = vmatpush.msrb.mxu2 %v5491_v23  ;;  %6155 = vmatpush.msrb.mxu3 %v5525_v39  ;;  %v5403_v18 = vld [vmem:[%s12167_s7 + $0xc18] sm:$0xff]  ;;  %v5501_v19 = vld [vmem:[%s12167_s7 + $0xf28] sm:$0xff] }
 0x76e   :  { %6097 = vmatpush.msrb.mxu0 %v5425_v58  ;;  %6116 = vmatpush.msrb.mxu1 %v5459_v54  ;;  %v5592_v32 = vadd.f32 %v5591_v61, %v5572_v2  ;;  %v5467_v39 = vld [vmem:[%s12167_s7 + $0xe18] sm:$0xff]  ;;  %v5671_v58 = vpop.f32.mrf.mxu2  ;;  %v5401_v54 = vld [vmem:[%s12167_s7 + $0xc08] sm:$0xff] }
 0x76f   :  { %6137 = vmatpush.msrb.mxu2 %v5489_v49  ;;  %6156 = vmatpush.msrb.mxu3 %v5523_v55  ;;  %v5435_v49 = vld [vmem:[%s12167_s7 + $0xd18] sm:$0xff]  ;;  %v5465_v55 = vld [vmem:[%s12167_s7 + $0xe08] sm:$0xff] }
 0x770   :  { %6098 = vmatpush.msrb.mxu0 %v5423_v13  ;;  %6117 = vmatpush.msrb.mxu1 %v5457_v16  ;;  %v5612_v52 = vadd.f32 %v5611_v47, %v5592_v32  ;;  %v5499_v13 = vld [vmem:[%s12167_s7 + $0xf18] sm:$0xff]  ;;  %v5497_v48 = vld [vmem:[%s12167_s7 + $0xf08] sm:$0xff] }
 0x771   :  { %6138 = vmatpush.msrb.mxu2 %v5487_v17  ;;  %6157 = vmatpush.msrb.mxu3 %v5521_v1  ;;  %v5631_v30 = vpop.f32.mrf.mxu0  ;;  %v6191_v40 = vld [vmem:[%s12169_s9 + $0x78] sm:$0xff]  ;;  %v5433_v17 = vld [vmem:[%s12167_s7 + $0xd08] sm:$0xff]  ;;  %v5691_v1 = vpop.f32.mrf.mxu3 }
 0x772   :  { %6099 = vmatpush.msrb.mxu0 %v5421_v53  ;;  %6118 = vmatpush.msrb.mxu1 %v5455_v35  ;;  %v5632_v37 = vadd.f32 %v5631_v30, %v5612_v52  ;;  %v6190_v53 = vld [vmem:[%s12169_s9 + $0x70] sm:$0xff]  ;;  %v6177_v52 = vld [vmem:[%s12169_s9 + $0x8] sm:$0xff]  ;;  %v6207_v30 = vld [vmem:[%s12169_s9 + $0xf8] sm:$0xff] }
 0x773   :  { %6139 = vmatpush.msrb.mxu2 %v5485_v59  ;;  %6158 = vmatpush.msrb.mxu3 %v5519_v44  ;;  %v6189_v44 = vld [vmem:[%s12169_s9 + $0x68] sm:$0xff] }
 0x774   :  { %6100 = vmatpush.msrb.mxu0 %v5419_v15  ;;  %6119 = vmatpush.msrb.mxu1 %v5453_v7  ;;  %v5652_v23 = vadd.f32 %v5651_v63, %v5632_v37  ;;  %v5731_v15 = vpop.f32.mrf.mxu1  ;;  %v6187_v7 = vld [vmem:[%s12169_s9 + $0x58] sm:$0xff]  ;;  %v5531_v37 = vperm.slane %v11811_v14, 1  ;;  %v6198_v14 = vld [vmem:[%s12169_s9 + $0xb0] sm:$0xff] }
 0x775   :  { %6140 = vmatpush.msrb.mxu2 %v5483_v3  ;;  %6159 = vmatpush.msrb.mxu3 %v5517_v46  ;;  %v6186_v3 = vld [vmem:[%s12169_s9 + $0x50] sm:$0xff]  ;;  %v6185_v46 = vld [vmem:[%s12169_s9 + $0x48] sm:$0xff]  ;;  %v6199_v63 = vld [vmem:[%s12169_s9 + $0xb8] sm:$0xff] }
 0x776   :  { %6101 = vmatpush.msrb.mxu0 %v5417_v28  ;;  %6120 = vmatpush.msrb.mxu1 %v5451_v21  ;;  %v5672_v16 = vadd.f32 %v5671_v58, %v5652_v23  ;;  %v5751_v2 = vpop.f32.mrf.mxu2  ;;  %v6184_v28 = vld [vmem:[%s12169_s9 + $0x40] sm:$0xff]  ;;  %v6197_v23 = vld [vmem:[%s12169_s9 + $0xa8] sm:$0xff] }
 0x777   :  { %6141 = vmatpush.msrb.mxu2 %v5481_v10  ;;  %6160 = vmatpush.msrb.mxu3 %v5515_v26  ;;  %v6183_v26 = vld [vmem:[%s12169_s9 + $0x38] sm:$0xff] }
 0x778   :  { %6102 = vmatpush.msrb.mxu0 %v5415_v60  ;;  %6121 = vmatpush.msrb.mxu1 %v5449_v6  ;;  %v5692_v59 = vadd.f32 %v5691_v1, %v5672_v16  ;;  %v6182_v6 = vld [vmem:[%s12169_s9 + $0x30] sm:$0xff]  ;;  %v6193_v16 = vld [vmem:[%s12169_s9 + $0x88] sm:$0xff]  ;;  %v6192_v1 = vld [vmem:[%s12169_s9 + $0x80] sm:$0xff] }
 0x779   :  { %6142 = vmatpush.msrb.mxu2 %v5479_v62  ;;  %6161 = vmatpush.msrb.mxu3 %v5513_v42  ;;  %v5711_v35 = vpop.f32.mrf.mxu0  ;;  %v5771_v61 = vpop.f32.mrf.mxu3  ;;  %v6181_v62 = vld [vmem:[%s12169_s9 + $0x28] sm:$0xff] }
 0x77a   :  { %6103 = vmatpush.msrb.mxu0 %v5413_v45  ;;  %6122 = vmatpush.msrb.mxu1 %v5447_v4  ;;  %v6180_v45 = vld [vmem:[%s12169_s9 + $0x20] sm:$0xff] }
 0x77b   :  { %6143 = vmatpush.msrb.mxu2 %v5477_v29  ;;  %6162 = vmatpush.msrb.mxu3 %v5511_v12  ;;  %v6179_v29 = vld [vmem:[%s12169_s9 + $0x18] sm:$0xff] }
 0x77c   :  { %6104 = vmatpush.msrb.mxu0 %v5411_v9  ;;  %6123 = vmatpush.msrb.mxu1 %v5445_v24  ;;  %v6178_v9 = vld [vmem:[%s12169_s9 + $0x10] sm:$0xff] }
 0x77d   :  { %6144 = vmatpush.msrb.mxu2 %v5475_v51  ;;  %6163 = vmatpush.msrb.mxu3 %v5509_v22  ;;  %v6176_v51 = vld [vmem:[%s12169_s9] sm:$0xff] }
 0x77e   :  { %6105 = vmatpush.msrb.mxu0 %v5409_v34  ;;  %6124 = vmatpush.msrb.mxu1 %v5443_v25  ;;  %v5811_v32 = vpop.f32.mrf.mxu1  ;;  %v6206_v34 = vld [vmem:[%s12169_s9 + $0xf0] sm:$0xff]  ;;  %v6205_v25 = vld [vmem:[%s12169_s9 + $0xe8] sm:$0xff] }
 0x77f   :  { %6145 = vmatpush.msrb.mxu2 %v5473_v57  ;;  %6164 = vmatpush.msrb.mxu3 %v5507_v41  ;;  %v6204_v57 = vld [vmem:[%s12169_s9 + $0xe0] sm:$0xff]  ;;  %v6203_v41 = vld [vmem:[%s12169_s9 + $0xd8] sm:$0xff] }
 0x780   :  { %6106 = vmatpush.msrb.mxu0 %v5407_v50  ;;  %6125 = vmatpush.msrb.mxu1 %v5441_v8  ;;  %v6202_v50 = vld [vmem:[%s12169_s9 + $0xd0] sm:$0xff]  ;;  %v6201_v8 = vld [vmem:[%s12169_s9 + $0xc8] sm:$0xff] }
 0x781   :  { %6146 = vmatpush.msrb.mxu2 %v5471_v20  ;;  %6165 = vmatpush.msrb.mxu3 %v5505_v0  ;;  %v5791_v21 = vpop.f32.mrf.mxu0  ;;  %v5831_v42 = vpop.f32.mrf.mxu2  ;;  %v6200_v0 = vld [vmem:[%s12169_s9 + $0xc0] sm:$0xff] }
 0x782   :  { %6107 = vmatpush.msrb.mxu0 %v5405_v43  ;;  %6126 = vmatpush.msrb.mxu1 %v5439_v27 }
 0x783   :  { %6147 = vmatpush.msrb.mxu2 %v5469_v36  ;;  %6166 = vmatpush.msrb.mxu3 %v5503_v56 }
 0x784   :  { %6108 = vmatpush.msrb.mxu0 %v5403_v18  ;;  %6127 = vmatpush.msrb.mxu1 %v5437_v38 }
 0x785   :  { %6148 = vmatpush.msrb.mxu2 %v5467_v39  ;;  %6167 = vmatpush.msrb.mxu3 %v5501_v19  ;;  %v5851_v12 = vpop.f32.mrf.mxu3  ;;  %v6196_v19 = vld [vmem:[%s12169_s9 + $0xa0] sm:$0xff] }
 0x786   :  { %6109 = vmatpush.msrb.mxu0 %v5401_v54  ;;  %6128 = vmatpush.msrb.mxu1 %v5435_v49  ;;  %v6195_v54 = vld [vmem:[%s12169_s9 + $0x98] sm:$0xff] }
 0x787   :  { %6149 = vmatpush.msrb.mxu2 %v5465_v55  ;;  %6168 = vmatpush.msrb.mxu3 %v5499_v13  ;;  %v6194_v13 = vld [vmem:[%s12169_s9 + $0x90] sm:$0xff] }
 0x788   :  { %6110 = vmatmul.f32.vlgmr.msrb.gmra.mxu0 %v11195_v31  ;;  %6150 = vmatmul.f32.vlgmr.msrb.gmra.mxu2 %v11198_v11  ;;  %v5712_v31 = vadd.f32 %v5711_v35, %v5692_v59  ;;  %v6188_v11 = vld [vmem:[%s12169_s9 + $0x60] sm:$0xff] }
 0x789   :  { %6212 = vmatpush.msra.mxu0 %v6191_v40  ;;  %6129 = vmatpush.msrb.mxu1 %v5433_v17 }
 0x78a   :  { %6169 = vmatpush.msrb.mxu3 %v5497_v48  ;;  %6130 = vmatmul.f32.vlgmr.msrb.gmra.mxu1 %v11215_v5  ;;  %v5732_v5 = vadd.f32 %v5731_v15, %v5712_v31 }
 0x78b   :  { %6170 = vmatmul.f32.vlgmr.msrb.gmra.mxu3 %v11218_v33  ;;  %6213 = vmatpush.msra.mxu0 %v6190_v53 }
 0x78c   :  { %v5752_v33 = vadd.f32 %v5751_v2, %v5732_v5  ;;  %6232 = vmatpush.msra.mxu1 %v6207_v30  ;;  %v6254_v30 = vld [vmem:[%s12171_s11 + $0x8] sm:$0xff] }
 0x78d   :  { %6214 = vmatpush.msra.mxu0 %v6189_v44 }
 0x78e   :  { %v5772_v10 = vadd.f32 %v5771_v61, %v5752_v33  ;;  %6233 = vmatpush.msra.mxu1 %v6206_v34  ;;  %v6267_v61 = vld [vmem:[%s12171_s11 + $0x70] sm:$0xff]  ;;  %v6253_v34 = vld [vmem:[%s12171_s11] sm:$0xff] }
 0x78f   :  { %6215 = vmatpush.msra.mxu0 %v6188_v11 }
 0x790   :  { %v5792_v60 = vadd.f32 %v5791_v21, %v5772_v10  ;;  %6234 = vmatpush.msra.mxu1 %v6205_v25  ;;  %v6266_v21 = vld [vmem:[%s12171_s11 + $0x68] sm:$0xff]  ;;  %v7419_v25 = vld [vmem:[%s12170_s10] ss:$0 sm:$0xff] }
 0x791   :  { %6216 = vmatpush.msra.mxu0 %v6187_v7 }
 0x792   :  { %v5812_v47 = vadd.f32 %v5811_v32, %v5792_v60  ;;  %6235 = vmatpush.msra.mxu1 %v6204_v57  ;;  %v6264_v32 = vld [vmem:[%s12171_s11 + $0x58] sm:$0xff] }
 0x793   :  { %6217 = vmatpush.msra.mxu0 %v6186_v3 }
 0x794   :  { %v5832_v4 = vadd.f32 %v5831_v42, %v5812_v47  ;;  %6236 = vmatpush.msra.mxu1 %v6203_v41  ;;  %v6263_v42 = vld [vmem:[%s12171_s11 + $0x50] sm:$0xff] }
 0x795   :  { %6218 = vmatpush.msra.mxu0 %v6185_v46  ;;  %v6268_v46 = vld [vmem:[%s12171_s11 + $0x78] sm:$0xff] }
 0x796   :  { %v5852_v24 = vadd.f32 %v5851_v12, %v5832_v4  ;;  %6237 = vmatpush.msra.mxu1 %v6202_v50  ;;  %6273 = vmatpush.msra.mxu2 %v6268_v46  ;;  %v6260_v12 = vld [vmem:[%s12171_s11 + $0x38] sm:$0xff] }
 0x797   :  { %6219 = vmatpush.msra.mxu0 %v6184_v28 }
 0x798   :  { %v6174_v22 = vmax.f32 %v5852_v24, 0.0  ;;  %6238 = vmatpush.msra.mxu1 %v6201_v8  ;;  %6274 = vmatpush.msra.mxu2 %v6267_v61  ;;  %v6258_v24 = vld [vmem:[%s12171_s11 + $0x28] sm:$0xff] }
 0x799   :  { %6220 = vmatpush.msra.mxu0 %v6183_v26  ;;  %v6265_v26 = vld [vmem:[%s12171_s11 + $0x60] sm:$0xff] }
 0x79a   :  { %6239 = vmatpush.msra.mxu1 %v6200_v0  ;;  %6275 = vmatpush.msra.mxu2 %v6266_v21 }
 0x79b   :  { %6221 = vmatpush.msra.mxu0 %v6182_v6 }
 0x79c   :  { %6240 = vmatpush.msra.mxu1 %v6199_v63  ;;  %6276 = vmatpush.msra.mxu2 %v6265_v26 }
 0x79d   :  { %6222 = vmatpush.msra.mxu0 %v6181_v62 }
 0x79e   :  { %6241 = vmatpush.msra.mxu1 %v6198_v14  ;;  %6277 = vmatpush.msra.mxu2 %v6264_v32 }
 0x79f   :  { %6223 = vmatpush.msra.mxu0 %v6180_v45  ;;  %v6262_v45 = vld [vmem:[%s12171_s11 + $0x48] sm:$0xff] }
 0x7a0   :  { %6242 = vmatpush.msra.mxu1 %v6197_v23  ;;  %6278 = vmatpush.msra.mxu2 %v6263_v42 }
 0x7a1   :  { %6224 = vmatpush.msra.mxu0 %v6179_v29  ;;  %v6261_v29 = vld [vmem:[%s12171_s11 + $0x40] sm:$0xff] }
 0x7a2   :  { %6243 = vmatpush.msra.mxu1 %v6196_v19  ;;  %6279 = vmatpush.msra.mxu2 %v6262_v45 }
 0x7a3   :  { %6225 = vmatpush.msra.mxu0 %v6178_v9  ;;  %v6259_v9 = vld [vmem:[%s12171_s11 + $0x30] sm:$0xff] }
 0x7a4   :  { %6244 = vmatpush.msra.mxu1 %v6195_v54  ;;  %6280 = vmatpush.msra.mxu2 %v6261_v29 }
 0x7a5   :  { %6226 = vmatpush.msra.mxu0 %v6177_v52  ;;  %v6257_v52 = vld [vmem:[%s12171_s11 + $0x20] sm:$0xff] }
 0x7a6   :  { %6245 = vmatpush.msra.mxu1 %v6194_v13  ;;  %6281 = vmatpush.msra.mxu2 %v6260_v12 }
 0x7a7   :  { %6227 = vmatpush.msra.mxu0 %v6176_v51  ;;  %v6256_v51 = vld [vmem:[%s12171_s11 + $0x18] sm:$0xff] }
 0x7a8   :  { %6228 = vmatmul.f32.vlgmr.msra.gmra.mxu0 %v6174_v22  ;;  %6246 = vmatpush.msra.mxu1 %v6193_v16  ;;  %v6255_v22 = vld [vmem:[%s12171_s11 + $0x10] sm:$0xff]  ;;  %s6301_s11 = sshll.u32 %s12173_s13, 4  ;;  %s6302_s11 = int_to_ptr.hbm [resolvable:$true] %s6301_s11 }
 0x7a9   :  { %6282 = vmatpush.msra.mxu2 %v6259_v9 }
 0x7aa   :  { %6247 = vmatpush.msra.mxu1 %v6192_v1 }
 0x7ab   :  { %6283 = vmatpush.msra.mxu2 %v6258_v24 }
 0x7ad   :  { %6284 = vmatpush.msra.mxu2 %v6257_v52 }
 0x7af   :  { %6285 = vmatpush.msra.mxu2 %v6256_v51 }
 0x7b1   :  { %6286 = vmatpush.msra.mxu2 %v6255_v22 }
 0x7b3   :  { %6287 = vmatpush.msra.mxu2 %v6254_v30 }
 0x7b5   :  { %6288 = vmatpush.msra.mxu2 %v6253_v34 }
 0x7bf   :  { %v5871_v20 = vpop.f32.mrf.mxu0 }
 0x7c0   :  { %v5872_v43 = vadd.f32 %v5871_v20, %v5531_v37  ;;  %v7420_v20 = vld [vmem:[%s12172_s12] ss:$0 sm:$0xff] }
 0x7c1   :  { %v5891_v27 = vpop.f32.mrf.mxu1 }
 0x7c2   :  { %v5892_v36 = vadd.f32 %v5891_v27, %v5872_v43 }
 0x7c4   :  { %v5911_v56 = vpop.f32.mrf.mxu2 }
 0x7c5   :  { %v5912_v18 = vadd.f32 %v5911_v56, %v5892_v36 }
 0x7c8   :  { %v5931_v38 = vpop.f32.mrf.mxu3 }
 0x7c9   :  { %v5932_v39 = vadd.f32 %v5931_v38, %v5912_v18 }
 0x7cb   :  { %v5951_v58 = vpop.f32.mrf.mxu0 }
 0x7cc   :  { %v5952_v49 = vadd.f32 %v5951_v58, %v5932_v39 }
 0x7ce   :  { %v5971_v55 = vpop.f32.mrf.mxu1 }
 0x7cf   :  { %v5972_v40 = vadd.f32 %v5971_v55, %v5952_v49  ;;  %v5991_v17 = vpop.f32.mrf.mxu2 }
 0x7d1   :  { %v5992_v48 = vadd.f32 %v5991_v17, %v5972_v40 }
 0x7d2   :  { %v6011_v53 = vpop.f32.mrf.mxu3 }
 0x7d3   :  { %v6012_v59 = vadd.f32 %v6011_v53, %v5992_v48 }
 0x7e3   :  { %v6031_v35 = vpop.f32.mrf.mxu0 }
 0x7e4   :  { %v6032_v44 = vadd.f32 %v6031_v35, %v6012_v59 }
 0x7e6   :  { %v6051_v31 = vpop.f32.mrf.mxu1 }
 0x7e7   :  { %v6052_v15 = vadd.f32 %v6051_v31, %v6032_v44 }
 0x7e9   :  { %v6071_v11 = vpop.f32.mrf.mxu2 }
 0x7ea   :  { %v6072_v7 = vadd.f32 %v6071_v11, %v6052_v15 }
 0x7ec   :  { %v6091_v2 = vpop.f32.mrf.mxu3 }
 0x7ed   :  { %v6092_v5 = vadd.f32 %v6091_v2, %v6072_v7 }
 0x805   :  { %v6111_v3 = vpop.f32.mrf.mxu0 }
 0x806   :  { %v6112_v33 = vadd.f32 %v6111_v3, %v6092_v5 }
 0x807   :  { %v6131_v28 = vpop.f32.mrf.mxu1 }
 0x808   :  { %v6132_v10 = vadd.f32 %v6131_v28, %v6112_v33 }
 0x80b   :  { %v6151_v60 = vpop.f32.mrf.mxu2 }
 0x80c   :  { %v6152_v6 = vadd.f32 %v6151_v60, %v6132_v10 }
 0x80e   :  { %v6171_v62 = vpop.f32.mrf.mxu3 }
 0x80f   :  { %v6172_v47 = vadd.f32 %v6171_v62, %v6152_v6 }
 0x811   :  { %v6175_v4 = vmax.f32 %v6172_v47, 0.0 }
 0x813   :  { %6248 = vmatmul.f32.vlgmr.msra.gmra.mxu1 %v6175_v4 }
 0x825   :  { %v6229_v57 = vpop.f32.mrf.mxu0 }
 0x826   :  { %v6230_v41 = vadd.f32 %v7419_v25, %v6229_v57 }
 0x890   :  { %v6249_v50 = vpop.f32.mrf.mxu1 }
 0x891   :  { %v6250_v8 = vadd.f32 %v6249_v50, %v6230_v41 }
 0x893   :  { %v6252_v37 = vmax.f32 %v6250_v8, 0.0 }
 0x895   :  { %6289 = vmatmul.f32.vlgmr.msra.gmra.mxu2 %v6252_v37 }
 0x918   :  { %v6290_v0 = vpop.f32.mrf.mxu2 }
 0x919   :  { %v6291_v63 = vadd.f32 %v7420_v20, %v6290_v0 }
 0x91b   :  { %6293 = vst [vmem:[#allocation5] sm:$0x3] %v6291_v63 }
 0x91c   :  { %6304 = dma.vmem_to_hbm [thread:$0]  %s6300_s26, 32, %s6302_s11, [#allocation6]  }
 0x91d   :  { %7457 = dma.done.wait [#allocation6], 32  }
 0x91e   :  { %7458 = vsyncadd [#allocation6], 4294967264 }
 0x91f   :  { %6309 = vsyncpa [#allocation6], 1 }

</bundles_post_ra>
